<compile_context>
chip_gen: v7x
topology: tpu7x:2x2x1
jax: 0.10.0
libtpu: 0.0.40
codegen_flags: <defaults>
</compile_context>

<pallas_src>
import math
import functools

import jax
import jax.numpy as jnp
from jax.experimental import pallas as pl
from jax.experimental.pallas import tpu as pltpu

EMB_DIM = 64
VOCAB_SIZE = 12
NUM_HEADS = 1
HEAD_DIM = EMB_DIM // NUM_HEADS
FFN_DIM = 2048            # PyTorch nn.Transformer default dim_feedforward
NUM_ENC_LAYERS = 1
NUM_DEC_LAYERS = 25
LN_EPS = 1e-5
PE_MAX_LEN = 20
ATTN_SCALE = 1.0 / math.sqrt(HEAD_DIM)

_VMEM = pl.BlockSpec(memory_space=pltpu.MemorySpace.VMEM)


# --------------------- in-kernel helpers (operate on values) ----------------
def _dense(x, w, b, relu=False):
    """y = x @ w.T + b   (torch.nn.Linear semantics; w stored as (out, in))."""
    y = jax.lax.dot_general(x, w, (((1,), (1,)), ((), ())),
                            preferred_element_type=jnp.float32)
    y = y + b
    if relu:
        y = jnp.maximum(y, 0.0)
    return y


def _layernorm(z, g, b):
    mean = jnp.mean(z, axis=-1, keepdims=True)
    zc = z - mean
    var = jnp.mean(zc * zc, axis=-1, keepdims=True)    # biased, like torch
    return zc * jax.lax.rsqrt(var + LN_EPS) * g + b


def _attention(q, k, v, mask):
    """Single-head attention on flattened (rows, E) slabs.

    Batches are separated by `mask`: -inf for cross-batch (and causally
    masked) pairs, 0 otherwise, so one 2-D matmul replaces the batched
    attention exactly (masked entries get probability 0)."""
    s = jax.lax.dot_general(q, k, (((1,), (1,)), ((), ())),
                            preferred_element_type=jnp.float32)
    s = s * ATTN_SCALE + mask
    s = s - jnp.max(s, axis=-1, keepdims=True)          # stable softmax
    p = jnp.exp(s)
    p = p / jnp.sum(p, axis=-1, keepdims=True)
    return jnp.dot(p, v, preferred_element_type=jnp.float32)


def _qkv(q_src, kv_src, in_w_ref, in_b_ref):
    """torch in_proj: weight rows [0:E)=Q, [E:2E)=K, [2E:3E)=V; bias (3, E)."""
    E = EMB_DIM
    q = _dense(q_src, in_w_ref[0:E, :], in_b_ref[0:1, :])
    k = _dense(kv_src, in_w_ref[E:2 * E, :], in_b_ref[1:2, :])
    v = _dense(kv_src, in_w_ref[2 * E:3 * E, :], in_b_ref[2:3, :])
    return q, k, v


# ------------------------------ encoder kernel -------------------------------
def _encoder_kernel(src_ref, emask_ref,
                    in_w_ref, in_b_ref, out_w_ref, out_b_ref,
                    n1_g_ref, n1_b_ref, n2_g_ref, n2_b_ref,
                    w1_ref, b1_ref, w2_ref, b2_ref,
                    ln_g_ref, ln_b_ref,
                    mem_ref):
    x = src_ref[...]
    # self-attention + add & norm
    q, k, v = _qkv(x, x, in_w_ref, in_b_ref)
    sa = _attention(q, k, v, emask_ref[...])
    sa = _dense(sa, out_w_ref[...], out_b_ref[...])
    x = _layernorm(x + sa, n1_g_ref[...], n1_b_ref[...])
    # feed-forward + add & norm (intermediate stays in VMEM)
    h = _dense(x, w1_ref[...], b1_ref[...], relu=True)
    ff = _dense(h, w2_ref[...], b2_ref[...])
    x = _layernorm(x + ff, n2_g_ref[...], n2_b_ref[...])
    # encoder final LayerNorm (nn.Transformer default encoder norm)
    mem_ref[...] = _layernorm(x, ln_g_ref[...], ln_b_ref[...])


# --------------------- fused 25-layer decoder-stack kernel -------------------
def _decoder_stack_kernel(tgt_ref, mem_ref, smask_ref, xmask_ref,
                          sa_in_w_ref, sa_in_b_ref, sa_out_w_ref, sa_out_b_ref,
                          ca_in_w_ref, ca_in_b_ref, ca_out_w_ref, ca_out_b_ref,
                          n1_g_ref, n1_b_ref, n2_g_ref, n2_b_ref,
                          n3_g_ref, n3_b_ref,
                          w1_ref, b1_ref, w2_ref, b2_ref,
                          ln_g_ref, ln_b_ref, ow_ref, ob_ref,
                          logits_ref,
                          x_vmem):
    layer = pl.program_id(0)

    @pl.when(layer == 0)
    def _():
        x_vmem[...] = tgt_ref[...]          # load activation once

    x = x_vmem[...]

    # ---- masked self-attention + add & norm ----
    q, k, v = _qkv(x, x, sa_in_w_ref, sa_in_b_ref)
    sa = _attention(q, k, v, smask_ref[...])
    sa = _dense(sa, sa_out_w_ref[...], sa_out_b_ref[...])
    x = _layernorm(x + sa, n1_g_ref[...], n1_b_ref[...])

    # ---- cross-attention over encoder memory + add & norm ----
    q, k, v = _qkv(x, mem_ref[...], ca_in_w_ref, ca_in_b_ref)
    ca = _attention(q, k, v, xmask_ref[...])
    ca = _dense(ca, ca_out_w_ref[...], ca_out_b_ref[...])
    x = _layernorm(x + ca, n2_g_ref[...], n2_b_ref[...])

    # ---- feed-forward (linear + relu + linear, all in VMEM) + add & norm ----
    h = _dense(x, w1_ref[...], b1_ref[...], relu=True)
    ff = _dense(h, w2_ref[...], b2_ref[...])
    x = _layernorm(x + ff, n3_g_ref[...], n3_b_ref[...])

    x_vmem[...] = x                          # carry activation to next layer

    # ---- final decoder norm + vocab projection, only on the last layer ----
    @pl.when(layer == pl.num_programs(0) - 1)
    def _():
        xn = _layernorm(x, ln_g_ref[...], ln_b_ref[...])
        logits_ref[...] = _dense(xn, ow_ref[...], ob_ref[...])


# ------------------------------- call wrappers -------------------------------
def _encode(p, src_flat, emask):
    m = src_flat.shape[0]
    return pl.pallas_call(
        _encoder_kernel,
        out_shape=jax.ShapeDtypeStruct((m, EMB_DIM), jnp.float32),
        in_specs=[_VMEM] * 16,
        out_specs=_VMEM,
    )(src_flat, emask,
      p['in_w'], p['in_b'], p['out_w'], p['out_b'],
      p['n1_g'], p['n1_b'], p['n2_g'], p['n2_b'],
      p['w1'], p['b1'], p['w2'], p['b2'],
      p['ln_g'], p['ln_b'])


def _decode(p, tgt_flat, mem_flat, smask, xmask):
    mt, E = tgt_flat.shape
    ms = mem_flat.shape[0]
    L = p['sa_in_w'].shape[0]

    def per_layer(*tail):            # stacked weight, one layer per grid step
        return pl.BlockSpec((None,) + tail, lambda l: (l, 0, 0))

    def shared(*shape):              # constant across the layer grid
        return pl.BlockSpec(shape, lambda l: (0, 0))

    grid_spec = pltpu.PrefetchScalarGridSpec(
        num_scalar_prefetch=0,
        grid=(L,),
        in_specs=[
            shared(mt, E),                      # tgt activation (layer 0 init)
            shared(ms, E),                      # encoder memory
            shared(mt, mt),                     # self-attn mask (causal+batch)
            shared(mt, ms),                     # cross-attn mask (batch only)
            per_layer(3 * E, E),                # sa_in_w
            per_layer(3, E),                    # sa_in_b
            per_layer(E, E),                    # sa_out_w
            per_layer(1, E),                    # sa_out_b
            per_layer(3 * E, E),                # ca_in_w
            per_layer(3, E),                    # ca_in_b
            per_layer(E, E),                    # ca_out_w
            per_layer(1, E),                    # ca_out_b
            per_layer(1, E), per_layer(1, E),   # norm1 g/b
            per_layer(1, E), per_layer(1, E),   # norm2 g/b
            per_layer(1, E), per_layer(1, E),   # norm3 g/b
            per_layer(FFN_DIM, E),              # ffn w1
            per_layer(1, FFN_DIM),              # ffn b1
            per_layer(E, FFN_DIM),              # ffn w2
            per_layer(1, E),                    # ffn b2
            shared(1, E), shared(1, E),         # decoder final norm g/b
            shared(VOCAB_SIZE, E),              # output projection weight
            shared(1, VOCAB_SIZE),              # output projection bias
        ],
        out_specs=pl.BlockSpec((mt, VOCAB_SIZE), lambda l: (0, 0)),
        scratch_shapes=[pltpu.VMEM((mt, E), jnp.float32)],
    )

    return pl.pallas_call(
        _decoder_stack_kernel,
        out_shape=jax.ShapeDtypeStruct((mt, VOCAB_SIZE), jnp.float32),
        grid_spec=grid_spec,
        compiler_params=pltpu.CompilerParams(
            dimension_semantics=("arbitrary",)),   # layer loop is sequential
    )(tgt_flat, mem_flat, smask, xmask,
      p['sa_in_w'], p['sa_in_b'], p['sa_out_w'], p['sa_out_b'],
      p['ca_in_w'], p['ca_in_b'], p['ca_out_w'], p['ca_out_b'],
      p['n1_g'], p['n1_b'], p['n2_g'], p['n2_b'], p['n3_g'], p['n3_b'],
      p['w1'], p['b1'], p['w2'], p['b2'],
      p['ln_g'], p['ln_b'], p['out_w'], p['out_b'])


# --------------------------------- forward -----------------------------------
def _block_diag_mask(B, Sq, Sk, base=None):
    """(B*Sq, B*Sk) additive mask: -inf across batches, `base` within batch."""
    bq = jnp.repeat(jnp.arange(B), Sq)
    bk = jnp.repeat(jnp.arange(B), Sk)
    same = bq[:, None] == bk[None, :]
    if base is None:
        within = jnp.zeros((B * Sq, B * Sk), jnp.float32)
    else:
        within = jnp.tile(base.astype(jnp.float32), (B, B))
    return jnp.where(same, within, -jnp.inf)


def transformer_forward(params, src_tokens, tgt_tokens, tgt_mask):
    B, Ss = src_tokens.shape
    _, St = tgt_tokens.shape
    E = EMB_DIM
    sqrt_d = math.sqrt(E)

    # Embedding gather + scale + positional encoding kept in plain-JAX glue.
    # TODO(synk): embedding table gather stays outside the kernel (tiny).
    src = jnp.take(params['embedding'], src_tokens, axis=0) * sqrt_d   # (B,Ss,E)
    tgt = jnp.take(params['embedding'], tgt_tokens, axis=0) * sqrt_d   # (B,St,E)
    # Faithful to the reference module: only tgt gets the positional encoding.
    tgt = tgt + params['pe'][:St][None, :, :]
    # dropout_p = 0.0 -> dropout is the identity.

    src_flat = src.reshape(B * Ss, E)       # batch-major rows
    tgt_flat = tgt.reshape(B * St, E)

    enc_mask = _block_diag_mask(B, Ss, Ss)
    self_mask = _block_diag_mask(B, St, St, base=tgt_mask)
    cross_mask = _block_diag_mask(B, St, Ss)

    memory = _encode(params['enc'], src_flat, enc_mask)
    logits = _decode(params['dec'], tgt_flat, memory, self_mask, cross_mask)

    # back to PyTorch layout (seq, batch, vocab)
    return logits.reshape(B, St, VOCAB_SIZE).transpose(1, 0, 2)


def get_tgt_mask(size):
    tril = jnp.tril(jnp.ones((size, size), jnp.float32)) == 1
    return jnp.where(tril, 0.0, float('-inf')).astype(jnp.float32)


# ------------------------------- parameters ----------------------------------
def init_params(key):
    keys = iter(jax.random.split(key, 64))

    def w(shape, scale=0.02):
        return jax.random.normal(next(keys), shape, jnp.float32) * scale

    L, E, F, V = NUM_DEC_LAYERS, EMB_DIM, FFN_DIM, VOCAB_SIZE

    def ones(shape):
        return jnp.ones(shape, jnp.float32)

    def zeros(shape):
        return jnp.zeros(shape, jnp.float32)

    # PositionalEncoding buffer (torch-style), stored as (max_len, d_model)
    position = jnp.arange(PE_MAX_LEN, dtype=jnp.float32)[:, None]
    div_term = jnp.exp(jnp.arange(0, E, 2, dtype=jnp.float32)
                       * (-math.log(10000.0) / E))
    pe = jnp.zeros((PE_MAX_LEN, E), jnp.float32)
    pe = pe.at[:, 0::2].set(jnp.sin(position * div_term))
    pe = pe.at[:, 1::2].set(jnp.cos(position * div_term))

    enc = dict(
        in_w=w((3 * E, E)), in_b=zeros((3, E)),
        out_w=w((E, E)), out_b=zeros((1, E)),
        n1_g=ones((1, E)), n1_b=zeros((1, E)),
        n2_g=ones((1, E)), n2_b=zeros((1, E)),
        w1=w((F, E)), b1=zeros((1, F)),
        w2=w((E, F)), b2=zeros((1, E)),
        ln_g=ones((1, E)), ln_b=zeros((1, E)),          # encoder final norm
    )
    dec = dict(
        sa_in_w=w((L, 3 * E, E)), sa_in_b=zeros((L, 3, E)),
        sa_out_w=w((L, E, E)), sa_out_b=zeros((L, 1, E)),
        ca_in_w=w((L, 3 * E, E)), ca_in_b=zeros((L, 3, E)),
        ca_out_w=w((L, E, E)), ca_out_b=zeros((L, 1, E)),
        n1_g=ones((L, 1, E)), n1_b=zeros((L, 1, E)),
        n2_g=ones((L, 1, E)), n2_b=zeros((L, 1, E)),
        n3_g=ones((L, 1, E)), n3_b=zeros((L, 1, E)),
        w1=w((L, F, E)), b1=zeros((L, 1, F)),
        w2=w((L, E, F)), b2=zeros((L, 1, E)),
        ln_g=ones((1, E)), ln_b=zeros((1, E)),          # decoder final norm
        out_w=w((V, E)), out_b=zeros((1, V)),           # vocab projection
    )
    return dict(embedding=w((V, E), 1.0), pe=pe, enc=enc, dec=dec)


# ---------------------------------- main --------------------------------------
if __name__ == "__main__":
    key = jax.random.PRNGKey(0)
    pkey, skey, tkey = jax.random.split(key, 3)
    params = init_params(pkey)

    B, SRC_LEN, TGT_LEN = 2, 8, 7          # tgt is y[:, :-1]-style (one shorter)
    src_tokens = jax.random.randint(skey, (B, SRC_LEN), 0, VOCAB_SIZE, jnp.int32)
    tgt_tokens = jax.random.randint(tkey, (B, TGT_LEN), 0, VOCAB_SIZE, jnp.int32)
    tgt_mask = get_tgt_mask(TGT_LEN)

    fwd = jax.jit(transformer_forward)
    out = fwd(params, src_tokens, tgt_tokens, tgt_mask)
    out = jax.block_until_ready(out)
    assert out.shape == (TGT_LEN, B, VOCAB_SIZE) and out.dtype == jnp.float32
    assert bool(jnp.all(jnp.isfinite(out)))
    print("KERNEL_OK")
</pallas_src>

<mosaic_0001>
module attributes {stable_mosaic.version = 11 : i64} {
  func.func @_encoder_kernel(%arg0: memref<16x64xf32, #tpu.memory_space<vmem>>, %arg1: memref<16x16xf32, #tpu.memory_space<vmem>>, %arg2: memref<192x64xf32, #tpu.memory_space<vmem>>, %arg3: memref<3x64xf32, #tpu.memory_space<vmem>>, %arg4: memref<64x64xf32, #tpu.memory_space<vmem>>, %arg5: memref<1x64xf32, #tpu.memory_space<vmem>>, %arg6: memref<1x64xf32, #tpu.memory_space<vmem>>, %arg7: memref<1x64xf32, #tpu.memory_space<vmem>>, %arg8: memref<1x64xf32, #tpu.memory_space<vmem>>, %arg9: memref<1x64xf32, #tpu.memory_space<vmem>>, %arg10: memref<2048x64xf32, #tpu.memory_space<vmem>>, %arg11: memref<1x2048xf32, #tpu.memory_space<vmem>>, %arg12: memref<64x2048xf32, #tpu.memory_space<vmem>>, %arg13: memref<1x64xf32, #tpu.memory_space<vmem>>, %arg14: memref<1x64xf32, #tpu.memory_space<vmem>>, %arg15: memref<1x64xf32, #tpu.memory_space<vmem>>, %arg16: memref<16x64xf32, #tpu.memory_space<vmem>>) attributes {dimension_semantics = [], scalar_prefetch = 0 : i64, scratch_operands = 0 : i64, tpu.core_type = #tpu.core_type<tc>} {
    %c0 = arith.constant 0 : index
    %c0_0 = arith.constant 0 : index
    %0 = vector.load %arg0[%c0, %c0_0] : memref<16x64xf32, #tpu.memory_space<vmem>>, vector<16x64xf32>
    %c0_1 = arith.constant 0 : index
    %c0_2 = arith.constant 0 : index
    %1 = vector.load %arg2[%c0_1, %c0_2] : memref<192x64xf32, #tpu.memory_space<vmem>>, vector<64x64xf32>
    %c0_3 = arith.constant 0 : index
    %c0_4 = arith.constant 0 : index
    %2 = vector.load %arg3[%c0_3, %c0_4] : memref<3x64xf32, #tpu.memory_space<vmem>>, vector<1x64xf32>
    %cst = arith.constant dense<0.000000e+00> : vector<16x64xf32>
    %3 = tpu.matmul %0, %1, %cst {dimension_numbers = #tpu.dot_dimension_numbers<[1], [1], [0], [0], [0, 0, 1, 0], [], []>} : vector<16x64xf32>, vector<64x64xf32>, vector<16x64xf32> -> vector<16x64xf32>
    %4 = vector.broadcast %2 : vector<1x64xf32> to vector<16x64xf32>
    %5 = arith.addf %3, %4 : vector<16x64xf32>
    %c64 = arith.constant 64 : index
    %c0_5 = arith.constant 0 : index
    %6 = vector.load %arg2[%c64, %c0_5] : memref<192x64xf32, #tpu.memory_space<vmem>>, vector<64x64xf32>
    %c1 = arith.constant 1 : index
    %c0_6 = arith.constant 0 : index
    %7 = vector.load %arg3[%c1, %c0_6] : memref<3x64xf32, #tpu.memory_space<vmem>>, vector<1x64xf32>
    %cst_7 = arith.constant dense<0.000000e+00> : vector<16x64xf32>
    %8 = tpu.matmul %0, %6, %cst_7 {dimension_numbers = #tpu.dot_dimension_numbers<[1], [1], [0], [0], [0, 0, 1, 0], [], []>} : vector<16x64xf32>, vector<64x64xf32>, vector<16x64xf32> -> vector<16x64xf32>
    %9 = vector.broadcast %7 : vector<1x64xf32> to vector<16x64xf32>
    %10 = arith.addf %8, %9 : vector<16x64xf32>
    %c128 = arith.constant 128 : index
    %c0_8 = arith.constant 0 : index
    %11 = vector.load %arg2[%c128, %c0_8] : memref<192x64xf32, #tpu.memory_space<vmem>>, vector<64x64xf32>
    %c2 = arith.constant 2 : index
    %c0_9 = arith.constant 0 : index
    %12 = vector.load %arg3[%c2, %c0_9] : memref<3x64xf32, #tpu.memory_space<vmem>>, vector<1x64xf32>
    %cst_10 = arith.constant dense<0.000000e+00> : vector<16x64xf32>
    %13 = tpu.matmul %0, %11, %cst_10 {dimension_numbers = #tpu.dot_dimension_numbers<[1], [1], [0], [0], [0, 0, 1, 0], [], []>} : vector<16x64xf32>, vector<64x64xf32>, vector<16x64xf32> -> vector<16x64xf32>
    %14 = vector.broadcast %12 : vector<1x64xf32> to vector<16x64xf32>
    %15 = arith.addf %13, %14 : vector<16x64xf32>
    %c0_11 = arith.constant 0 : index
    %c0_12 = arith.constant 0 : index
    %16 = vector.load %arg1[%c0_11, %c0_12] : memref<16x16xf32, #tpu.memory_space<vmem>>, vector<16x16xf32>
    %cst_13 = arith.constant dense<0.000000e+00> : vector<16x16xf32>
    %17 = tpu.matmul %5, %10, %cst_13 {dimension_numbers = #tpu.dot_dimension_numbers<[1], [1], [0], [0], [0, 0, 1, 0], [], []>} : vector<16x64xf32>, vector<16x64xf32>, vector<16x16xf32> -> vector<16x16xf32>
    %cst_14 = arith.constant 1.250000e-01 : f32
    %18 = vector.broadcast %cst_14 : f32 to vector<16x16xf32>
    %19 = arith.mulf %17, %18 : vector<16x16xf32>
    %20 = arith.addf %19, %16 : vector<16x16xf32>
    %cst_15 = arith.constant dense<0xFF800000> : vector<16xf32>
    %21 = vector.multi_reduction <maximumf>, %20, %cst_15 [1] : vector<16x16xf32> to vector<16xf32>
    %22 = vector.shape_cast %21 : vector<16xf32> to vector<16x1xf32>
    %23 = vector.broadcast %22 : vector<16x1xf32> to vector<16x16xf32>
    %24 = arith.subf %20, %23 : vector<16x16xf32>
    %25 = math.exp %24 : vector<16x16xf32>
    %cst_16 = arith.constant dense<0.000000e+00> : vector<16xf32>
    %26 = vector.multi_reduction <add>, %25, %cst_16 [1] : vector<16x16xf32> to vector<16xf32>
    %27 = vector.shape_cast %26 : vector<16xf32> to vector<16x1xf32>
    %28 = vector.broadcast %27 : vector<16x1xf32> to vector<16x16xf32>
    %29 = arith.divf %25, %28 : vector<16x16xf32>
    %cst_17 = arith.constant dense<0.000000e+00> : vector<16x64xf32>
    %30 = tpu.matmul %29, %15, %cst_17 {dimension_numbers = #tpu.dot_dimension_numbers<[1], [0], [0], [1], [0, 0, 1, 1], [], []>} : vector<16x16xf32>, vector<16x64xf32>, vector<16x64xf32> -> vector<16x64xf32>
    %c0_18 = arith.constant 0 : index
    %c0_19 = arith.constant 0 : index
    %31 = vector.load %arg4[%c0_18, %c0_19] : memref<64x64xf32, #tpu.memory_space<vmem>>, vector<64x64xf32>
    %c0_20 = arith.constant 0 : index
    %c0_21 = arith.constant 0 : index
    %32 = vector.load %arg5[%c0_20, %c0_21] : memref<1x64xf32, #tpu.memory_space<vmem>>, vector<1x64xf32>
    %cst_22 = arith.constant dense<0.000000e+00> : vector<16x64xf32>
    %33 = tpu.matmul %30, %31, %cst_22 {dimension_numbers = #tpu.dot_dimension_numbers<[1], [1], [0], [0], [0, 0, 1, 0], [], []>} : vector<16x64xf32>, vector<64x64xf32>, vector<16x64xf32> -> vector<16x64xf32>
    %34 = vector.broadcast %32 : vector<1x64xf32> to vector<16x64xf32>
    %35 = arith.addf %33, %34 : vector<16x64xf32>
    %36 = arith.addf %0, %35 : vector<16x64xf32>
    %c0_23 = arith.constant 0 : index
    %c0_24 = arith.constant 0 : index
    %37 = vector.load %arg6[%c0_23, %c0_24] : memref<1x64xf32, #tpu.memory_space<vmem>>, vector<1x64xf32>
    %c0_25 = arith.constant 0 : index
    %c0_26 = arith.constant 0 : index
    %38 = vector.load %arg7[%c0_25, %c0_26] : memref<1x64xf32, #tpu.memory_space<vmem>>, vector<1x64xf32>
    %cst_27 = arith.constant dense<0.000000e+00> : vector<16xf32>
    %39 = vector.multi_reduction <add>, %36, %cst_27 [1] : vector<16x64xf32> to vector<16xf32>
    %40 = vector.shape_cast %39 : vector<16xf32> to vector<16x1xf32>
    %cst_28 = arith.constant 6.400000e+01 : f32
    %41 = vector.broadcast %cst_28 : f32 to vector<16x1xf32>
    %42 = arith.divf %40, %41 : vector<16x1xf32>
    %43 = vector.broadcast %42 : vector<16x1xf32> to vector<16x64xf32>
    %44 = arith.subf %36, %43 : vector<16x64xf32>
    %45 = arith.mulf %44, %44 : vector<16x64xf32>
    %cst_29 = arith.constant dense<0.000000e+00> : vector<16xf32>
    %46 = vector.multi_reduction <add>, %45, %cst_29 [1] : vector<16x64xf32> to vector<16xf32>
    %47 = vector.shape_cast %46 : vector<16xf32> to vector<16x1xf32>
    %cst_30 = arith.constant 6.400000e+01 : f32
    %48 = vector.broadcast %cst_30 : f32 to vector<16x1xf32>
    %49 = arith.divf %47, %48 : vector<16x1xf32>
    %cst_31 = arith.constant 9.99999974E-6 : f32
    %50 = vector.broadcast %cst_31 : f32 to vector<16x1xf32>
    %51 = arith.addf %49, %50 : vector<16x1xf32>
    %52 = math.rsqrt %51 : vector<16x1xf32>
    %53 = vector.broadcast %52 : vector<16x1xf32> to vector<16x64xf32>
    %54 = arith.mulf %44, %53 : vector<16x64xf32>
    %55 = vector.broadcast %37 : vector<1x64xf32> to vector<16x64xf32>
    %56 = arith.mulf %54, %55 : vector<16x64xf32>
    %57 = vector.broadcast %38 : vector<1x64xf32> to vector<16x64xf32>
    %58 = arith.addf %56, %57 : vector<16x64xf32>
    %c0_32 = arith.constant 0 : index
    %c0_33 = arith.constant 0 : index
    %59 = vector.load %arg10[%c0_32, %c0_33] : memref<2048x64xf32, #tpu.memory_space<vmem>>, vector<2048x64xf32>
    %c0_34 = arith.constant 0 : index
    %c0_35 = arith.constant 0 : index
    %60 = vector.load %arg11[%c0_34, %c0_35] : memref<1x2048xf32, #tpu.memory_space<vmem>>, vector<1x2048xf32>
    %cst_36 = arith.constant dense<0.000000e+00> : vector<16x2048xf32>
    %61 = tpu.matmul %58, %59, %cst_36 {dimension_numbers = #tpu.dot_dimension_numbers<[1], [1], [0], [0], [0, 0, 1, 0], [], []>} : vector<16x64xf32>, vector<2048x64xf32>, vector<16x2048xf32> -> vector<16x2048xf32>
    %62 = vector.broadcast %60 : vector<1x2048xf32> to vector<16x2048xf32>
    %63 = arith.addf %61, %62 : vector<16x2048xf32>
    %cst_37 = arith.constant 0.000000e+00 : f32
    %64 = vector.broadcast %cst_37 : f32 to vector<16x2048xf32>
    %65 = arith.maximumf %63, %64 : vector<16x2048xf32>
    %c0_38 = arith.constant 0 : index
    %c0_39 = arith.constant 0 : index
    %66 = vector.load %arg12[%c0_38, %c0_39] : memref<64x2048xf32, #tpu.memory_space<vmem>>, vector<64x2048xf32>
    %c0_40 = arith.constant 0 : index
    %c0_41 = arith.constant 0 : index
    %67 = vector.load %arg13[%c0_40, %c0_41] : memref<1x64xf32, #tpu.memory_space<vmem>>, vector<1x64xf32>
    %cst_42 = arith.constant dense<0.000000e+00> : vector<16x64xf32>
    %68 = tpu.matmul %65, %66, %cst_42 {dimension_numbers = #tpu.dot_dimension_numbers<[1], [1], [0], [0], [0, 0, 1, 0], [], []>} : vector<16x2048xf32>, vector<64x2048xf32>, vector<16x64xf32> -> vector<16x64xf32>
    %69 = vector.broadcast %67 : vector<1x64xf32> to vector<16x64xf32>
    %70 = arith.addf %68, %69 : vector<16x64xf32>
    %71 = arith.addf %58, %70 : vector<16x64xf32>
    %c0_43 = arith.constant 0 : index
    %c0_44 = arith.constant 0 : index
    %72 = vector.load %arg8[%c0_43, %c0_44] : memref<1x64xf32, #tpu.memory_space<vmem>>, vector<1x64xf32>
    %c0_45 = arith.constant 0 : index
    %c0_46 = arith.constant 0 : index
    %73 = vector.load %arg9[%c0_45, %c0_46] : memref<1x64xf32, #tpu.memory_space<vmem>>, vector<1x64xf32>
    %cst_47 = arith.constant dense<0.000000e+00> : vector<16xf32>
    %74 = vector.multi_reduction <add>, %71, %cst_47 [1] : vector<16x64xf32> to vector<16xf32>
    %75 = vector.shape_cast %74 : vector<16xf32> to vector<16x1xf32>
    %cst_48 = arith.constant 6.400000e+01 : f32
    %76 = vector.broadcast %cst_48 : f32 to vector<16x1xf32>
    %77 = arith.divf %75, %76 : vector<16x1xf32>
    %78 = vector.broadcast %77 : vector<16x1xf32> to vector<16x64xf32>
    %79 = arith.subf %71, %78 : vector<16x64xf32>
    %80 = arith.mulf %79, %79 : vector<16x64xf32>
    %cst_49 = arith.constant dense<0.000000e+00> : vector<16xf32>
    %81 = vector.multi_reduction <add>, %80, %cst_49 [1] : vector<16x64xf32> to vector<16xf32>
    %82 = vector.shape_cast %81 : vector<16xf32> to vector<16x1xf32>
    %cst_50 = arith.constant 6.400000e+01 : f32
    %83 = vector.broadcast %cst_50 : f32 to vector<16x1xf32>
    %84 = arith.divf %82, %83 : vector<16x1xf32>
    %cst_51 = arith.constant 9.99999974E-6 : f32
    %85 = vector.broadcast %cst_51 : f32 to vector<16x1xf32>
    %86 = arith.addf %84, %85 : vector<16x1xf32>
    %87 = math.rsqrt %86 : vector<16x1xf32>
    %88 = vector.broadcast %87 : vector<16x1xf32> to vector<16x64xf32>
    %89 = arith.mulf %79, %88 : vector<16x64xf32>
    %90 = vector.broadcast %72 : vector<1x64xf32> to vector<16x64xf32>
    %91 = arith.mulf %89, %90 : vector<16x64xf32>
    %92 = vector.broadcast %73 : vector<1x64xf32> to vector<16x64xf32>
    %93 = arith.addf %91, %92 : vector<16x64xf32>
    %c0_52 = arith.constant 0 : index
    %c0_53 = arith.constant 0 : index
    %94 = vector.load %arg14[%c0_52, %c0_53] : memref<1x64xf32, #tpu.memory_space<vmem>>, vector<1x64xf32>
    %c0_54 = arith.constant 0 : index
    %c0_55 = arith.constant 0 : index
    %95 = vector.load %arg15[%c0_54, %c0_55] : memref<1x64xf32, #tpu.memory_space<vmem>>, vector<1x64xf32>
    %cst_56 = arith.constant dense<0.000000e+00> : vector<16xf32>
    %96 = vector.multi_reduction <add>, %93, %cst_56 [1] : vector<16x64xf32> to vector<16xf32>
    %97 = vector.shape_cast %96 : vector<16xf32> to vector<16x1xf32>
    %cst_57 = arith.constant 6.400000e+01 : f32
    %98 = vector.broadcast %cst_57 : f32 to vector<16x1xf32>
    %99 = arith.divf %97, %98 : vector<16x1xf32>
    %100 = vector.broadcast %99 : vector<16x1xf32> to vector<16x64xf32>
    %101 = arith.subf %93, %100 : vector<16x64xf32>
    %102 = arith.mulf %101, %101 : vector<16x64xf32>
    %cst_58 = arith.constant dense<0.000000e+00> : vector<16xf32>
    %103 = vector.multi_reduction <add>, %102, %cst_58 [1] : vector<16x64xf32> to vector<16xf32>
    %104 = vector.shape_cast %103 : vector<16xf32> to vector<16x1xf32>
    %cst_59 = arith.constant 6.400000e+01 : f32
    %105 = vector.broadcast %cst_59 : f32 to vector<16x1xf32>
    %106 = arith.divf %104, %105 : vector<16x1xf32>
    %cst_60 = arith.constant 9.99999974E-6 : f32
    %107 = vector.broadcast %cst_60 : f32 to vector<16x1xf32>
    %108 = arith.addf %106, %107 : vector<16x1xf32>
    %109 = math.rsqrt %108 : vector<16x1xf32>
    %110 = vector.broadcast %109 : vector<16x1xf32> to vector<16x64xf32>
    %111 = arith.mulf %101, %110 : vector<16x64xf32>
    %112 = vector.broadcast %94 : vector<1x64xf32> to vector<16x64xf32>
    %113 = arith.mulf %111, %112 : vector<16x64xf32>
    %114 = vector.broadcast %95 : vector<1x64xf32> to vector<16x64xf32>
    %115 = arith.addf %113, %114 : vector<16x64xf32>
    %c0_61 = arith.constant 0 : index
    %c0_62 = arith.constant 0 : index
    %116 = vector.load %arg16[%c0_61, %c0_62] : memref<16x64xf32, #tpu.memory_space<vmem>>, vector<16x64xf32>
    tpu.vector_store %arg16[%c0_61, %c0_62], %115 {strides = array<i32>} : memref<16x64xf32, #tpu.memory_space<vmem>>, vector<16x64xf32>,
    return
  }
}

module attributes {stable_mosaic.version = 11 : i64} {
  func.func @_decoder_stack_kernel(%arg0: i32, %arg1: memref<14x64xf32, #tpu.memory_space<vmem>>, %arg2: memref<16x64xf32, #tpu.memory_space<vmem>>, %arg3: memref<14x14xf32, #tpu.memory_space<vmem>>, %arg4: memref<14x16xf32, #tpu.memory_space<vmem>>, %arg5: memref<1x192x64xf32, #tpu.memory_space<vmem>>, %arg6: memref<1x3x64xf32, #tpu.memory_space<vmem>>, %arg7: memref<1x64x64xf32, #tpu.memory_space<vmem>>, %arg8: memref<1x1x64xf32, #tpu.memory_space<vmem>>, %arg9: memref<1x192x64xf32, #tpu.memory_space<vmem>>, %arg10: memref<1x3x64xf32, #tpu.memory_space<vmem>>, %arg11: memref<1x64x64xf32, #tpu.memory_space<vmem>>, %arg12: memref<1x1x64xf32, #tpu.memory_space<vmem>>, %arg13: memref<1x1x64xf32, #tpu.memory_space<vmem>>, %arg14: memref<1x1x64xf32, #tpu.memory_space<vmem>>, %arg15: memref<1x1x64xf32, #tpu.memory_space<vmem>>, %arg16: memref<1x1x64xf32, #tpu.memory_space<vmem>>, %arg17: memref<1x1x64xf32, #tpu.memory_space<vmem>>, %arg18: memref<1x1x64xf32, #tpu.memory_space<vmem>>, %arg19: memref<1x2048x64xf32, #tpu.memory_space<vmem>>, %arg20: memref<1x1x2048xf32, #tpu.memory_space<vmem>>, %arg21: memref<1x64x2048xf32, #tpu.memory_space<vmem>>, %arg22: memref<1x1x64xf32, #tpu.memory_space<vmem>>, %arg23: memref<1x64xf32, #tpu.memory_space<vmem>>, %arg24: memref<1x64xf32, #tpu.memory_space<vmem>>, %arg25: memref<12x64xf32, #tpu.memory_space<vmem>>, %arg26: memref<1x12xf32, #tpu.memory_space<vmem>>, %arg27: memref<14x12xf32, #tpu.memory_space<vmem>>, %arg28: memref<14x64xf32, #tpu.memory_space<vmem>>) attributes {dimension_semantics = [#tpu.dimension_semantics<arbitrary>], iteration_bounds = array<i64: 25>, scalar_prefetch = 0 : i64, scratch_operands = 1 : i64, tpu.core_type = #tpu.core_type<tc>, window_params = [{pipeline_mode = #tpu.pipeline_mode<synchronous>, transform_indices = @transform_0, window_bounds = array<i64: 14, 64>}, {pipeline_mode = #tpu.pipeline_mode<synchronous>, transform_indices = @transform_1, window_bounds = array<i64: 16, 64>}, {pipeline_mode = #tpu.pipeline_mode<synchronous>, transform_indices = @transform_2, window_bounds = array<i64: 14, 14>}, {pipeline_mode = #tpu.pipeline_mode<synchronous>, transform_indices = @transform_3, window_bounds = array<i64: 14, 16>}, {transform_indices = @transform_4, window_bounds = array<i64: 1, 192, 64>}, {transform_indices = @transform_5, window_bounds = array<i64: 1, 3, 64>}, {transform_indices = @transform_6, window_bounds = array<i64: 1, 64, 64>}, {transform_indices = @transform_7, window_bounds = array<i64: 1, 1, 64>}, {transform_indices = @transform_8, window_bounds = array<i64: 1, 192, 64>}, {transform_indices = @transform_9, window_bounds = array<i64: 1, 3, 64>}, {transform_indices = @transform_10, window_bounds = array<i64: 1, 64, 64>}, {transform_indices = @transform_11, window_bounds = array<i64: 1, 1, 64>}, {transform_indices = @transform_12, window_bounds = array<i64: 1, 1, 64>}, {transform_indices = @transform_13, window_bounds = array<i64: 1, 1, 64>}, {transform_indices = @transform_14, window_bounds = array<i64: 1, 1, 64>}, {transform_indices = @transform_15, window_bounds = array<i64: 1, 1, 64>}, {transform_indices = @transform_16, window_bounds = array<i64: 1, 1, 64>}, {transform_indices = @transform_17, window_bounds = array<i64: 1, 1, 64>}, {transform_indices = @transform_18, window_bounds = array<i64: 1, 2048, 64>}, {transform_indices = @transform_19, window_bounds = array<i64: 1, 1, 2048>}, {transform_indices = @transform_20, window_bounds = array<i64: 1, 64, 2048>}, {transform_indices = @transform_21, window_bounds = array<i64: 1, 1, 64>}, {pipeline_mode = #tpu.pipeline_mode<synchronous>, transform_indices = @transform_22, window_bounds = array<i64: 1, 64>}, {pipeline_mode = #tpu.pipeline_mode<synchronous>, transform_indices = @transform_23, window_bounds = array<i64: 1, 64>}, {pipeline_mode = #tpu.pipeline_mode<synchronous>, transform_indices = @transform_24, window_bounds = array<i64: 12, 64>}, {pipeline_mode = #tpu.pipeline_mode<synchronous>, transform_indices = @transform_25, window_bounds = array<i64: 1, 12>}, {pipeline_mode = #tpu.pipeline_mode<synchronous>, transform_indices = @transform_26, window_bounds = array<i64: 14, 12>}]} {
    %c0_i32 = arith.constant 0 : i32
    %0 = arith.cmpi eq, %arg0, %c0_i32 : i32
    %1 = arith.extui %0 : i1 to i32
    %c0_i32_0 = arith.constant 0 : i32
    %2 = arith.cmpi ne, %1, %c0_i32_0 : i32
    scf.if %2 {
      %c0_120 = arith.constant 0 : index
      %c0_121 = arith.constant 0 : index
      %186 = vector.load %arg1[%c0_120, %c0_121] : memref<14x64xf32, #tpu.memory_space<vmem>>, vector<14x64xf32>
      %c0_122 = arith.constant 0 : index
      %c0_123 = arith.constant 0 : index
      %187 = vector.load %arg28[%c0_122, %c0_123] : memref<14x64xf32, #tpu.memory_space<vmem>>, vector<14x64xf32>
      tpu.vector_store %arg28[%c0_122, %c0_123], %186 {strides = array<i32>} : memref<14x64xf32, #tpu.memory_space<vmem>>, vector<14x64xf32>,
    } else {
    }
    %c0 = arith.constant 0 : index
    %c0_1 = arith.constant 0 : index
    %3 = vector.load %arg28[%c0, %c0_1] : memref<14x64xf32, #tpu.memory_space<vmem>>, vector<14x64xf32>
    %c0_2 = arith.constant 0 : index
    %c0_3 = arith.constant 0 : index
    %c0_4 = arith.constant 0 : index
    %4 = vector.load %arg5[%c0_2, %c0_3, %c0_4] : memref<1x192x64xf32, #tpu.memory_space<vmem>>, vector<1x64x64xf32>
    %5 = vector.shape_cast %4 : vector<1x64x64xf32> to vector<64x64xf32>
    %c0_5 = arith.constant 0 : index
    %c0_6 = arith.constant 0 : index
    %c0_7 = arith.constant 0 : index
    %6 = vector.load %arg6[%c0_5, %c0_6, %c0_7] : memref<1x3x64xf32, #tpu.memory_space<vmem>>, vector<1x1x64xf32>
    %7 = vector.shape_cast %6 : vector<1x1x64xf32> to vector<1x64xf32>
    %cst = arith.constant dense<0.000000e+00> : vector<14x64xf32>
    %8 = tpu.matmul %3, %5, %cst {dimension_numbers = #tpu.dot_dimension_numbers<[1], [1], [0], [0], [0, 0, 1, 0], [], []>} : vector<14x64xf32>, vector<64x64xf32>, vector<14x64xf32> -> vector<14x64xf32>
    %9 = vector.broadcast %7 : vector<1x64xf32> to vector<14x64xf32>
    %10 = arith.addf %8, %9 : vector<14x64xf32>
    %c0_8 = arith.constant 0 : index
    %c64 = arith.constant 64 : index
    %c0_9 = arith.constant 0 : index
    %11 = vector.load %arg5[%c0_8, %c64, %c0_9] : memref<1x192x64xf32, #tpu.memory_space<vmem>>, vector<1x64x64xf32>
    %12 = vector.shape_cast %11 : vector<1x64x64xf32> to vector<64x64xf32>
    %c0_10 = arith.constant 0 : index
    %c1 = arith.constant 1 : index
    %c0_11 = arith.constant 0 : index
    %13 = vector.load %arg6[%c0_10, %c1, %c0_11] : memref<1x3x64xf32, #tpu.memory_space<vmem>>, vector<1x1x64xf32>
    %14 = vector.shape_cast %13 : vector<1x1x64xf32> to vector<1x64xf32>
    %cst_12 = arith.constant dense<0.000000e+00> : vector<14x64xf32>
    %15 = tpu.matmul %3, %12, %cst_12 {dimension_numbers = #tpu.dot_dimension_numbers<[1], [1], [0], [0], [0, 0, 1, 0], [], []>} : vector<14x64xf32>, vector<64x64xf32>, vector<14x64xf32> -> vector<14x64xf32>
    %16 = vector.broadcast %14 : vector<1x64xf32> to vector<14x64xf32>
    %17 = arith.addf %15, %16 : vector<14x64xf32>
    %c0_13 = arith.constant 0 : index
    %c128 = arith.constant 128 : index
    %c0_14 = arith.constant 0 : index
    %18 = vector.load %arg5[%c0_13, %c128, %c0_14] : memref<1x192x64xf32, #tpu.memory_space<vmem>>, vector<1x64x64xf32>
    %19 = vector.shape_cast %18 : vector<1x64x64xf32> to vector<64x64xf32>
    %c0_15 = arith.constant 0 : index
    %c2 = arith.constant 2 : index
    %c0_16 = arith.constant 0 : index
    %20 = vector.load %arg6[%c0_15, %c2, %c0_16] : memref<1x3x64xf32, #tpu.memory_space<vmem>>, vector<1x1x64xf32>
    %21 = vector.shape_cast %20 : vector<1x1x64xf32> to vector<1x64xf32>
    %cst_17 = arith.constant dense<0.000000e+00> : vector<14x64xf32>
    %22 = tpu.matmul %3, %19, %cst_17 {dimension_numbers = #tpu.dot_dimension_numbers<[1], [1], [0], [0], [0, 0, 1, 0], [], []>} : vector<14x64xf32>, vector<64x64xf32>, vector<14x64xf32> -> vector<14x64xf32>
    %23 = vector.broadcast %21 : vector<1x64xf32> to vector<14x64xf32>
    %24 = arith.addf %22, %23 : vector<14x64xf32>
    %c0_18 = arith.constant 0 : index
    %c0_19 = arith.constant 0 : index
    %25 = vector.load %arg3[%c0_18, %c0_19] : memref<14x14xf32, #tpu.memory_space<vmem>>, vector<14x14xf32>
    %cst_20 = arith.constant dense<0.000000e+00> : vector<14x14xf32>
    %26 = tpu.matmul %10, %17, %cst_20 {dimension_numbers = #tpu.dot_dimension_numbers<[1], [1], [0], [0], [0, 0, 1, 0], [], []>} : vector<14x64xf32>, vector<14x64xf32>, vector<14x14xf32> -> vector<14x14xf32>
    %cst_21 = arith.constant 1.250000e-01 : f32
    %27 = vector.broadcast %cst_21 : f32 to vector<14x14xf32>
    %28 = arith.mulf %26, %27 : vector<14x14xf32>
    %29 = arith.addf %28, %25 : vector<14x14xf32>
    %cst_22 = arith.constant dense<0xFF800000> : vector<14xf32>
    %30 = vector.multi_reduction <maximumf>, %29, %cst_22 [1] : vector<14x14xf32> to vector<14xf32>
    %31 = vector.shape_cast %30 : vector<14xf32> to vector<14x1xf32>
    %32 = vector.broadcast %31 : vector<14x1xf32> to vector<14x14xf32>
    %33 = arith.subf %29, %32 : vector<14x14xf32>
    %34 = math.exp %33 : vector<14x14xf32>
    %cst_23 = arith.constant dense<0.000000e+00> : vector<14xf32>
    %35 = vector.multi_reduction <add>, %34, %cst_23 [1] : vector<14x14xf32> to vector<14xf32>
    %36 = vector.shape_cast %35 : vector<14xf32> to vector<14x1xf32>
    %37 = vector.broadcast %36 : vector<14x1xf32> to vector<14x14xf32>
    %38 = arith.divf %34, %37 : vector<14x14xf32>
    %cst_24 = arith.constant dense<0.000000e+00> : vector<14x64xf32>
    %39 = tpu.matmul %38, %24, %cst_24 {dimension_numbers = #tpu.dot_dimension_numbers<[1], [0], [0], [1], [0, 0, 1, 1], [], []>} : vector<14x14xf32>, vector<14x64xf32>, vector<14x64xf32> -> vector<14x64xf32>
    %c0_25 = arith.constant 0 : index
    %c0_26 = arith.constant 0 : index
    %c0_27 = arith.constant 0 : index
    %40 = vector.load %arg7[%c0_25, %c0_26, %c0_27] : memref<1x64x64xf32, #tpu.memory_space<vmem>>, vector<1x64x64xf32>
    %41 = vector.shape_cast %40 : vector<1x64x64xf32> to vector<64x64xf32>
    %c0_28 = arith.constant 0 : index
    %c0_29 = arith.constant 0 : index
    %c0_30 = arith.constant 0 : index
    %42 = vector.load %arg8[%c0_28, %c0_29, %c0_30] : memref<1x1x64xf32, #tpu.memory_space<vmem>>, vector<1x1x64xf32>
    %43 = vector.shape_cast %42 : vector<1x1x64xf32> to vector<1x64xf32>
    %cst_31 = arith.constant dense<0.000000e+00> : vector<14x64xf32>
    %44 = tpu.matmul %39, %41, %cst_31 {dimension_numbers = #tpu.dot_dimension_numbers<[1], [1], [0], [0], [0, 0, 1, 0], [], []>} : vector<14x64xf32>, vector<64x64xf32>, vector<14x64xf32> -> vector<14x64xf32>
    %45 = vector.broadcast %43 : vector<1x64xf32> to vector<14x64xf32>
    %46 = arith.addf %44, %45 : vector<14x64xf32>
    %47 = arith.addf %3, %46 : vector<14x64xf32>
    %c0_32 = arith.constant 0 : index
    %c0_33 = arith.constant 0 : index
    %c0_34 = arith.constant 0 : index
    %48 = vector.load %arg13[%c0_32, %c0_33, %c0_34] : memref<1x1x64xf32, #tpu.memory_space<vmem>>, vector<1x1x64xf32>
    %49 = vector.shape_cast %48 : vector<1x1x64xf32> to vector<1x64xf32>
    %c0_35 = arith.constant 0 : index
    %c0_36 = arith.constant 0 : index
    %c0_37 = arith.constant 0 : index
    %50 = vector.load %arg14[%c0_35, %c0_36, %c0_37] : memref<1x1x64xf32, #tpu.memory_space<vmem>>, vector<1x1x64xf32>
    %51 = vector.shape_cast %50 : vector<1x1x64xf32> to vector<1x64xf32>
    %cst_38 = arith.constant dense<0.000000e+00> : vector<14xf32>
    %52 = vector.multi_reduction <add>, %47, %cst_38 [1] : vector<14x64xf32> to vector<14xf32>
    %53 = vector.shape_cast %52 : vector<14xf32> to vector<14x1xf32>
    %cst_39 = arith.constant 6.400000e+01 : f32
    %54 = vector.broadcast %cst_39 : f32 to vector<14x1xf32>
    %55 = arith.divf %53, %54 : vector<14x1xf32>
    %56 = vector.broadcast %55 : vector<14x1xf32> to vector<14x64xf32>
    %57 = arith.subf %47, %56 : vector<14x64xf32>
    %58 = arith.mulf %57, %57 : vector<14x64xf32>
    %cst_40 = arith.constant dense<0.000000e+00> : vector<14xf32>
    %59 = vector.multi_reduction <add>, %58, %cst_40 [1] : vector<14x64xf32> to vector<14xf32>
    %60 = vector.shape_cast %59 : vector<14xf32> to vector<14x1xf32>
    %cst_41 = arith.constant 6.400000e+01 : f32
    %61 = vector.broadcast %cst_41 : f32 to vector<14x1xf32>
    %62 = arith.divf %60, %61 : vector<14x1xf32>
    %cst_42 = arith.constant 9.99999974E-6 : f32
    %63 = vector.broadcast %cst_42 : f32 to vector<14x1xf32>
    %64 = arith.addf %62, %63 : vector<14x1xf32>
    %65 = math.rsqrt %64 : vector<14x1xf32>
    %66 = vector.broadcast %65 : vector<14x1xf32> to vector<14x64xf32>
    %67 = arith.mulf %57, %66 : vector<14x64xf32>
    %68 = vector.broadcast %49 : vector<1x64xf32> to vector<14x64xf32>
    %69 = arith.mulf %67, %68 : vector<14x64xf32>
    %70 = vector.broadcast %51 : vector<1x64xf32> to vector<14x64xf32>
    %71 = arith.addf %69, %70 : vector<14x64xf32>
    %c0_43 = arith.constant 0 : index
    %c0_44 = arith.constant 0 : index
    %72 = vector.load %arg2[%c0_43, %c0_44] : memref<16x64xf32, #tpu.memory_space<vmem>>, vector<16x64xf32>
    %c0_45 = arith.constant 0 : index
    %c0_46 = arith.constant 0 : index
    %c0_47 = arith.constant 0 : index
    %73 = vector.load %arg9[%c0_45, %c0_46, %c0_47] : memref<1x192x64xf32, #tpu.memory_space<vmem>>, vector<1x64x64xf32>
    %74 = vector.shape_cast %73 : vector<1x64x64xf32> to vector<64x64xf32>
    %c0_48 = arith.constant 0 : index
    %c0_49 = arith.constant 0 : index
    %c0_50 = arith.constant 0 : index
    %75 = vector.load %arg10[%c0_48, %c0_49, %c0_50] : memref<1x3x64xf32, #tpu.memory_space<vmem>>, vector<1x1x64xf32>
    %76 = vector.shape_cast %75 : vector<1x1x64xf32> to vector<1x64xf32>
    %cst_51 = arith.constant dense<0.000000e+00> : vector<14x64xf32>
    %77 = tpu.matmul %71, %74, %cst_51 {dimension_numbers = #tpu.dot_dimension_numbers<[1], [1], [0], [0], [0, 0, 1, 0], [], []>} : vector<14x64xf32>, vector<64x64xf32>, vector<14x64xf32> -> vector<14x64xf32>
    %78 = vector.broadcast %76 : vector<1x64xf32> to vector<14x64xf32>
    %79 = arith.addf %77, %78 : vector<14x64xf32>
    %c0_52 = arith.constant 0 : index
    %c64_53 = arith.constant 64 : index
    %c0_54 = arith.constant 0 : index
    %80 = vector.load %arg9[%c0_52, %c64_53, %c0_54] : memref<1x192x64xf32, #tpu.memory_space<vmem>>, vector<1x64x64xf32>
    %81 = vector.shape_cast %80 : vector<1x64x64xf32> to vector<64x64xf32>
    %c0_55 = arith.constant 0 : index
    %c1_56 = arith.constant 1 : index
    %c0_57 = arith.constant 0 : index
    %82 = vector.load %arg10[%c0_55, %c1_56, %c0_57] : memref<1x3x64xf32, #tpu.memory_space<vmem>>, vector<1x1x64xf32>
    %83 = vector.shape_cast %82 : vector<1x1x64xf32> to vector<1x64xf32>
    %cst_58 = arith.constant dense<0.000000e+00> : vector<16x64xf32>
    %84 = tpu.matmul %72, %81, %cst_58 {dimension_numbers = #tpu.dot_dimension_numbers<[1], [1], [0], [0], [0, 0, 1, 0], [], []>} : vector<16x64xf32>, vector<64x64xf32>, vector<16x64xf32> -> vector<16x64xf32>
    %85 = vector.broadcast %83 : vector<1x64xf32> to vector<16x64xf32>
    %86 = arith.addf %84, %85 : vector<16x64xf32>
    %c0_59 = arith.constant 0 : index
    %c128_60 = arith.constant 128 : index
    %c0_61 = arith.constant 0 : index
    %87 = vector.load %arg9[%c0_59, %c128_60, %c0_61] : memref<1x192x64xf32, #tpu.memory_space<vmem>>, vector<1x64x64xf32>
    %88 = vector.shape_cast %87 : vector<1x64x64xf32> to vector<64x64xf32>
    %c0_62 = arith.constant 0 : index
    %c2_63 = arith.constant 2 : index
    %c0_64 = arith.constant 0 : index
    %89 = vector.load %arg10[%c0_62, %c2_63, %c0_64] : memref<1x3x64xf32, #tpu.memory_space<vmem>>, vector<1x1x64xf32>
    %90 = vector.shape_cast %89 : vector<1x1x64xf32> to vector<1x64xf32>
    %cst_65 = arith.constant dense<0.000000e+00> : vector<16x64xf32>
    %91 = tpu.matmul %72, %88, %cst_65 {dimension_numbers = #tpu.dot_dimension_numbers<[1], [1], [0], [0], [0, 0, 1, 0], [], []>} : vector<16x64xf32>, vector<64x64xf32>, vector<16x64xf32> -> vector<16x64xf32>
    %92 = vector.broadcast %90 : vector<1x64xf32> to vector<16x64xf32>
    %93 = arith.addf %91, %92 : vector<16x64xf32>
    %c0_66 = arith.constant 0 : index
    %c0_67 = arith.constant 0 : index
    %94 = vector.load %arg4[%c0_66, %c0_67] : memref<14x16xf32, #tpu.memory_space<vmem>>, vector<14x16xf32>
    %cst_68 = arith.constant dense<0.000000e+00> : vector<14x16xf32>
    %95 = tpu.matmul %79, %86, %cst_68 {dimension_numbers = #tpu.dot_dimension_numbers<[1], [1], [0], [0], [0, 0, 1, 0], [], []>} : vector<14x64xf32>, vector<16x64xf32>, vector<14x16xf32> -> vector<14x16xf32>
    %cst_69 = arith.constant 1.250000e-01 : f32
    %96 = vector.broadcast %cst_69 : f32 to vector<14x16xf32>
    %97 = arith.mulf %95, %96 : vector<14x16xf32>
    %98 = arith.addf %97, %94 : vector<14x16xf32>
    %cst_70 = arith.constant dense<0xFF800000> : vector<14xf32>
    %99 = vector.multi_reduction <maximumf>, %98, %cst_70 [1] : vector<14x16xf32> to vector<14xf32>
    %100 = vector.shape_cast %99 : vector<14xf32> to vector<14x1xf32>
    %101 = vector.broadcast %100 : vector<14x1xf32> to vector<14x16xf32>
    %102 = arith.subf %98, %101 : vector<14x16xf32>
    %103 = math.exp %102 : vector<14x16xf32>
    %cst_71 = arith.constant dense<0.000000e+00> : vector<14xf32>
    %104 = vector.multi_reduction <add>, %103, %cst_71 [1] : vector<14x16xf32> to vector<14xf32>
    %105 = vector.shape_cast %104 : vector<14xf32> to vector<14x1xf32>
    %106 = vector.broadcast %105 : vector<14x1xf32> to vector<14x16xf32>
    %107 = arith.divf %103, %106 : vector<14x16xf32>
    %cst_72 = arith.constant dense<0.000000e+00> : vector<14x64xf32>
    %108 = tpu.matmul %107, %93, %cst_72 {dimension_numbers = #tpu.dot_dimension_numbers<[1], [0], [0], [1], [0, 0, 1, 1], [], []>} : vector<14x16xf32>, vector<16x64xf32>, vector<14x64xf32> -> vector<14x64xf32>
    %c0_73 = arith.constant 0 : index
    %c0_74 = arith.constant 0 : index
    %c0_75 = arith.constant 0 : index
    %109 = vector.load %arg11[%c0_73, %c0_74, %c0_75] : memref<1x64x64xf32, #tpu.memory_space<vmem>>, vector<1x64x64xf32>
    %110 = vector.shape_cast %109 : vector<1x64x64xf32> to vector<64x64xf32>
    %c0_76 = arith.constant 0 : index
    %c0_77 = arith.constant 0 : index
    %c0_78 = arith.constant 0 : index
    %111 = vector.load %arg12[%c0_76, %c0_77, %c0_78] : memref<1x1x64xf32, #tpu.memory_space<vmem>>, vector<1x1x64xf32>
    %112 = vector.shape_cast %111 : vector<1x1x64xf32> to vector<1x64xf32>
    %cst_79 = arith.constant dense<0.000000e+00> : vector<14x64xf32>
    %113 = tpu.matmul %108, %110, %cst_79 {dimension_numbers = #tpu.dot_dimension_numbers<[1], [1], [0], [0], [0, 0, 1, 0], [], []>} : vector<14x64xf32>, vector<64x64xf32>, vector<14x64xf32> -> vector<14x64xf32>
    %114 = vector.broadcast %112 : vector<1x64xf32> to vector<14x64xf32>
    %115 = arith.addf %113, %114 : vector<14x64xf32>
    %116 = arith.addf %71, %115 : vector<14x64xf32>
    %c0_80 = arith.constant 0 : index
    %c0_81 = arith.constant 0 : index
    %c0_82 = arith.constant 0 : index
    %117 = vector.load %arg15[%c0_80, %c0_81, %c0_82] : memref<1x1x64xf32, #tpu.memory_space<vmem>>, vector<1x1x64xf32>
    %118 = vector.shape_cast %117 : vector<1x1x64xf32> to vector<1x64xf32>
    %c0_83 = arith.constant 0 : index
    %c0_84 = arith.constant 0 : index
    %c0_85 = arith.constant 0 : index
    %119 = vector.load %arg16[%c0_83, %c0_84, %c0_85] : memref<1x1x64xf32, #tpu.memory_space<vmem>>, vector<1x1x64xf32>
    %120 = vector.shape_cast %119 : vector<1x1x64xf32> to vector<1x64xf32>
    %cst_86 = arith.constant dense<0.000000e+00> : vector<14xf32>
    %121 = vector.multi_reduction <add>, %116, %cst_86 [1] : vector<14x64xf32> to vector<14xf32>
    %122 = vector.shape_cast %121 : vector<14xf32> to vector<14x1xf32>
    %cst_87 = arith.constant 6.400000e+01 : f32
    %123 = vector.broadcast %cst_87 : f32 to vector<14x1xf32>
    %124 = arith.divf %122, %123 : vector<14x1xf32>
    %125 = vector.broadcast %124 : vector<14x1xf32> to vector<14x64xf32>
    %126 = arith.subf %116, %125 : vector<14x64xf32>
    %127 = arith.mulf %126, %126 : vector<14x64xf32>
    %cst_88 = arith.constant dense<0.000000e+00> : vector<14xf32>
    %128 = vector.multi_reduction <add>, %127, %cst_88 [1] : vector<14x64xf32> to vector<14xf32>
    %129 = vector.shape_cast %128 : vector<14xf32> to vector<14x1xf32>
    %cst_89 = arith.constant 6.400000e+01 : f32
    %130 = vector.broadcast %cst_89 : f32 to vector<14x1xf32>
    %131 = arith.divf %129, %130 : vector<14x1xf32>
    %cst_90 = arith.constant 9.99999974E-6 : f32
    %132 = vector.broadcast %cst_90 : f32 to vector<14x1xf32>
    %133 = arith.addf %131, %132 : vector<14x1xf32>
    %134 = math.rsqrt %133 : vector<14x1xf32>
    %135 = vector.broadcast %134 : vector<14x1xf32> to vector<14x64xf32>
    %136 = arith.mulf %126, %135 : vector<14x64xf32>
    %137 = vector.broadcast %118 : vector<1x64xf32> to vector<14x64xf32>
    %138 = arith.mulf %136, %137 : vector<14x64xf32>
    %139 = vector.broadcast %120 : vector<1x64xf32> to vector<14x64xf32>
    %140 = arith.addf %138, %139 : vector<14x64xf32>
    %c0_91 = arith.constant 0 : index
    %c0_92 = arith.constant 0 : index
    %c0_93 = arith.constant 0 : index
    %141 = vector.load %arg19[%c0_91, %c0_92, %c0_93] : memref<1x2048x64xf32, #tpu.memory_space<vmem>>, vector<1x2048x64xf32>
    %142 = vector.shape_cast %141 : vector<1x2048x64xf32> to vector<2048x64xf32>
    %c0_94 = arith.constant 0 : index
    %c0_95 = arith.constant 0 : index
    %c0_96 = arith.constant 0 : index
    %143 = vector.load %arg20[%c0_94, %c0_95, %c0_96] : memref<1x1x2048xf32, #tpu.memory_space<vmem>>, vector<1x1x2048xf32>
    %144 = vector.shape_cast %143 : vector<1x1x2048xf32> to vector<1x2048xf32>
    %cst_97 = arith.constant dense<0.000000e+00> : vector<14x2048xf32>
    %145 = tpu.matmul %140, %142, %cst_97 {dimension_numbers = #tpu.dot_dimension_numbers<[1], [1], [0], [0], [0, 0, 1, 0], [], []>} : vector<14x64xf32>, vector<2048x64xf32>, vector<14x2048xf32> -> vector<14x2048xf32>
    %146 = vector.broadcast %144 : vector<1x2048xf32> to vector<14x2048xf32>
    %147 = arith.addf %145, %146 : vector<14x2048xf32>
    %cst_98 = arith.constant 0.000000e+00 : f32
    %148 = vector.broadcast %cst_98 : f32 to vector<14x2048xf32>
    %149 = arith.maximumf %147, %148 : vector<14x2048xf32>
    %c0_99 = arith.constant 0 : index
    %c0_100 = arith.constant 0 : index
    %c0_101 = arith.constant 0 : index
    %150 = vector.load %arg21[%c0_99, %c0_100, %c0_101] : memref<1x64x2048xf32, #tpu.memory_space<vmem>>, vector<1x64x2048xf32>
    %151 = vector.shape_cast %150 : vector<1x64x2048xf32> to vector<64x2048xf32>
    %c0_102 = arith.constant 0 : index
    %c0_103 = arith.constant 0 : index
    %c0_104 = arith.constant 0 : index
    %152 = vector.load %arg22[%c0_102, %c0_103, %c0_104] : memref<1x1x64xf32, #tpu.memory_space<vmem>>, vector<1x1x64xf32>
    %153 = vector.shape_cast %152 : vector<1x1x64xf32> to vector<1x64xf32>
    %cst_105 = arith.constant dense<0.000000e+00> : vector<14x64xf32>
    %154 = tpu.matmul %149, %151, %cst_105 {dimension_numbers = #tpu.dot_dimension_numbers<[1], [1], [0], [0], [0, 0, 1, 0], [], []>} : vector<14x2048xf32>, vector<64x2048xf32>, vector<14x64xf32> -> vector<14x64xf32>
    %155 = vector.broadcast %153 : vector<1x64xf32> to vector<14x64xf32>
    %156 = arith.addf %154, %155 : vector<14x64xf32>
    %157 = arith.addf %140, %156 : vector<14x64xf32>
    %c0_106 = arith.constant 0 : index
    %c0_107 = arith.constant 0 : index
    %c0_108 = arith.constant 0 : index
    %158 = vector.load %arg17[%c0_106, %c0_107, %c0_108] : memref<1x1x64xf32, #tpu.memory_space<vmem>>, vector<1x1x64xf32>
    %159 = vector.shape_cast %158 : vector<1x1x64xf32> to vector<1x64xf32>
    %c0_109 = arith.constant 0 : index
    %c0_110 = arith.constant 0 : index
    %c0_111 = arith.constant 0 : index
    %160 = vector.load %arg18[%c0_109, %c0_110, %c0_111] : memref<1x1x64xf32, #tpu.memory_space<vmem>>, vector<1x1x64xf32>
    %161 = vector.shape_cast %160 : vector<1x1x64xf32> to vector<1x64xf32>
    %cst_112 = arith.constant dense<0.000000e+00> : vector<14xf32>
    %162 = vector.multi_reduction <add>, %157, %cst_112 [1] : vector<14x64xf32> to vector<14xf32>
    %163 = vector.shape_cast %162 : vector<14xf32> to vector<14x1xf32>
    %cst_113 = arith.constant 6.400000e+01 : f32
    %164 = vector.broadcast %cst_113 : f32 to vector<14x1xf32>
    %165 = arith.divf %163, %164 : vector<14x1xf32>
    %166 = vector.broadcast %165 : vector<14x1xf32> to vector<14x64xf32>
    %167 = arith.subf %157, %166 : vector<14x64xf32>
    %168 = arith.mulf %167, %167 : vector<14x64xf32>
    %cst_114 = arith.constant dense<0.000000e+00> : vector<14xf32>
    %169 = vector.multi_reduction <add>, %168, %cst_114 [1] : vector<14x64xf32> to vector<14xf32>
    %170 = vector.shape_cast %169 : vector<14xf32> to vector<14x1xf32>
    %cst_115 = arith.constant 6.400000e+01 : f32
    %171 = vector.broadcast %cst_115 : f32 to vector<14x1xf32>
    %172 = arith.divf %170, %171 : vector<14x1xf32>
    %cst_116 = arith.constant 9.99999974E-6 : f32
    %173 = vector.broadcast %cst_116 : f32 to vector<14x1xf32>
    %174 = arith.addf %172, %173 : vector<14x1xf32>
    %175 = math.rsqrt %174 : vector<14x1xf32>
    %176 = vector.broadcast %175 : vector<14x1xf32> to vector<14x64xf32>
    %177 = arith.mulf %167, %176 : vector<14x64xf32>
    %178 = vector.broadcast %159 : vector<1x64xf32> to vector<14x64xf32>
    %179 = arith.mulf %177, %178 : vector<14x64xf32>
    %180 = vector.broadcast %161 : vector<1x64xf32> to vector<14x64xf32>
    %181 = arith.addf %179, %180 : vector<14x64xf32>
    %c0_117 = arith.constant 0 : index
    %c0_118 = arith.constant 0 : index
    %182 = vector.load %arg28[%c0_117, %c0_118] : memref<14x64xf32, #tpu.memory_space<vmem>>, vector<14x64xf32>
    tpu.vector_store %arg28[%c0_117, %c0_118], %181 {strides = array<i32>} : memref<14x64xf32, #tpu.memory_space<vmem>>, vector<14x64xf32>,
    %c24_i32 = arith.constant 24 : i32
    %183 = arith.cmpi eq, %arg0, %c24_i32 : i32
    %184 = arith.extui %183 : i1 to i32
    %c0_i32_119 = arith.constant 0 : i32
    %185 = arith.cmpi ne, %184, %c0_i32_119 : i32
    scf.if %185 {
      %c0_120 = arith.constant 0 : index
      %c0_121 = arith.constant 0 : index
      %186 = vector.load %arg23[%c0_120, %c0_121] : memref<1x64xf32, #tpu.memory_space<vmem>>, vector<1x64xf32>
      %c0_122 = arith.constant 0 : index
      %c0_123 = arith.constant 0 : index
      %187 = vector.load %arg24[%c0_122, %c0_123] : memref<1x64xf32, #tpu.memory_space<vmem>>, vector<1x64xf32>
      %cst_124 = arith.constant dense<0.000000e+00> : vector<14xf32>
      %188 = vector.multi_reduction <add>, %181, %cst_124 [1] : vector<14x64xf32> to vector<14xf32>
      %189 = vector.shape_cast %188 : vector<14xf32> to vector<14x1xf32>
      %cst_125 = arith.constant 6.400000e+01 : f32
      %190 = vector.broadcast %cst_125 : f32 to vector<14x1xf32>
      %191 = arith.divf %189, %190 : vector<14x1xf32>
      %192 = vector.broadcast %191 : vector<14x1xf32> to vector<14x64xf32>
      %193 = arith.subf %181, %192 : vector<14x64xf32>
      %194 = arith.mulf %193, %193 : vector<14x64xf32>
      %cst_126 = arith.constant dense<0.000000e+00> : vector<14xf32>
      %195 = vector.multi_reduction <add>, %194, %cst_126 [1] : vector<14x64xf32> to vector<14xf32>
      %196 = vector.shape_cast %195 : vector<14xf32> to vector<14x1xf32>
      %cst_127 = arith.constant 6.400000e+01 : f32
      %197 = vector.broadcast %cst_127 : f32 to vector<14x1xf32>
      %198 = arith.divf %196, %197 : vector<14x1xf32>
      %cst_128 = arith.constant 9.99999974E-6 : f32
      %199 = vector.broadcast %cst_128 : f32 to vector<14x1xf32>
      %200 = arith.addf %198, %199 : vector<14x1xf32>
      %201 = math.rsqrt %200 : vector<14x1xf32>
      %202 = vector.broadcast %201 : vector<14x1xf32> to vector<14x64xf32>
      %203 = arith.mulf %193, %202 : vector<14x64xf32>
      %204 = vector.broadcast %186 : vector<1x64xf32> to vector<14x64xf32>
      %205 = arith.mulf %203, %204 : vector<14x64xf32>
      %206 = vector.broadcast %187 : vector<1x64xf32> to vector<14x64xf32>
      %207 = arith.addf %205, %206 : vector<14x64xf32>
      %c0_129 = arith.constant 0 : index
      %c0_130 = arith.constant 0 : index
      %208 = vector.load %arg25[%c0_129, %c0_130] : memref<12x64xf32, #tpu.memory_space<vmem>>, vector<12x64xf32>
      %c0_131 = arith.constant 0 : index
      %c0_132 = arith.constant 0 : index
      %209 = vector.load %arg26[%c0_131, %c0_132] : memref<1x12xf32, #tpu.memory_space<vmem>>, vector<1x12xf32>
      %cst_133 = arith.constant dense<0.000000e+00> : vector<14x12xf32>
      %210 = tpu.matmul %207, %208, %cst_133 {dimension_numbers = #tpu.dot_dimension_numbers<[1], [1], [0], [0], [0, 0, 1, 0], [], []>} : vector<14x64xf32>, vector<12x64xf32>, vector<14x12xf32> -> vector<14x12xf32>
      %211 = vector.broadcast %209 : vector<1x12xf32> to vector<14x12xf32>
      %212 = arith.addf %210, %211 : vector<14x12xf32>
      %c0_134 = arith.constant 0 : index
      %c0_135 = arith.constant 0 : index
      %213 = vector.load %arg27[%c0_134, %c0_135] : memref<14x12xf32, #tpu.memory_space<vmem>>, vector<14x12xf32>
      tpu.vector_store %arg27[%c0_134, %c0_135], %212 {strides = array<i32>} : memref<14x12xf32, #tpu.memory_space<vmem>>, vector<14x12xf32>,
    } else {
    }
    return
  }
  func.func @transform_0(%arg0: i32) -> (i32, i32) {
    %c0_i32 = arith.constant 0 : i32
    %c0_i32_0 = arith.constant 0 : i32
    %c0_i32_1 = arith.constant 0 : i32
    return %c0_i32, %c0_i32_0 : i32, i32
  }
  func.func @transform_1(%arg0: i32) -> (i32, i32) {
    %c0_i32 = arith.constant 0 : i32
    %c0_i32_0 = arith.constant 0 : i32
    %c0_i32_1 = arith.constant 0 : i32
    return %c0_i32, %c0_i32_0 : i32, i32
  }
  func.func @transform_2(%arg0: i32) -> (i32, i32) {
    %c0_i32 = arith.constant 0 : i32
    %c0_i32_0 = arith.constant 0 : i32
    %c0_i32_1 = arith.constant 0 : i32
    return %c0_i32, %c0_i32_0 : i32, i32
  }
  func.func @transform_3(%arg0: i32) -> (i32, i32) {
    %c0_i32 = arith.constant 0 : i32
    %c0_i32_0 = arith.constant 0 : i32
    %c0_i32_1 = arith.constant 0 : i32
    return %c0_i32, %c0_i32_0 : i32, i32
  }
  func.func @transform_4(%arg0: i32) -> (i32, i32, i32) {
    %c0_i32 = arith.constant 0 : i32
    %c0_i32_0 = arith.constant 0 : i32
    %c0_i32_1 = arith.constant 0 : i32
    return %arg0, %c0_i32, %c0_i32_0 : i32, i32, i32
  }
  func.func @transform_5(%arg0: i32) -> (i32, i32, i32) {
    %c0_i32 = arith.constant 0 : i32
    %c0_i32_0 = arith.constant 0 : i32
    %c0_i32_1 = arith.constant 0 : i32
    return %arg0, %c0_i32, %c0_i32_0 : i32, i32, i32
  }
  func.func @transform_6(%arg0: i32) -> (i32, i32, i32) {
    %c0_i32 = arith.constant 0 : i32
    %c0_i32_0 = arith.constant 0 : i32
    %c0_i32_1 = arith.constant 0 : i32
    return %arg0, %c0_i32, %c0_i32_0 : i32, i32, i32
  }
  func.func @transform_7(%arg0: i32) -> (i32, i32, i32) {
    %c0_i32 = arith.constant 0 : i32
    %c0_i32_0 = arith.constant 0 : i32
    %c0_i32_1 = arith.constant 0 : i32
    return %arg0, %c0_i32, %c0_i32_0 : i32, i32, i32
  }
  func.func @transform_8(%arg0: i32) -> (i32, i32, i32) {
    %c0_i32 = arith.constant 0 : i32
    %c0_i32_0 = arith.constant 0 : i32
    %c0_i32_1 = arith.constant 0 : i32
    return %arg0, %c0_i32, %c0_i32_0 : i32, i32, i32
  }
  func.func @transform_9(%arg0: i32) -> (i32, i32, i32) {
    %c0_i32 = arith.constant 0 : i32
    %c0_i32_0 = arith.constant 0 : i32
    %c0_i32_1 = arith.constant 0 : i32
    return %arg0, %c0_i32, %c0_i32_0 : i32, i32, i32
  }
  func.func @transform_10(%arg0: i32) -> (i32, i32, i32) {
    %c0_i32 = arith.constant 0 : i32
    %c0_i32_0 = arith.constant 0 : i32
    %c0_i32_1 = arith.constant 0 : i32
    return %arg0, %c0_i32, %c0_i32_0 : i32, i32, i32
  }
  func.func @transform_11(%arg0: i32) -> (i32, i32, i32) {
    %c0_i32 = arith.constant 0 : i32
    %c0_i32_0 = arith.constant 0 : i32
    %c0_i32_1 = arith.constant 0 : i32
    return %arg0, %c0_i32, %c0_i32_0 : i32, i32, i32
  }
  func.func @transform_12(%arg0: i32) -> (i32, i32, i32) {
    %c0_i32 = arith.constant 0 : i32
    %c0_i32_0 = arith.constant 0 : i32
    %c0_i32_1 = arith.constant 0 : i32
    return %arg0, %c0_i32, %c0_i32_0 : i32, i32, i32
  }
  func.func @transform_13(%arg0: i32) -> (i32, i32, i32) {
    %c0_i32 = arith.constant 0 : i32
    %c0_i32_0 = arith.constant 0 : i32
    %c0_i32_1 = arith.constant 0 : i32
    return %arg0, %c0_i32, %c0_i32_0 : i32, i32, i32
  }
  func.func @transform_14(%arg0: i32) -> (i32, i32, i32) {
    %c0_i32 = arith.constant 0 : i32
    %c0_i32_0 = arith.constant 0 : i32
    %c0_i32_1 = arith.constant 0 : i32
    return %arg0, %c0_i32, %c0_i32_0 : i32, i32, i32
  }
  func.func @transform_15(%arg0: i32) -> (i32, i32, i32) {
    %c0_i32 = arith.constant 0 : i32
    %c0_i32_0 = arith.constant 0 : i32
    %c0_i32_1 = arith.constant 0 : i32
    return %arg0, %c0_i32, %c0_i32_0 : i32, i32, i32
  }
  func.func @transform_16(%arg0: i32) -> (i32, i32, i32) {
    %c0_i32 = arith.constant 0 : i32
    %c0_i32_0 = arith.constant 0 : i32
    %c0_i32_1 = arith.constant 0 : i32
    return %arg0, %c0_i32, %c0_i32_0 : i32, i32, i32
  }
  func.func @transform_17(%arg0: i32) -> (i32, i32, i32) {
    %c0_i32 = arith.constant 0 : i32
    %c0_i32_0 = arith.constant 0 : i32
    %c0_i32_1 = arith.constant 0 : i32
    return %arg0, %c0_i32, %c0_i32_0 : i32, i32, i32
  }
  func.func @transform_18(%arg0: i32) -> (i32, i32, i32) {
    %c0_i32 = arith.constant 0 : i32
    %c0_i32_0 = arith.constant 0 : i32
    %c0_i32_1 = arith.constant 0 : i32
    return %arg0, %c0_i32, %c0_i32_0 : i32, i32, i32
  }
  func.func @transform_19(%arg0: i32) -> (i32, i32, i32) {
    %c0_i32 = arith.constant 0 : i32
    %c0_i32_0 = arith.constant 0 : i32
    %c0_i32_1 = arith.constant 0 : i32
    return %arg0, %c0_i32, %c0_i32_0 : i32, i32, i32
  }
  func.func @transform_20(%arg0: i32) -> (i32, i32, i32) {
    %c0_i32 = arith.constant 0 : i32
    %c0_i32_0 = arith.constant 0 : i32
    %c0_i32_1 = arith.constant 0 : i32
    return %arg0, %c0_i32, %c0_i32_0 : i32, i32, i32
  }
  func.func @transform_21(%arg0: i32) -> (i32, i32, i32) {
    %c0_i32 = arith.constant 0 : i32
    %c0_i32_0 = arith.constant 0 : i32
    %c0_i32_1 = arith.constant 0 : i32
    return %arg0, %c0_i32, %c0_i32_0 : i32, i32, i32
  }
  func.func @transform_22(%arg0: i32) -> (i32, i32) {
    %c0_i32 = arith.constant 0 : i32
    %c0_i32_0 = arith.constant 0 : i32
    %c0_i32_1 = arith.constant 0 : i32
    return %c0_i32, %c0_i32_0 : i32, i32
  }
  func.func @transform_23(%arg0: i32) -> (i32, i32) {
    %c0_i32 = arith.constant 0 : i32
    %c0_i32_0 = arith.constant 0 : i32
    %c0_i32_1 = arith.constant 0 : i32
    return %c0_i32, %c0_i32_0 : i32, i32
  }
  func.func @transform_24(%arg0: i32) -> (i32, i32) {
    %c0_i32 = arith.constant 0 : i32
    %c0_i32_0 = arith.constant 0 : i32
    %c0_i32_1 = arith.constant 0 : i32
    return %c0_i32, %c0_i32_0 : i32, i32
  }
  func.func @transform_25(%arg0: i32) -> (i32, i32) {
    %c0_i32 = arith.constant 0 : i32
    %c0_i32_0 = arith.constant 0 : i32
    %c0_i32_1 = arith.constant 0 : i32
    return %c0_i32, %c0_i32_0 : i32, i32
  }
  func.func @transform_26(%arg0: i32) -> (i32, i32) {
    %c0_i32 = arith.constant 0 : i32
    %c0_i32_0 = arith.constant 0 : i32
    %c0_i32_1 = arith.constant 0 : i32
    return %c0_i32, %c0_i32_0 : i32, i32
  }
}

</mosaic_0001>

<bundles_post_ra>
// kernel: tile.8
= control target key start
LH: loop header
LB: loop body
LE: loop exit
PB: predicated region body
PF: predicated region fallthrough
CT: control target
= control target key end

     0   :  { %2 = vsyncpa [#allocation1], 0  ;;  %s166_s0 = inlined_call_operand.hbm [shape: f32[7,7], index: 0, kind: input, shape index: {}]   ;;  %s167_s1 = inlined_call_operand.vmem [shape: f32[2,7,2,7], index: 1, kind: output, shape index: {}]  }
   0x1   :  { %7 = vsyncadd [#allocation1], 128  ;;  %s99_s6 = smov [#allocation0]   ;;  %s75_s10 = scalar_lea.hbm %s166_s0, 128 }
   0x2   :  { %s8_s7 = sshll.u32 %s99_s6, 4  ;;  %p76_p0 = scmp.ne.s32.totalorder %s166_s0, %s75_s10  ;;  %s9_s7 = int_to_ptr.vmem [resolvable:$true] %s8_s7 }
   0x3   :  { %p79_p1 = scmp.lt.u32.totalorder %s75_s10, %s166_s0 }
   0x5   :  { %p81_p2 = pnand %p79_p1, %p76_p0 }
   0x7   :  { %84 = shalt.err (!%p81_p2)
}
   0x8   :  { %s85_s15 = scalar_lea.vmem %s9_s7, 128  ;;  %s89_s16 = scalar_lea.vmem %s9_s7, 256 }
   0x9   :  { %p86_p3 = scmp.ne.s32.totalorder %s9_s7, %s85_s15  ;;  %p90_p4 = scmp.lt.s32.totalorder %s9_s7, %s9_s7 }
   0xa   :  { %p91_p5 = scmp.lt.s32.totalorder %s89_s16, %s85_s15 }
   0xc   :  { %p92_p6 = por %p91_p5, %p90_p4 }
   0xe   :  { %p93_p7 = pnand %p92_p6, %p86_p3 }
  0x10   :  { %96 = shalt.err (!%p93_p7)
}
  0x11   :  { %s100_s17 = smov 128   ;;  %s101_s18 = smov 8  }
  0x12   :  { %14 = dma.hbm_to_vmem [thread:$0]  %s166_s0, 128, %s9_s7, [#allocation1], %s100_s17, %s100_s17, %s101_s18  }
  0x13   :  { %97 = dma.done.wait [#allocation1], 256  }
  0x14   :  { %98 = vsyncadd [#allocation1], 4294967040  ;;  %v18_v0 = vld [vmem:[#allocation0] ss:$0 sm:$0xff]  ;;  %v23_v1 = vld [vmem:[#allocation0 + $0x1] ss:$0 sm:$0xff] }
  0x15   :  { %v29_v2 = vld [vmem:[#allocation0 + $0x2] ss:$0 sm:$0xff]  ;;  %19 = vst [vmem:[%s167_s1] sm:$0x3] %v18_v0  ;;  %59 = vst [vmem:[%s167_s1 + $0xe] sm:$0x3] %v18_v0 }
  0x16   :  { %60 = vst [vmem:[%s167_s1 + $0x2] sm:$0x3] %v23_v1  ;;  %61 = vst [vmem:[%s167_s1 + $0x10] sm:$0x3] %v23_v1  ;;  %v35_v3 = vld [vmem:[#allocation0 + $0x3] ss:$0 sm:$0xff] }
  0x17   :  { %62 = vst [vmem:[%s167_s1 + $0x4] sm:$0x3] %v29_v2  ;;  %63 = vst [vmem:[%s167_s1 + $0x12] sm:$0x3] %v29_v2  ;;  %v41_v4 = vld [vmem:[#allocation0 + $0x4] ss:$0 sm:$0xff] }
  0x18   :  { %v47_v5 = vld [vmem:[#allocation0 + $0x5] ss:$0 sm:$0xff]  ;;  %64 = vst [vmem:[%s167_s1 + $0x6] sm:$0x3] %v35_v3  ;;  %65 = vst [vmem:[%s167_s1 + $0x14] sm:$0x3] %v35_v3 }
  0x19   :  { %66 = vst [vmem:[%s167_s1 + $0x8] sm:$0x3] %v41_v4  ;;  %67 = vst [vmem:[%s167_s1 + $0x16] sm:$0x3] %v41_v4  ;;  %v53_v6 = vld [vmem:[#allocation0 + $0x6] ss:$0 sm:$0xff] }
  0x1a   :  { %68 = vst [vmem:[%s167_s1 + $0xa] sm:$0x3] %v47_v5  ;;  %69 = vst [vmem:[%s167_s1 + $0x18] sm:$0x3] %v47_v5 }
  0x1b   :  { %70 = vst [vmem:[%s167_s1 + $0xc] sm:$0x3] %v53_v6  ;;  %71 = vst [vmem:[%s167_s1 + $0x1a] sm:$0x3] %v53_v6 }
  0x1c   :  { %58 = vsyncpa [#allocation1], 1 }

// kernel: tile.9
= control target key start
LH: loop header
LB: loop body
LE: loop exit
PB: predicated region body
PF: predicated region fallthrough
CT: control target
= control target key end

     0   :  { %vm72_vm0 = vcmask 1047556   ;;  %vm81_vm1 = vcmask 1045508   ;;  %vm74_vm2 = vcmask 56320   ;;  %s79_s5 = smov 48  ;;  %s136_s6 = smov 7   ;;  %vm94_vm3 = vcmask 113720   ;;  %s205_s0 = inlined_call_operand.vmem [shape: f32[2,7,2,7], index: 0, kind: input, shape index: {}]   ;;  %s206_s1 = inlined_call_operand.vmem [shape: f32[14,14], index: 1, kind: output, shape index: {}]  }
   0x1   :  { %v126_v0 = vld [vmem:[%s205_s0 + $0xe] sm:$0x3]  ;;  %v127_v1 = vld [vmem:[%s205_s0 + $0xc] sm:$0x3]  ;;  %v128_v2 = vld [vmem:[%s205_s0 + $0xa] sm:$0x3] }
   0x2   :  { %38 = vst [vmem:[#allocation0 + $0x38] sm:$0x3] %v126_v0  ;;  %43 = vst [vmem:[#allocation0 + $0x30] sm:$0x3] %v127_v1  ;;  %v129_v3 = vld [vmem:[%s205_s0 + $0x8] sm:$0x3] }
   0x3   :  { %48 = vst [vmem:[#allocation0 + $0x28] sm:$0x3] %v128_v2  ;;  %v130_v4 = vld [vmem:[%s205_s0 + $0x6] sm:$0x3]  ;;  %v131_v5 = vld [vmem:[%s205_s0 + $0x4] sm:$0x3] }
   0x4   :  { %53 = vst [vmem:[#allocation0 + $0x20] sm:$0x3] %v129_v3  ;;  %58 = vst [vmem:[#allocation0 + $0x18] sm:$0x3] %v130_v4  ;;  %v132_v6 = vld [vmem:[%s205_s0 + $0x2] sm:$0x3] }
   0x5   :  { %63 = vst [vmem:[#allocation0 + $0x10] sm:$0x3] %v131_v5  ;;  %v68_v7 = vld [vmem:[%s205_s0] sm:$0x3]  ;;  %67 = vst [vmem:[#allocation0 + $0x8] sm:$0x3] %v132_v6 }
   0x6   :  { %69 = vst [vmem:[#allocation0] sm:$0x3] %v68_v7  ;;  %v120_v8 = vld [vmem:[%s205_s0 + $0x1a] sm:$0x3]  ;;  %v121_v9 = vld [vmem:[%s205_s0 + $0x18] sm:$0x3] }
   0x7   :  { %v122_v10 = vld [vmem:[%s205_s0 + $0x16] sm:$0x3]  ;;  %8 = vst [vmem:[#allocation0 + $0x68] sm:$0x3] %v120_v8  ;;  %13 = vst [vmem:[#allocation0 + $0x60] sm:$0x3] %v121_v9 }
   0x8   :  { %18 = vst [vmem:[#allocation0 + $0x58] sm:$0x3] %v122_v10  ;;  %v123_v11 = vld [vmem:[%s205_s0 + $0x14] sm:$0x3]  ;;  %v124_v12 = vld [vmem:[%s205_s0 + $0x12] sm:$0x3] }
   0x9   :  { %v125_v13 = vld [vmem:[%s205_s0 + $0x10] sm:$0x3]  ;;  %23 = vst [vmem:[#allocation0 + $0x50] sm:$0x3] %v123_v11  ;;  %28 = vst [vmem:[#allocation0 + $0x48] sm:$0x3] %v124_v12 }
   0xa   :  { %33 = vst [vmem:[#allocation0 + $0x40] sm:$0x3] %v125_v13  ;;  %s99_s0 = smov 48 }
   0xb   :  { %v89_v14 = vld [vmem:[#allocation0 + $0x1] ss:$8 sm:$0xf0]   ;;  %v71_v15 = vld [vmem:[#allocation0] ss:$8 sm:$0xf0]  }
   0xd   :  { %v70_v16 = vld [vmem:[#allocation0] ss:$8 sm:$0xf]   ;;  %v87_v17 = vld [vmem:[#allocation0 + $0x1] ss:$8 sm:$0xf]  }
   0xe   :  { %v91_v18 = vsel %vm72_vm0, %v89_v14, %v87_v17  ;;  %v73_v19 = vsel %vm72_vm0, %v71_v15, %v70_v16 }
   0xf   :  { %92 = vrot.lane.b32.xlu0 %v91_v18, %s136_s6  ;;  %75 = vst.msk [vmem:[%s206_s1] sm:$0xff] %vm74_vm2, %v73_v19  }
  0x11   :  { %v97_v20 = vld [vmem:[#allocation0 + $0x41] ss:$8 sm:$0xf]   ;;  %v77_v23 = vld [vmem:[#allocation0 + $0x40] ss:$8 sm:$0xf]  }
  0x12   :  { %v100_v21 = vld [vmem:[#allocation0 + $0x41] ss:$8 sm:%s99_s0]   ;;  %v80_v24 = vld [vmem:[#allocation0 + $0x40] ss:$8 sm:%s79_s5]  }
  0x13   :  { %v102_v22 = vsel %vm81_vm1, %v100_v21, %v97_v20  ;;  %v82_v25 = vsel %vm81_vm1, %v80_v24, %v77_v23 }
  0x14   :  { %133 = vst.msk [vmem:[%s206_s1 + $0x8] sm:$0x3f] %vm74_vm2, %v82_v25   ;;  %103 = vrot.lane.b32.xlu0 %v102_v22, %s136_s6 }
  0x81   :  { %v93_v26 = vpop.permute.xlu0 %92  }
  0x82   :  { %95 = vst.msk [vmem:[%s206_s1] sm:$0xff] %vm94_vm3, %v93_v26  }
  0x86   :  { %v104_v27 = vpop.permute.xlu0 %103  }
  0x87   :  { %134 = vst.msk [vmem:[%s206_s1 + $0x8] sm:$0x3f] %vm94_vm3, %v104_v27  }

// kernel: transformer_forward.2
= control target key start
LH: loop header
LB: loop body
LE: loop exit
PB: predicated region body
PF: predicated region fallthrough
CT: control target
= control target key end

     0   :  { %s7134_s0 = inlined_call_operand.vmem [shape: f32[16,64], index: 0, kind: input, shape index: {}]   ;;  %s7135_s1 = inlined_call_operand.vmem [shape: f32[16,16], index: 1, kind: input, shape index: {}]   ;;  %s7136_s2 = inlined_call_operand.vmem [shape: f32[192,64], index: 2, kind: input, shape index: {}]   ;;  %s7137_s3 = inlined_call_operand.hbm [shape: f32[3,64], index: 3, kind: input, shape index: {}]   ;;  %s7138_s4 = inlined_call_operand.hbm [shape: f32[64,64], index: 4, kind: input, shape index: {}]   ;;  %s7139_s5 = inlined_call_operand.hbm [shape: f32[1,64], index: 5, kind: input, shape index: {}]   ;;  %s7140_s6 = inlined_call_operand.hbm [shape: f32[1,64], index: 6, kind: input, shape index: {}]   ;;  %s7141_s7 = inlined_call_operand.hbm [shape: f32[1,64], index: 7, kind: input, shape index: {}]   ;;  %s7142_s8 = inlined_call_operand.hbm [shape: f32[1,64], index: 8, kind: input, shape index: {}]   ;;  %s7143_s9 = inlined_call_operand.hbm [shape: f32[1,64], index: 9, kind: input, shape index: {}]   ;;  %s7144_s10 = inlined_call_operand.vmem [shape: f32[2048,64], index: 10, kind: input, shape index: {}]   ;;  %s7145_s11 = inlined_call_operand.hbm [shape: f32[1,2048], index: 11, kind: input, shape index: {}]   ;;  %s7146_s12 = inlined_call_operand.vmem [shape: f32[64,2048], index: 12, kind: input, shape index: {}]   ;;  %s7147_s13 = inlined_call_operand.hbm [shape: f32[1,64], index: 13, kind: input, shape index: {}]   ;;  %s7148_s14 = inlined_call_operand.hbm [shape: f32[1,64], index: 14, kind: input, shape index: {}]   ;;  %s7149_s15 = inlined_call_operand.hbm [shape: f32[1,64], index: 15, kind: input, shape index: {}]   ;;  %s7150_s16 = inlined_call_operand.vmem [shape: f32[16,64], index: 16, kind: output, shape index: {}]  }
   0x1   :  { %7153 = sst [smem:[#allocation25_spill]] %s7134_s0 }
   0x2   :  { %7154 = sst [smem:[#allocation26_spill]] %s7150_s16 }
   0x3   :  { %21 = vsyncpa [#allocation3], 0 }
   0x4   :  { %22 = vsyncpa [#allocation5], 0 }
   0x5   :  { %23 = vsyncpa [#allocation8], 0 }
   0x6   :  { %24 = vsyncpa [#allocation11], 0 }
   0x7   :  { %25 = vsyncpa [#allocation14], 0 }
   0x8   :  { %26 = vsyncpa [#allocation17], 0  ;;  %s5150_s21 = smov [#allocation4]   ;;  %s4896_s25 = scalar_lea.hbm %s7138_s4, 1024 }
   0x9   :  { %s48_s22 = sshll.u32 %s5150_s21, 4  ;;  %p4897_p0 = scmp.ne.s32.totalorder %s7138_s4, %s4896_s25  ;;  %s49_s22 = int_to_ptr.vmem [resolvable:$true] %s48_s22 }
   0xa   :  { %p4900_p1 = scmp.lt.u32.totalorder %s4896_s25, %s7138_s4 }
   0xc   :  { %p4902_p2 = pnand %p4900_p1, %p4897_p0 }
   0xe   :  { %4905 = shalt.err (!%p4902_p2)
}
   0xf   :  { %s4906_s30 = scalar_lea.vmem %s49_s22, 1024  ;;  %p4911_p4 = scmp.lt.s32.totalorder %s49_s22, %s49_s22 }
  0x10   :  { %p4907_p3 = scmp.ne.s32.totalorder %s49_s22, %s4906_s30  ;;  %p4912_p5 = scmp.lt.s32.totalorder %s4906_s30, %s4906_s30 }
  0x12   :  { %p4913_p6 = por %p4912_p5, %p4911_p4 }
  0x14   :  { %p4914_p7 = pnand %p4913_p6, %p4907_p3 }
  0x16   :  { %4917 = shalt.err (!%p4914_p7)
}
  0x17   :  { %s5151_s0 = smov 128   ;;  %s5152_s17 = smov 8  }
  0x18   :  { %54 = dma.hbm_to_vmem [thread:$0]  %s7138_s4, 1024, %s49_s22, [#allocation5], %s5151_s0, %s5151_s0, %s5152_s17  }
  0x19   :  { %s5153_s20 = smov [#allocation7]   ;;  %s5154_s23 = smov [#allocation10]  }
  0x1a   :  { %s71_s21 = sshll.u32 %s5153_s20, 4  ;;  %s91_s24 = sshll.u32 %s5154_s23, 4  ;;  %s72_s21 = int_to_ptr.vmem [resolvable:$true] %s71_s21  ;;  %s92_s24 = int_to_ptr.vmem [resolvable:$true] %s91_s24 }
  0x1b   :  { %s4918_s27 = scalar_lea.hbm %s7140_s6, 16 }
  0x1c   :  { %p4919_p8 = scmp.ne.s32.totalorder %s7140_s6, %s4918_s27  ;;  %p4922_p9 = scmp.lt.u32.totalorder %s4918_s27, %s7140_s6 }
  0x1e   :  { %p4924_p10 = pnand %p4922_p9, %p4919_p8 }
  0x20   :  { %4927 = shalt.err (!%p4924_p10)
}
  0x21   :  { %s4928_s4 = scalar_lea.vmem %s72_s21, 16  ;;  %s4932_s22 = scalar_lea.vmem %s72_s21, 32 }
  0x22   :  { %p4929_p11 = scmp.ne.s32.totalorder %s72_s21, %s4928_s4  ;;  %p4933_p12 = scmp.lt.s32.totalorder %s72_s21, %s72_s21 }
  0x23   :  { %p4934_p13 = scmp.lt.s32.totalorder %s4932_s22, %s4928_s4 }
  0x25   :  { %p4935_p0 = por %p4934_p13, %p4933_p12 }
  0x27   :  { %p4936_p1 = pnand %p4935_p0, %p4929_p11 }
  0x29   :  { %4939 = shalt.err (!%p4936_p1)
}
  0x2a   :  { %74 = dma.hbm_to_vmem [thread:$0]  %s7140_s6, 16, %s72_s21, [#allocation8]  }
  0x2b   :  { %s4940_s16 = scalar_lea.hbm %s7142_s8, 16 }
  0x2c   :  { %p4941_p2 = scmp.ne.s32.totalorder %s7142_s8, %s4940_s16  ;;  %p4944_p3 = scmp.lt.u32.totalorder %s4940_s16, %s7142_s8 }
  0x2e   :  { %p4946_p4 = pnand %p4944_p3, %p4941_p2 }
  0x30   :  { %4949 = shalt.err (!%p4946_p4)
}
  0x31   :  { %s4950_s27 = scalar_lea.vmem %s92_s24, 16  ;;  %s4954_s28 = scalar_lea.vmem %s92_s24, 32 }
  0x32   :  { %p4951_p5 = scmp.ne.s32.totalorder %s92_s24, %s4950_s27  ;;  %p4955_p6 = scmp.lt.s32.totalorder %s92_s24, %s92_s24 }
  0x33   :  { %p4956_p7 = scmp.lt.s32.totalorder %s4954_s28, %s4950_s27 }
  0x35   :  { %p4957_p8 = por %p4956_p7, %p4955_p6 }
  0x37   :  { %p4958_p9 = pnand %p4957_p8, %p4951_p5 }
  0x39   :  { %4961 = shalt.err (!%p4958_p9)
}
  0x3a   :  { %94 = dma.hbm_to_vmem [thread:$0]  %s7142_s8, 16, %s92_s24, [#allocation11]  }
  0x3b   :  { %s5155_s29 = smov [#allocation13]   ;;  %s5156_s4 = smov [#allocation16]  }
  0x3c   :  { %s113_s30 = sshll.u32 %s5155_s29, 4  ;;  %s135_s22 = sshll.u32 %s5156_s4, 4  ;;  %s114_s30 = int_to_ptr.vmem [resolvable:$true] %s113_s30  ;;  %s136_s22 = int_to_ptr.vmem [resolvable:$true] %s135_s22 }
  0x3d   :  { %s4962_s18 = scalar_lea.hbm %s7145_s11, 256 }
  0x3e   :  { %p4963_p10 = scmp.ne.s32.totalorder %s7145_s11, %s4962_s18  ;;  %p4966_p11 = scmp.lt.u32.totalorder %s4962_s18, %s7145_s11 }
  0x40   :  { %p4968_p12 = pnand %p4966_p11, %p4963_p10 }
  0x42   :  { %4971 = shalt.err (!%p4968_p12)
}
  0x43   :  { %s4972_s8 = scalar_lea.vmem %s114_s30, 256  ;;  %p4977_p0 = scmp.lt.s32.totalorder %s114_s30, %s114_s30 }
  0x44   :  { %p4973_p13 = scmp.ne.s32.totalorder %s114_s30, %s4972_s8  ;;  %p4978_p1 = scmp.lt.s32.totalorder %s4972_s8, %s4972_s8 }
  0x46   :  { %p4979_p2 = por %p4978_p1, %p4977_p0 }
  0x48   :  { %p4980_p3 = pnand %p4979_p2, %p4973_p13 }
  0x4a   :  { %4983 = shalt.err (!%p4980_p3)
}
  0x4b   :  { %116 = dma.hbm_to_vmem [thread:$0]  %s7145_s11, 256, %s114_s30, [#allocation14]  }
  0x4c   :  { %s4984_s28 = scalar_lea.hbm %s7148_s14, 16 }
  0x4d   :  { %p4985_p4 = scmp.ne.s32.totalorder %s7148_s14, %s4984_s28  ;;  %p4988_p5 = scmp.lt.u32.totalorder %s4984_s28, %s7148_s14 }
  0x4f   :  { %p4990_p6 = pnand %p4988_p5, %p4985_p4 }
  0x51   :  { %4993 = shalt.err (!%p4990_p6)
}
  0x52   :  { %s4994_s0 = scalar_lea.vmem %s136_s22, 16  ;;  %s4998_s17 = scalar_lea.vmem %s136_s22, 32 }
  0x53   :  { %p4995_p7 = scmp.ne.s32.totalorder %s136_s22, %s4994_s0  ;;  %p4999_p8 = scmp.lt.s32.totalorder %s136_s22, %s136_s22 }
  0x54   :  { %p5000_p9 = scmp.lt.s32.totalorder %s4998_s17, %s4994_s0 }
  0x56   :  { %p5001_p10 = por %p5000_p9, %p4999_p8 }
  0x58   :  { %p5002_p11 = pnand %p5001_p10, %p4995_p7 }
  0x5a   :  { %5005 = shalt.err (!%p5002_p11)
}
  0x5b   :  { %138 = dma.hbm_to_vmem [thread:$0]  %s7148_s14, 16, %s136_s22, [#allocation17]  }
  0x5c   :  { %s5157_s18 = smov [#allocation2]   ;;  %s5158_s16 = smov [#allocation6]  }
  0x5d   :  { %s39_s19 = sshll.u32 %s5157_s18, 4  ;;  %s61_s20 = sshll.u32 %s5158_s16, 4  ;;  %s40_s19 = int_to_ptr.vmem [resolvable:$true] %s39_s19  ;;  %s62_s20 = int_to_ptr.vmem [resolvable:$true] %s61_s20 }
  0x5e   :  { %s5006_s24 = scalar_lea.hbm %s7137_s3, 64 }
  0x5f   :  { %p5007_p12 = scmp.ne.s32.totalorder %s7137_s3, %s5006_s24  ;;  %p5010_p13 = scmp.lt.u32.totalorder %s5006_s24, %s7137_s3 }
  0x61   :  { %p5012_p0 = pnand %p5010_p13, %p5007_p12 }
  0x63   :  { %5015 = shalt.err (!%p5012_p0)
}
  0x64   :  { %s5016_s14 = scalar_lea.vmem %s40_s19, 64  ;;  %p5021_p2 = scmp.lt.s32.totalorder %s40_s19, %s40_s19 }
  0x65   :  { %p5017_p1 = scmp.ne.s32.totalorder %s40_s19, %s5016_s14  ;;  %p5022_p3 = scmp.lt.s32.totalorder %s5016_s14, %s5016_s14 }
  0x67   :  { %p5023_p4 = por %p5022_p3, %p5021_p2 }
  0x69   :  { %p5024_p5 = pnand %p5023_p4, %p5017_p1 }
  0x6b   :  { %5027 = shalt.err (!%p5024_p5)
}
  0x6c   :  { %42 = dma.hbm_to_vmem [thread:$0]  %s7137_s3, 64, %s40_s19, [#allocation3]  }
  0x6d   :  { %s5028_s4 = scalar_lea.hbm %s7139_s5, 16 }
  0x6e   :  { %p5029_p6 = scmp.ne.s32.totalorder %s7139_s5, %s5028_s4  ;;  %p5032_p7 = scmp.lt.u32.totalorder %s5028_s4, %s7139_s5 }
  0x70   :  { %p5034_p8 = pnand %p5032_p7, %p5029_p6 }
  0x72   :  { %5037 = shalt.err (!%p5034_p8)
}
  0x73   :  { %s5038_s18 = scalar_lea.vmem %s62_s20, 16  ;;  %s5042_s16 = scalar_lea.vmem %s62_s20, 32 }
  0x74   :  { %p5039_p9 = scmp.ne.s32.totalorder %s62_s20, %s5038_s18  ;;  %p5043_p10 = scmp.lt.s32.totalorder %s62_s20, %s62_s20 }
  0x75   :  { %p5044_p11 = scmp.lt.s32.totalorder %s5042_s16, %s5038_s18 }
  0x77   :  { %p5045_p12 = por %p5044_p11, %p5043_p10 }
  0x79   :  { %p5046_p13 = pnand %p5045_p12, %p5039_p9 }
  0x7b   :  { %5049 = shalt.err (!%p5046_p13)
}
  0x7c   :  { %64 = dma.hbm_to_vmem [thread:$0]  %s7139_s5, 16, %s62_s20, [#allocation5]  }
  0x7d   :  { %s5159_s23 = smov [#allocation9]   ;;  %s5160_s24 = smov [#allocation12]  }
  0x7e   :  { %s81_s8 = sshll.u32 %s5159_s23, 4  ;;  %s101_s25 = sshll.u32 %s5160_s24, 4  ;;  %s82_s8 = int_to_ptr.vmem [resolvable:$true] %s81_s8  ;;  %s102_s25 = int_to_ptr.vmem [resolvable:$true] %s101_s25 }
  0x7f   :  { %s5050_s28 = scalar_lea.hbm %s7141_s7, 16 }
  0x80   :  { %p5051_p0 = scmp.ne.s32.totalorder %s7141_s7, %s5050_s28  ;;  %p5054_p1 = scmp.lt.u32.totalorder %s5050_s28, %s7141_s7 }
  0x82   :  { %p5056_p2 = pnand %p5054_p1, %p5051_p0 }
  0x84   :  { %5059 = shalt.err (!%p5056_p2)
}
  0x85   :  { %s5060_s5 = scalar_lea.vmem %s82_s8, 16  ;;  %s5064_s20 = scalar_lea.vmem %s82_s8, 32 }
  0x86   :  { %p5061_p3 = scmp.ne.s32.totalorder %s82_s8, %s5060_s5  ;;  %p5065_p4 = scmp.lt.s32.totalorder %s82_s8, %s82_s8 }
  0x87   :  { %p5066_p5 = scmp.lt.s32.totalorder %s5064_s20, %s5060_s5 }
  0x89   :  { %p5067_p6 = por %p5066_p5, %p5065_p4 }
  0x8b   :  { %p5068_p7 = pnand %p5067_p6, %p5061_p3 }
  0x8d   :  { %5071 = shalt.err (!%p5068_p7)
}
  0x8e   :  { %84 = dma.hbm_to_vmem [thread:$0]  %s7141_s7, 16, %s82_s8, [#allocation8]  }
  0x8f   :  { %s5072_s11 = scalar_lea.hbm %s7143_s9, 16 }
  0x90   :  { %p5073_p8 = scmp.ne.s32.totalorder %s7143_s9, %s5072_s11  ;;  %p5076_p9 = scmp.lt.u32.totalorder %s5072_s11, %s7143_s9 }
  0x92   :  { %p5078_p10 = pnand %p5076_p9, %p5073_p8 }
  0x94   :  { %5081 = shalt.err (!%p5078_p10)
}
  0x95   :  { %s5082_s19 = scalar_lea.vmem %s102_s25, 16  ;;  %s5086_s23 = scalar_lea.vmem %s102_s25, 32 }
  0x96   :  { %p5083_p11 = scmp.ne.s32.totalorder %s102_s25, %s5082_s19  ;;  %p5087_p12 = scmp.lt.s32.totalorder %s102_s25, %s102_s25 }
  0x97   :  { %p5088_p13 = scmp.lt.s32.totalorder %s5086_s23, %s5082_s19 }
  0x99   :  { %p5089_p0 = por %p5088_p13, %p5087_p12 }
  0x9b   :  { %p5090_p1 = pnand %p5089_p0, %p5083_p11 }
  0x9d   :  { %5093 = shalt.err (!%p5090_p1)
}
  0x9e   :  { %104 = dma.hbm_to_vmem [thread:$0]  %s7143_s9, 16, %s102_s25, [#allocation11]  }
  0x9f   :  { %s5161_s24 = smov [#allocation15]   ;;  %s5162_s27 = smov [#allocation18]  }
  0xa0   :  { %s125_s26 = sshll.u32 %s5161_s24, 4  ;;  %s145_s28 = sshll.u32 %s5162_s27, 4  ;;  %s126_s26 = int_to_ptr.vmem [resolvable:$true] %s125_s26  ;;  %s146_s28 = int_to_ptr.vmem [resolvable:$true] %s145_s28 }
  0xa1   :  { %s5094_s6 = scalar_lea.hbm %s7147_s13, 16 }
  0xa2   :  { %p5095_p2 = scmp.ne.s32.totalorder %s7147_s13, %s5094_s6  ;;  %p5098_p3 = scmp.lt.u32.totalorder %s5094_s6, %s7147_s13 }
  0xa4   :  { %p5100_p4 = pnand %p5098_p3, %p5095_p2 }
  0xa6   :  { %5103 = shalt.err (!%p5100_p4)
}
  0xa7   :  { %s5104_s9 = scalar_lea.vmem %s126_s26, 16  ;;  %s5108_s25 = scalar_lea.vmem %s126_s26, 32 }
  0xa8   :  { %p5105_p5 = scmp.ne.s32.totalorder %s126_s26, %s5104_s9  ;;  %p5109_p6 = scmp.lt.s32.totalorder %s126_s26, %s126_s26 }
  0xa9   :  { %p5110_p7 = scmp.lt.s32.totalorder %s5108_s25, %s5104_s9 }
  0xab   :  { %p5111_p8 = por %p5110_p7, %p5109_p6 }
  0xad   :  { %p5112_p9 = pnand %p5111_p8, %p5105_p5 }
  0xaf   :  { %5115 = shalt.err (!%p5112_p9)
}
  0xb0   :  { %128 = dma.hbm_to_vmem [thread:$0]  %s7147_s13, 16, %s126_s26, [#allocation14]  }
  0xb1   :  { %s5116_s30 = scalar_lea.hbm %s7149_s15, 16 }
  0xb2   :  { %p5117_p10 = scmp.ne.s32.totalorder %s7149_s15, %s5116_s30  ;;  %p5120_p11 = scmp.lt.u32.totalorder %s5116_s30, %s7149_s15 }
  0xb4   :  { %p5122_p12 = pnand %p5120_p11, %p5117_p10 }
  0xb6   :  { %5125 = shalt.err (!%p5122_p12)
}
  0xb7   :  { %s5126_s23 = scalar_lea.vmem %s146_s28, 16  ;;  %s5130_s7 = scalar_lea.vmem %s146_s28, 32 }
  0xb8   :  { %p5127_p13 = scmp.ne.s32.totalorder %s146_s28, %s5126_s23  ;;  %p5131_p0 = scmp.lt.s32.totalorder %s146_s28, %s146_s28 }
  0xb9   :  { %p5132_p1 = scmp.lt.s32.totalorder %s5130_s7, %s5126_s23 }
  0xbb   :  { %p5133_p2 = por %p5132_p1, %p5131_p0 }
  0xbd   :  { %p5134_p3 = pnand %p5133_p2, %p5127_p13 }
  0xbf   :  { %5137 = shalt.err (!%p5134_p3)
}
  0xc0   :  { %148 = dma.hbm_to_vmem [thread:$0]  %s7149_s15, 16, %s146_s28, [#allocation17]  }
  0xc1   :  { %5138 = dma.done.wait [#allocation3], 64  }
  0xc2   :  { %5139 = vsyncadd [#allocation3], 4294967232 }
  0xc3   :  { %5140 = dma.done.wait [#allocation5], 1040  }
  0xc4   :  { %5141 = vsyncadd [#allocation5], 4294966256 }
  0xc5   :  { %5142 = dma.done.wait [#allocation8], 32  }
  0xc6   :  { %5143 = vsyncadd [#allocation8], 4294967264 }
  0xc7   :  { %5144 = dma.done.wait [#allocation11], 32  }
  0xc8   :  { %5145 = vsyncadd [#allocation11], 4294967264 }
  0xc9   :  { %5146 = dma.done.wait [#allocation14], 272  }
  0xca   :  { %5147 = vsyncadd [#allocation14], 4294967024 }
  0xcb   :  { %5148 = dma.done.wait [#allocation17], 32  }
  0xcc   :  { %5149 = vsyncadd [#allocation17], 4294967264  ;;  %vm197_vm0 = vcmask 523264   ;;  %v303_v1 = vld [vmem:[%s7136_s2 + $0x40] sm:$0xff]  ;;  %v304_v2 = vld [vmem:[%s7136_s2 + $0x48] sm:$0xff]  ;;  %s7157_s30 = sld [smem:[#allocation25_spill]] }
  0xcd   :  { %vm5382_vm1 = vmpackc.low %vm197_vm0, %vm197_vm0  ;;  %v184_v3 = vld [vmem:[%s7136_s2] sm:$0xff]  ;;  %v4269_v4 = vpack.c.bf16 %v304_v2, %v303_v1  ;;  %v185_v5 = vld [vmem:[%s7136_s2 + $0x8] sm:$0xff]  ;;  %vm620_vm2 = vcmask 130048   ;;  %s7158_s6 = sld [smem:[#allocation26_spill]] }
  0xce   :  { %v305_v6 = vld [vmem:[%s7136_s2 + $0x50] sm:$0xff]  ;;  %v306_v7 = vld [vmem:[%s7136_s2 + $0x58] sm:$0xff]  ;;  %v4245_v8 = vpack.c.bf16 %v185_v5, %v184_v3  ;;  %v307_v14 = vld [vmem:[%s7136_s2 + $0x60] sm:$0xff] }
  0xcf   :  { %v4275_v9 = vpack.c.bf16 %v306_v7, %v305_v6  ;;  %v186_v10 = vld [vmem:[%s7136_s2 + $0x10] sm:$0xff]  ;;  %v187_v11 = vld [vmem:[%s7136_s2 + $0x18] sm:$0xff]  ;;  %4271 = vmatprep.subr.msk.bf16.mxu1 %vm5382_vm1, %v4269_v4  ;;  %v308_v15 = vld [vmem:[%s7136_s2 + $0x68] sm:$0xff] }
  0xd0   :  { %v4251_v12 = vpack.c.bf16 %v187_v11, %v186_v10  ;;  %4274 = vmatpush3.bf16.xpose.msk.msra.mxu1 %vm5382_vm1, %v4269_v4  ;;  %4247 = vmatprep.subr.msk.bf16.mxu0 %vm5382_vm1, %v4245_v8  ;;  %v188_v16 = vld [vmem:[%s7136_s2 + $0x20] sm:$0xff]  ;;  %v189_v17 = vld [vmem:[%s7136_s2 + $0x28] sm:$0xff]  ;;  %v4281_v18 = vpack.c.bf16 %v308_v15, %v307_v14  ;;  %v309_v20 = vld [vmem:[%s7136_s2 + $0x70] sm:$0xff] }
  0xd1   :  { %4277 = vmatprep.subr.msk.bf16.mxu1 %vm5382_vm1, %v4275_v9  ;;  %4250 = vmatpush3.bf16.xpose.msk.msra.mxu0 %vm5382_vm1, %v4245_v8  ;;  %v4257_v19 = vpack.c.bf16 %v189_v17, %v188_v16  ;;  %v310_v21 = vld [vmem:[%s7136_s2 + $0x78] sm:$0xff]  ;;  %v190_v22 = vld [vmem:[%s7136_s2 + $0x30] sm:$0xff]  ;;  %v415_v26 = vld [vmem:[%s7136_s2 + $0x80] sm:$0xff] }
  0xd2   :  { %v5419_v13 = vld [vmem:[%s7157_s30] sm:$0xff]  ;;  %4253 = vmatprep.subr.msk.bf16.mxu0 %vm5382_vm1, %v4251_v12  ;;  %v191_v23 = vld [vmem:[%s7136_s2 + $0x38] sm:$0xff]  ;;  %v4287_v24 = vpack.c.bf16 %v310_v21, %v309_v20  ;;  %v416_v27 = vld [vmem:[%s7136_s2 + $0x88] sm:$0xff] }
  0xd3   :  { %4190 = vmatprep.mubr.msk.f32.mxu1 %vm197_vm0, %v5419_v13  ;;  %4171 = vmatprep.mubr.msk.f32.mxu0 %vm197_vm0, %v5419_v13  ;;  %v4263_v25 = vpack.c.bf16 %v191_v23, %v190_v22  ;;  %v4293_v28 = vpack.c.bf16 %v416_v27, %v415_v26  ;;  %v417_v29 = vld [vmem:[%s7136_s2 + $0x90] sm:$0xff]  ;;  %v418_v30 = vld [vmem:[%s7136_s2 + $0x98] sm:$0xff]  ;;  %v5492_v31 = vld [vmem:[%s7157_s30 + $0x8] sm:$0xff] }
  0xd4   :  { %v4299_v32 = vpack.c.bf16 %v418_v30, %v417_v29  ;;  %v419_v33 = vld [vmem:[%s7136_s2 + $0xa0] sm:$0xff]  ;;  %v420_v34 = vld [vmem:[%s7136_s2 + $0xa8] sm:$0xff]  ;;  %v421_v36 = vld [vmem:[%s7136_s2 + $0xb0] sm:$0xff] }
  0xd5   :  { %v4305_v35 = vpack.c.bf16 %v420_v34, %v419_v33  ;;  %v422_v37 = vld [vmem:[%s7136_s2 + $0xb8] sm:$0xff]  ;;  %v3501_v39 = vld [vmem:[#allocation2 + $0x1] ss:$0 sm:$0xff]  ;;  %v3490_v41 = vld [vmem:[#allocation2] ss:$0 sm:$0xff] }
  0xd6   :  { %v4311_v38 = vpack.c.bf16 %v422_v37, %v421_v36  ;;  %v3512_v50 = vld [vmem:[#allocation2 + $0x2] ss:$0 sm:$0xff]  ;;  %v527_v58 = vld [vmem:[%s7135_s1] sm:$0xff]  ;;  %v528_v61 = vld [vmem:[%s7135_s1 + $0x8] sm:$0xff] }
  0xd7   :  { %v724_v14 = vld [vmem:[#allocation4] sm:$0xff]  ;;  %v725_v15 = vld [vmem:[#allocation4 + $0x8] sm:$0xff]  ;;  %v726_v21 = vld [vmem:[#allocation4 + $0x10] sm:$0xff] }
  0xd8   :  { %4280 = vmatpush3.bf16.xpose.msk.msra.mxu1 %vm5382_vm1, %v4275_v9  ;;  %v4327_v16 = vpack.c.bf16 %v725_v15, %v724_v14  ;;  %v727_v22 = vld [vmem:[#allocation4 + $0x18] sm:$0xff]  ;;  %v728_v26 = vld [vmem:[#allocation4 + $0x20] sm:$0xff]  ;;  %v729_v27 = vld [vmem:[#allocation4 + $0x28] sm:$0xff] }
  0xd9   :  { %4283 = vmatprep.subr.msk.bf16.mxu1 %vm5382_vm1, %v4281_v18  ;;  %4256 = vmatpush3.bf16.xpose.msk.msra.mxu0 %vm5382_vm1, %v4251_v12  ;;  %v730_v29 = vld [vmem:[#allocation4 + $0x30] sm:$0xff]  ;;  %v731_v30 = vld [vmem:[#allocation4 + $0x38] sm:$0xff]  ;;  %v914_v15 = vld [vmem:[%s7144_s10 + $0xb8] sm:$0xff] }
  0xda   :  { %4259 = vmatprep.subr.msk.bf16.mxu0 %vm5382_vm1, %v4257_v19  ;;  %v913_v14 = vld [vmem:[%s7144_s10 + $0xb0] sm:$0xff]  ;;  %v2686_v0 = vld [vmem:[%s7146_s12 + $0x108] sm:$0xff] }
  0xe0   :  { %4286 = vmatpush3.bf16.xpose.msk.msra.mxu1 %vm5382_vm1, %v4281_v18 }
  0xe1   :  { %4289 = vmatprep.subr.msk.bf16.mxu1 %vm5382_vm1, %v4287_v24  ;;  %4262 = vmatpush3.bf16.xpose.msk.msra.mxu0 %vm5382_vm1, %v4257_v19 }
  0xe2   :  { %4265 = vmatprep.subr.msk.bf16.mxu0 %vm5382_vm1, %v4263_v25 }
  0xe8   :  { %4292 = vmatpush3.bf16.xpose.msk.msra.mxu1 %vm5382_vm1, %v4287_v24 }
  0xe9   :  { %4268 = vmatpush3.bf16.xpose.msk.msra.mxu0 %vm5382_vm1, %v4263_v25  ;;  %v4333_v25 = vpack.c.bf16 %v727_v22, %v726_v21  ;;  %v897_v22 = vld [vmem:[%s7144_s10 + $0x30] sm:$0xff] }
  0xea   :  { %4295 = vmatprep.subr.msk.bf16.mxu0 %vm5382_vm1, %v4293_v28 }
  0xef   :  { %4191 = vmatmul.mubr.msk.f32.vlgmr.msra.gmra.mrb[0].mxu1 %vm197_vm0, %v5492_v31 }
  0xf0   :  { %4172 = vmatmul.mubr.msk.f32.vlgmr.msra.gmra.mrb[0].mxu0 %vm197_vm0, %v5492_v31 }
  0xf1   :  { %4298 = vmatpush3.bf16.xpose.msk.msra.mxu0 %vm5382_vm1, %v4293_v28  ;;  %4209 = vmatprep.mubr.msk.f32.mxu0 %vm197_vm0, %v5419_v13  ;;  %v4339_v28 = vpack.c.bf16 %v729_v27, %v728_v26  ;;  %v915_v26 = vld [vmem:[%s7144_s10 + $0xc0] sm:$0xff]  ;;  %v916_v27 = vld [vmem:[%s7144_s10 + $0xc8] sm:$0xff] }
  0xf2   :  { %4301 = vmatprep.subr.msk.bf16.mxu0 %vm5382_vm1, %v4299_v32 }
  0xf9   :  { %4304 = vmatpush3.bf16.xpose.msk.msra.mxu0 %vm5382_vm1, %v4299_v32  ;;  %v4345_v32 = vpack.c.bf16 %v731_v30, %v730_v29  ;;  %v948_v29 = vld [vmem:[%s7144_s10 + $0x1c8] sm:$0xff] }
  0xfa   :  { %4307 = vmatprep.subr.msk.bf16.mxu0 %vm5382_vm1, %v4305_v35 }
 0x101   :  { %4310 = vmatpush3.bf16.xpose.msk.msra.mxu0 %vm5382_vm1, %v4305_v35  ;;  %v3529_v35 = vld [vmem:[#allocation6] ss:$0 sm:$0xff] }
 0x102   :  { %4313 = vmatprep.subr.msk.bf16.mxu0 %vm5382_vm1, %v4311_v38 }
 0x109   :  { %4316 = vmatpush3.bf16.xpose.msk.msra.mxu0 %vm5382_vm1, %v4311_v38 }
 0x110   :  { %4210 = vmatmul.mubr.msk.f32.vlgmr.msra.gmra.mrb[2].mxu0 %vm197_vm0, %v5492_v31 }
 0x1c2   :  { %v4192_v40 = vpop.f32.mrb[0].mxu1 }
 0x1c3   :  { %v412_v42 = vadd.f32 %v4192_v40, %v3501_v39  ;;  %v406_v43 = vpop.f32.mrb[1].mxu1  ;;  %v4173_v44 = vpop.f32.mrb[0].mxu0 }
 0x1c4   :  { %v407_v45 = vadd.f32 %v3501_v39, %v406_v43  ;;  %v294_v46 = vpop.f32.mrb[1].mxu0  ;;  %v300_v49 = vadd.f32 %v4173_v44, %v3490_v41  ;;  %v907_v44 = vld [vmem:[%s7144_s10 + $0x80] sm:$0xff] }
 0x1c5   :  { %v295_v47 = vadd.f32 %v3490_v41, %v294_v46  ;;  %v940_v46 = vld [vmem:[%s7144_s10 + $0x188] sm:$0xff] }
 0x1c6   :  { %v4317_v48 = vpack.c.bf16 %v412_v42, %v407_v45 }
 0x1c7   :  { %4216 = vmatprep.mubr.msk.f32.mxu0 %vm197_vm0, %v295_v47  ;;  %v891_v47 = vld [vmem:[%s7144_s10] sm:$0xff] }
 0x1c8   :  { %4319 = vmatprep.subr.msk.bf16.mxu0 %vm5382_vm1, %v4317_v48 }
 0x1c9   :  { %4322 = vmatpush3.bf16.xpose.msk.msra.mxu0 %vm5382_vm1, %v4317_v48  ;;  %v892_v48 = vld [vmem:[%s7144_s10 + $0x8] sm:$0xff] }
 0x1d0   :  { %4217 = vmatmul.mubr.msk.f32.vlgmr.msra.gmra.mrb[4].mxu0 %vm197_vm0, %v300_v49 }
 0x1e3   :  { %v4211_v51 = vpop.f32.mrb[2].mxu0 }
 0x1e4   :  { %v524_v52 = vadd.f32 %v4211_v51, %v3512_v50  ;;  %v518_v53 = vpop.f32.mrb[3].mxu0  ;;  %v923_v51 = vld [vmem:[%s7144_s10 + $0x100] sm:$0xff] }
 0x1e5   :  { %v519_v54 = vadd.f32 %v3512_v50, %v518_v53  ;;  %v4354_v50 = vpack.c.bf16 %v892_v48, %v891_v47  ;;  %v909_v53 = vld [vmem:[%s7144_s10 + $0x90] sm:$0xff]  ;;  %v902_v48 = vld [vmem:[%s7144_s10 + $0x58] sm:$0xff] }
 0x1e6   :  { %v901_v47 = vld [vmem:[%s7144_s10 + $0x50] sm:$0xff] }
 0x1e7   :  { %v4323_v55 = vpack.c.bf16 %v524_v52, %v519_v54  ;;  %v924_v52 = vld [vmem:[%s7144_s10 + $0x108] sm:$0xff] }
 0x1e8   :  { %v4402_v54 = vpack.c.bf16 %v924_v52, %v923_v51  ;;  %v4384_v51 = vpack.c.bf16 %v902_v48, %v901_v47  ;;  %v973_v47 = vld [vmem:[%s7144_s10 + $0x290] sm:$0xff] }
 0x1e9   :  { %4324 = vmatprep.subr.bf16.mxu1 %v4323_v55 }
 0x1ea   :  { %4326 = vmatpush3.bf16.msra.mxu1 %v4323_v55  ;;  %v910_v55 = vld [vmem:[%s7144_s10 + $0x98] sm:$0xff] }
 0x1eb   :  { %4329 = vmatprep.subr.msk.bf16.mxu1 %vm5382_vm1, %v4327_v16 }
 0x2a3   :  { %v4218_v56 = vpop.f32.mrb[4].mxu0 }
 0x2a4   :  { %v607_v57 = vpop.f32.mrb[5].mxu0  ;;  %v617_v59 = vmul.f32 0.125, %v4218_v56  ;;  %v941_v56 = vld [vmem:[%s7144_s10 + $0x190] sm:$0xff] }
 0x2a5   :  { %v616_v60 = vmul.f32 0.125, %v607_v57  ;;  %v942_v57 = vld [vmem:[%s7144_s10 + $0x198] sm:$0xff] }
 0x2a6   :  { %v619_v1 = vadd.f32 %v617_v59, %v528_v61  ;;  %v4405_v59 = vpack.c.bf16 %v942_v57, %v941_v56  ;;  %v894_v61 = vld [vmem:[%s7144_s10 + $0x18] sm:$0xff] }
 0x2a7   :  { %v618_v62 = vadd.f32 %v616_v60, %v527_v58  ;;  %v4357_v58 = vpack.c.bf16 %v910_v55, %v909_v53  ;;  %v893_v60 = vld [vmem:[%s7144_s10 + $0x10] sm:$0xff] }
 0x2a8   :  { %v624_v2 = vsel %vm620_vm2, %v619_v1, -inf }
 0x2a9   :  { %v621_v63 = vsel %vm620_vm2, %v618_v62, -inf }
 0x2aa   :  { %622 = vmax.xlane.f32.xlu0 %v621_v63  ;;  %v926_v63 = vld [vmem:[%s7144_s10 + $0x118] sm:$0xff] }
 0x2ae   :  { %625 = vmax.xlane.f32.xlu0 %v624_v2  ;;  %v912_v2 = vld [vmem:[%s7144_s10 + $0xa8] sm:$0xff] }
 0x337   :  { %v623_v3 = vpop.xlane.xlu0 %622 }
 0x338   :  { %v627_v4 = vsub.f32 %v618_v62, %v623_v3  ;;  %v925_v62 = vld [vmem:[%s7144_s10 + $0x110] sm:$0xff]  ;;  %v943_v3 = vld [vmem:[%s7144_s10 + $0x1a0] sm:$0xff] }
 0x33a   :  { %v629_v5 = vmul.f32 1.442695, %v627_v4  ;;  %v944_v4 = vld [vmem:[%s7144_s10 + $0x1a8] sm:$0xff] }
 0x33b   :  { %v626_v6 = vpop.xlane.xlu0 %625 }
 0x33c   :  { %4876 = vpow2.f32 %v629_v5  ;;  %v628_v7 = vsub.f32 %v619_v1, %v626_v6  ;;  %v911_v1 = vld [vmem:[%s7144_s10 + $0xa0] sm:$0xff]  ;;  %v4360_v5 = vpack.c.bf16 %v894_v61, %v893_v60  ;;  %v4408_v6 = vpack.c.bf16 %v926_v63, %v925_v62 }
 0x33d   :  { %v919_v63 = vld [vmem:[%s7144_s10 + $0xe0] sm:$0xff] }
 0x33e   :  { %v631_v8 = vmul.f32 1.442695, %v628_v7  ;;  %v4363_v7 = vpack.c.bf16 %v912_v2, %v911_v1  ;;  %v920_v1 = vld [vmem:[%s7144_s10 + $0xe8] sm:$0xff] }
 0x33f   :  { %v952_v2 = vld [vmem:[%s7144_s10 + $0x1e8] sm:$0xff] }
 0x340   :  { %4878 = vpow2.f32 %v631_v8  ;;  %v4411_v8 = vpack.c.bf16 %v944_v4, %v943_v3  ;;  %v903_v3 = vld [vmem:[%s7144_s10 + $0x60] sm:$0xff]  ;;  %v904_v4 = vld [vmem:[%s7144_s10 + $0x68] sm:$0xff] }
 0x346   :  { %v4877_v9 = vpop.eup %4876 }
 0x347   :  { %v633_v10 = vsel %vm620_vm2, %v4877_v9, 0.0 }
 0x348   :  { %634 = vadd.xlane.f32.xlu1 %v633_v10  ;;  %v896_v10 = vld [vmem:[%s7144_s10 + $0x28] sm:$0xff] }
 0x34a   :  { %v4879_v11 = vpop.eup %4878 }
 0x34b   :  { %v636_v12 = vsel %vm620_vm2, %v4879_v11, 0.0 }
 0x34c   :  { %637 = vadd.xlane.f32.xlu1 %v636_v12  ;;  %v928_v12 = vld [vmem:[%s7144_s10 + $0x128] sm:$0xff] }
 0x3d5   :  { %v635_v17 = vpop.xlane.xlu1 %634 }
 0x3d6   :  { %4880 = vrcp.f32 %v635_v17  ;;  %v946_v17 = vld [vmem:[%s7144_s10 + $0x1b8] sm:$0xff] }
 0x3d9   :  { %v638_v18 = vpop.xlane.xlu1 %637 }
 0x3da   :  { %4882 = vrcp.f32 %v638_v18 }
 0x3e0   :  { %v4881_v19 = vpop.eup %4880 }
 0x3e1   :  { %v640_v20 = vmul.f32 %v4881_v19, %v4877_v9  ;;  %v895_v9 = vld [vmem:[%s7144_s10 + $0x20] sm:$0xff] }
 0x3e2   :  { %v4366_v18 = vpack.c.bf16 %v896_v10, %v895_v9  ;;  %v921_v10 = vld [vmem:[%s7144_s10 + $0xf0] sm:$0xff] }
 0x3e3   :  { %4223 = vmatprep.mubr.msk.f32.mxu1 %vm620_vm2, %v640_v20  ;;  %v4369_v20 = vpack.c.bf16 %v914_v15, %v913_v14  ;;  %v954_v15 = vld [vmem:[%s7144_s10 + $0x1f8] sm:$0xff] }
 0x3e4   :  { %v4883_v23 = vpop.eup %4882 }
 0x3e5   :  { %v642_v24 = vmul.f32 %v4883_v23, %v4879_v11  ;;  %v927_v11 = vld [vmem:[%s7144_s10 + $0x120] sm:$0xff]  ;;  %v898_v23 = vld [vmem:[%s7144_s10 + $0x38] sm:$0xff] }
 0x3e6   :  { %v4414_v19 = vpack.c.bf16 %v928_v12, %v927_v11  ;;  %v4372_v30 = vpack.c.bf16 %v898_v23, %v897_v22  ;;  %v922_v11 = vld [vmem:[%s7144_s10 + $0xf8] sm:$0xff]  ;;  %v953_v12 = vld [vmem:[%s7144_s10 + $0x1f0] sm:$0xff]  ;;  %v971_v23 = vld [vmem:[%s7144_s10 + $0x280] sm:$0xff] }
 0x3e7   :  { %4224 = vmatmul.mubr.msk.f32.vlgmr.msra.gmra.mrb[2].mxu1 %vm620_vm2, %v642_v24  ;;  %v929_v24 = vld [vmem:[%s7144_s10 + $0x130] sm:$0xff]  ;;  %v4393_v14 = vpack.c.bf16 %v922_v11, %v921_v10  ;;  %v978_v10 = vld [vmem:[%s7144_s10 + $0x2b8] sm:$0xff] }
 0x3e8   :  { %4332 = vmatpush3.bf16.xpose.msk.msra.mxu1 %vm5382_vm1, %v4327_v16  ;;  %v945_v16 = vld [vmem:[%s7144_s10 + $0x1b0] sm:$0xff] }
 0x3e9   :  { %4335 = vmatprep.subr.msk.bf16.mxu1 %vm5382_vm1, %v4333_v25  ;;  %v4417_v21 = vpack.c.bf16 %v946_v17, %v945_v16  ;;  %v905_v16 = vld [vmem:[%s7144_s10 + $0x70] sm:$0xff]  ;;  %v906_v17 = vld [vmem:[%s7144_s10 + $0x78] sm:$0xff] }
 0x3ea   :  { %v1009_v11 = vld [vmem:[%s7144_s10 + $0x3b0] sm:$0xff] }
 0x3f0   :  { %4338 = vmatpush3.bf16.xpose.msk.msra.mxu1 %vm5382_vm1, %v4333_v25  ;;  %v930_v25 = vld [vmem:[%s7144_s10 + $0x138] sm:$0xff] }
 0x3f1   :  { %4341 = vmatprep.subr.msk.bf16.mxu1 %vm5382_vm1, %v4339_v28 }
 0x3f8   :  { %4344 = vmatpush3.bf16.xpose.msk.msra.mxu1 %vm5382_vm1, %v4339_v28  ;;  %v947_v28 = vld [vmem:[%s7144_s10 + $0x1c0] sm:$0xff] }
 0x3f9   :  { %4347 = vmatprep.subr.msk.bf16.mxu1 %vm5382_vm1, %v4345_v32 }
 0x400   :  { %4350 = vmatpush3.bf16.xpose.msk.msra.mxu1 %vm5382_vm1, %v4345_v32  ;;  %v4420_v32 = vpack.c.bf16 %v930_v25, %v929_v24  ;;  %v972_v24 = vld [vmem:[%s7144_s10 + $0x288] sm:$0xff]  ;;  %v1003_v25 = vld [vmem:[%s7144_s10 + $0x380] sm:$0xff] }
 0x4ba   :  { %v4225_v33 = vpop.f32.mrb[2].mxu1 }
 0x4bb   :  { %v715_v34 = vpop.f32.mrb[3].mxu1 }
 0x4bc   :  { %4242 = vmatprep.mubr.msk.f32.mxu1 %vm197_vm0, %v715_v34  ;;  %v4423_v34 = vpack.c.bf16 %v948_v29, %v947_v28 }
 0x4bd   :  { %4243 = vmatmul.mubr.msk.f32.vlgmr.msra.gmra.mrb[4].mxu1 %vm197_vm0, %v4225_v33  ;;  %v4375_v33 = vpack.c.bf16 %v916_v27, %v915_v26  ;;  %v4447_v26 = vpack.c.bf16 %v972_v24, %v971_v23  ;;  %v1004_v27 = vld [vmem:[%s7144_s10 + $0x388] sm:$0xff]  ;;  %v1011_v24 = vld [vmem:[%s7144_s10 + $0x3c0] sm:$0xff] }
 0x4be   :  { %v4495_v28 = vpack.c.bf16 %v1004_v27, %v1003_v25  ;;  %v980_v23 = vld [vmem:[%s7144_s10 + $0x2c8] sm:$0xff] }
 0x4bf   :  { %v1012_v25 = vld [vmem:[%s7144_s10 + $0x3c8] sm:$0xff] }
 0x590   :  { %v4244_v36 = vpop.f32.mrb[4].mxu1 }
 0x591   :  { %v841_v37 = vadd.f32 %v4244_v36, %v3529_v35  ;;  %v835_v38 = vpop.f32.mrb[5].mxu1  ;;  %v900_v36 = vld [vmem:[%s7144_s10 + $0x48] sm:$0xff] }
 0x592   :  { %v836_v39 = vadd.f32 %v3529_v35, %v835_v38  ;;  %v899_v35 = vld [vmem:[%s7144_s10 + $0x40] sm:$0xff]  ;;  %v932_v38 = vld [vmem:[%s7144_s10 + $0x148] sm:$0xff] }
 0x593   :  { %v5565_v40 = vadd.f32 %v841_v37, %v5492_v31  ;;  %v908_v31 = vld [vmem:[%s7144_s10 + $0x88] sm:$0xff]  ;;  %v931_v37 = vld [vmem:[%s7144_s10 + $0x140] sm:$0xff] }
 0x594   :  { %v5568_v41 = vadd.f32 %v836_v39, %v5419_v13  ;;  %v939_v13 = vld [vmem:[%s7144_s10 + $0x180] sm:$0xff]  ;;  %v4351_v45 = vpack.c.bf16 %v908_v31, %v907_v44  ;;  %v917_v39 = vld [vmem:[%s7144_s10 + $0xd0] sm:$0xff]  ;;  %v950_v44 = vld [vmem:[%s7144_s10 + $0x1d8] sm:$0xff]  ;;  %v4378_v31 = vpack.c.bf16 %v900_v36, %v899_v35 }
 0x595   :  { %v851_v42 = vsel %vm197_vm0, %v5565_v40, 0.0  ;;  %v4399_v49 = vpack.c.bf16 %v940_v46, %v939_v13  ;;  %v4426_v13 = vpack.c.bf16 %v932_v38, %v931_v37  ;;  %v3540_v38 = vld [vmem:[#allocation7] ss:$0 sm:$0xff] }
 0x596   :  { %852 = vadd.xlane.f32.xlu1 %v851_v42  ;;  %v848_v43 = vsel %vm197_vm0, %v5568_v41, 0.0  ;;  %4353 = vmatprep.subr.msk.bf16.mxu0 %vm5382_vm1, %v4351_v45  ;;  %v918_v42 = vld [vmem:[%s7144_s10 + $0xd8] sm:$0xff] }
 0x597   :  { %849 = vadd.xlane.f32.xlu0 %v848_v43  ;;  %4401 = vmatprep.subr.msk.bf16.mxu1 %vm5382_vm1, %v4399_v49  ;;  %v949_v43 = vld [vmem:[%s7144_s10 + $0x1d0] sm:$0xff]  ;;  %v4381_v45 = vpack.c.bf16 %v918_v42, %v917_v39  ;;  %v3541_v42 = vld [vmem:[#allocation9] ss:$0 sm:$0xff] }
 0x598   :  { %4356 = vmatpush3.bf16.xpose.msk.msra.mxu0 %vm5382_vm1, %v4354_v50  ;;  %4404 = vmatpush3.bf16.xpose.msk.msra.mxu1 %vm5382_vm1, %v4402_v54  ;;  %v4429_v46 = vpack.c.bf16 %v950_v44, %v949_v43  ;;  %v933_v49 = vld [vmem:[%s7144_s10 + $0x150] sm:$0xff]  ;;  %v934_v50 = vld [vmem:[%s7144_s10 + $0x158] sm:$0xff]  ;;  %v955_v44 = vld [vmem:[%s7144_s10 + $0x200] sm:$0xff] }
 0x599   :  { %4359 = vmatprep.subr.msk.bf16.mxu0 %vm5382_vm1, %v4357_v58  ;;  %4407 = vmatprep.subr.msk.bf16.mxu1 %vm5382_vm1, %v4405_v59  ;;  %v4432_v52 = vpack.c.bf16 %v934_v50, %v933_v49  ;;  %v974_v49 = vld [vmem:[%s7144_s10 + $0x298] sm:$0xff]  ;;  %v1005_v50 = vld [vmem:[%s7144_s10 + $0x390] sm:$0xff] }
 0x5a0   :  { %4362 = vmatpush3.bf16.xpose.msk.msra.mxu0 %vm5382_vm1, %v4360_v5  ;;  %4410 = vmatpush3.bf16.xpose.msk.msra.mxu1 %vm5382_vm1, %v4408_v6  ;;  %v4390_v6 = vpack.c.bf16 %v904_v4, %v903_v3 }
 0x5a1   :  { %4365 = vmatprep.subr.msk.bf16.mxu0 %vm5382_vm1, %v4363_v7  ;;  %4413 = vmatprep.subr.msk.bf16.mxu1 %vm5382_vm1, %v4411_v8  ;;  %v935_v7 = vld [vmem:[%s7144_s10 + $0x160] sm:$0xff]  ;;  %v936_v8 = vld [vmem:[%s7144_s10 + $0x168] sm:$0xff] }
 0x5a2   :  { %v4438_v9 = vpack.c.bf16 %v936_v8, %v935_v7  ;;  %v991_v7 = vld [vmem:[%s7144_s10 + $0x320] sm:$0xff]  ;;  %v992_v8 = vld [vmem:[%s7144_s10 + $0x328] sm:$0xff] }
 0x5a8   :  { %4368 = vmatpush3.bf16.xpose.msk.msra.mxu0 %vm5382_vm1, %v4366_v18  ;;  %4416 = vmatpush3.bf16.xpose.msk.msra.mxu1 %vm5382_vm1, %v4414_v19  ;;  %v4441_v18 = vpack.c.bf16 %v954_v15, %v953_v12  ;;  %v4396_v19 = vpack.c.bf16 %v906_v17, %v905_v16  ;;  %v1010_v12 = vld [vmem:[%s7144_s10 + $0x3b8] sm:$0xff]  ;;  %v4510_v15 = vpack.c.bf16 %v992_v8, %v991_v7  ;;  %v1035_v8 = vld [vmem:[%s7144_s10 + $0x480] sm:$0xff] }
 0x5a9   :  { %4371 = vmatprep.subr.msk.bf16.mxu0 %vm5382_vm1, %v4369_v20  ;;  %4419 = vmatprep.subr.msk.bf16.mxu1 %vm5382_vm1, %v4417_v21  ;;  %v937_v20 = vld [vmem:[%s7144_s10 + $0x170] sm:$0xff]  ;;  %v938_v21 = vld [vmem:[%s7144_s10 + $0x178] sm:$0xff]  ;;  %v4513_v17 = vpack.c.bf16 %v1010_v12, %v1009_v11  ;;  %v1068_v11 = vld [vmem:[%s7144_s10 + $0x588] sm:$0xff] }
 0x5aa   :  { %v4444_v22 = vpack.c.bf16 %v938_v21, %v937_v20  ;;  %v993_v20 = vld [vmem:[%s7144_s10 + $0x330] sm:$0xff]  ;;  %v994_v21 = vld [vmem:[%s7144_s10 + $0x338] sm:$0xff] }
 0x5ab   :  { %v4516_v27 = vpack.c.bf16 %v994_v21, %v993_v20  ;;  %v1002_v7 = vld [vmem:[%s7144_s10 + $0x378] sm:$0xff]  ;;  %v1052_v20 = vld [vmem:[%s7144_s10 + $0x508] sm:$0xff]  ;;  %v1037_v21 = vld [vmem:[%s7144_s10 + $0x490] sm:$0xff] }
 0x5b0   :  { %4374 = vmatpush3.bf16.xpose.msk.msra.mxu0 %vm5382_vm1, %v4372_v30  ;;  %4422 = vmatpush3.bf16.xpose.msk.msra.mxu1 %vm5382_vm1, %v4420_v32 }
 0x5b1   :  { %4377 = vmatprep.subr.msk.bf16.mxu0 %vm5382_vm1, %v4375_v33  ;;  %4425 = vmatprep.subr.msk.bf16.mxu1 %vm5382_vm1, %v4423_v34 }
 0x5b8   :  { %4380 = vmatpush3.bf16.xpose.msk.msra.mxu0 %vm5382_vm1, %v4378_v31  ;;  %4428 = vmatpush3.bf16.xpose.msk.msra.mxu1 %vm5382_vm1, %v4426_v13  ;;  %v956_v31 = vld [vmem:[%s7144_s10 + $0x208] sm:$0xff]  ;;  %v987_v13 = vld [vmem:[%s7144_s10 + $0x300] sm:$0xff] }
 0x5b9   :  { %4383 = vmatprep.subr.msk.bf16.mxu0 %vm5382_vm1, %v4381_v45  ;;  %4431 = vmatprep.subr.msk.bf16.mxu1 %vm5382_vm1, %v4429_v46  ;;  %v988_v45 = vld [vmem:[%s7144_s10 + $0x308] sm:$0xff] }
 0x5c0   :  { %4386 = vmatpush3.bf16.xpose.msk.msra.mxu0 %vm5382_vm1, %v4384_v51  ;;  %4434 = vmatpush3.bf16.xpose.msk.msra.mxu1 %vm5382_vm1, %v4432_v52  ;;  %v1006_v51 = vld [vmem:[%s7144_s10 + $0x398] sm:$0xff] }
 0x623   :  { %v853_v53 = vpop.xlane.xlu1 %852 }
 0x624   :  { %v856_v54 = vmul.f32 0.015625, %v853_v53  ;;  %v850_v55 = vpop.xlane.xlu0 %849  ;;  %v4450_v53 = vpack.c.bf16 %v956_v31, %v955_v44  ;;  %v965_v31 = vld [vmem:[%s7144_s10 + $0x250] sm:$0xff] }
 0x625   :  { %v855_v56 = vmul.f32 0.015625, %v850_v55  ;;  %v4453_v55 = vpack.c.bf16 %v974_v49, %v973_v47  ;;  %v983_v47 = vld [vmem:[%s7144_s10 + $0x2e0] sm:$0xff] }
 0x626   :  { %v858_v57 = vsub.f32 %v5565_v40, %v856_v54  ;;  %v951_v40 = vld [vmem:[%s7144_s10 + $0x1e0] sm:$0xff]  ;;  %v4498_v54 = vpack.c.bf16 %v988_v45, %v987_v13  ;;  %v966_v13 = vld [vmem:[%s7144_s10 + $0x258] sm:$0xff]  ;;  %v997_v45 = vld [vmem:[%s7144_s10 + $0x350] sm:$0xff] }
 0x627   :  { %v857_v58 = vsub.f32 %v5568_v41, %v855_v56  ;;  %v4387_v41 = vpack.c.bf16 %v920_v1, %v919_v63  ;;  %v4435_v5 = vpack.c.bf16 %v952_v2, %v951_v40  ;;  %v4501_v56 = vpack.c.bf16 %v1006_v51, %v1005_v50  ;;  %v976_v63 = vld [vmem:[%s7144_s10 + $0x2a8] sm:$0xff]  ;;  %v1007_v1 = vld [vmem:[%s7144_s10 + $0x3a0] sm:$0xff] }
 0x628   :  { %v860_v59 = vmul.f32 %v858_v57, %v858_v57  ;;  %v1008_v40 = vld [vmem:[%s7144_s10 + $0x3a8] sm:$0xff]  ;;  %v1015_v49 = vld [vmem:[%s7144_s10 + $0x3e0] sm:$0xff]  ;;  %v4480_v51 = vpack.c.bf16 %v966_v13, %v965_v31 }
 0x629   :  { %v859_v60 = vmul.f32 %v857_v58, %v857_v58  ;;  %4389 = vmatprep.subr.msk.bf16.mxu0 %vm5382_vm1, %v4387_v41  ;;  %4437 = vmatprep.subr.msk.bf16.mxu1 %vm5382_vm1, %v4435_v5  ;;  %v4507_v4 = vpack.c.bf16 %v1008_v40, %v1007_v1  ;;  %v959_v5 = vld [vmem:[%s7144_s10 + $0x220] sm:$0xff]  ;;  %v1016_v50 = vld [vmem:[%s7144_s10 + $0x3e8] sm:$0xff]  ;;  %v1018_v1 = vld [vmem:[%s7144_s10 + $0x3f8] sm:$0xff] }
 0x62a   :  { %v864_v61 = vsel %vm197_vm0, %v860_v59, 0.0  ;;  %4392 = vmatpush3.bf16.xpose.msk.msra.mxu0 %vm5382_vm1, %v4390_v6  ;;  %4440 = vmatpush3.bf16.xpose.msk.msra.mxu1 %vm5382_vm1, %v4438_v9  ;;  %v958_v59 = vld [vmem:[%s7144_s10 + $0x218] sm:$0xff]  ;;  %v960_v6 = vld [vmem:[%s7144_s10 + $0x228] sm:$0xff]  ;;  %v977_v9 = vld [vmem:[%s7144_s10 + $0x2b0] sm:$0xff] }
 0x62b   :  { %865 = vadd.xlane.f32.xlu1 %v864_v61  ;;  %v861_v62 = vsel %vm197_vm0, %v859_v60, 0.0  ;;  %4395 = vmatprep.subr.msk.bf16.mxu0 %vm5382_vm1, %v4393_v14  ;;  %v989_v60 = vld [vmem:[%s7144_s10 + $0x310] sm:$0xff]  ;;  %v990_v61 = vld [vmem:[%s7144_s10 + $0x318] sm:$0xff]  ;;  %v4462_v14 = vpack.c.bf16 %v960_v6, %v959_v5  ;;  %v4465_v16 = vpack.c.bf16 %v978_v10, %v977_v9  ;;  %v1036_v9 = vld [vmem:[%s7144_s10 + $0x488] sm:$0xff] }
 0x62c   :  { %862 = vadd.xlane.f32.xlu0 %v861_v62  ;;  %4443 = vmatprep.subr.msk.bf16.mxu1 %vm5382_vm1, %v4441_v18  ;;  %v975_v62 = vld [vmem:[%s7144_s10 + $0x2a0] sm:$0xff]  ;;  %v4504_v2 = vpack.c.bf16 %v990_v61, %v989_v60  ;;  %v961_v18 = vld [vmem:[%s7144_s10 + $0x230] sm:$0xff]  ;;  %v1000_v60 = vld [vmem:[%s7144_s10 + $0x368] sm:$0xff] }
 0x62d   :  { %v4459_v3 = vpack.c.bf16 %v976_v63, %v975_v62  ;;  %v985_v61 = vld [vmem:[%s7144_s10 + $0x2f0] sm:$0xff]  ;;  %v986_v62 = vld [vmem:[%s7144_s10 + $0x2f8] sm:$0xff]  ;;  %v1067_v10 = vld [vmem:[%s7144_s10 + $0x580] sm:$0xff] }
 0x62e   :  { %v1017_v63 = vld [vmem:[%s7144_s10 + $0x3f0] sm:$0xff]  ;;  %v970_v5 = vld [vmem:[%s7144_s10 + $0x278] sm:$0xff]  ;;  %v1024_v31 = vld [vmem:[%s7144_s10 + $0x428] sm:$0xff] }
 0x62f   :  { %v1001_v6 = vld [vmem:[%s7144_s10 + $0x370] sm:$0xff]  ;;  %v1055_v13 = vld [vmem:[%s7144_s10 + $0x520] sm:$0xff] }
 0x632   :  { %4398 = vmatpush3.bf16.xpose.msk.msra.mxu0 %vm5382_vm1, %v4396_v19  ;;  %4446 = vmatpush3.bf16.xpose.msk.msra.mxu1 %vm5382_vm1, %v4444_v22  ;;  %v962_v19 = vld [vmem:[%s7144_s10 + $0x238] sm:$0xff]  ;;  %v979_v22 = vld [vmem:[%s7144_s10 + $0x2c0] sm:$0xff] }
 0x633   :  { %4449 = vmatprep.subr.msk.bf16.mxu0 %vm5382_vm1, %v4447_v26  ;;  %4497 = vmatprep.subr.msk.bf16.mxu1 %vm5382_vm1, %v4495_v28  ;;  %v4468_v26 = vpack.c.bf16 %v962_v19, %v961_v18  ;;  %v4471_v28 = vpack.c.bf16 %v980_v23, %v979_v22  ;;  %v1020_v18 = vld [vmem:[%s7144_s10 + $0x408] sm:$0xff]  ;;  %v1051_v19 = vld [vmem:[%s7144_s10 + $0x500] sm:$0xff]  ;;  %v1038_v22 = vld [vmem:[%s7144_s10 + $0x498] sm:$0xff] }
 0x634   :  { %v1069_v23 = vld [vmem:[%s7144_s10 + $0x590] sm:$0xff] }
 0x6b8   :  { %v866_v29 = vpop.xlane.xlu1 %865 }
 0x6b9   :  { %v868_v30 = vmul.f32 0.015625, %v866_v29  ;;  %v863_v32 = vpop.xlane.xlu0 %862  ;;  %v4519_v29 = vpack.c.bf16 %v1012_v25, %v1011_v24  ;;  %v1070_v24 = vld [vmem:[%s7144_s10 + $0x598] sm:$0xff] }
 0x6ba   :  { %v867_v33 = vmul.f32 0.015625, %v863_v32  ;;  %v964_v32 = vld [vmem:[%s7144_s10 + $0x248] sm:$0xff] }
 0x6bb   :  { %v870_v34 = vadd.f32 1e-05, %v868_v30  ;;  %v963_v30 = vld [vmem:[%s7144_s10 + $0x240] sm:$0xff] }
 0x6bc   :  { %v869_v35 = vadd.f32 1e-05, %v867_v33  ;;  %v995_v33 = vld [vmem:[%s7144_s10 + $0x340] sm:$0xff] }
 0x6bd   :  { %4884 = vrsqrt.f32 %v870_v34  ;;  %v996_v34 = vld [vmem:[%s7144_s10 + $0x348] sm:$0xff] }
 0x6be   :  { %4886 = vrsqrt.f32 %v869_v35  ;;  %v981_v35 = vld [vmem:[%s7144_s10 + $0x2d0] sm:$0xff] }
 0x6c7   :  { %v4885_v36 = vpop.eup %4884 }
 0x6c8   :  { %v4887_v37 = vpop.eup %4886  ;;  %v874_v39 = vmul.f32 %v4885_v36, %v858_v57  ;;  %v982_v36 = vld [vmem:[%s7144_s10 + $0x2d8] sm:$0xff] }
 0x6c9   :  { %v873_v43 = vmul.f32 %v4887_v37, %v857_v58  ;;  %v957_v58 = vld [vmem:[%s7144_s10 + $0x210] sm:$0xff] }
 0x6ca   :  { %v882_v48 = vmul.f32 %v3540_v38, %v874_v39  ;;  %v4456_v41 = vpack.c.bf16 %v958_v59, %v957_v58  ;;  %v1013_v37 = vld [vmem:[%s7144_s10 + $0x3d0] sm:$0xff]  ;;  %v4474_v39 = vpack.c.bf16 %v964_v32, %v963_v30  ;;  %v968_v58 = vld [vmem:[%s7144_s10 + $0x268] sm:$0xff]  ;;  %v999_v59 = vld [vmem:[%s7144_s10 + $0x360] sm:$0xff] }
 0x6cb   :  { %v881_v46 = vmul.f32 %v3540_v38, %v873_v43  ;;  %v1014_v38 = vld [vmem:[%s7144_s10 + $0x3d8] sm:$0xff]  ;;  %v4477_v43 = vpack.c.bf16 %v982_v36, %v981_v35  ;;  %v1053_v32 = vld [vmem:[%s7144_s10 + $0x510] sm:$0xff]  ;;  %v1040_v35 = vld [vmem:[%s7144_s10 + $0x4a8] sm:$0xff] }
 0x6cc   :  { %v5880_v57 = vadd.f32 %v3541_v42, %v882_v48  ;;  %v4525_v44 = vpack.c.bf16 %v1014_v38, %v1013_v37  ;;  %v984_v48 = vld [vmem:[%s7144_s10 + $0x2e8] sm:$0xff]  ;;  %v1022_v30 = vld [vmem:[%s7144_s10 + $0x418] sm:$0xff]  ;;  %v1071_v36 = vld [vmem:[%s7144_s10 + $0x5a0] sm:$0xff] }
 0x6cd   :  { %v5874_v52 = vadd.f32 %v3541_v42, %v881_v46  ;;  %v4522_v42 = vpack.c.bf16 %v996_v34, %v995_v33  ;;  %v998_v46 = vld [vmem:[%s7144_s10 + $0x358] sm:$0xff]  ;;  %v1039_v34 = vld [vmem:[%s7144_s10 + $0x4a0] sm:$0xff]  ;;  %v1072_v37 = vld [vmem:[%s7144_s10 + $0x5a8] sm:$0xff] }
 0x6ce   :  { %v1054_v33 = vld [vmem:[%s7144_s10 + $0x518] sm:$0xff] }
 0x6cf   :  { %3899 = vmatprep.mubr.msk.f32.mxu0 %vm197_vm0, %v5874_v52  ;;  %3935 = vmatprep.mubr.msk.f32.mxu1 %vm197_vm0, %v5874_v52 }
 0x6d0   :  { %3900 = vmatmul.mubr.msk.f32.vlgmr.msra.gmra.mrb[6].mxu0 %vm197_vm0, %v5874_v52  ;;  %3936 = vmatmul.mubr.msk.f32.vlgmr.msra.gmra.mrb[6].mxu1 %vm197_vm0, %v5874_v52 }
 0x6d1   :  { %4452 = vmatpush3.bf16.xpose.msk.msra.mxu0 %vm5382_vm1, %v4450_v53  ;;  %4500 = vmatpush3.bf16.xpose.msk.msra.mxu1 %vm5382_vm1, %v4498_v54  ;;  %v4528_v53 = vpack.c.bf16 %v998_v46, %v997_v45  ;;  %v4483_v54 = vpack.c.bf16 %v984_v48, %v983_v47  ;;  %v1056_v45 = vld [vmem:[%s7144_s10 + $0x528] sm:$0xff]  ;;  %v1041_v46 = vld [vmem:[%s7144_s10 + $0x4b0] sm:$0xff]  ;;  %v1042_v47 = vld [vmem:[%s7144_s10 + $0x4b8] sm:$0xff] }
 0x6d2   :  { %3901 = vmatprep.mubr.msk.f32.mxu0 %vm197_vm0, %v5880_v57  ;;  %3937 = vmatprep.mubr.msk.f32.mxu1 %vm197_vm0, %v5880_v57  ;;  %v1073_v48 = vld [vmem:[%s7144_s10 + $0x5b0] sm:$0xff] }
 0x6d3   :  { %4455 = vmatprep.subr.msk.bf16.mxu0 %vm5382_vm1, %v4453_v55  ;;  %4503 = vmatprep.subr.msk.bf16.mxu1 %vm5382_vm1, %v4501_v56  ;;  %v4531_v55 = vpack.c.bf16 %v1016_v50, %v1015_v49  ;;  %v967_v56 = vld [vmem:[%s7144_s10 + $0x260] sm:$0xff]  ;;  %v1074_v49 = vld [vmem:[%s7144_s10 + $0x5b8] sm:$0xff] }
 0x6d4   :  { %3902 = vmatmul.mubr.msk.f32.gmra.mrb[8].mxu0 %vm197_vm0, %v5880_v57  ;;  %3938 = vmatmul.mubr.msk.f32.gmra.mrb[8].mxu1 %vm197_vm0, %v5880_v57  ;;  %v4486_v40 = vpack.c.bf16 %v968_v58, %v967_v56  ;;  %v1026_v56 = vld [vmem:[%s7144_s10 + $0x438] sm:$0xff]  ;;  %v1057_v58 = vld [vmem:[%s7144_s10 + $0x530] sm:$0xff] }
 0x6d5   :  { %3971 = vmatprep.mubr.msk.f32.mxu0 %vm197_vm0, %v5874_v52  ;;  %4007 = vmatprep.mubr.msk.f32.mxu1 %vm197_vm0, %v5874_v52 }
 0x6d9   :  { %4458 = vmatpush3.bf16.xpose.msk.msra.mxu0 %vm5382_vm1, %v4456_v41  ;;  %4506 = vmatpush3.bf16.xpose.msk.msra.mxu1 %vm5382_vm1, %v4504_v2  ;;  %v4534_v41 = vpack.c.bf16 %v1000_v60, %v999_v59  ;;  %v4489_v2 = vpack.c.bf16 %v986_v62, %v985_v61  ;;  %v1058_v59 = vld [vmem:[%s7144_s10 + $0x538] sm:$0xff]  ;;  %v1043_v60 = vld [vmem:[%s7144_s10 + $0x4c0] sm:$0xff]  ;;  %v1044_v61 = vld [vmem:[%s7144_s10 + $0x4c8] sm:$0xff] }
 0x6da   :  { %4461 = vmatprep.subr.msk.bf16.mxu0 %vm5382_vm1, %v4459_v3  ;;  %4509 = vmatprep.subr.msk.bf16.mxu1 %vm5382_vm1, %v4507_v4  ;;  %v4537_v3 = vpack.c.bf16 %v1018_v1, %v1017_v63  ;;  %v969_v4 = vld [vmem:[%s7144_s10 + $0x270] sm:$0xff]  ;;  %v1075_v62 = vld [vmem:[%s7144_s10 + $0x5c0] sm:$0xff]  ;;  %v1076_v63 = vld [vmem:[%s7144_s10 + $0x5c8] sm:$0xff] }
 0x6db   :  { %v4492_v12 = vpack.c.bf16 %v970_v5, %v969_v4  ;;  %v1028_v4 = vld [vmem:[%s7144_s10 + $0x448] sm:$0xff]  ;;  %v1059_v5 = vld [vmem:[%s7144_s10 + $0x540] sm:$0xff] }
 0x6e1   :  { %4464 = vmatpush3.bf16.xpose.msk.msra.mxu0 %vm5382_vm1, %v4462_v14  ;;  %4512 = vmatpush3.bf16.xpose.msk.msra.mxu1 %vm5382_vm1, %v4510_v15  ;;  %v4540_v14 = vpack.c.bf16 %v1002_v7, %v1001_v6  ;;  %v4543_v15 = vpack.c.bf16 %v1036_v9, %v1035_v8  ;;  %v1060_v6 = vld [vmem:[%s7144_s10 + $0x548] sm:$0xff]  ;;  %v1045_v7 = vld [vmem:[%s7144_s10 + $0x4d0] sm:$0xff]  ;;  %v1046_v8 = vld [vmem:[%s7144_s10 + $0x4d8] sm:$0xff] }
 0x6e2   :  { %4467 = vmatprep.subr.msk.bf16.mxu0 %vm5382_vm1, %v4465_v16  ;;  %4515 = vmatprep.subr.msk.bf16.mxu1 %vm5382_vm1, %v4513_v17  ;;  %v4591_v16 = vpack.c.bf16 %v1068_v11, %v1067_v10  ;;  %v1019_v17 = vld [vmem:[%s7144_s10 + $0x400] sm:$0xff]  ;;  %v1077_v9 = vld [vmem:[%s7144_s10 + $0x5d0] sm:$0xff]  ;;  %v1078_v10 = vld [vmem:[%s7144_s10 + $0x5d8] sm:$0xff] }
 0x6e3   :  { %v4546_v25 = vpack.c.bf16 %v1020_v18, %v1019_v17  ;;  %v1030_v17 = vld [vmem:[%s7144_s10 + $0x458] sm:$0xff]  ;;  %v1061_v18 = vld [vmem:[%s7144_s10 + $0x550] sm:$0xff] }
 0x6e9   :  { %4470 = vmatpush3.bf16.xpose.msk.msra.mxu0 %vm5382_vm1, %v4468_v26  ;;  %4518 = vmatpush3.bf16.xpose.msk.msra.mxu1 %vm5382_vm1, %v4516_v27  ;;  %v4594_v26 = vpack.c.bf16 %v1052_v20, %v1051_v19  ;;  %v4549_v27 = vpack.c.bf16 %v1038_v22, %v1037_v21  ;;  %v1062_v19 = vld [vmem:[%s7144_s10 + $0x558] sm:$0xff]  ;;  %v1047_v20 = vld [vmem:[%s7144_s10 + $0x4e0] sm:$0xff]  ;;  %v1048_v21 = vld [vmem:[%s7144_s10 + $0x4e8] sm:$0xff] }
 0x6ea   :  { %4473 = vmatprep.subr.msk.bf16.mxu0 %vm5382_vm1, %v4471_v28  ;;  %4521 = vmatprep.subr.msk.bf16.mxu1 %vm5382_vm1, %v4519_v29  ;;  %v4597_v28 = vpack.c.bf16 %v1070_v24, %v1069_v23  ;;  %v1021_v29 = vld [vmem:[%s7144_s10 + $0x410] sm:$0xff]  ;;  %v1079_v22 = vld [vmem:[%s7144_s10 + $0x5e0] sm:$0xff]  ;;  %v1080_v23 = vld [vmem:[%s7144_s10 + $0x5e8] sm:$0xff] }
 0x6eb   :  { %v4552_v38 = vpack.c.bf16 %v1022_v30, %v1021_v29  ;;  %v1032_v29 = vld [vmem:[%s7144_s10 + $0x468] sm:$0xff]  ;;  %v1063_v30 = vld [vmem:[%s7144_s10 + $0x560] sm:$0xff] }
 0x6f1   :  { %4476 = vmatpush3.bf16.xpose.msk.msra.mxu0 %vm5382_vm1, %v4474_v39  ;;  %4524 = vmatpush3.bf16.xpose.msk.msra.mxu1 %vm5382_vm1, %v4522_v42  ;;  %v4600_v39 = vpack.c.bf16 %v1054_v33, %v1053_v32  ;;  %v4555_v42 = vpack.c.bf16 %v1040_v35, %v1039_v34  ;;  %v1064_v32 = vld [vmem:[%s7144_s10 + $0x568] sm:$0xff]  ;;  %v1049_v33 = vld [vmem:[%s7144_s10 + $0x4f0] sm:$0xff]  ;;  %v1050_v34 = vld [vmem:[%s7144_s10 + $0x4f8] sm:$0xff] }
 0x6f2   :  { %4479 = vmatprep.subr.msk.bf16.mxu0 %vm5382_vm1, %v4477_v43  ;;  %4527 = vmatprep.subr.msk.bf16.mxu1 %vm5382_vm1, %v4525_v44  ;;  %v4603_v43 = vpack.c.bf16 %v1072_v37, %v1071_v36  ;;  %v1023_v44 = vld [vmem:[%s7144_s10 + $0x420] sm:$0xff]  ;;  %v1081_v35 = vld [vmem:[%s7144_s10 + $0x5f0] sm:$0xff]  ;;  %v1082_v36 = vld [vmem:[%s7144_s10 + $0x5f8] sm:$0xff] }
 0x6f3   :  { %v4558_v50 = vpack.c.bf16 %v1024_v31, %v1023_v44  ;;  %v1034_v44 = vld [vmem:[%s7144_s10 + $0x478] sm:$0xff]  ;;  %v1065_v31 = vld [vmem:[%s7144_s10 + $0x570] sm:$0xff] }
 0x6f9   :  { %4482 = vmatpush3.bf16.xpose.msk.msra.mxu0 %vm5382_vm1, %v4480_v51  ;;  %4530 = vmatpush3.bf16.xpose.msk.msra.mxu1 %vm5382_vm1, %v4528_v53  ;;  %v4606_v51 = vpack.c.bf16 %v1056_v45, %v1055_v13  ;;  %v4561_v53 = vpack.c.bf16 %v1042_v47, %v1041_v46  ;;  %v1066_v13 = vld [vmem:[%s7144_s10 + $0x578] sm:$0xff]  ;;  %v1099_v45 = vld [vmem:[%s7144_s10 + $0x680] sm:$0xff]  ;;  %v1100_v46 = vld [vmem:[%s7144_s10 + $0x688] sm:$0xff] }
 0x6fa   :  { %4485 = vmatprep.subr.msk.bf16.mxu0 %vm5382_vm1, %v4483_v54  ;;  %4533 = vmatprep.subr.msk.bf16.mxu1 %vm5382_vm1, %v4531_v55  ;;  %v4609_v54 = vpack.c.bf16 %v1074_v49, %v1073_v48  ;;  %v1025_v55 = vld [vmem:[%s7144_s10 + $0x430] sm:$0xff]  ;;  %v1131_v47 = vld [vmem:[%s7144_s10 + $0x780] sm:$0xff]  ;;  %v1132_v48 = vld [vmem:[%s7144_s10 + $0x788] sm:$0xff] }
 0x6fb   :  { %v4564_v1 = vpack.c.bf16 %v1026_v56, %v1025_v55  ;;  %v1084_v55 = vld [vmem:[%s7144_s10 + $0x608] sm:$0xff]  ;;  %v1115_v56 = vld [vmem:[%s7144_s10 + $0x700] sm:$0xff] }
 0x701   :  { %4488 = vmatpush3.bf16.xpose.msk.msra.mxu0 %vm5382_vm1, %v4486_v40  ;;  %4536 = vmatpush3.bf16.xpose.msk.msra.mxu1 %vm5382_vm1, %v4534_v41  ;;  %v4612_v40 = vpack.c.bf16 %v1058_v59, %v1057_v58  ;;  %v4567_v41 = vpack.c.bf16 %v1044_v61, %v1043_v60  ;;  %v1116_v58 = vld [vmem:[%s7144_s10 + $0x708] sm:$0xff]  ;;  %v1101_v59 = vld [vmem:[%s7144_s10 + $0x690] sm:$0xff]  ;;  %v1102_v60 = vld [vmem:[%s7144_s10 + $0x698] sm:$0xff] }
 0x702   :  { %4491 = vmatprep.subr.msk.bf16.mxu0 %vm5382_vm1, %v4489_v2  ;;  %4539 = vmatprep.subr.msk.bf16.mxu1 %vm5382_vm1, %v4537_v3  ;;  %v4615_v2 = vpack.c.bf16 %v1076_v63, %v1075_v62  ;;  %v1027_v3 = vld [vmem:[%s7144_s10 + $0x440] sm:$0xff]  ;;  %v1133_v61 = vld [vmem:[%s7144_s10 + $0x790] sm:$0xff]  ;;  %v1134_v62 = vld [vmem:[%s7144_s10 + $0x798] sm:$0xff] }
 0x703   :  { %v4570_v11 = vpack.c.bf16 %v1028_v4, %v1027_v3  ;;  %v1086_v3 = vld [vmem:[%s7144_s10 + $0x618] sm:$0xff]  ;;  %v1117_v4 = vld [vmem:[%s7144_s10 + $0x710] sm:$0xff] }
 0x709   :  { %4494 = vmatpush3.bf16.xpose.msk.msra.mxu0 %vm5382_vm1, %v4492_v12  ;;  %4542 = vmatpush3.bf16.xpose.msk.msra.mxu1 %vm5382_vm1, %v4540_v14  ;;  %v4618_v12 = vpack.c.bf16 %v1060_v6, %v1059_v5  ;;  %v4573_v14 = vpack.c.bf16 %v1046_v8, %v1045_v7  ;;  %v1118_v5 = vld [vmem:[%s7144_s10 + $0x718] sm:$0xff]  ;;  %v1103_v6 = vld [vmem:[%s7144_s10 + $0x6a0] sm:$0xff]  ;;  %v1104_v7 = vld [vmem:[%s7144_s10 + $0x6a8] sm:$0xff] }
 0x70a   :  { %4545 = vmatprep.subr.msk.bf16.mxu0 %vm5382_vm1, %v4543_v15  ;;  %4593 = vmatprep.subr.msk.bf16.mxu1 %vm5382_vm1, %v4591_v16  ;;  %v4621_v15 = vpack.c.bf16 %v1078_v10, %v1077_v9  ;;  %v1029_v16 = vld [vmem:[%s7144_s10 + $0x450] sm:$0xff]  ;;  %v1135_v8 = vld [vmem:[%s7144_s10 + $0x7a0] sm:$0xff]  ;;  %v1136_v9 = vld [vmem:[%s7144_s10 + $0x7a8] sm:$0xff] }
 0x70b   :  { %v4576_v24 = vpack.c.bf16 %v1030_v17, %v1029_v16  ;;  %v1088_v16 = vld [vmem:[%s7144_s10 + $0x628] sm:$0xff]  ;;  %v1119_v17 = vld [vmem:[%s7144_s10 + $0x720] sm:$0xff] }
 0x710   :  { %3972 = vmatmul.mubr.msk.f32.vlgmr.msra.gmra.mrb[10].mxu0 %vm197_vm0, %v5874_v52  ;;  %4008 = vmatmul.mubr.msk.f32.vlgmr.msra.gmra.mrb[10].mxu1 %vm197_vm0, %v5874_v52 }
 0x711   :  { %3973 = vmatprep.mubr.msk.f32.mxu0 %vm197_vm0, %v5880_v57  ;;  %4009 = vmatprep.mubr.msk.f32.mxu1 %vm197_vm0, %v5880_v57 }
 0x712   :  { %4548 = vmatpush3.bf16.xpose.msk.msra.mxu0 %vm5382_vm1, %v4546_v25  ;;  %4596 = vmatpush3.bf16.xpose.msk.msra.mxu1 %vm5382_vm1, %v4594_v26  ;;  %v4624_v25 = vpack.c.bf16 %v1062_v19, %v1061_v18  ;;  %v4579_v26 = vpack.c.bf16 %v1048_v21, %v1047_v20  ;;  %v1120_v18 = vld [vmem:[%s7144_s10 + $0x728] sm:$0xff]  ;;  %v1105_v19 = vld [vmem:[%s7144_s10 + $0x6b0] sm:$0xff]  ;;  %v1106_v20 = vld [vmem:[%s7144_s10 + $0x6b8] sm:$0xff] }
 0x713   :  { %4551 = vmatprep.subr.msk.bf16.mxu0 %vm5382_vm1, %v4549_v27  ;;  %4599 = vmatprep.subr.msk.bf16.mxu1 %vm5382_vm1, %v4597_v28  ;;  %v4627_v27 = vpack.c.bf16 %v1080_v23, %v1079_v22  ;;  %v1031_v28 = vld [vmem:[%s7144_s10 + $0x460] sm:$0xff]  ;;  %v1137_v21 = vld [vmem:[%s7144_s10 + $0x7b0] sm:$0xff]  ;;  %v1138_v22 = vld [vmem:[%s7144_s10 + $0x7b8] sm:$0xff] }
 0x714   :  { %3974 = vmatmul.mubr.msk.f32.gmra.mrb[12].mxu0 %vm197_vm0, %v5880_v57  ;;  %4010 = vmatmul.mubr.msk.f32.gmra.mrb[12].mxu1 %vm197_vm0, %v5880_v57  ;;  %v4582_v37 = vpack.c.bf16 %v1032_v29, %v1031_v28  ;;  %v1090_v28 = vld [vmem:[%s7144_s10 + $0x638] sm:$0xff]  ;;  %v1121_v29 = vld [vmem:[%s7144_s10 + $0x730] sm:$0xff] }
 0x715   :  { %4043 = vmatprep.mubr.msk.f32.mxu0 %vm197_vm0, %v5874_v52  ;;  %4079 = vmatprep.mubr.msk.f32.mxu1 %vm197_vm0, %v5874_v52 }
 0x71a   :  { %4554 = vmatpush3.bf16.xpose.msk.msra.mxu0 %vm5382_vm1, %v4552_v38  ;;  %4602 = vmatpush3.bf16.xpose.msk.msra.mxu1 %vm5382_vm1, %v4600_v39  ;;  %v4630_v38 = vpack.c.bf16 %v1064_v32, %v1063_v30  ;;  %v4585_v39 = vpack.c.bf16 %v1050_v34, %v1049_v33  ;;  %v1122_v30 = vld [vmem:[%s7144_s10 + $0x738] sm:$0xff]  ;;  %v1107_v32 = vld [vmem:[%s7144_s10 + $0x6c0] sm:$0xff]  ;;  %v1108_v33 = vld [vmem:[%s7144_s10 + $0x6c8] sm:$0xff] }
 0x71b   :  { %4557 = vmatprep.subr.msk.bf16.mxu0 %vm5382_vm1, %v4555_v42  ;;  %4605 = vmatprep.subr.msk.bf16.mxu1 %vm5382_vm1, %v4603_v43  ;;  %v4633_v42 = vpack.c.bf16 %v1082_v36, %v1081_v35  ;;  %v1033_v43 = vld [vmem:[%s7144_s10 + $0x470] sm:$0xff]  ;;  %v1139_v34 = vld [vmem:[%s7144_s10 + $0x7c0] sm:$0xff]  ;;  %v1140_v35 = vld [vmem:[%s7144_s10 + $0x7c8] sm:$0xff] }
 0x71c   :  { %v4588_v49 = vpack.c.bf16 %v1034_v44, %v1033_v43  ;;  %v1092_v43 = vld [vmem:[%s7144_s10 + $0x648] sm:$0xff]  ;;  %v1123_v44 = vld [vmem:[%s7144_s10 + $0x740] sm:$0xff] }
 0x722   :  { %4560 = vmatpush3.bf16.xpose.msk.msra.mxu0 %vm5382_vm1, %v4558_v50  ;;  %4608 = vmatpush3.bf16.xpose.msk.msra.mxu1 %vm5382_vm1, %v4606_v51  ;;  %v4636_v50 = vpack.c.bf16 %v1066_v13, %v1065_v31  ;;  %v4639_v51 = vpack.c.bf16 %v1100_v46, %v1099_v45  ;;  %v1124_v31 = vld [vmem:[%s7144_s10 + $0x748] sm:$0xff]  ;;  %v1109_v13 = vld [vmem:[%s7144_s10 + $0x6d0] sm:$0xff]  ;;  %v1110_v45 = vld [vmem:[%s7144_s10 + $0x6d8] sm:$0xff] }
 0x723   :  { %4563 = vmatprep.subr.msk.bf16.mxu0 %vm5382_vm1, %v4561_v53  ;;  %4611 = vmatprep.subr.msk.bf16.mxu1 %vm5382_vm1, %v4609_v54  ;;  %v4687_v53 = vpack.c.bf16 %v1132_v48, %v1131_v47  ;;  %v1083_v54 = vld [vmem:[%s7144_s10 + $0x600] sm:$0xff]  ;;  %v1141_v46 = vld [vmem:[%s7144_s10 + $0x7d0] sm:$0xff]  ;;  %v1142_v47 = vld [vmem:[%s7144_s10 + $0x7d8] sm:$0xff] }
 0x724   :  { %v4642_v63 = vpack.c.bf16 %v1084_v55, %v1083_v54  ;;  %v1094_v54 = vld [vmem:[%s7144_s10 + $0x658] sm:$0xff]  ;;  %v1125_v55 = vld [vmem:[%s7144_s10 + $0x750] sm:$0xff] }
 0x72a   :  { %4566 = vmatpush3.bf16.xpose.msk.msra.mxu0 %vm5382_vm1, %v4564_v1  ;;  %4614 = vmatpush3.bf16.xpose.msk.msra.mxu1 %vm5382_vm1, %v4612_v40  ;;  %v4690_v1 = vpack.c.bf16 %v1116_v58, %v1115_v56  ;;  %v4645_v40 = vpack.c.bf16 %v1102_v60, %v1101_v59  ;;  %v1126_v56 = vld [vmem:[%s7144_s10 + $0x758] sm:$0xff]  ;;  %v1111_v58 = vld [vmem:[%s7144_s10 + $0x6e0] sm:$0xff]  ;;  %v1112_v59 = vld [vmem:[%s7144_s10 + $0x6e8] sm:$0xff] }
 0x72b   :  { %4569 = vmatprep.subr.msk.bf16.mxu0 %vm5382_vm1, %v4567_v41  ;;  %4617 = vmatprep.subr.msk.bf16.mxu1 %vm5382_vm1, %v4615_v2  ;;  %v4693_v41 = vpack.c.bf16 %v1134_v62, %v1133_v61  ;;  %v1085_v2 = vld [vmem:[%s7144_s10 + $0x610] sm:$0xff]  ;;  %v1143_v60 = vld [vmem:[%s7144_s10 + $0x7e0] sm:$0xff]  ;;  %v1144_v61 = vld [vmem:[%s7144_s10 + $0x7e8] sm:$0xff] }
 0x72c   :  { %v4648_v10 = vpack.c.bf16 %v1086_v3, %v1085_v2  ;;  %v1096_v2 = vld [vmem:[%s7144_s10 + $0x668] sm:$0xff]  ;;  %v1127_v3 = vld [vmem:[%s7144_s10 + $0x760] sm:$0xff] }
 0x732   :  { %4572 = vmatpush3.bf16.xpose.msk.msra.mxu0 %vm5382_vm1, %v4570_v11  ;;  %4620 = vmatpush3.bf16.xpose.msk.msra.mxu1 %vm5382_vm1, %v4618_v12  ;;  %v4696_v11 = vpack.c.bf16 %v1118_v5, %v1117_v4  ;;  %v4651_v12 = vpack.c.bf16 %v1104_v7, %v1103_v6  ;;  %v1128_v4 = vld [vmem:[%s7144_s10 + $0x768] sm:$0xff]  ;;  %v1113_v5 = vld [vmem:[%s7144_s10 + $0x6f0] sm:$0xff]  ;;  %v1114_v6 = vld [vmem:[%s7144_s10 + $0x6f8] sm:$0xff] }
 0x733   :  { %4575 = vmatprep.subr.msk.bf16.mxu0 %vm5382_vm1, %v4573_v14  ;;  %4623 = vmatprep.subr.msk.bf16.mxu1 %vm5382_vm1, %v4621_v15  ;;  %v4699_v14 = vpack.c.bf16 %v1136_v9, %v1135_v8  ;;  %v1087_v15 = vld [vmem:[%s7144_s10 + $0x620] sm:$0xff]  ;;  %v1145_v7 = vld [vmem:[%s7144_s10 + $0x7f0] sm:$0xff]  ;;  %v1146_v8 = vld [vmem:[%s7144_s10 + $0x7f8] sm:$0xff] }
 0x734   :  { %v4654_v23 = vpack.c.bf16 %v1088_v16, %v1087_v15  ;;  %v1098_v15 = vld [vmem:[%s7144_s10 + $0x678] sm:$0xff]  ;;  %v1129_v16 = vld [vmem:[%s7144_s10 + $0x770] sm:$0xff] }
 0x73a   :  { %4578 = vmatpush3.bf16.xpose.msk.msra.mxu0 %vm5382_vm1, %v4576_v24  ;;  %4626 = vmatpush3.bf16.xpose.msk.msra.mxu1 %vm5382_vm1, %v4624_v25  ;;  %v4702_v24 = vpack.c.bf16 %v1120_v18, %v1119_v17  ;;  %v4657_v25 = vpack.c.bf16 %v1106_v20, %v1105_v19  ;;  %v1130_v17 = vld [vmem:[%s7144_s10 + $0x778] sm:$0xff]  ;;  %v2654_v18 = vld [vmem:[%s7146_s12 + $0x8] sm:$0xff] }
 0x73b   :  { %4581 = vmatprep.subr.msk.bf16.mxu0 %vm5382_vm1, %v4579_v26  ;;  %4629 = vmatprep.subr.msk.bf16.mxu1 %vm5382_vm1, %v4627_v27  ;;  %v4705_v26 = vpack.c.bf16 %v1138_v22, %v1137_v21  ;;  %v1089_v27 = vld [vmem:[%s7144_s10 + $0x630] sm:$0xff]  ;;  %v2670_v19 = vld [vmem:[%s7146_s12 + $0x88] sm:$0xff]  ;;  %v2656_v20 = vld [vmem:[%s7146_s12 + $0x18] sm:$0xff] }
 0x73c   :  { %v4660_v36 = vpack.c.bf16 %v1090_v28, %v1089_v27  ;;  %v2672_v21 = vld [vmem:[%s7146_s12 + $0x98] sm:$0xff]  ;;  %v2669_v27 = vld [vmem:[%s7146_s12 + $0x80] sm:$0xff]  ;;  %v2655_v28 = vld [vmem:[%s7146_s12 + $0x10] sm:$0xff] }
 0x742   :  { %4584 = vmatpush3.bf16.xpose.msk.msra.mxu0 %vm5382_vm1, %v4582_v37  ;;  %4632 = vmatpush3.bf16.xpose.msk.msra.mxu1 %vm5382_vm1, %v4630_v38  ;;  %v4708_v37 = vpack.c.bf16 %v1122_v30, %v1121_v29  ;;  %v4663_v38 = vpack.c.bf16 %v1108_v33, %v1107_v32  ;;  %v2671_v29 = vld [vmem:[%s7146_s12 + $0x90] sm:$0xff]  ;;  %v2702_v30 = vld [vmem:[%s7146_s12 + $0x188] sm:$0xff]  ;;  %v2688_v32 = vld [vmem:[%s7146_s12 + $0x118] sm:$0xff] }
 0x743   :  { %4587 = vmatprep.subr.msk.bf16.mxu0 %vm5382_vm1, %v4585_v39  ;;  %4635 = vmatprep.subr.msk.bf16.mxu1 %vm5382_vm1, %v4633_v42  ;;  %v4711_v39 = vpack.c.bf16 %v1140_v35, %v1139_v34  ;;  %v1091_v42 = vld [vmem:[%s7144_s10 + $0x640] sm:$0xff]  ;;  %v2704_v33 = vld [vmem:[%s7146_s12 + $0x198] sm:$0xff]  ;;  %v4753_v35 = vpack.c.bf16 %v2671_v29, %v2655_v28 }
 0x744   :  { %v4666_v48 = vpack.c.bf16 %v1092_v43, %v1091_v42  ;;  %v2687_v42 = vld [vmem:[%s7146_s12 + $0x110] sm:$0xff] }
 0x745   :  { %v2703_v43 = vld [vmem:[%s7146_s12 + $0x190] sm:$0xff] }
 0x74a   :  { %4590 = vmatpush3.bf16.xpose.msk.msra.mxu0 %vm5382_vm1, %v4588_v49  ;;  %4638 = vmatpush3.bf16.xpose.msk.msra.mxu1 %vm5382_vm1, %v4636_v50  ;;  %v4714_v49 = vpack.c.bf16 %v1124_v31, %v1123_v44  ;;  %v4669_v50 = vpack.c.bf16 %v1110_v45, %v1109_v13  ;;  %v2718_v44 = vld [vmem:[%s7146_s12 + $0x208] sm:$0xff]  ;;  %v1151_v31 = vlaneseq  ;;  %v2720_v45 = vld [vmem:[%s7146_s12 + $0x218] sm:$0xff] }
 0x74b   :  { %4641 = vmatprep.subr.msk.bf16.mxu0 %vm5382_vm1, %v4639_v51  ;;  %4689 = vmatprep.subr.msk.bf16.mxu1 %vm5382_vm1, %v4687_v53  ;;  %v4717_v51 = vpack.c.bf16 %v1142_v47, %v1141_v46  ;;  %v1093_v53 = vld [vmem:[%s7144_s10 + $0x650] sm:$0xff]  ;;  %v2734_v13 = vld [vmem:[%s7146_s12 + $0x288] sm:$0xff]  ;;  %v2736_v46 = vld [vmem:[%s7146_s12 + $0x298] sm:$0xff] }
 0x74c   :  { %v4672_v62 = vpack.c.bf16 %v1094_v54, %v1093_v53  ;;  %v2717_v53 = vld [vmem:[%s7146_s12 + $0x200] sm:$0xff] }
 0x74d   :  { %v2733_v54 = vld [vmem:[%s7146_s12 + $0x280] sm:$0xff] }
 0x751   :  { %4044 = vmatmul.mubr.msk.f32.vlgmr.msra.gmra.mrb[14].mxu0 %vm197_vm0, %v5874_v52  ;;  %4080 = vmatmul.mubr.msk.f32.vlgmr.msra.gmra.mrb[14].mxu1 %vm197_vm0, %v5874_v52 }
 0x752   :  { %4045 = vmatprep.mubr.msk.f32.mxu0 %vm197_vm0, %v5880_v57  ;;  %4081 = vmatprep.mubr.msk.f32.mxu1 %vm197_vm0, %v5880_v57 }
 0x753   :  { %4644 = vmatpush3.bf16.xpose.msk.msra.mxu0 %vm5382_vm1, %v4642_v63  ;;  %4692 = vmatpush3.bf16.xpose.msk.msra.mxu1 %vm5382_vm1, %v4690_v1  ;;  %v4720_v63 = vpack.c.bf16 %v1126_v56, %v1125_v55  ;;  %v4675_v1 = vpack.c.bf16 %v1112_v59, %v1111_v58  ;;  %v2719_v55 = vld [vmem:[%s7146_s12 + $0x210] sm:$0xff]  ;;  %v6744_v58 = vld [vmem:[#allocation13] sm:$0xff] }
 0x754   :  { %4647 = vmatprep.subr.msk.bf16.mxu0 %vm5382_vm1, %v4645_v40  ;;  %4695 = vmatprep.subr.msk.bf16.mxu1 %vm5382_vm1, %v4693_v41  ;;  %v4723_v40 = vpack.c.bf16 %v1144_v61, %v1143_v60  ;;  %v1095_v41 = vld [vmem:[%s7144_s10 + $0x660] sm:$0xff]  ;;  %v2735_v56 = vld [vmem:[%s7146_s12 + $0x290] sm:$0xff]  ;;  %v2750_v61 = vld [vmem:[%s7146_s12 + $0x308] sm:$0xff] }
 0x755   :  { %4046 = vmatmul.mubr.msk.f32.gmra.mrb[16].mxu0 %vm197_vm0, %v5880_v57  ;;  %4082 = vmatmul.mubr.msk.f32.gmra.mrb[16].mxu1 %vm197_vm0, %v5880_v57  ;;  %v4678_v9 = vpack.c.bf16 %v1096_v2, %v1095_v41  ;;  %v4761_v41 = vpack.c.bf16 %v2735_v56, %v2719_v55 }
 0x756   :  { %4115 = vmatprep.mubr.msk.f32.mxu0 %vm197_vm0, %v5874_v52  ;;  %4151 = vmatprep.mubr.msk.f32.mxu1 %vm197_vm0, %v5874_v52 }
 0x75b   :  { %4650 = vmatpush3.bf16.xpose.msk.msra.mxu0 %vm5382_vm1, %v4648_v10  ;;  %4698 = vmatpush3.bf16.xpose.msk.msra.mxu1 %vm5382_vm1, %v4696_v11  ;;  %v4726_v10 = vpack.c.bf16 %v1128_v4, %v1127_v3  ;;  %v4681_v11 = vpack.c.bf16 %v1114_v6, %v1113_v5 }
 0x75c   :  { %4653 = vmatprep.subr.msk.bf16.mxu0 %vm5382_vm1, %v4651_v12  ;;  %4701 = vmatprep.subr.msk.bf16.mxu1 %vm5382_vm1, %v4699_v14  ;;  %v4729_v12 = vpack.c.bf16 %v1146_v8, %v1145_v7  ;;  %v1097_v14 = vld [vmem:[%s7144_s10 + $0x670] sm:$0xff] }
 0x75d   :  { %v4684_v22 = vpack.c.bf16 %v1098_v15, %v1097_v14 }
 0x763   :  { %4656 = vmatpush3.bf16.xpose.msk.msra.mxu0 %vm5382_vm1, %v4654_v23  ;;  %4704 = vmatpush3.bf16.xpose.msk.msra.mxu1 %vm5382_vm1, %v4702_v24  ;;  %v4732_v23 = vpack.c.bf16 %v1130_v17, %v1129_v16  ;;  %v4735_v24 = vpack.c.bf16 %v2670_v19, %v2654_v18  ;;  %v2751_v17 = vld [vmem:[%s7146_s12 + $0x310] sm:$0xff]  ;;  %v2658_v19 = vld [vmem:[%s7146_s12 + $0x28] sm:$0xff] }
 0x764   :  { %4659 = vmatprep.subr.msk.bf16.mxu0 %vm5382_vm1, %v4657_v25  ;;  %4707 = vmatprep.subr.msk.bf16.mxu1 %vm5382_vm1, %v4705_v26  ;;  %v4751_v25 = vpack.c.bf16 %v2672_v21, %v2656_v20  ;;  %v2653_v26 = vld [vmem:[%s7146_s12] sm:$0xff]  ;;  %v2767_v18 = vld [vmem:[%s7146_s12 + $0x390] sm:$0xff]  ;;  %v2674_v20 = vld [vmem:[%s7146_s12 + $0xa8] sm:$0xff] }
 0x765   :  { %v4737_v34 = vpack.c.bf16 %v2669_v27, %v2653_v26  ;;  %v2660_v21 = vld [vmem:[%s7146_s12 + $0x38] sm:$0xff] }
 0x76b   :  { %4662 = vmatpush3.bf16.xpose.msk.msra.mxu0 %vm5382_vm1, %v4660_v36  ;;  %4710 = vmatpush3.bf16.xpose.msk.msra.mxu1 %vm5382_vm1, %v4708_v37  ;;  %v4739_v36 = vpack.c.bf16 %v2702_v30, %v2686_v0  ;;  %v4755_v37 = vpack.c.bf16 %v2704_v33, %v2688_v32  ;;  %v4765_v30 = vpack.c.bf16 %v2767_v18, %v2751_v17  ;;  %v2723_v17 = vld [vmem:[%s7146_s12 + $0x230] sm:$0xff] }
 0x76c   :  { %4665 = vmatprep.subr.msk.bf16.mxu0 %vm5382_vm1, %v4663_v38  ;;  %4713 = vmatprep.subr.msk.bf16.mxu1 %vm5382_vm1, %v4711_v39  ;;  %v2685_v38 = vld [vmem:[%s7146_s12 + $0x100] sm:$0xff]  ;;  %v4767_v33 = vpack.c.bf16 %v2674_v20, %v2658_v19  ;;  %v2739_v18 = vld [vmem:[%s7146_s12 + $0x2b0] sm:$0xff]  ;;  %v2754_v19 = vld [vmem:[%s7146_s12 + $0x328] sm:$0xff] }
 0x76d   :  { %v2701_v39 = vld [vmem:[%s7146_s12 + $0x180] sm:$0xff]  ;;  %v2770_v20 = vld [vmem:[%s7146_s12 + $0x3a8] sm:$0xff] }
 0x76e   :  { %v4741_v47 = vpack.c.bf16 %v2701_v39, %v2685_v38  ;;  %v2673_v38 = vld [vmem:[%s7146_s12 + $0xa0] sm:$0xff]  ;;  %v2659_v39 = vld [vmem:[%s7146_s12 + $0x30] sm:$0xff] }
 0x773   :  { %4668 = vmatpush3.bf16.xpose.msk.msra.mxu0 %vm5382_vm1, %v4666_v48  ;;  %4716 = vmatpush3.bf16.xpose.msk.msra.mxu1 %vm5382_vm1, %v4714_v49  ;;  %v4757_v48 = vpack.c.bf16 %v2703_v43, %v2687_v42  ;;  %v4743_v49 = vpack.c.bf16 %v2734_v13, %v2718_v44  ;;  %v2675_v42 = vld [vmem:[%s7146_s12 + $0xb0] sm:$0xff]  ;;  %v2706_v13 = vld [vmem:[%s7146_s12 + $0x1a8] sm:$0xff] }
 0x774   :  { %4671 = vmatprep.subr.msk.bf16.mxu0 %vm5382_vm1, %v4669_v50  ;;  %4719 = vmatprep.subr.msk.bf16.mxu1 %vm5382_vm1, %v4717_v51  ;;  %v4759_v50 = vpack.c.bf16 %v2736_v46, %v2720_v45  ;;  %v6730_v51 = vshrl.u32 %v1151_v31, 7  ;;  %v2690_v31 = vld [vmem:[%s7146_s12 + $0x128] sm:$0xff]  ;;  %v2692_v45 = vld [vmem:[%s7146_s12 + $0x138] sm:$0xff] }
 0x775   :  { %v2708_v46 = vld [vmem:[%s7146_s12 + $0x1b8] sm:$0xff] }
 0x776   :  { %v1157_v59 = vsub.s32 1, %v6730_v51  ;;  %v1165_v60 = vsub.s32 3, %v6730_v51  ;;  %v1153_v8 = vsub.s32 0, %v6730_v51  ;;  %v1161_v14 = vsub.s32 2, %v6730_v51 }
 0x778   :  { %v1158_v2 = vrot.slane %v6744_v58, %v1157_v59  ;;  %v1166_v3 = vrot.slane %v6744_v58, %v1165_v60  ;;  %v1154_v27 = vrot.slane %v6744_v58, %v1153_v8  ;;  %v1162_v32 = vrot.slane %v6744_v58, %v1161_v14 }
 0x77b   :  { %4674 = vmatpush3.bf16.xpose.msk.msra.mxu0 %vm5382_vm1, %v4672_v62  ;;  %4722 = vmatpush3.bf16.xpose.msk.msra.mxu1 %vm5382_vm1, %v4720_v63  ;;  %v2766_v62 = vld [vmem:[%s7146_s12 + $0x388] sm:$0xff]  ;;  %v2752_v63 = vld [vmem:[%s7146_s12 + $0x318] sm:$0xff] }
 0x77c   :  { %4677 = vmatprep.subr.msk.bf16.mxu0 %vm5382_vm1, %v4675_v1  ;;  %4725 = vmatprep.subr.msk.bf16.mxu1 %vm5382_vm1, %v4723_v40  ;;  %v2768_v1 = vld [vmem:[%s7146_s12 + $0x398] sm:$0xff]  ;;  %v4745_v40 = vpack.c.bf16 %v2733_v54, %v2717_v53  ;;  %v4747_v4 = vpack.c.bf16 %v2766_v62, %v2750_v61  ;;  %v4771_v61 = vpack.c.bf16 %v2706_v13, %v2690_v31 }
 0x77d   :  { %v4763_v5 = vpack.c.bf16 %v2768_v1, %v2752_v63  ;;  %v4787_v62 = vpack.c.bf16 %v2708_v46, %v2692_v45 }
 0x783   :  { %4680 = vmatpush3.bf16.xpose.msk.msra.mxu0 %vm5382_vm1, %v4678_v9  ;;  %4728 = vmatpush3.bf16.xpose.msk.msra.mxu1 %vm5382_vm1, %v4726_v10 }
 0x784   :  { %4683 = vmatprep.subr.msk.bf16.mxu0 %vm5382_vm1, %v4681_v11  ;;  %4731 = vmatprep.subr.msk.bf16.mxu1 %vm5382_vm1, %v4729_v12  ;;  %v2749_v11 = vld [vmem:[%s7146_s12 + $0x300] sm:$0xff] }
 0x785   :  { %v2765_v12 = vld [vmem:[%s7146_s12 + $0x380] sm:$0xff] }
 0x786   :  { %v4749_v0 = vpack.c.bf16 %v2765_v12, %v2749_v11 }
 0x78b   :  { %4686 = vmatpush3.bf16.xpose.msk.msra.mxu0 %vm5382_vm1, %v4684_v22  ;;  %4734 = vmatpush3.bf16.xpose.msk.msra.mxu1 %vm5382_vm1, %v4732_v23  ;;  %v2676_v22 = vld [vmem:[%s7146_s12 + $0xb8] sm:$0xff] }
 0x78c   :  { %4736 = vmatprep.subr.bf16.mxu0 %v4735_v24  ;;  %4752 = vmatprep.subr.bf16.mxu1 %v4751_v25 }
 0x792   :  { %4116 = vmatmul.mubr.msk.f32.vlgmr.msra.gmra.mrb[18].mxu0 %vm197_vm0, %v5874_v52  ;;  %4152 = vmatmul.mubr.msk.f32.vlgmr.msra.gmra.mrb[18].mxu1 %vm197_vm0, %v5874_v52 }
 0x793   :  { %4117 = vmatprep.mubr.msk.f32.mxu0 %vm197_vm0, %v5880_v57  ;;  %4153 = vmatprep.mubr.msk.f32.mxu1 %vm197_vm0, %v5880_v57 }
 0x794   :  { %4738 = vmatpush1.bf16.xpose.msra.mxu0 %v4737_v34  ;;  %4754 = vmatpush1.bf16.xpose.msra.mxu1 %v4753_v35  ;;  %v4783_v34 = vpack.c.bf16 %v2676_v22, %v2660_v21  ;;  %v2657_v35 = vld [vmem:[%s7146_s12 + $0x20] sm:$0xff]  ;;  %v2756_v21 = vld [vmem:[%s7146_s12 + $0x338] sm:$0xff] }
 0x795   :  { %4740 = vmatprep.subr.bf16.mxu0 %v4739_v36  ;;  %4756 = vmatprep.subr.bf16.mxu1 %v4755_v37  ;;  %v2772_v22 = vld [vmem:[%s7146_s12 + $0x3b8] sm:$0xff] }
 0x796   :  { %4118 = vmatmul.mubr.msk.f32.gmra.mrb[20].mxu0 %vm197_vm0, %v5880_v57  ;;  %4154 = vmatmul.mubr.msk.f32.gmra.mrb[20].mxu1 %vm197_vm0, %v5880_v57 }
 0x79c   :  { %4742 = vmatpush1.bf16.xpose.msra.mxu0 %v4741_v47  ;;  %4758 = vmatpush1.bf16.xpose.msra.mxu1 %v4757_v48  ;;  %v4769_v47 = vpack.c.bf16 %v2673_v38, %v2657_v35  ;;  %v4785_v48 = vpack.c.bf16 %v2675_v42, %v2659_v39  ;;  %v1169_v39 = vsub.s32 4, %v6730_v51  ;;  %v1177_v42 = vsub.s32 6, %v6730_v51 }
 0x79d   :  { %4744 = vmatprep.subr.bf16.mxu0 %v4743_v49  ;;  %4760 = vmatprep.subr.bf16.mxu1 %v4759_v50 }
 0x79e   :  { %v1170_v31 = vrot.slane %v6744_v58, %v1169_v39  ;;  %v1178_v13 = vrot.slane %v6744_v58, %v1177_v42 }
 0x7a3   :  { %v2071_v6 = vpop.f32.mrb[6].mxu0  ;;  %v2148_v7 = vpop.f32.mrb[6].mxu1 }
 0x7a4   :  { %4746 = vmatpush1.bf16.xpose.msra.mxu0 %v4745_v40  ;;  %4762 = vmatpush1.bf16.xpose.msra.mxu1 %v4761_v41  ;;  %v2073_v9 = vpop.f32.mrb[7].mxu0  ;;  %v2150_v10 = vpop.f32.mrb[7].mxu1  ;;  %v2072_v36 = vadd.f32 %v2071_v6, %v1154_v27  ;;  %v2149_v37 = vadd.f32 %v2148_v7, %v1162_v32  ;;  %v2689_v40 = vld [vmem:[%s7146_s12 + $0x120] sm:$0xff]  ;;  %v2724_v6 = vld [vmem:[%s7146_s12 + $0x238] sm:$0xff] }
 0x7a5   :  { %v2074_v15 = vadd.f32 %v2073_v9, %v1158_v2  ;;  %v2151_v16 = vadd.f32 %v2150_v10, %v1166_v3  ;;  %4748 = vmatprep.subr.bf16.mxu0 %v4747_v4  ;;  %4764 = vmatprep.subr.bf16.mxu1 %v4763_v5  ;;  %v2705_v41 = vld [vmem:[%s7146_s12 + $0x1a0] sm:$0xff]  ;;  %v2722_v4 = vld [vmem:[%s7146_s12 + $0x228] sm:$0xff]  ;;  %v2740_v7 = vld [vmem:[%s7146_s12 + $0x2b8] sm:$0xff] }
 0x7a6   :  { %v2621_v49 = vmax.f32 %v2072_v36, 0.0  ;;  %v2623_v50 = vmax.f32 %v2149_v37, 0.0  ;;  %v2738_v5 = vld [vmem:[%s7146_s12 + $0x2a8] sm:$0xff]  ;;  %v4773_v9 = vpack.c.bf16 %v2705_v41, %v2689_v40  ;;  %v4791_v12 = vpack.c.bf16 %v2740_v7, %v2724_v6  ;;  %v2712_v40 = vld [vmem:[%s7146_s12 + $0x1d8] sm:$0xff] }
 0x7a7   :  { %v2622_v23 = vmax.f32 %v2074_v15, 0.0  ;;  %v2624_v24 = vmax.f32 %v2151_v16, 0.0  ;;  %v2077_v25 = vpop.f32.mrb[8].mxu0  ;;  %v2154_v26 = vpop.f32.mrb[8].mxu1  ;;  %v4775_v11 = vpack.c.bf16 %v2738_v5, %v2722_v4  ;;  %v2721_v15 = vld [vmem:[%s7146_s12 + $0x220] sm:$0xff] }
 0x7a8   :  { %v2079_v28 = vpop.f32.mrb[9].mxu0  ;;  %v2156_v29 = vpop.f32.mrb[9].mxu1  ;;  %v2078_v53 = vadd.f32 %v2077_v25, %v1154_v27  ;;  %v2155_v54 = vadd.f32 %v2154_v26, %v1162_v32  ;;  %v2737_v16 = vld [vmem:[%s7146_s12 + $0x2a0] sm:$0xff]  ;;  %v4779_v25 = vpack.c.bf16 %v2770_v20, %v2754_v19  ;;  %v4795_v26 = vpack.c.bf16 %v2772_v22, %v2756_v21  ;;  %v2678_v32 = vld [vmem:[%s7146_s12 + $0xc8] sm:$0xff] }
 0x7a9   :  { %2852 = vmatprep.mubr.f32.mxu0 %v2622_v23  ;;  %2927 = vmatprep.mubr.f32.mxu1 %v2624_v24  ;;  %v2080_v43 = vadd.f32 %v2079_v28, %v1158_v2  ;;  %v2157_v44 = vadd.f32 %v2156_v29, %v1166_v3  ;;  %v2691_v2 = vld [vmem:[%s7146_s12 + $0x130] sm:$0xff]  ;;  %v4777_v23 = vpack.c.bf16 %v2737_v16, %v2721_v15  ;;  %v2753_v27 = vld [vmem:[%s7146_s12 + $0x320] sm:$0xff] }
 0x7aa   :  { %v2637_v63 = vmax.f32 %v2078_v53, 0.0  ;;  %v2639_v1 = vmax.f32 %v2155_v54, 0.0  ;;  %v2707_v3 = vld [vmem:[%s7146_s12 + $0x1b0] sm:$0xff]  ;;  %v4793_v24 = vpack.c.bf16 %v2739_v18, %v2723_v17  ;;  %v2769_v28 = vld [vmem:[%s7146_s12 + $0x3a0] sm:$0xff] }
 0x7ab   :  { %v2638_v55 = vmax.f32 %v2080_v43, 0.0  ;;  %v2640_v56 = vmax.f32 %v2157_v44, 0.0  ;;  %v4789_v10 = vpack.c.bf16 %v2707_v3, %v2691_v2  ;;  %v2755_v29 = vld [vmem:[%s7146_s12 + $0x330] sm:$0xff]  ;;  %v4781_v35 = vpack.c.bf16 %v2769_v28, %v2753_v27 }
 0x7ac   :  { %4750 = vmatpush1.bf16.xpose.msra.mxu0 %v4749_v0  ;;  %4766 = vmatpush1.bf16.xpose.msra.mxu1 %v4765_v30  ;;  %v2771_v0 = vld [vmem:[%s7146_s12 + $0x3b0] sm:$0xff]  ;;  %v2662_v30 = vld [vmem:[%s7146_s12 + $0x48] sm:$0xff]  ;;  %v1173_v43 = vsub.s32 5, %v6730_v51  ;;  %v1181_v44 = vsub.s32 7, %v6730_v51 }
 0x7ad   :  { %4768 = vmatprep.subr.bf16.mxu0 %v4767_v33  ;;  %4784 = vmatprep.subr.bf16.mxu1 %v4783_v34  ;;  %v2664_v33 = vld [vmem:[%s7146_s12 + $0x58] sm:$0xff]  ;;  %v4797_v36 = vpack.c.bf16 %v2771_v0, %v2755_v29  ;;  %v4799_v37 = vpack.c.bf16 %v2678_v32, %v2662_v30  ;;  %v2663_v53 = vld [vmem:[%s7146_s12 + $0x50] sm:$0xff]  ;;  %v2726_v0 = vld [vmem:[%s7146_s12 + $0x248] sm:$0xff] }
 0x7ae   :  { %v2680_v34 = vld [vmem:[%s7146_s12 + $0xd8] sm:$0xff]  ;;  %v1174_v45 = vrot.slane %v6744_v58, %v1173_v43  ;;  %v1182_v46 = vrot.slane %v6744_v58, %v1181_v44  ;;  %v2679_v54 = vld [vmem:[%s7146_s12 + $0xd0] sm:$0xff]  ;;  %v2694_v58 = vld [vmem:[%s7146_s12 + $0x148] sm:$0xff] }
 0x7af   :  { %v4815_v38 = vpack.c.bf16 %v2680_v34, %v2664_v33  ;;  %v4817_v4 = vpack.c.bf16 %v2679_v54, %v2663_v53  ;;  %v2695_v28 = vld [vmem:[%s7146_s12 + $0x150] sm:$0xff]  ;;  %v2742_v30 = vld [vmem:[%s7146_s12 + $0x2c8] sm:$0xff]  ;;  %v2728_v32 = vld [vmem:[%s7146_s12 + $0x258] sm:$0xff] }
 0x7b0   :  { %v2711_v29 = vld [vmem:[%s7146_s12 + $0x1d0] sm:$0xff]  ;;  %v2744_v33 = vld [vmem:[%s7146_s12 + $0x2d8] sm:$0xff] }
 0x7b3   :  { %2853 = vmatmul.mubr.f32.vlgmr.msra.gmra.mrb[22].mxu0 %v2621_v49  ;;  %2928 = vmatmul.mubr.f32.vlgmr.msra.gmra.mrb[22].mxu1 %v2623_v50 }
 0x7b4   :  { %2857 = vmatprep.mubr.f32.mxu0 %v2638_v55  ;;  %2932 = vmatprep.mubr.f32.mxu1 %v2640_v56 }
 0x7b5   :  { %4770 = vmatpush1.bf16.xpose.msra.mxu0 %v4769_v47  ;;  %4786 = vmatpush1.bf16.xpose.msra.mxu1 %v4785_v48  ;;  %v2661_v47 = vld [vmem:[%s7146_s12 + $0x40] sm:$0xff] }
 0x7b6   :  { %4772 = vmatprep.subr.bf16.mxu0 %v4771_v61  ;;  %4788 = vmatprep.subr.bf16.mxu1 %v4787_v62  ;;  %v2677_v48 = vld [vmem:[%s7146_s12 + $0xc0] sm:$0xff] }
 0x7b7   :  { %2858 = vmatmul.mubr.f32.gmra.mrb[24].mxu0 %v2637_v63  ;;  %2933 = vmatmul.mubr.f32.gmra.mrb[24].mxu1 %v2639_v1  ;;  %v2710_v63 = vld [vmem:[%s7146_s12 + $0x1c8] sm:$0xff]  ;;  %v2696_v1 = vld [vmem:[%s7146_s12 + $0x158] sm:$0xff]  ;;  %v4801_v3 = vpack.c.bf16 %v2677_v48, %v2661_v47 }
 0x7b8   :  { %v2774_v47 = vld [vmem:[%s7146_s12 + $0x3c8] sm:$0xff]  ;;  %v2760_v48 = vld [vmem:[%s7146_s12 + $0x358] sm:$0xff] }
 0x7bd   :  { %4774 = vmatpush1.bf16.xpose.msra.mxu0 %v4773_v9  ;;  %4790 = vmatpush1.bf16.xpose.msra.mxu1 %v4789_v10  ;;  %v4803_v10 = vpack.c.bf16 %v2710_v63, %v2694_v58  ;;  %v2666_v63 = vld [vmem:[%s7146_s12 + $0x68] sm:$0xff] }
 0x7be   :  { %4776 = vmatprep.subr.bf16.mxu0 %v4775_v11  ;;  %4792 = vmatprep.subr.bf16.mxu1 %v4791_v12  ;;  %v4819_v11 = vpack.c.bf16 %v2712_v40, %v2696_v1  ;;  %v2682_v1 = vld [vmem:[%s7146_s12 + $0xe8] sm:$0xff]  ;;  %v2668_v40 = vld [vmem:[%s7146_s12 + $0x78] sm:$0xff] }
 0x7c5   :  { %4778 = vmatpush1.bf16.xpose.msra.mxu0 %v4777_v23  ;;  %4794 = vmatpush1.bf16.xpose.msra.mxu1 %v4793_v24  ;;  %v2693_v24 = vld [vmem:[%s7146_s12 + $0x140] sm:$0xff] }
 0x7c6   :  { %4780 = vmatprep.subr.bf16.mxu0 %v4779_v25  ;;  %4796 = vmatprep.subr.bf16.mxu1 %v4795_v26  ;;  %v2709_v25 = vld [vmem:[%s7146_s12 + $0x1c0] sm:$0xff] }
 0x7c7   :  { %v4805_v34 = vpack.c.bf16 %v2709_v25, %v2693_v24 }
 0x7cd   :  { %4782 = vmatpush1.bf16.xpose.msra.mxu0 %v4781_v35  ;;  %4798 = vmatpush1.bf16.xpose.msra.mxu1 %v4797_v36  ;;  %v4821_v35 = vpack.c.bf16 %v2711_v29, %v2695_v28  ;;  %v4807_v36 = vpack.c.bf16 %v2742_v30, %v2726_v0 }
 0x7ce   :  { %4800 = vmatprep.subr.bf16.mxu0 %v4799_v37  ;;  %4816 = vmatprep.subr.bf16.mxu1 %v4815_v38  ;;  %v4823_v37 = vpack.c.bf16 %v2744_v33, %v2728_v32  ;;  %v2725_v38 = vld [vmem:[%s7146_s12 + $0x240] sm:$0xff] }
 0x7e3   :  { %v2225_v49 = vpop.f32.mrb[10].mxu0  ;;  %v2302_v50 = vpop.f32.mrb[10].mxu1 }
 0x7e4   :  { %v2226_v55 = vadd.f32 %v2225_v49, %v1170_v31  ;;  %v2303_v56 = vadd.f32 %v2302_v50, %v1178_v13  ;;  %v2227_v61 = vpop.f32.mrb[11].mxu0  ;;  %v2304_v62 = vpop.f32.mrb[11].mxu1  ;;  %v2776_v49 = vld [vmem:[%s7146_s12 + $0x3d8] sm:$0xff] }
 0x7e5   :  { %v2228_v41 = vadd.f32 %v2227_v61, %v1174_v45  ;;  %v2305_v2 = vadd.f32 %v2304_v62, %v1182_v46  ;;  %v4827_v58 = vpack.c.bf16 %v2776_v49, %v2760_v48  ;;  %v2759_v61 = vld [vmem:[%s7146_s12 + $0x350] sm:$0xff]  ;;  %v2697_v48 = vld [vmem:[%s7146_s12 + $0x160] sm:$0xff] }
 0x7e6   :  { %v2625_v12 = vmax.f32 %v2226_v55, 0.0  ;;  %v2627_v15 = vmax.f32 %v2303_v56, 0.0  ;;  %v2757_v55 = vld [vmem:[%s7146_s12 + $0x340] sm:$0xff]  ;;  %v2775_v62 = vld [vmem:[%s7146_s12 + $0x3d0] sm:$0xff] }
 0x7e7   :  { %v2626_v5 = vmax.f32 %v2228_v41, 0.0  ;;  %v2628_v6 = vmax.f32 %v2305_v2, 0.0  ;;  %v2231_v7 = vpop.f32.mrb[12].mxu0  ;;  %v2308_v9 = vpop.f32.mrb[12].mxu1  ;;  %v2773_v56 = vld [vmem:[%s7146_s12 + $0x3c0] sm:$0xff]  ;;  %v2684_v41 = vld [vmem:[%s7146_s12 + $0xf8] sm:$0xff] }
 0x7e8   :  { %v2232_v16 = vadd.f32 %v2231_v7, %v1170_v31  ;;  %v2309_v17 = vadd.f32 %v2308_v9, %v1178_v13  ;;  %v2233_v18 = vpop.f32.mrb[13].mxu0  ;;  %v2310_v19 = vpop.f32.mrb[13].mxu1  ;;  %v2741_v31 = vld [vmem:[%s7146_s12 + $0x2c0] sm:$0xff]  ;;  %v2727_v13 = vld [vmem:[%s7146_s12 + $0x250] sm:$0xff]  ;;  %v4813_v2 = vpack.c.bf16 %v2773_v56, %v2757_v55  ;;  %v2730_v55 = vld [vmem:[%s7146_s12 + $0x268] sm:$0xff] }
 0x7e9   :  { %v2234_v20 = vadd.f32 %v2233_v18, %v1174_v45  ;;  %v2311_v21 = vadd.f32 %v2310_v19, %v1182_v46  ;;  %3002 = vmatprep.mubr.f32.mxu0 %v2626_v5  ;;  %3077 = vmatprep.mubr.f32.mxu1 %v2628_v6  ;;  %v2743_v45 = vld [vmem:[%s7146_s12 + $0x2d0] sm:$0xff]  ;;  %v2758_v46 = vld [vmem:[%s7146_s12 + $0x348] sm:$0xff]  ;;  %v4809_v50 = vpack.c.bf16 %v2741_v31, %v2725_v38  ;;  %v2713_v49 = vld [vmem:[%s7146_s12 + $0x1e0] sm:$0xff] }
 0x7ea   :  { %3003 = vmatmul.mubr.f32.vlgmr.msra.gmra.mrb[26].mxu0 %v2625_v12  ;;  %3078 = vmatmul.mubr.f32.vlgmr.msra.gmra.mrb[26].mxu1 %v2627_v15  ;;  %v2641_v26 = vmax.f32 %v2232_v16, 0.0  ;;  %v2643_v27 = vmax.f32 %v2309_v17, 0.0  ;;  %v4825_v53 = vpack.c.bf16 %v2743_v45, %v2727_v13  ;;  %v4811_v54 = vpack.c.bf16 %v2774_v47, %v2758_v46  ;;  %v7006_v6 = vld [vmem:[#allocation13 + $0x8] sm:$0xff] }
 0x7eb   :  { %v2642_v22 = vmax.f32 %v2234_v20, 0.0  ;;  %v2644_v23 = vmax.f32 %v2311_v21, 0.0  ;;  %4802 = vmatpush1.bf16.xpose.msra.mxu0 %v4801_v3  ;;  %4818 = vmatpush1.bf16.xpose.msra.mxu1 %v4817_v4  ;;  %v4829_v3 = vpack.c.bf16 %v2775_v62, %v2759_v61  ;;  %v4831_v4 = vpack.c.bf16 %v2682_v1, %v2666_v63  ;;  %v2665_v12 = vld [vmem:[%s7146_s12 + $0x60] sm:$0xff]  ;;  %v2714_v21 = vld [vmem:[%s7146_s12 + $0x1e8] sm:$0xff]  ;;  %v2732_v61 = vld [vmem:[%s7146_s12 + $0x278] sm:$0xff] }
 0x7ec   :  { %4804 = vmatprep.subr.bf16.mxu0 %v4803_v10  ;;  %4820 = vmatprep.subr.bf16.mxu1 %v4819_v11  ;;  %v4847_v5 = vpack.c.bf16 %v2684_v41, %v2668_v40  ;;  %v1186_v7 = vrot.slane %v7006_v6, %v1153_v8  ;;  %v1194_v9 = vrot.slane %v7006_v6, %v1161_v14  ;;  %v2681_v8 = vld [vmem:[%s7146_s12 + $0xe0] sm:$0xff]  ;;  %v2667_v14 = vld [vmem:[%s7146_s12 + $0x70] sm:$0xff]  ;;  %v2746_v56 = vld [vmem:[%s7146_s12 + $0x2e8] sm:$0xff] }
 0x7ed   :  { %3007 = vmatprep.mubr.f32.mxu0 %v2642_v22  ;;  %3082 = vmatprep.mubr.f32.mxu1 %v2644_v23  ;;  %v1190_v10 = vrot.slane %v7006_v6, %v1157_v59  ;;  %v1198_v11 = vrot.slane %v7006_v6, %v1165_v60  ;;  %v2683_v59 = vld [vmem:[%s7146_s12 + $0xf0] sm:$0xff]  ;;  %v2698_v60 = vld [vmem:[%s7146_s12 + $0x168] sm:$0xff]  ;;  %v2700_v22 = vld [vmem:[%s7146_s12 + $0x178] sm:$0xff]  ;;  %v4837_v63 = vpack.c.bf16 %v2713_v49, %v2697_v48 }
 0x7ee   :  { %3008 = vmatmul.mubr.f32.gmra.mrb[28].mxu0 %v2641_v26  ;;  %3083 = vmatmul.mubr.f32.gmra.mrb[28].mxu1 %v2643_v27  ;;  %v2716_v23 = vld [vmem:[%s7146_s12 + $0x1f8] sm:$0xff]  ;;  %v4833_v26 = vpack.c.bf16 %v2681_v8, %v2665_v12  ;;  %v4849_v27 = vpack.c.bf16 %v2683_v59, %v2667_v14  ;;  %v4835_v32 = vpack.c.bf16 %v2714_v21, %v2698_v60  ;;  %v2761_v14 = vld [vmem:[%s7146_s12 + $0x360] sm:$0xff]  ;;  %v2763_v60 = vld [vmem:[%s7146_s12 + $0x370] sm:$0xff] }
 0x7ef   :  { %v4851_v33 = vpack.c.bf16 %v2716_v23, %v2700_v22  ;;  %v2748_v62 = vld [vmem:[%s7146_s12 + $0x2f8] sm:$0xff]  ;;  %v4839_v40 = vpack.c.bf16 %v2746_v56, %v2730_v55  ;;  %v2777_v59 = vld [vmem:[%s7146_s12 + $0x3e0] sm:$0xff]  ;;  %v1210_v21 = vrot.slane %v7006_v6, %v1177_v42  ;;  %v1206_v22 = vrot.slane %v7006_v6, %v1173_v43 }
 0x7f0   :  { %v4855_v41 = vpack.c.bf16 %v2748_v62, %v2732_v61  ;;  %v1214_v23 = vrot.slane %v7006_v6, %v1181_v44 }
 0x7f3   :  { %4806 = vmatpush1.bf16.xpose.msra.mxu0 %v4805_v34  ;;  %4822 = vmatpush1.bf16.xpose.msra.mxu1 %v4821_v35 }
 0x7f4   :  { %4808 = vmatprep.subr.bf16.mxu0 %v4807_v36  ;;  %4824 = vmatprep.subr.bf16.mxu1 %v4823_v37 }
 0x7fb   :  { %4810 = vmatpush1.bf16.xpose.msra.mxu0 %v4809_v50  ;;  %4826 = vmatpush1.bf16.xpose.msra.mxu1 %v4825_v53 }
 0x7fc   :  { %4812 = vmatprep.subr.bf16.mxu0 %v4811_v54  ;;  %4828 = vmatprep.subr.bf16.mxu1 %v4827_v58  ;;  %v2699_v54 = vld [vmem:[%s7146_s12 + $0x170] sm:$0xff] }
 0x7fd   :  { %v2715_v58 = vld [vmem:[%s7146_s12 + $0x1f0] sm:$0xff] }
 0x7fe   :  { %v4853_v1 = vpack.c.bf16 %v2715_v58, %v2699_v54 }
 0x803   :  { %4814 = vmatpush1.bf16.xpose.msra.mxu0 %v4813_v2  ;;  %4830 = vmatpush1.bf16.xpose.msra.mxu1 %v4829_v3  ;;  %v2729_v2 = vld [vmem:[%s7146_s12 + $0x260] sm:$0xff] }
 0x804   :  { %4832 = vmatprep.subr.bf16.mxu0 %v4831_v4  ;;  %4848 = vmatprep.subr.bf16.mxu1 %v4847_v5  ;;  %v2745_v3 = vld [vmem:[%s7146_s12 + $0x2e0] sm:$0xff]  ;;  %v2731_v4 = vld [vmem:[%s7146_s12 + $0x270] sm:$0xff] }
 0x805   :  { %v2747_v5 = vld [vmem:[%s7146_s12 + $0x2f0] sm:$0xff]  ;;  %v4841_v12 = vpack.c.bf16 %v2745_v3, %v2729_v2 }
 0x806   :  { %v4857_v8 = vpack.c.bf16 %v2747_v5, %v2731_v4 }
 0x824   :  { %v2379_v15 = vpop.f32.mrb[14].mxu0  ;;  %v2456_v16 = vpop.f32.mrb[14].mxu1 }
 0x825   :  { %v2380_v17 = vadd.f32 %v2379_v15, %v1186_v7  ;;  %v2457_v18 = vadd.f32 %v2456_v16, %v1194_v9  ;;  %v2381_v19 = vpop.f32.mrb[15].mxu0  ;;  %v2458_v20 = vpop.f32.mrb[15].mxu1 }
 0x826   :  { %v2382_v24 = vadd.f32 %v2381_v19, %v1190_v10  ;;  %v2459_v25 = vadd.f32 %v2458_v20, %v1198_v11  ;;  %v1202_v20 = vrot.slane %v7006_v6, %v1169_v39 }
 0x827   :  { %v2629_v34 = vmax.f32 %v2380_v17, 0.0  ;;  %v2631_v35 = vmax.f32 %v2457_v18, 0.0  ;;  %v2779_v17 = vld [vmem:[%s7146_s12 + $0x3f0] sm:$0xff]  ;;  %v4845_v18 = vpack.c.bf16 %v2777_v59, %v2761_v14 }
 0x828   :  { %v2630_v28 = vmax.f32 %v2382_v24, 0.0  ;;  %v2632_v29 = vmax.f32 %v2459_v25, 0.0  ;;  %v2385_v0 = vpop.f32.mrb[16].mxu0  ;;  %v2462_v30 = vpop.f32.mrb[16].mxu1  ;;  %v4861_v19 = vpack.c.bf16 %v2779_v17, %v2763_v60 }
 0x829   :  { %v2386_v36 = vadd.f32 %v2385_v0, %v1186_v7  ;;  %v2463_v37 = vadd.f32 %v2462_v30, %v1194_v9  ;;  %v2387_v38 = vpop.f32.mrb[17].mxu0  ;;  %v2464_v31 = vpop.f32.mrb[17].mxu1  ;;  %v2762_v7 = vld [vmem:[%s7146_s12 + $0x368] sm:$0xff] }
 0x82a   :  { %v2388_v13 = vadd.f32 %v2387_v38, %v1190_v10  ;;  %v2465_v45 = vadd.f32 %v2464_v31, %v1198_v11  ;;  %3152 = vmatprep.mubr.f32.mxu0 %v2630_v28  ;;  %3227 = vmatprep.mubr.f32.mxu1 %v2632_v29  ;;  %v2778_v9 = vld [vmem:[%s7146_s12 + $0x3e8] sm:$0xff]  ;;  %v2764_v10 = vld [vmem:[%s7146_s12 + $0x378] sm:$0xff] }
 0x82b   :  { %3153 = vmatmul.mubr.f32.vlgmr.msra.gmra.mrb[30].mxu0 %v2629_v34  ;;  %3228 = vmatmul.mubr.f32.vlgmr.msra.gmra.mrb[30].mxu1 %v2631_v35  ;;  %v2645_v50 = vmax.f32 %v2386_v36, 0.0  ;;  %v2647_v53 = vmax.f32 %v2463_v37, 0.0  ;;  %v2780_v11 = vld [vmem:[%s7146_s12 + $0x3f8] sm:$0xff]  ;;  %v4843_v15 = vpack.c.bf16 %v2778_v9, %v2762_v7 }
 0x82c   :  { %v2646_v46 = vmax.f32 %v2388_v13, 0.0  ;;  %v2648_v47 = vmax.f32 %v2465_v45, 0.0  ;;  %4834 = vmatpush1.bf16.xpose.msra.mxu0 %v4833_v26  ;;  %4850 = vmatpush1.bf16.xpose.msra.mxu1 %v4849_v27  ;;  %v4859_v16 = vpack.c.bf16 %v2780_v11, %v2764_v10 }
 0x82d   :  { %4836 = vmatprep.subr.bf16.mxu0 %v4835_v32  ;;  %4852 = vmatprep.subr.bf16.mxu1 %v4851_v33 }
 0x82e   :  { %3157 = vmatprep.mubr.f32.mxu0 %v2646_v46  ;;  %3232 = vmatprep.mubr.f32.mxu1 %v2648_v47  ;;  %v3814_v46 = vld [vmem:[#allocation15] ss:$0 sm:$0xff] }
 0x82f   :  { %3158 = vmatmul.mubr.f32.gmra.mrb[32].mxu0 %v2645_v50  ;;  %3233 = vmatmul.mubr.f32.gmra.mrb[32].mxu1 %v2647_v53 }
 0x834   :  { %4838 = vmatpush1.bf16.xpose.msra.mxu0 %v4837_v63  ;;  %4854 = vmatpush1.bf16.xpose.msra.mxu1 %v4853_v1 }
 0x835   :  { %4840 = vmatprep.subr.bf16.mxu0 %v4839_v40  ;;  %4856 = vmatprep.subr.bf16.mxu1 %v4855_v41 }
 0x83c   :  { %4842 = vmatpush1.bf16.xpose.msra.mxu0 %v4841_v12  ;;  %4858 = vmatpush1.bf16.xpose.msra.mxu1 %v4857_v8 }
 0x83d   :  { %4844 = vmatprep.subr.bf16.mxu0 %v4843_v15  ;;  %4860 = vmatprep.subr.bf16.mxu1 %v4859_v16 }
 0x844   :  { %4846 = vmatpush1.bf16.xpose.msra.mxu0 %v4845_v18  ;;  %4862 = vmatpush1.bf16.xpose.msra.mxu1 %v4861_v19 }
 0x865   :  { %v2533_v24 = vpop.f32.mrb[18].mxu0  ;;  %v2610_v25 = vpop.f32.mrb[18].mxu1 }
 0x866   :  { %v2534_v26 = vadd.f32 %v2533_v24, %v1202_v20  ;;  %v2611_v27 = vadd.f32 %v2610_v25, %v1210_v21  ;;  %v2535_v28 = vpop.f32.mrb[19].mxu0  ;;  %v2612_v29 = vpop.f32.mrb[19].mxu1 }
 0x867   :  { %v2536_v0 = vadd.f32 %v2535_v28, %v1206_v22  ;;  %v2613_v39 = vadd.f32 %v2612_v29, %v1214_v23 }
 0x868   :  { %v2633_v34 = vmax.f32 %v2534_v26, 0.0  ;;  %v2635_v35 = vmax.f32 %v2611_v27, 0.0 }
 0x869   :  { %v2634_v30 = vmax.f32 %v2536_v0, 0.0  ;;  %v2636_v32 = vmax.f32 %v2613_v39, 0.0  ;;  %v2539_v33 = vpop.f32.mrb[20].mxu0  ;;  %v2616_v42 = vpop.f32.mrb[20].mxu1 }
 0x86a   :  { %v2540_v36 = vadd.f32 %v2539_v33, %v1202_v20  ;;  %v2617_v43 = vadd.f32 %v2616_v42, %v1210_v21  ;;  %v2541_v37 = vpop.f32.mrb[21].mxu0  ;;  %v2618_v51 = vpop.f32.mrb[21].mxu1 }
 0x86b   :  { %v2542_v38 = vadd.f32 %v2541_v37, %v1206_v22  ;;  %v2619_v44 = vadd.f32 %v2618_v51, %v1214_v23  ;;  %3302 = vmatprep.mubr.f32.mxu0 %v2634_v30  ;;  %3377 = vmatprep.mubr.f32.mxu1 %v2636_v32 }
 0x86c   :  { %3303 = vmatmul.mubr.f32.vlgmr.msra.gmra.mrb[34].mxu0 %v2633_v34  ;;  %3378 = vmatmul.mubr.f32.vlgmr.msra.gmra.mrb[34].mxu1 %v2635_v35  ;;  %v2649_v13 = vmax.f32 %v2540_v36, 0.0  ;;  %v2651_v45 = vmax.f32 %v2617_v43, 0.0 }
 0x86d   :  { %v2650_v6 = vmax.f32 %v2542_v38, 0.0  ;;  %v2652_v31 = vmax.f32 %v2619_v44, 0.0 }
 0x86f   :  { %3307 = vmatprep.mubr.f32.mxu0 %v2650_v6  ;;  %3382 = vmatprep.mubr.f32.mxu1 %v2652_v31 }
 0x870   :  { %3308 = vmatmul.mubr.f32.gmra.mrb[36].mxu0 %v2649_v13  ;;  %3383 = vmatmul.mubr.f32.gmra.mrb[36].mxu1 %v2651_v45 }
 0x886   :  { %v2854_v47 = vpop.f32.mrb[22].mxu0  ;;  %v2929_v48 = vpop.f32.mrb[22].mxu1 }
 0x887   :  { %v2855_v49 = vadd.f32 %v3814_v46, %v2854_v47  ;;  %v2856_v50 = vpop.f32.mrb[23].mxu0  ;;  %v2931_v53 = vpop.f32.mrb[23].mxu1 }
 0x889   :  { %v2930_v54 = vadd.f32 %v2929_v48, %v2855_v49 }
 0x88a   :  { %v2859_v58 = vpop.f32.mrb[24].mxu0  ;;  %v2934_v55 = vpop.f32.mrb[24].mxu1 }
 0x88b   :  { %v2860_v56 = vadd.f32 %v3814_v46, %v2859_v58  ;;  %v2861_v61 = vpop.f32.mrb[25].mxu0  ;;  %v2936_v62 = vpop.f32.mrb[25].mxu1 }
 0x88d   :  { %v2935_v63 = vadd.f32 %v2934_v55, %v2860_v56  ;;  %v3816_v55 = vld [vmem:[#allocation12] ss:$0 sm:$0xff] }
 0x8bd   :  { %v3004_v1 = vpop.f32.mrb[26].mxu0  ;;  %v3079_v40 = vpop.f32.mrb[26].mxu1 }
 0x8be   :  { %v3005_v41 = vadd.f32 %v3004_v1, %v2930_v54  ;;  %v3006_v2 = vpop.f32.mrb[27].mxu0  ;;  %v3081_v3 = vpop.f32.mrb[27].mxu1  ;;  %v3815_v54 = vld [vmem:[#allocation10] ss:$0 sm:$0xff] }
 0x8c0   :  { %v3080_v4 = vadd.f32 %v3079_v40, %v3005_v41 }
 0x8c1   :  { %v3009_v5 = vpop.f32.mrb[28].mxu0  ;;  %v3084_v7 = vpop.f32.mrb[28].mxu1 }
 0x8c2   :  { %v3010_v9 = vadd.f32 %v3009_v5, %v2935_v63  ;;  %v3011_v10 = vpop.f32.mrb[29].mxu0  ;;  %v3086_v11 = vpop.f32.mrb[29].mxu1 }
 0x8c4   :  { %v3085_v12 = vadd.f32 %v3084_v7, %v3010_v9 }
 0x8fe   :  { %v3154_v8 = vpop.f32.mrb[30].mxu0  ;;  %v3229_v15 = vpop.f32.mrb[30].mxu1 }
 0x8ff   :  { %v3155_v16 = vadd.f32 %v3154_v8, %v3080_v4  ;;  %v3156_v14 = vpop.f32.mrb[31].mxu0  ;;  %v3231_v59 = vpop.f32.mrb[31].mxu1 }
 0x901   :  { %v3230_v60 = vadd.f32 %v3229_v15, %v3155_v16 }
 0x902   :  { %v3159_v17 = vpop.f32.mrb[32].mxu0  ;;  %v3234_v18 = vpop.f32.mrb[32].mxu1 }
 0x903   :  { %v3160_v19 = vadd.f32 %v3159_v17, %v3085_v12  ;;  %v3161_v20 = vpop.f32.mrb[33].mxu0  ;;  %v3236_v21 = vpop.f32.mrb[33].mxu1 }
 0x904   :  { %v3817_v20 = vld [vmem:[#allocation16] ss:$0 sm:$0xff] }
 0x905   :  { %v3235_v22 = vadd.f32 %v3234_v18, %v3160_v19 }
 0x93f   :  { %v3304_v23 = vpop.f32.mrb[34].mxu0  ;;  %v3379_v24 = vpop.f32.mrb[34].mxu1 }
 0x940   :  { %v3305_v25 = vadd.f32 %v3304_v23, %v3230_v60  ;;  %v3306_v26 = vpop.f32.mrb[35].mxu0  ;;  %v3381_v27 = vpop.f32.mrb[35].mxu1 }
 0x942   :  { %v3380_v28 = vadd.f32 %v3379_v24, %v3305_v25 }
 0x943   :  { %v3309_v29 = vpop.f32.mrb[36].mxu0  ;;  %v3384_v0 = vpop.f32.mrb[36].mxu1 }
 0x944   :  { %v3310_v39 = vadd.f32 %v3309_v29, %v3235_v22  ;;  %v3311_v30 = vpop.f32.mrb[37].mxu0  ;;  %v3386_v32 = vpop.f32.mrb[37].mxu1  ;;  %v3388_v33 = vadd.f32 %v3380_v28, %v5874_v52  ;;  %v3818_v22 = vld [vmem:[#allocation18] ss:$0 sm:$0xff] }
 0x946   :  { %v3385_v42 = vadd.f32 %v3384_v0, %v3310_v39  ;;  %v3392_v34 = vsel %vm197_vm0, %v3388_v33, 0.0 }
 0x947   :  { %3393 = vadd.xlane.f32.xlu0 %v3392_v34 }
 0x948   :  { %v3389_v35 = vadd.f32 %v3385_v42, %v5880_v57 }
 0x94a   :  { %v3395_v36 = vsel %vm197_vm0, %v3389_v35, 0.0 }
 0x94b   :  { %3396 = vadd.xlane.f32.xlu1 %v3395_v36 }
 0x9d4   :  { %v3394_v43 = vpop.xlane.xlu0 %3393 }
 0x9d5   :  { %v3398_v37 = vmul.f32 0.015625, %v3394_v43 }
 0x9d7   :  { %v3400_v51 = vsub.f32 %v3388_v33, %v3398_v37 }
 0x9d8   :  { %v3397_v38 = vpop.xlane.xlu1 %3396 }
 0x9d9   :  { %v3399_v44 = vmul.f32 0.015625, %v3397_v38  ;;  %v3402_v6 = vmul.f32 %v3400_v51, %v3400_v51 }
 0x9db   :  { %v3401_v31 = vsub.f32 %v3389_v35, %v3399_v44  ;;  %v3404_v13 = vsel %vm197_vm0, %v3402_v6, 0.0 }
 0x9dc   :  { %3405 = vadd.xlane.f32.xlu0 %v3404_v13 }
 0x9dd   :  { %v3403_v52 = vmul.f32 %v3401_v31, %v3401_v31 }
 0x9df   :  { %v3407_v45 = vsel %vm197_vm0, %v3403_v52, 0.0 }
 0x9e0   :  { %3408 = vadd.xlane.f32.xlu1 %v3407_v45 }
 0xa69   :  { %v3406_v46 = vpop.xlane.xlu0 %3405 }
 0xa6a   :  { %v3410_v47 = vmul.f32 0.015625, %v3406_v46 }
 0xa6c   :  { %v3412_v57 = vadd.f32 1e-05, %v3410_v47 }
 0xa6d   :  { %v3409_v48 = vpop.xlane.xlu1 %3408 }
 0xa6e   :  { %4888 = vrsqrt.f32 %v3412_v57  ;;  %v3411_v49 = vmul.f32 0.015625, %v3409_v48 }
 0xa70   :  { %v3413_v50 = vadd.f32 1e-05, %v3411_v49 }
 0xa72   :  { %4890 = vrsqrt.f32 %v3413_v50 }
 0xa78   :  { %v4889_v53 = vpop.eup %4888 }
 0xa79   :  { %v3416_v58 = vmul.f32 %v4889_v53, %v3400_v51 }
 0xa7b   :  { %v3424_v56 = vmul.f32 %v3815_v54, %v3416_v58 }
 0xa7c   :  { %v4891_v61 = vpop.eup %4890 }
 0xa7d   :  { %v3432_v62 = vadd.f32 %v3816_v55, %v3424_v56  ;;  %v3417_v63 = vmul.f32 %v4891_v61, %v3401_v31 }
 0xa7f   :  { %v3436_v1 = vsel %vm197_vm0, %v3432_v62, 0.0  ;;  %v3425_v40 = vmul.f32 %v3815_v54, %v3417_v63 }
 0xa80   :  { %3437 = vadd.xlane.f32.xlu0 %v3436_v1 }
 0xa81   :  { %v3433_v41 = vadd.f32 %v3816_v55, %v3425_v40 }
 0xa83   :  { %v3439_v2 = vsel %vm197_vm0, %v3433_v41, 0.0 }
 0xa84   :  { %3440 = vadd.xlane.f32.xlu1 %v3439_v2 }
 0xb0d   :  { %v3438_v3 = vpop.xlane.xlu0 %3437 }
 0xb0e   :  { %v3442_v4 = vmul.f32 0.015625, %v3438_v3 }
 0xb10   :  { %v3444_v5 = vsub.f32 %v3432_v62, %v3442_v4 }
 0xb11   :  { %v3441_v7 = vpop.xlane.xlu1 %3440 }
 0xb12   :  { %v3443_v9 = vmul.f32 0.015625, %v3441_v7  ;;  %v3446_v10 = vmul.f32 %v3444_v5, %v3444_v5 }
 0xb14   :  { %v3445_v11 = vsub.f32 %v3433_v41, %v3443_v9  ;;  %v3448_v12 = vsel %vm197_vm0, %v3446_v10, 0.0 }
 0xb15   :  { %3449 = vadd.xlane.f32.xlu0 %v3448_v12 }
 0xb16   :  { %v3447_v8 = vmul.f32 %v3445_v11, %v3445_v11 }
 0xb18   :  { %v3451_v15 = vsel %vm197_vm0, %v3447_v8, 0.0 }
 0xb19   :  { %3452 = vadd.xlane.f32.xlu1 %v3451_v15 }
 0xba2   :  { %v3450_v16 = vpop.xlane.xlu0 %3449 }
 0xba3   :  { %v3454_v14 = vmul.f32 0.015625, %v3450_v16 }
 0xba5   :  { %v3456_v59 = vadd.f32 1e-05, %v3454_v14 }
 0xba6   :  { %v3453_v60 = vpop.xlane.xlu1 %3452 }
 0xba7   :  { %4892 = vrsqrt.f32 %v3456_v59  ;;  %v3455_v17 = vmul.f32 0.015625, %v3453_v60 }
 0xba9   :  { %v3457_v18 = vadd.f32 1e-05, %v3455_v17 }
 0xbab   :  { %4894 = vrsqrt.f32 %v3457_v18 }
 0xbb1   :  { %v4893_v19 = vpop.eup %4892 }
 0xbb2   :  { %v3460_v21 = vmul.f32 %v4893_v19, %v3444_v5 }
 0xbb4   :  { %v3468_v23 = vmul.f32 %v3817_v20, %v3460_v21 }
 0xbb5   :  { %v4895_v24 = vpop.eup %4894 }
 0xbb6   :  { %v3476_v25 = vadd.f32 %v3818_v22, %v3468_v23  ;;  %v3461_v26 = vmul.f32 %v4895_v24, %v3445_v11 }
 0xbb8   :  { %3478 = vst.msk [vmem:[%s7158_s6] sm:$0xff] %vm197_vm0, %v3476_v25  ;;  %v3469_v27 = vmul.f32 %v3817_v20, %v3461_v26 }
 0xbba   :  { %v3477_v28 = vadd.f32 %v3818_v22, %v3469_v27 }
 0xbbc   :  { %3479 = vst.msk [vmem:[%s7158_s6 + $0x8] sm:$0xff] %vm197_vm0, %v3477_v28 }
 0xbbd   :  { %3484 = vsyncpa [#allocation3], 1 }
 0xbbe   :  { %3485 = vsyncpa [#allocation5], 1 }
 0xbbf   :  { %3486 = vsyncpa [#allocation8], 1 }
 0xbc0   :  { %3487 = vsyncpa [#allocation11], 1 }
 0xbc1   :  { %3488 = vsyncpa [#allocation14], 1 }
 0xbc2   :  { %3489 = vsyncpa [#allocation17], 1 }

// kernel: transformer_forward.3
= control target key start
LH: loop header
LB: loop body
LE: loop exit
PB: predicated region body
PF: predicated region fallthrough
CT: control target
= control target key end

     0   :  { %s8777_s0 = inlined_call_operand.vmem [shape: f32[14,64], index: 0, kind: input, shape index: {}]   ;;  %s8778_s1 = inlined_call_operand.vmem [shape: f32[16,64], index: 1, kind: input, shape index: {}]   ;;  %s8779_s2 = inlined_call_operand.vmem [shape: f32[14,14], index: 2, kind: input, shape index: {}]   ;;  %s8780_s3 = inlined_call_operand.vmem [shape: f32[14,16], index: 3, kind: input, shape index: {}]   ;;  %s8781_s4 = inlined_call_operand.vmem [shape: f32[25,192,64], index: 4, kind: input, shape index: {}]   ;;  %s8782_s5 = inlined_call_operand.vmem [shape: f32[25,3,64], index: 5, kind: input, shape index: {}]   ;;  %s8783_s6 = inlined_call_operand.vmem [shape: f32[25,64,64], index: 6, kind: input, shape index: {}]   ;;  %s8784_s7 = inlined_call_operand.vmem [shape: f32[25,1,64], index: 7, kind: input, shape index: {}]   ;;  %s8785_s8 = inlined_call_operand.vmem [shape: f32[25,192,64], index: 8, kind: input, shape index: {}]   ;;  %s8786_s9 = inlined_call_operand.vmem [shape: f32[25,3,64], index: 9, kind: input, shape index: {}]   ;;  %s8787_s10 = inlined_call_operand.vmem [shape: f32[25,64,64], index: 10, kind: input, shape index: {}]   ;;  %s8788_s11 = inlined_call_operand.vmem [shape: f32[25,1,64], index: 11, kind: input, shape index: {}]   ;;  %s8789_s12 = inlined_call_operand.vmem [shape: f32[25,1,64], index: 12, kind: input, shape index: {}]   ;;  %s8790_s13 = inlined_call_operand.vmem [shape: f32[25,1,64], index: 13, kind: input, shape index: {}]   ;;  %s8791_s14 = inlined_call_operand.vmem [shape: f32[25,1,64], index: 14, kind: input, shape index: {}]   ;;  %s8792_s15 = inlined_call_operand.vmem [shape: f32[25,1,64], index: 15, kind: input, shape index: {}]   ;;  %s8793_s16 = inlined_call_operand.vmem [shape: f32[25,1,64], index: 16, kind: input, shape index: {}]   ;;  %s8794_s17 = inlined_call_operand.vmem [shape: f32[25,1,64], index: 17, kind: input, shape index: {}]   ;;  %s8795_s18 = inlined_call_operand.vmem [shape: f32[25,2048,64], index: 18, kind: input, shape index: {}]   ;;  %s8796_s19 = inlined_call_operand.vmem [shape: f32[25,1,2048], index: 19, kind: input, shape index: {}]   ;;  %s8797_s20 = inlined_call_operand.hbm [shape: f32[25,64,2048], index: 20, kind: input, shape index: {}]   ;;  %s8798_s21 = inlined_call_operand.vmem [shape: f32[25,1,64], index: 21, kind: input, shape index: {}]   ;;  %s8799_s22 = inlined_call_operand.vmem [shape: f32[1,64], index: 22, kind: input, shape index: {}]   ;;  %s8800_s23 = inlined_call_operand.vmem [shape: f32[1,64], index: 23, kind: input, shape index: {}]   ;;  %s8801_s24 = inlined_call_operand.vmem [shape: f32[12,64], index: 24, kind: input, shape index: {}]   ;;  %s8802_s25 = inlined_call_operand.vmem [shape: f32[1,12], index: 25, kind: input, shape index: {}]   ;;  %s8803_s26 = inlined_call_operand.vmem [shape: f32[14,12], index: 26, kind: output, shape index: {}]  }
   0x1   :  { %8819 = sst [smem:[#allocation15_spill]] %s8777_s0 }
   0x2   :  { %8820 = sst [smem:[#allocation16_spill]] %s8778_s1 }
   0x3   :  { %8821 = sst [smem:[#allocation17_spill]] %s8779_s2 }
   0x4   :  { %8822 = sst [smem:[#allocation18_spill]] %s8780_s3 }
   0x5   :  { %8823 = sst [smem:[#allocation19_spill]] %s8781_s4 }
   0x6   :  { %8824 = sst [smem:[#allocation20_spill]] %s8782_s5 }
   0x7   :  { %8825 = sst [smem:[#allocation21_spill]] %s8783_s6 }
   0x8   :  { %8826 = sst [smem:[#allocation22_spill]] %s8784_s7 }
   0x9   :  { %8827 = sst [smem:[#allocation23_spill]] %s8785_s8 }
   0xa   :  { %8828 = sst [smem:[#allocation24_spill]] %s8786_s9 }
   0xb   :  { %8829 = sst [smem:[#allocation25_spill]] %s8787_s10 }
   0xc   :  { %8830 = sst [smem:[#allocation26_spill]] %s8797_s20 }
   0xd   :  { %8831 = sst [smem:[#allocation27_spill]] %s8798_s21 }
   0xe   :  { %8832 = sst [smem:[#allocation28_spill]] %s8799_s22 }
   0xf   :  { %8833 = sst [smem:[#allocation29_spill]] %s8800_s23 }
  0x10   :  { %8834 = sst [smem:[#allocation30_spill]] %s8801_s24 }
  0x11   :  { %8835 = sst [smem:[#allocation31_spill]] %s8802_s25 }
  0x12   :  { %8836 = sst [smem:[#allocation32_spill]] %s8803_s26 }
  0x13   :  { %31 = vsyncpa [#allocation4], 0 }
  0x14   :  { %33 = vsyncpa [#allocation4 + $0x1], 0  ;;  %s7423_s27 = smov 0   ;;  %s7425_s3 = smov 0  }
  0x15   :  { %s7427_s7 = smov 0   ;;  %s7429_s28 = smov 0  }
  0x16 LB: > { %8837 = sst [smem:[#allocation6_spill]] %s7274_s3  ;;  %s7442_s8 = sadd.s32 4294967295, %s7282_s28   ;;  %s7282_s28 = sphi %s7429_s28, %s8883_s28   ;;  %s7278_s7 = sphi %s7427_s7, %s8886_s7   ;;  %s7274_s3 = sphi %s7425_s3, %s8885_s3   ;;  %s7270_s27 = sphi %s7423_s27, %s8884_s27  }
  0x17   : > { %8838 = sst [smem:[#allocation7_spill]] %s7278_s7  ;;  %s7445_s4 = sadd.s32 1, %s7282_s28  }
  0x18   : > { %8839 = sst [smem:[#allocation8_spill]] %s7442_s8  ;;  %s543_s29 = ssub.s32 %s7282_s28, %s7445_s4 }
  0x19   : > { %8840 = sst [smem:[#allocation9_spill]] %s7445_s4  ;;  %s546_s0 = sadd.s32 1, %s7278_s7 }
  0x1a   : > { %p544_p0 = scmp.eq.s32.totalorder %s543_s29, 0  ;;  %p553_p1 = scmp.ne.s32.totalorder %s7278_s7, %s7274_s3 }
  0x1b   : > { %p554_p2 = scmp.eq.s32.totalorder %s7282_s28, 0  ;;  %p559_p3 = scmp.ne.s32.totalorder %s7274_s3, %s7270_s27 }
  0x1c   : > { %s7455_s9 = scalar_select %p544_p0, %s7278_s7, %s546_s0  }
  0x1d   : > { %p555_p4 = por %p554_p2, %p553_p1  ;;  %p560_p5 = scmp.eq.s32.totalorder %s7442_s8, 0 }
  0x1e   : > { %8841 = sst [smem:[#allocation10_spill]] %s7455_s9  ;;  %p7150_p6 = scmp.lt.s32.totalorder %s7282_s28, 25 }
  0x1f   : > { %p7459_p7 = por %p560_p5, %p559_p3  ;;  %s847_s2 = sand.u32 1, %s7278_s7  }
  0x20   : > { %s5425_s5 = sshll.u32 %s847_s2, 10  ;;  %s5832_s10 = sshll.u32 %s7282_s28, 14 }
  0x21   : > { %s8843_s20 = sld [smem:[#allocation26_spill]]  ;;  %s851_s27 = scalar_lea.vmem [#allocation3], %s5425_s5 }
  0x22   : > { %s858_s0 = sshll.u32 %s851_s27, 4  ;;  %p7472_p8 = pnand %p7150_p6, %p555_p4  ;;  %s7470_s0 = int_to_ptr.vmem [resolvable:$true] %s858_s0 }
  0x23   : > { %s7477_s7 = scalar_lea.sflag [#allocation4], %s847_s2 }
  0x24   : > { %p7220_p11 = pneg %p7472_p8 }
  0x27   : > { %s7468_s29 = scalar_lea.hbm %s8843_s20, %s5832_s10  ;;  %s7223_s1 = scalar_lea.hbm %s8843_s20, 409600 }
  0x28   : > { %s7218_s6 = scalar_lea.hbm %s7468_s29, 16384  ;;  %p7224_p0 = scmp.lt.u32.totalorder %s7468_s29, %s8843_s20 }
  0x29   : > { %p7219_p10 = scmp.ne.s32.totalorder %s7468_s29, %s7218_s6  ;;  %p7225_p1 = scmp.lt.u32.totalorder %s7223_s1, %s7218_s6 }
  0x2a   : > { %p7227_p3 = scmp.lt.u32.totalorder %s7218_s6, %s7468_s29 }
  0x2b   : > { %p7221_p12 = pnand %p7220_p11, %p7219_p10  ;;  %p7226_p2 = por %p7225_p1, %p7224_p0 }
  0x2d   : > { %p7222_p13 = pneg %p7221_p12  ;;  %p7228_p4 = por %p7227_p3, %p7226_p2 }
  0x2f   : > { %p7229_p5 = pnand %p7228_p4, %p7222_p13 }
  0x31   : > { %7232 = shalt.err (!%p7229_p5)
}
  0x32   : > { %s7233_s2 = scalar_lea.vmem %s7470_s0, 16384  ;;  %s7284_s5 = smov [#allocation3]  }
  0x33   : > { %p7234_p6 = scmp.ne.s32.totalorder %s7470_s0, %s7233_s2  ;;  %s7238_s10 = sshll.u32 %s7284_s5, 4  ;;  %s7239_s10 = int_to_ptr.vmem [resolvable:$false] %s7238_s10 }
  0x34   : > { %s7240_s4 = scalar_lea.vmem %s7239_s10, 32768  ;;  %p7241_p9 = scmp.lt.s32.totalorder %s7470_s0, %s7239_s10 }
  0x35   : > { %p7236_p10 = pnand %p7234_p6, %p7220_p11  ;;  %p7242_p0 = scmp.lt.s32.totalorder %s7240_s4, %s7233_s2 }
  0x37   : > { %p7237_p12 = pneg %p7236_p10  ;;  %p7243_p1 = por %p7242_p0, %p7241_p9 }
  0x39   : > { %p7244_p2 = pnand %p7243_p1, %p7237_p12 }
  0x3b   : > { %7247 = shalt.err (!%p7244_p2)
}
  0x3c   : > { %s7285_s6 = smov 2048   ;;  %s7286_s1 = smov 128  }
  0x3d   : > { %7149 = dma.hbm_to_vmem [thread:$0]  (!%p7472_p8), %s7468_s29, 16384, %s7470_s0, %s7477_s7, %s7285_s6, %s7285_s6, %s7286_s1  }
  0x3e   : > { %p872_p11 = scmp.lt.s32.totalorder %s7282_s28, 26  ;;  %p8845_p13 = scmp.ge.s32.totalorder %s7282_s28, 1 }
  0x40   : > { %p873_p3 = pnand %p8845_p13, %p872_p11 }
  0x42   : > { %876 = sbr.rel (%p873_p3) target bundleno = 4623 (0x120f), region = 124 }
  0x49   : > { %s878_s27 = sand.u32 1, %s7274_s3  }
  0x4a   : > { %s5429_s2 = sshll.u32 %s878_s27, 10  ;;  %s879_s5 = scalar_lea.sflag [#allocation4], %s878_s27 }
  0x4b   : > { %s7509_s10 = scalar_lea.vmem [#allocation3], %s5429_s2 }
  0x4c   : > { %8846 = sst [smem:[#allocation11_spill]] %s7509_s10 }
  0x4d   : > { %7265 = dma.done.wait (%p7459_p7), %s879_s5, 16384  }
  0x4e   : > { %7267 = vsyncadd (%p7459_p7), %s879_s5, 4294950912  ;;  %p1010_p9 = scmp.lt.s32.totalorder %s7442_s8, 24  ;;  %s8847_s0 = sld [smem:[#allocation20_spill]] }
  0x4f   : > { %s8849_s2 = sld [smem:[#allocation19_spill]]  ;;  %s8851_s26 = sld [smem:[#allocation21_spill]] }
  0x50   : > { %s7517_s7 = scalar_select %p1010_p9, %s7442_s8, 24 }
  0x51   : > { %s8853_s24 = sld [smem:[#allocation22_spill]]  ;;  %s8854_s10 = sld [smem:[#allocation23_spill]] }
  0x52   : > { %s7143_s28 = smul.u32 192, %s7517_s7  ;;  %s5431_s9 = sshll.u32 %s7517_s7, 2 }
  0x53   : > { %s5833_s6 = sshll.u32 %s7517_s7, 6  ;;  %s8855_s27 = sld [smem:[#allocation24_spill]] }
  0x54   : > { %s7524_s4 = scalar_lea.vmem %s8847_s0, %s5431_s9  ;;  %s8856_s20 = sld [smem:[#allocation25_spill]] }
  0x55   : > { %8848 = sst [smem:[#allocation12_spill]] %s7524_s4  ;;  %s7530_s5 = scalar_lea.vmem %s8849_s2, %s7143_s28 }
  0x56   : > { %8850 = sst [smem:[#allocation13_spill]] %s7530_s5  ;;  %s7535_s25 = scalar_lea.vmem %s8851_s26, %s5833_s6 }
  0x57   : > { %8852 = sst [smem:[#allocation14_spill]] %s7535_s25  ;;  %s1026_s30 = scalar_lea.vmem %s8853_s24, %s7517_s7 }
  0x58   : > { %s7544_s4 = scalar_lea.vmem %s8854_s10, %s7143_s28  ;;  %s1049_s0 = scalar_lea.vmem %s8790_s13, %s7517_s7 }
  0x59   : > { %s7549_s2 = scalar_lea.vmem %s8855_s27, %s5431_s9  ;;  %s5835_s24 = sshll.u32 %s7517_s7, 11 }
  0x5a   : > { %s7554_s26 = scalar_lea.vmem %s8856_s20, %s5833_s6  ;;  %s7588_s28 = scalar_lea.vmem %s8795_s18, %s5835_s24 }
  0x5b   : > { %s5440_s8 = sshll.u32 %s7517_s7, 4  ;;  %s8857_s5 = sld [smem:[#allocation27_spill]] }
  0x5c   : > { %s7594_s27 = scalar_lea.vmem %s8796_s19, %s5440_s8  ;;  %s8858_s25 = sld [smem:[#allocation8_spill]] }
  0x61   : > { %s1073_s20 = scalar_lea.vmem %s8857_s5, %s7517_s7 }
  0x62   : > { %p5441_p7 = scmp.ne.s32.totalorder %s8858_s25, 0 }
  0x63   : > { %s8859_s23 = sld [smem:[#allocation15_spill]] (!%p5441_p7)  ;;  %vm1080_vm0 = vcmask (!%p5441_p7), 523264   ;;  %vm1082_vm1 = vcmask (!%p5441_p7), 521216  }
  0x64   : > { %1077 = sbr.rel (%p5441_p7) target bundleno = 108 (0x6c), region = 132 }
  0x69   : > { %v1078_v0 = vld [vmem:[%s8859_s23] sm:$0xff] (!%p5441_p7)  ;;  %v1079_v1 = vld [vmem:[%s8859_s23 + $0x8] sm:$0x3f] (!%p5441_p7) }
  0x6a   : > { %1081 = vst.msk [vmem:[#allocation2] sm:$0xff] (!%p5441_p7), %vm1080_vm0, %v1078_v0 }
  0x6b   : > { %1083 = vst.msk [vmem:[#allocation2 + $0x8] sm:$0x3f] %vm1082_vm1, %v1079_v1 }
  0x6c PF: > { %vm1099_vm2 = vcmask 523264   ;;  %s8860_s1 = sld [smem:[#allocation13_spill]]  ;;  %s8863_s6 = sld [smem:[#allocation12_spill]]  ;;  %vm1552_vm4 = vcmask 1045504   ;;  %vm7287_vm5 = vmmov 1   ;;  %vm1522_vm7 = vcmask 113664  }
  0x6d   : > { %vm7612_vm3 = vmpackc.low %vm1099_vm2, %vm1099_vm2  ;;  %s8864_s8 = sld [smem:[#allocation17_spill]]  ;;  %vm1526_vm8 = vcmask 111616   ;;  %vm1758_vm9 = vcmask 521216   ;;  %s8868_s21 = scalar_lea.vmem %s8789_s12, %s7517_s7  ;;  %vm2246_vm10 = vcmask 128000   ;;  %vm2242_vm11 = vcmask 130048  }
  0x6e   : > { %vm6490_vm6 = vmpackc.low %vm1552_vm4, %vm7287_vm5  ;;  %s8865_s5 = sld [smem:[#allocation14_spill]]  ;;  %s8869_s29 = sld [smem:[#allocation18_spill]] }
  0x6f   : > { %s8870_s24 = scalar_lea.vmem %s8788_s11, %s7517_s7  ;;  %s8871_s10 = scalar_lea.vmem %s8791_s14, %s7517_s7 }
  0x70   : > { %s8873_s22 = sld [smem:[#allocation11_spill]] }
  0x72   : > { %v1205_v2 = vld [vmem:[%s8860_s1 + $0x40] sm:$0xff]  ;;  %v1206_v3 = vld [vmem:[%s8860_s1 + $0x48] sm:$0xff]  ;;  %v1207_v8 = vld [vmem:[%s8860_s1 + $0x50] sm:$0xff] }
  0x73   : > { %v1086_v4 = vld [vmem:[%s8860_s1] sm:$0xff]  ;;  %v6435_v6 = vpack.c.bf16 %v1206_v3, %v1205_v2  ;;  %v1087_v7 = vld [vmem:[%s8860_s1 + $0x8] sm:$0xff]  ;;  %v1208_v10 = vld [vmem:[%s8860_s1 + $0x58] sm:$0xff] }
  0x74   : > { %v6411_v9 = vpack.c.bf16 %v1087_v7, %v1086_v4  ;;  %v1088_v11 = vld [vmem:[%s8860_s1 + $0x10] sm:$0xff]  ;;  %v1089_v12 = vld [vmem:[%s8860_s1 + $0x18] sm:$0xff]  ;;  %v6441_v13 = vpack.c.bf16 %v1208_v10, %v1207_v8  ;;  %v1209_v16 = vld [vmem:[%s8860_s1 + $0x60] sm:$0xff] }
  0x75   : > { %6437 = vmatprep.subr.msk.bf16.mxu1 %vm7612_vm3, %v6435_v6  ;;  %v6417_v14 = vpack.c.bf16 %v1089_v12, %v1088_v11  ;;  %v7631_v15 = vld [vmem:[#allocation2] sm:$0xff]  ;;  %v1210_v17 = vld [vmem:[%s8860_s1 + $0x68] sm:$0xff]  ;;  %v1090_v18 = vld [vmem:[%s8860_s1 + $0x20] sm:$0xff] }
  0x76   : > { %6440 = vmatpush3.bf16.xpose.msk.msra.mxu1 %vm7612_vm3, %v6435_v6  ;;  %6413 = vmatprep.subr.msk.bf16.mxu0 %vm7612_vm3, %v6411_v9  ;;  %v1091_v19 = vld [vmem:[%s8860_s1 + $0x28] sm:$0xff]  ;;  %v6447_v20 = vpack.c.bf16 %v1210_v17, %v1209_v16  ;;  %v1211_v22 = vld [vmem:[%s8860_s1 + $0x70] sm:$0xff]  ;;  %v1212_v23 = vld [vmem:[%s8860_s1 + $0x78] sm:$0xff] }
  0x77   : > { %6443 = vmatprep.subr.msk.bf16.mxu1 %vm7612_vm3, %v6441_v13  ;;  %6416 = vmatpush3.bf16.xpose.msk.msra.mxu0 %vm7612_vm3, %v6411_v9  ;;  %v6423_v21 = vpack.c.bf16 %v1091_v19, %v1090_v18  ;;  %v1092_v24 = vld [vmem:[%s8860_s1 + $0x30] sm:$0xff]  ;;  %v1093_v25 = vld [vmem:[%s8860_s1 + $0x38] sm:$0xff]  ;;  %v6453_v26 = vpack.c.bf16 %v1212_v23, %v1211_v22  ;;  %v1317_v28 = vld [vmem:[%s8860_s1 + $0x80] sm:$0xff] }
  0x78   : > { %6419 = vmatprep.subr.msk.bf16.mxu0 %vm7612_vm3, %v6417_v14  ;;  %6259 = vmatprep.mubr.msk.f32.mxu1 %vm1099_vm2, %v7631_v15  ;;  %v6429_v27 = vpack.c.bf16 %v1093_v25, %v1092_v24  ;;  %v1318_v29 = vld [vmem:[%s8860_s1 + $0x88] sm:$0xff]  ;;  %v1319_v31 = vld [vmem:[%s8860_s1 + $0x90] sm:$0xff]  ;;  %v1320_v32 = vld [vmem:[%s8860_s1 + $0x98] sm:$0xff] }
  0x79   : > { %6240 = vmatprep.mubr.msk.f32.mxu0 %vm1099_vm2, %v7631_v15  ;;  %v6459_v30 = vpack.c.bf16 %v1318_v29, %v1317_v28  ;;  %v7673_v33 = vld [vmem:[#allocation2 + $0x8] sm:$0x3f]  ;;  %v6465_v34 = vpack.c.bf16 %v1320_v32, %v1319_v31  ;;  %v1321_v35 = vld [vmem:[%s8860_s1 + $0xa0] sm:$0xff]  ;;  %v1322_v36 = vld [vmem:[%s8860_s1 + $0xa8] sm:$0xff] }
  0x7a   : > { %v6471_v37 = vpack.c.bf16 %v1322_v36, %v1321_v35  ;;  %v1323_v38 = vld [vmem:[%s8860_s1 + $0xb0] sm:$0xff]  ;;  %v1324_v39 = vld [vmem:[%s8860_s1 + $0xb8] sm:$0xff]  ;;  %v5453_v41 = vld [vmem:[%s8863_s6 + $0x1] ss:$0 sm:$0xff]  ;;  %s8867_s1 = sld [smem:[#allocation16_spill]] }
  0x7b   : > { %v6477_v40 = vpack.c.bf16 %v1324_v39, %v1323_v38  ;;  %v5442_v43 = vld [vmem:[%s8863_s6] ss:$0 sm:$0xff]  ;;  %v5464_v52 = vld [vmem:[%s8863_s6 + $0x2] ss:$0 sm:$0xff]  ;;  %v1430_v63 = vld [vmem:[%s8864_s8 + $0x8] sm:$0x3f] }
  0x7c   : > { %v1429_v60 = vld [vmem:[%s8864_s8] sm:$0xff]  ;;  %v1632_v17 = vld [vmem:[%s8865_s5 + $0x8] sm:$0xff]  ;;  %v1633_v18 = vld [vmem:[%s8865_s5 + $0x10] sm:$0xff] }
  0x7d   : > { %v1631_v16 = vld [vmem:[%s8865_s5] sm:$0xff]  ;;  %v1636_v23 = vld [vmem:[%s8865_s5 + $0x28] sm:$0xff]  ;;  %v1637_v25 = vld [vmem:[%s8865_s5 + $0x30] sm:$0xff] }
  0x7e   : > { %6446 = vmatpush3.bf16.xpose.msk.msra.mxu1 %vm7612_vm3, %v6441_v13  ;;  %v6495_v19 = vpack.c.bf16 %v1632_v17, %v1631_v16  ;;  %v1635_v22 = vld [vmem:[%s8865_s5 + $0x20] sm:$0xff]  ;;  %v1808_v16 = vld [vmem:[%s7544_s4 + $0x38] sm:$0xff] }
  0x7f   : > { %6449 = vmatprep.subr.msk.bf16.mxu1 %vm7612_vm3, %v6447_v20  ;;  %6422 = vmatpush3.bf16.xpose.msk.msra.mxu0 %vm7612_vm3, %v6417_v14  ;;  %v6507_v24 = vpack.c.bf16 %v1636_v23, %v1635_v22 }
  0x80   : > { %6425 = vmatprep.subr.msk.bf16.mxu0 %vm7612_vm3, %v6423_v21 }
  0x86   : > { %6452 = vmatpush3.bf16.xpose.msk.msra.mxu1 %vm7612_vm3, %v6447_v20  ;;  %v1634_v20 = vld [vmem:[%s8865_s5 + $0x18] sm:$0xff] }
  0x87   : > { %6455 = vmatprep.subr.msk.bf16.mxu1 %vm7612_vm3, %v6453_v26  ;;  %6428 = vmatpush3.bf16.xpose.msk.msra.mxu0 %vm7612_vm3, %v6423_v21  ;;  %v6501_v21 = vpack.c.bf16 %v1634_v20, %v1633_v18 }
  0x88   : > { %6431 = vmatprep.subr.msk.bf16.mxu0 %vm7612_vm3, %v6429_v27 }
  0x8e   : > { %6458 = vmatpush3.bf16.xpose.msk.msra.mxu1 %vm7612_vm3, %v6453_v26  ;;  %v1638_v26 = vld [vmem:[%s8865_s5 + $0x38] sm:$0xff]  ;;  %s8872_s5 = scalar_lea.vmem %s8792_s15, %s7517_s7 }
  0x8f   : > { %6434 = vmatpush3.bf16.xpose.msk.msra.mxu0 %vm7612_vm3, %v6429_v27  ;;  %6497 = vmatprep.subr.msk.bf16.mxu1 %vm7612_vm3, %v6495_v19  ;;  %v6513_v27 = vpack.c.bf16 %v1638_v26, %v1637_v25  ;;  %v5493_v25 = vld [vmem:[%s8868_s21] ss:$0 sm:$0xff] }
  0x90   : > { %6461 = vmatprep.subr.msk.bf16.mxu0 %vm7612_vm3, %v6459_v30 }
  0x95   : > { %6260 = vmatmul.mubr.msk.f32.vlgmr.msra.gmra.mrb[0].mxu1 %vm1099_vm2, %v7673_v33 }
  0x96   : > { %6241 = vmatmul.mubr.msk.f32.vlgmr.msra.gmra.mrb[0].mxu0 %vm1099_vm2, %v7673_v33  ;;  %6500 = vmatpush3.bf16.xpose.msk.msra.mxu1 %vm7612_vm3, %v6495_v19 }
  0x97   : > { %6464 = vmatpush3.bf16.xpose.msk.msra.mxu0 %vm7612_vm3, %v6459_v30  ;;  %6278 = vmatprep.mubr.msk.f32.mxu0 %vm1099_vm2, %v7631_v15 }
  0x98   : > { %6467 = vmatprep.subr.msk.bf16.mxu0 %vm7612_vm3, %v6465_v34  ;;  %6503 = vmatprep.subr.msk.bf16.mxu1 %vm7612_vm3, %v6501_v21 }
  0x9e   : > { %6506 = vmatpush3.bf16.xpose.msk.msra.mxu1 %vm7612_vm3, %v6501_v21 }
  0x9f   : > { %6470 = vmatpush3.bf16.xpose.msk.msra.mxu0 %vm7612_vm3, %v6465_v34  ;;  %6509 = vmatprep.subr.msk.bf16.mxu1 %vm7612_vm3, %v6507_v24 }
  0xa0   : > { %6473 = vmatprep.subr.msk.bf16.mxu0 %vm7612_vm3, %v6471_v37 }
  0xa6   : > { %6512 = vmatpush3.bf16.xpose.msk.msra.mxu1 %vm7612_vm3, %v6507_v24 }
  0xa7   : > { %6476 = vmatpush3.bf16.xpose.msk.msra.mxu0 %vm7612_vm3, %v6471_v37  ;;  %6515 = vmatprep.subr.msk.bf16.mxu1 %vm7612_vm3, %v6513_v27  ;;  %v5482_v37 = vld [vmem:[%s1026_s30] ss:$0 sm:$0xff] }
  0xa8   : > { %6479 = vmatprep.subr.msk.bf16.mxu0 %vm7612_vm3, %v6477_v40 }
  0xae   : > { %6518 = vmatpush3.bf16.xpose.msk.msra.mxu1 %vm7612_vm3, %v6513_v27 }
  0xaf   : > { %6482 = vmatpush3.bf16.xpose.msk.msra.mxu0 %vm7612_vm3, %v6477_v40 }
  0xb6   : > { %6279 = vmatmul.mubr.msk.f32.vlgmr.msra.gmra.mrb[2].mxu0 %vm1099_vm2, %v7673_v33 }
 0x168   : > { %v6261_v42 = vpop.f32.mrb[0].mxu1 }
 0x169   : > { %v1314_v44 = vadd.f32 %v6261_v42, %v5453_v41  ;;  %v1308_v45 = vpop.f32.mrb[1].mxu1  ;;  %v6242_v46 = vpop.f32.mrb[0].mxu0 }
 0x16a   : > { %v1309_v47 = vadd.f32 %v5453_v41, %v1308_v45  ;;  %v1196_v48 = vpop.f32.mrb[1].mxu0  ;;  %v1202_v51 = vadd.f32 %v6242_v46, %v5442_v43  ;;  %v1919_v46 = vld [vmem:[%s7544_s4 + $0x40] sm:$0xff] }
 0x16b   : > { %v1197_v49 = vadd.f32 %v5442_v43, %v1196_v48  ;;  %v1921_v48 = vld [vmem:[%s7544_s4 + $0x50] sm:$0xff] }
 0x16c   : > { %v6483_v50 = vpack.c.bf16 %v1314_v44, %v1309_v47  ;;  %v1920_v47 = vld [vmem:[%s7544_s4 + $0x48] sm:$0xff] }
 0x16d   : > { %6285 = vmatprep.mubr.msk.f32.mxu0 %vm1099_vm2, %v1197_v49  ;;  %v6543_v49 = vpack.c.bf16 %v1920_v47, %v1919_v46  ;;  %v2037_v46 = vld [vmem:[%s7544_s4 + $0x80] sm:$0xff]  ;;  %v2038_v47 = vld [vmem:[%s7544_s4 + $0x88] sm:$0xff] }
 0x16e   : > { %6485 = vmatprep.subr.msk.bf16.mxu0 %vm7612_vm3, %v6483_v50 }
 0x16f   : > { %6488 = vmatpush3.bf16.xpose.msk.msra.mxu0 %vm7612_vm3, %v6483_v50  ;;  %v1922_v50 = vld [vmem:[%s7544_s4 + $0x58] sm:$0xff]  ;;  %6545 = vmatprep.subr.msk.bf16.mxu1 %vm7612_vm3, %v6543_v49 }
 0x176   : > { %6286 = vmatmul.mubr.msk.f32.vlgmr.msra.gmra.mrb[4].mxu0 %vm1099_vm2, %v1202_v51  ;;  %v1801_v51 = vld [vmem:[%s7544_s4] sm:$0xff] }
 0x189   : > { %v6280_v53 = vpop.f32.mrb[2].mxu0 }
 0x18a   : > { %v1426_v54 = vadd.f32 %v6280_v53, %v5464_v52  ;;  %v1420_v55 = vpop.f32.mrb[3].mxu0  ;;  %v6549_v53 = vpack.c.bf16 %v1922_v50, %v1921_v48  ;;  %v2039_v48 = vld [vmem:[%s7544_s4 + $0x90] sm:$0xff]  ;;  %v2040_v50 = vld [vmem:[%s7544_s4 + $0x98] sm:$0xff] }
 0x18b   : > { %v1421_v56 = vadd.f32 %v5464_v52, %v1420_v55  ;;  %v1802_v52 = vld [vmem:[%s7544_s4 + $0x8] sm:$0xff] }
 0x18d   : > { %v6489_v57 = vpack.c.bf16 %v1426_v54, %v1421_v56  ;;  %v1803_v54 = vld [vmem:[%s7544_s4 + $0x10] sm:$0xff]  ;;  %v1923_v56 = vld [vmem:[%s7544_s4 + $0x60] sm:$0xff] }
 0x18f   : > { %6491 = vmatprep.subr.msk.bf16.mxu0 %vm6490_vm6, %v6489_v57 }
 0x190   : > { %6494 = vmatpush3.bf16.msk.msra.mxu0 %vm6490_vm6, %v6489_v57  ;;  %v1924_v57 = vld [vmem:[%s7544_s4 + $0x68] sm:$0xff] }
 0x249   : > { %v6287_v58 = vpop.f32.mrb[4].mxu0 }
 0x24a   : > { %v1509_v59 = vpop.f32.mrb[5].mxu0  ;;  %v1519_v61 = vmul.f32 0.125, %v6287_v58  ;;  %v6555_v58 = vpack.c.bf16 %v1924_v57, %v1923_v56  ;;  %v2150_v57 = vld [vmem:[%s8869_s29 + $0x8] sm:$0x3f] }
 0x24b   : > { %v1518_v62 = vmul.f32 0.125, %v1509_v59 }
 0x24c   : > { %v1521_v2 = vadd.f32 %v1519_v61, %v1430_v63 }
 0x24d   : > { %v1520_v0 = vadd.f32 %v1518_v62, %v1429_v60 }
 0x24e   : > { %v1527_v3 = vsel %vm1526_vm8, %v1521_v2, -inf }
 0x24f   : > { %v1523_v1 = vsel %vm1522_vm7, %v1520_v0, -inf }
 0x250   : > { %1524 = vmax.xlane.f32.xlu0 %v1523_v1 }
 0x254   : > { %1528 = vmax.xlane.f32.xlu0 %v1527_v3 }
 0x2dd   : > { %v1525_v4 = vpop.xlane.xlu0 %1524 }
 0x2de   : > { %v1530_v6 = vsub.f32 %v1520_v0, %v1525_v4 }
 0x2e0   : > { %v1532_v7 = vmul.f32 1.442695, %v1530_v6  ;;  %v1925_v6 = vld [vmem:[%s7544_s4 + $0x70] sm:$0xff] }
 0x2e1   : > { %v1529_v8 = vpop.xlane.xlu0 %1528 }
 0x2e2   : > { %7186 = vpow2.f32 %v1532_v7  ;;  %v1531_v9 = vsub.f32 %v1521_v2, %v1529_v8  ;;  %v1926_v7 = vld [vmem:[%s7544_s4 + $0x78] sm:$0xff] }
 0x2e3   : > { %v6561_v8 = vpack.c.bf16 %v1926_v7, %v1925_v6 }
 0x2e4   : > { %v1534_v10 = vmul.f32 1.442695, %v1531_v9  ;;  %v1805_v9 = vld [vmem:[%s7544_s4 + $0x20] sm:$0xff] }
 0x2e6   : > { %7188 = vpow2.f32 %v1534_v10  ;;  %v1806_v10 = vld [vmem:[%s7544_s4 + $0x28] sm:$0xff] }
 0x2ec   : > { %v7187_v11 = vpop.eup %7186 }
 0x2ed   : > { %v1536_v12 = vsel %vm1522_vm7, %v7187_v11, 0.0 }
 0x2ee   : > { %1537 = vadd.xlane.f32.xlu1 %v1536_v12  ;;  %v1799_v12 = vld [vmem:[%s8867_s1] sm:$0xff] }
 0x2f0   : > { %v7189_v13 = vpop.eup %7188 }
 0x2f1   : > { %v1539_v14 = vsel %vm1526_vm8, %v7189_v13, 0.0 }
 0x2f2   : > { %1540 = vadd.xlane.f32.xlu1 %v1539_v14  ;;  %v1807_v14 = vld [vmem:[%s7544_s4 + $0x30] sm:$0xff] }
 0x2f3   : > { %v6537_v17 = vpack.c.bf16 %v1808_v16, %v1807_v14  ;;  %v5517_v14 = vld [vmem:[%s7549_s2 + $0x2] ss:$0 sm:$0xff] }
 0x37b   : > { %v1538_v28 = vpop.xlane.xlu1 %1537 }
 0x37c   : > { %7190 = vrcp.f32 %v1538_v28 }
 0x37f   : > { %v1541_v29 = vpop.xlane.xlu1 %1540 }
 0x380   : > { %7192 = vrcp.f32 %v1541_v29  ;;  %v5494_v29 = vld [vmem:[%s1049_s0] ss:$0 sm:$0xff] }
 0x386   : > { %v7191_v30 = vpop.eup %7190 }
 0x387   : > { %v1543_v31 = vmul.f32 %v7191_v30, %v7187_v11  ;;  %v6531_v11 = vpack.c.bf16 %v1806_v10, %v1805_v9 }
 0x389   : > { %6292 = vmatprep.mubr.msk.f32.mxu0 %vm1522_vm7, %v1543_v31 }
 0x38a   : > { %v7193_v32 = vpop.eup %7192 }
 0x38b   : > { %v1545_v34 = vmul.f32 %v7193_v32, %v7189_v13  ;;  %v7806_v13 = vld [vmem:[%s8867_s1 + $0x8] sm:$0xff] }
 0x38d   : > { %6293 = vmatmul.mubr.msk.f32.vlgmr.msra.gmra.mrb[6].mxu0 %vm1522_vm7, %v1545_v34 }
 0x460   : > { %v6294_v35 = vpop.f32.mrb[6].mxu0 }
 0x461   : > { %v1622_v36 = vpop.f32.mrb[7].mxu0 }
 0x462   : > { %6311 = vmatprep.mubr.msk.f32.mxu1 %vm1099_vm2, %v1622_v36 }
 0x463   : > { %6312 = vmatmul.mubr.msk.f32.vlgmr.msra.gmra.mrb[2].mxu1 %vm1099_vm2, %v6294_v35  ;;  %v5506_v35 = vld [vmem:[%s7549_s2 + $0x1] ss:$0 sm:$0xff] }
 0x464   : > { %6548 = vmatpush3.bf16.xpose.msk.msra.mxu1 %vm7612_vm3, %v6543_v49  ;;  %6349 = vmatprep.mubr.msk.f32.mxu1 %vm1099_vm2, %v1799_v12  ;;  %v6567_v49 = vpack.c.bf16 %v2038_v47, %v2037_v46 }
 0x465   : > { %6551 = vmatprep.subr.msk.bf16.mxu1 %vm7612_vm3, %v6549_v53 }
 0x46c   : > { %6554 = vmatpush3.bf16.xpose.msk.msra.mxu1 %vm7612_vm3, %v6549_v53  ;;  %v2042_v53 = vld [vmem:[%s7544_s4 + $0xa8] sm:$0xff] }
 0x46d   : > { %6557 = vmatprep.subr.msk.bf16.mxu1 %vm7612_vm3, %v6555_v58 }
 0x474   : > { %6560 = vmatpush3.bf16.xpose.msk.msra.mxu1 %vm7612_vm3, %v6555_v58 }
 0x475   : > { %6563 = vmatprep.subr.msk.bf16.mxu1 %vm7612_vm3, %v6561_v8 }
 0x47c   : > { %6566 = vmatpush3.bf16.xpose.msk.msra.mxu1 %vm7612_vm3, %v6561_v8 }
 0x483   : > { %6350 = vmatmul.mubr.msk.f32.vlgmr.msra.gmra.mrb[4].mxu1 %vm1099_vm2, %v7806_v13 }
 0x536   : > { %v6313_v38 = vpop.f32.mrb[2].mxu1 }
 0x537   : > { %v1748_v39 = vadd.f32 %v6313_v38, %v5482_v37  ;;  %v1742_v40 = vpop.f32.mrb[3].mxu1 }
 0x538   : > { %v1743_v41 = vadd.f32 %v5482_v37, %v1742_v40 }
 0x539   : > { %v1752_v42 = vadd.f32 %v1748_v39, %v7673_v33  ;;  %v6519_v33 = vpack.c.bf16 %v1802_v52, %v1801_v51  ;;  %v6573_v51 = vpack.c.bf16 %v2040_v50, %v2039_v48  ;;  %v2041_v52 = vld [vmem:[%s7544_s4 + $0xa0] sm:$0xff] }
 0x53a   : > { %v1751_v43 = vadd.f32 %v1743_v41, %v7631_v15  ;;  %v1804_v15 = vld [vmem:[%s7544_s4 + $0x18] sm:$0xff]  ;;  %v5495_v41 = vld [vmem:[%s7549_s2] ss:$0 sm:$0xff] }
 0x53b   : > { %v1759_v44 = vsel %vm1758_vm9, %v1752_v42, 0.0  ;;  %6521 = vmatprep.subr.msk.bf16.mxu0 %vm7612_vm3, %v6519_v33  ;;  %v6525_v55 = vpack.c.bf16 %v1804_v15, %v1803_v54  ;;  %v2043_v54 = vld [vmem:[%s7544_s4 + $0xb0] sm:$0xff]  ;;  %v2044_v15 = vld [vmem:[%s7544_s4 + $0xb8] sm:$0xff]  ;;  %s8875_s4 = scalar_lea.vmem %s8793_s16, %s7517_s7 }
 0x53c   : > { %1760 = vadd.xlane.f32.xlu1 %v1759_v44  ;;  %v1755_v45 = vsel %vm1099_vm2, %v1751_v43, 0.0  ;;  %6524 = vmatpush3.bf16.xpose.msk.msra.mxu0 %vm7612_vm3, %v6519_v33  ;;  %v6579_v33 = vpack.c.bf16 %v2042_v53, %v2041_v52  ;;  %v2529_v52 = vld [vmem:[%s7588_s28 + $0x80] sm:$0xff]  ;;  %v2530_v53 = vld [vmem:[%s7588_s28 + $0x88] sm:$0xff] }
 0x53d   : > { %1756 = vadd.xlane.f32.xlu0 %v1755_v45  ;;  %6527 = vmatprep.subr.msk.bf16.mxu0 %vm7612_vm3, %v6525_v55 }
 0x544   : > { %6530 = vmatpush3.bf16.xpose.msk.msra.mxu0 %vm7612_vm3, %v6525_v55  ;;  %v6585_v55 = vpack.c.bf16 %v2044_v15, %v2043_v54  ;;  %v2562_v54 = vld [vmem:[%s7588_s28 + $0x188] sm:$0xff]  ;;  %v2513_v15 = vld [vmem:[%s7588_s28] sm:$0xff] }
 0x545   : > { %6533 = vmatprep.subr.msk.bf16.mxu0 %vm7612_vm3, %v6531_v11 }
 0x54c   : > { %6536 = vmatpush3.bf16.xpose.msk.msra.mxu0 %vm7612_vm3, %v6531_v11 }
 0x54d   : > { %6539 = vmatprep.subr.msk.bf16.mxu0 %vm7612_vm3, %v6537_v17 }
 0x554   : > { %6542 = vmatpush3.bf16.xpose.msk.msra.mxu0 %vm7612_vm3, %v6537_v17 }
 0x555   : > { %6569 = vmatprep.subr.msk.bf16.mxu0 %vm7612_vm3, %v6567_v49 }
 0x556   : > { %v6351_v36 = vpop.f32.mrb[4].mxu1 }
 0x557   : > { %v2034_v37 = vadd.f32 %v6351_v36, %v5506_v35  ;;  %v2028_v38 = vpop.f32.mrb[5].mxu1  ;;  %v2352_v36 = vld [vmem:[%s7554_s26 + $0x28] sm:$0xff] }
 0x558   : > { %v2029_v39 = vadd.f32 %v5506_v35, %v2028_v38  ;;  %v2351_v35 = vld [vmem:[%s7554_s26 + $0x20] sm:$0xff]  ;;  %v2353_v38 = vld [vmem:[%s7554_s26 + $0x30] sm:$0xff] }
 0x55a   : > { %v6591_v40 = vpack.c.bf16 %v2034_v37, %v2029_v39  ;;  %v6613_v37 = vpack.c.bf16 %v2352_v36, %v2351_v35  ;;  %v2354_v39 = vld [vmem:[%s7554_s26 + $0x38] sm:$0xff]  ;;  %v2537_v35 = vld [vmem:[%s7588_s28 + $0xc0] sm:$0xff]  ;;  %v2538_v36 = vld [vmem:[%s7588_s28 + $0xc8] sm:$0xff] }
 0x55c   : > { %6593 = vmatprep.subr.msk.bf16.mxu1 %vm7612_vm3, %v6591_v40 }
 0x55d   : > { %6596 = vmatpush3.bf16.xpose.msk.msra.mxu1 %vm7612_vm3, %v6591_v40  ;;  %v6619_v40 = vpack.c.bf16 %v2354_v39, %v2353_v38  ;;  %v2570_v38 = vld [vmem:[%s7588_s28 + $0x1c8] sm:$0xff] }
 0x5c9   : > { %v1761_v59 = vpop.xlane.xlu1 %1760 }
 0x5ca   : > { %v1764_v60 = vmul.f32 0.015625, %v1761_v59  ;;  %v1757_v61 = vpop.xlane.xlu0 %1756 }
 0x5cb   : > { %v1763_v62 = vmul.f32 0.015625, %v1757_v61 }
 0x5cc   : > { %v1766_v63 = vsub.f32 %v1752_v42, %v1764_v60  ;;  %v2149_v60 = vld [vmem:[%s8869_s29] sm:$0xff] }
 0x5cd   : > { %v1765_v0 = vsub.f32 %v1751_v43, %v1763_v62 }
 0x5ce   : > { %v1768_v1 = vmul.f32 %v1766_v63, %v1766_v63 }
 0x5cf   : > { %v1767_v2 = vmul.f32 %v1765_v0, %v1765_v0 }
 0x5d0   : > { %v1772_v3 = vsel %vm1758_vm9, %v1768_v1, 0.0 }
 0x5d1   : > { %1773 = vadd.xlane.f32.xlu1 %v1772_v3  ;;  %v1769_v4 = vsel %vm1099_vm2, %v1767_v2, 0.0 }
 0x5d2   : > { %1770 = vadd.xlane.f32.xlu0 %v1769_v4 }
 0x65e   : > { %v1774_v18 = vpop.xlane.xlu1 %1773 }
 0x65f   : > { %v1776_v19 = vmul.f32 0.015625, %v1774_v18  ;;  %v1771_v20 = vpop.xlane.xlu0 %1770 }
 0x660   : > { %v1775_v21 = vmul.f32 0.015625, %v1771_v20  ;;  %v2347_v20 = vld [vmem:[%s7554_s26] sm:$0xff] }
 0x661   : > { %v1778_v22 = vadd.f32 1e-05, %v1776_v19 }
 0x662   : > { %v1777_v23 = vadd.f32 1e-05, %v1775_v21  ;;  %v2348_v21 = vld [vmem:[%s7554_s26 + $0x8] sm:$0xff] }
 0x663   : > { %7194 = vrsqrt.f32 %v1778_v22  ;;  %v6601_v22 = vpack.c.bf16 %v2348_v21, %v2347_v20  ;;  %v2535_v20 = vld [vmem:[%s7588_s28 + $0xb0] sm:$0xff]  ;;  %v2536_v21 = vld [vmem:[%s7588_s28 + $0xb8] sm:$0xff] }
 0x664   : > { %7196 = vrsqrt.f32 %v1777_v23 }
 0x66d   : > { %v7195_v24 = vpop.eup %7194 }
 0x66e   : > { %v7197_v26 = vpop.eup %7196  ;;  %v1782_v27 = vmul.f32 %v7195_v24, %v1766_v63 }
 0x66f   : > { %v1781_v28 = vmul.f32 %v7197_v26, %v1765_v0  ;;  %v2349_v26 = vld [vmem:[%s7554_s26 + $0x10] sm:$0xff] }
 0x670   : > { %v1790_v30 = vmul.f32 %v5493_v25, %v1782_v27  ;;  %v2350_v27 = vld [vmem:[%s7554_s26 + $0x18] sm:$0xff]  ;;  %s8876_s26 = scalar_lea.vmem %s8794_s17, %s7517_s7 }
 0x671   : > { %v1789_v31 = vmul.f32 %v5493_v25, %v1781_v28 }
 0x672   : > { %v7828_v34 = vadd.f32 %v5494_v29, %v1790_v30 }
 0x673   : > { %v7826_v32 = vadd.f32 %v5494_v29, %v1789_v31  ;;  %v6607_v31 = vpack.c.bf16 %v2350_v27, %v2349_v26  ;;  %v6643_v26 = vpack.c.bf16 %v2536_v21, %v2535_v20  ;;  %v2576_v21 = vld [vmem:[%s7588_s28 + $0x1f8] sm:$0xff] }
 0x675   : > { %6330 = vmatprep.mubr.msk.f32.mxu0 %vm1099_vm2, %v7826_v32 }
 0x676   : > { %6331 = vmatmul.mubr.msk.f32.vlgmr.msra.gmra.mrb[8].mxu0 %vm1099_vm2, %v7828_v34 }
 0x677   : > { %6368 = vmatprep.mubr.msk.f32.mxu0 %vm1099_vm2, %v1799_v12  ;;  %6572 = vmatpush3.bf16.xpose.msk.msra.mxu0 %vm7612_vm3, %v6567_v49 }
 0x678   : > { %6575 = vmatprep.subr.msk.bf16.mxu0 %vm7612_vm3, %v6573_v51 }
 0x67f   : > { %6578 = vmatpush3.bf16.xpose.msk.msra.mxu0 %vm7612_vm3, %v6573_v51 }
 0x680   : > { %6581 = vmatprep.subr.msk.bf16.mxu0 %vm7612_vm3, %v6579_v33 }
 0x687   : > { %6584 = vmatpush3.bf16.xpose.msk.msra.mxu0 %vm7612_vm3, %v6579_v33  ;;  %v6625_v33 = vpack.c.bf16 %v2530_v53, %v2529_v52  ;;  %v2572_v52 = vld [vmem:[%s7588_s28 + $0x1d8] sm:$0xff] }
 0x688   : > { %6587 = vmatprep.subr.msk.bf16.mxu0 %vm7612_vm3, %v6585_v55 }
 0x68f   : > { %6590 = vmatpush3.bf16.xpose.msk.msra.mxu0 %vm7612_vm3, %v6585_v55 }
 0x690   : > { %6627 = vmatprep.subr.msk.bf16.mxu0 %vm7612_vm3, %v6625_v33 }
 0x696   : > { %6369 = vmatmul.mubr.msk.f32.vlgmr.msra.gmra.mrb[10].mxu0 %vm1099_vm2, %v7806_v13 }
 0x749   : > { %v6332_v42 = vpop.f32.mrb[8].mxu0 }
 0x74a   : > { %v1910_v43 = vpop.f32.mrb[9].mxu0  ;;  %v1916_v45 = vadd.f32 %v6332_v42, %v5495_v41 }
 0x74b   : > { %v1911_v44 = vadd.f32 %v5495_v41, %v1910_v43  ;;  %v5534_v43 = vld [vmem:[%s8870_s24] ss:$0 sm:$0xff]  ;;  %s8877_s24 = sld [smem:[#allocation8_spill]] }
 0x74d   : > { %6375 = vmatprep.mubr.msk.f32.mxu1 %vm1099_vm2, %v1911_v44 }
 0x74e   : > { %6376 = vmatmul.mubr.msk.f32.vlgmr.msra.gmra.mrb[6].mxu1 %vm1099_vm2, %v1916_v45 }
 0x751   : > { %p5822_p8 = scmp.ne.s32.totalorder %s8877_s24, 24 }
 0x752   : > { %s8878_s25 = sld [smem:[#allocation30_spill]] (!%p5822_p8)  ;;  %s8880_s0 = sld [smem:[#allocation29_spill]] (!%p5822_p8)  ;;  %vm5204_vm12 = vcmask (!%p5822_p8), 95232   ;;  %vm5202_vm13 = vcmask (!%p5822_p8), 97280  }
 0x769   : > { %v6370_v13 = vpop.f32.mrb[10].mxu0 }
 0x76a   : > { %v2140_v16 = vpop.f32.mrb[11].mxu0  ;;  %v2146_v17 = vadd.f32 %v6370_v13, %v5517_v14 }
 0x76b   : > { %v2141_v18 = vadd.f32 %v5517_v14, %v2140_v16  ;;  %v2517_v16 = vld [vmem:[%s7588_s28 + $0x20] sm:$0xff] }
 0x76d   : > { %v6597_v19 = vpack.c.bf16 %v2146_v17, %v2141_v18  ;;  %v2518_v17 = vld [vmem:[%s7588_s28 + $0x28] sm:$0xff]  ;;  %v2549_v18 = vld [vmem:[%s7588_s28 + $0x120] sm:$0xff] }
 0x76f   : > { %6598 = vmatprep.subr.bf16.mxu1 %v6597_v19 }
 0x770   : > { %6600 = vmatpush3.bf16.msra.mxu1 %v6597_v19  ;;  %v2550_v19 = vld [vmem:[%s7588_s28 + $0x128] sm:$0xff] }
 0x771   : > { %6603 = vmatprep.subr.msk.bf16.mxu1 %vm7612_vm3, %v6601_v22 }
 0x821   : > { %v6377_v56 = vpop.f32.mrb[6].mxu1 }
 0x822   : > { %v2239_v58 = vmul.f32 0.125, %v6377_v56  ;;  %v2229_v59 = vpop.f32.mrb[7].mxu1 }
 0x823   : > { %v2238_v61 = vmul.f32 0.125, %v2229_v59  ;;  %v2531_v59 = vld [vmem:[%s7588_s28 + $0x90] sm:$0xff] }
 0x824   : > { %v2241_v62 = vadd.f32 %v2239_v58, %v2150_v57  ;;  %v2545_v57 = vld [vmem:[%s7588_s28 + $0x100] sm:$0xff]  ;;  %v2546_v58 = vld [vmem:[%s7588_s28 + $0x108] sm:$0xff] }
 0x825   : > { %v2240_v63 = vadd.f32 %v2238_v61, %v2149_v60  ;;  %v6676_v60 = vpack.c.bf16 %v2546_v58, %v2545_v57  ;;  %v2532_v61 = vld [vmem:[%s7588_s28 + $0x98] sm:$0xff] }
 0x826   : > { %v2247_v0 = vsel %vm2246_vm10, %v2241_v62, -inf }
 0x827   : > { %2248 = vmax.xlane.f32.xlu1 %v2247_v0  ;;  %v2243_v1 = vsel %vm2242_vm11, %v2240_v63, -inf  ;;  %v6631_v0 = vpack.c.bf16 %v2532_v61, %v2531_v59 }
 0x828   : > { %2244 = vmax.xlane.f32.xlu0 %v2243_v1 }
 0x8b4   : > { %v2249_v2 = vpop.xlane.xlu1 %2248 }
 0x8b5   : > { %v2251_v3 = vsub.f32 %v2241_v62, %v2249_v2  ;;  %v2245_v4 = vpop.xlane.xlu0 %2244  ;;  %v2563_v62 = vld [vmem:[%s7588_s28 + $0x190] sm:$0xff] }
 0x8b6   : > { %v2250_v6 = vsub.f32 %v2240_v63, %v2245_v4  ;;  %v2564_v63 = vld [vmem:[%s7588_s28 + $0x198] sm:$0xff]  ;;  %v2515_v2 = vld [vmem:[%s7588_s28 + $0x10] sm:$0xff] }
 0x8b7   : > { %v2254_v7 = vmul.f32 1.442695, %v2251_v3  ;;  %v6679_v1 = vpack.c.bf16 %v2564_v63, %v2563_v62  ;;  %v2516_v3 = vld [vmem:[%s7588_s28 + $0x18] sm:$0xff]  ;;  %v2547_v4 = vld [vmem:[%s7588_s28 + $0x110] sm:$0xff] }
 0x8b8   : > { %v2252_v8 = vmul.f32 1.442695, %v2250_v6  ;;  %v2548_v6 = vld [vmem:[%s7588_s28 + $0x118] sm:$0xff] }
 0x8b9   : > { %7198 = vpow2.f32 %v2254_v7  ;;  %v2533_v7 = vld [vmem:[%s7588_s28 + $0xa0] sm:$0xff] }
 0x8ba   : > { %7200 = vpow2.f32 %v2252_v8  ;;  %v2534_v8 = vld [vmem:[%s7588_s28 + $0xa8] sm:$0xff] }
 0x8bb   : > { %v6637_v13 = vpack.c.bf16 %v2534_v8, %v2533_v7  ;;  %v2542_v7 = vld [vmem:[%s7588_s28 + $0xe8] sm:$0xff]  ;;  %v2573_v8 = vld [vmem:[%s7588_s28 + $0x1e0] sm:$0xff] }
 0x8c3   : > { %v7199_v9 = vpop.eup %7198 }
 0x8c4   : > { %v7201_v10 = vpop.eup %7200  ;;  %v2259_v11 = vsel %vm2246_vm10, %v7199_v9, 0.0 }
 0x8c5   : > { %2260 = vadd.xlane.f32.xlu1 %v2259_v11  ;;  %v2256_v12 = vsel %vm2242_vm11, %v7201_v10, 0.0  ;;  %v6634_v11 = vpack.c.bf16 %v2516_v3, %v2515_v2 }
 0x8c6   : > { %2257 = vadd.xlane.f32.xlu0 %v2256_v12  ;;  %v6682_v12 = vpack.c.bf16 %v2548_v6, %v2547_v4  ;;  %v2541_v6 = vld [vmem:[%s7588_s28 + $0xe0] sm:$0xff] }
 0x952   : > { %v2261_v23 = vpop.xlane.xlu1 %2260 }
 0x953   : > { %7202 = vrcp.f32 %v2261_v23  ;;  %v2258_v24 = vpop.xlane.xlu0 %2257  ;;  %v2568_v23 = vld [vmem:[%s7588_s28 + $0x1b8] sm:$0xff] }
 0x954   : > { %7204 = vrcp.f32 %v2258_v24  ;;  %v6640_v24 = vpack.c.bf16 %v2518_v17, %v2517_v16  ;;  %v2543_v17 = vld [vmem:[%s7588_s28 + $0xf0] sm:$0xff] }
 0x95d   : > { %v7203_v25 = vpop.eup %7202 }
 0x95e   : > { %v7205_v28 = vpop.eup %7204  ;;  %v2265_v30 = vmul.f32 %v7203_v25, %v7199_v9  ;;  %v2565_v9 = vld [vmem:[%s7588_s28 + $0x1a0] sm:$0xff]  ;;  %v6688_v25 = vpack.c.bf16 %v2550_v19, %v2549_v18  ;;  %v2544_v18 = vld [vmem:[%s7588_s28 + $0xf8] sm:$0xff]  ;;  %v2575_v19 = vld [vmem:[%s7588_s28 + $0x1f0] sm:$0xff] }
 0x95f   : > { %v2263_v29 = vmul.f32 %v7205_v28, %v7201_v10  ;;  %v2566_v10 = vld [vmem:[%s7588_s28 + $0x1a8] sm:$0xff]  ;;  %v2519_v28 = vld [vmem:[%s7588_s28 + $0x30] sm:$0xff]  ;;  %v6667_v20 = vpack.c.bf16 %v2544_v18, %v2543_v17  ;;  %v2600_v17 = vld [vmem:[%s7588_s28 + $0x2b8] sm:$0xff] }
 0x960   : > { %v6685_v14 = vpack.c.bf16 %v2566_v10, %v2565_v9  ;;  %v6661_v9 = vpack.c.bf16 %v2542_v7, %v2541_v6  ;;  %v2526_v10 = vld [vmem:[%s7588_s28 + $0x68] sm:$0xff]  ;;  %v2629_v7 = vld [vmem:[%s7588_s28 + $0x3a0] sm:$0xff]  ;;  %v2631_v18 = vld [vmem:[%s7588_s28 + $0x3b0] sm:$0xff] }
 0x961   : > { %6382 = vmatprep.mubr.msk.f32.mxu1 %vm2242_vm11, %v2263_v29  ;;  %v2520_v29 = vld [vmem:[%s7588_s28 + $0x38] sm:$0xff]  ;;  %v2598_v6 = vld [vmem:[%s7588_s28 + $0x2a8] sm:$0xff] }
 0x962   : > { %6383 = vmatmul.mubr.msk.f32.vlgmr.msra.gmra.mrb[8].mxu1 %vm2242_vm11, %v2265_v30  ;;  %v2551_v30 = vld [vmem:[%s7588_s28 + $0x130] sm:$0xff]  ;;  %v6646_v39 = vpack.c.bf16 %v2520_v29, %v2519_v28  ;;  %v2593_v29 = vld [vmem:[%s7588_s28 + $0x280] sm:$0xff] }
 0x963   : > { %6606 = vmatpush3.bf16.xpose.msk.msra.mxu1 %vm7612_vm3, %v6601_v22  ;;  %v2567_v22 = vld [vmem:[%s7588_s28 + $0x1b0] sm:$0xff] }
 0x964   : > { %6609 = vmatprep.subr.msk.bf16.mxu1 %vm7612_vm3, %v6607_v31  ;;  %v6691_v27 = vpack.c.bf16 %v2568_v23, %v2567_v22  ;;  %v2527_v22 = vld [vmem:[%s7588_s28 + $0x70] sm:$0xff]  ;;  %v2528_v23 = vld [vmem:[%s7588_s28 + $0x78] sm:$0xff] }
 0x96b   : > { %6612 = vmatpush3.bf16.xpose.msk.msra.mxu1 %vm7612_vm3, %v6607_v31  ;;  %v2552_v31 = vld [vmem:[%s7588_s28 + $0x138] sm:$0xff] }
 0x96c   : > { %6615 = vmatprep.subr.msk.bf16.mxu1 %vm7612_vm3, %v6613_v37 }
 0x973   : > { %6618 = vmatpush3.bf16.xpose.msk.msra.mxu1 %vm7612_vm3, %v6613_v37  ;;  %v2569_v37 = vld [vmem:[%s7588_s28 + $0x1c0] sm:$0xff] }
 0x974   : > { %6621 = vmatprep.subr.msk.bf16.mxu1 %vm7612_vm3, %v6619_v40 }
 0x97b   : > { %6624 = vmatpush3.bf16.xpose.msk.msra.mxu1 %vm7612_vm3, %v6619_v40  ;;  %v6694_v40 = vpack.c.bf16 %v2552_v31, %v2551_v30  ;;  %v2594_v30 = vld [vmem:[%s7588_s28 + $0x288] sm:$0xff]  ;;  %v2625_v31 = vld [vmem:[%s7588_s28 + $0x380] sm:$0xff] }
 0xa35   : > { %v6384_v41 = vpop.f32.mrb[8].mxu1 }
 0xa36   : > { %v2338_v42 = vpop.f32.mrb[9].mxu1 }
 0xa37   : > { %6401 = vmatprep.mubr.msk.f32.mxu1 %vm1099_vm2, %v2338_v42  ;;  %v6697_v42 = vpack.c.bf16 %v2570_v38, %v2569_v37 }
 0xa38   : > { %6402 = vmatmul.mubr.msk.f32.vlgmr.msra.gmra.mrb[10].mxu1 %vm1099_vm2, %v6384_v41  ;;  %v6649_v41 = vpack.c.bf16 %v2538_v36, %v2537_v35  ;;  %v6721_v35 = vpack.c.bf16 %v2594_v30, %v2593_v29  ;;  %v2626_v36 = vld [vmem:[%s7588_s28 + $0x388] sm:$0xff]  ;;  %v2633_v30 = vld [vmem:[%s7588_s28 + $0x3c0] sm:$0xff] }
 0xa39   : > { %v6769_v37 = vpack.c.bf16 %v2626_v36, %v2625_v31  ;;  %v2602_v29 = vld [vmem:[%s7588_s28 + $0x2c8] sm:$0xff] }
 0xa3a   : > { %v2634_v31 = vld [vmem:[%s7588_s28 + $0x3c8] sm:$0xff] }
 0xb0b   : > { %v6403_v44 = vpop.f32.mrb[10].mxu1 }
 0xb0c   : > { %v2464_v45 = vadd.f32 %v6403_v44, %v5534_v43  ;;  %v2458_v46 = vpop.f32.mrb[11].mxu1  ;;  %v2522_v44 = vld [vmem:[%s7588_s28 + $0x48] sm:$0xff] }
 0xb0d   : > { %v2459_v47 = vadd.f32 %v5534_v43, %v2458_v46  ;;  %v2521_v43 = vld [vmem:[%s7588_s28 + $0x40] sm:$0xff]  ;;  %v2554_v46 = vld [vmem:[%s7588_s28 + $0x148] sm:$0xff] }
 0xb0e   : > { %v7914_v48 = vadd.f32 %v2464_v45, %v7828_v34  ;;  %v2561_v34 = vld [vmem:[%s7588_s28 + $0x180] sm:$0xff]  ;;  %v6652_v53 = vpack.c.bf16 %v2522_v44, %v2521_v43 }
 0xb0f   : > { %v7917_v49 = vadd.f32 %v2459_v47, %v7826_v32  ;;  %v2514_v32 = vld [vmem:[%s7588_s28 + $0x8] sm:$0xff]  ;;  %v6673_v55 = vpack.c.bf16 %v2562_v54, %v2561_v34  ;;  %v2553_v45 = vld [vmem:[%s7588_s28 + $0x140] sm:$0xff]  ;;  %v2539_v47 = vld [vmem:[%s7588_s28 + $0xd0] sm:$0xff] }
 0xb10   : > { %v2474_v50 = vsel %vm1758_vm9, %v7914_v48, 0.0  ;;  %v6628_v56 = vpack.c.bf16 %v2514_v32, %v2513_v15  ;;  %v6700_v34 = vpack.c.bf16 %v2554_v46, %v2553_v45  ;;  %v2523_v15 = vld [vmem:[%s7588_s28 + $0x50] sm:$0xff]  ;;  %v2524_v32 = vld [vmem:[%s7588_s28 + $0x58] sm:$0xff]  ;;  %v5545_v46 = vld [vmem:[%s8871_s10] ss:$0 sm:$0xff] }
 0xb11   : > { %2475 = vadd.xlane.f32.xlu1 %v2474_v50  ;;  %v2471_v51 = vsel %vm1099_vm2, %v7917_v49, 0.0  ;;  %6675 = vmatprep.subr.msk.bf16.mxu1 %vm7612_vm3, %v6673_v55  ;;  %v2540_v50 = vld [vmem:[%s7588_s28 + $0xd8] sm:$0xff]  ;;  %v2555_v55 = vld [vmem:[%s7588_s28 + $0x150] sm:$0xff]  ;;  %v6658_v57 = vpack.c.bf16 %v2524_v32, %v2523_v15 }
 0xb12   : > { %2472 = vadd.xlane.f32.xlu0 %v2471_v51  ;;  %6630 = vmatpush3.bf16.xpose.msk.msra.mxu0 %vm7612_vm3, %v6628_v56  ;;  %v2571_v51 = vld [vmem:[%s7588_s28 + $0x1d0] sm:$0xff]  ;;  %v6655_v33 = vpack.c.bf16 %v2540_v50, %v2539_v47  ;;  %v2556_v56 = vld [vmem:[%s7588_s28 + $0x158] sm:$0xff]  ;;  %v5546_v50 = vld [vmem:[%s8872_s5] ss:$0 sm:$0xff] }
 0xb13   : > { %6678 = vmatpush3.bf16.xpose.msk.msra.mxu1 %vm7612_vm3, %v6676_v60  ;;  %6633 = vmatprep.subr.msk.bf16.mxu0 %vm7612_vm3, %v6631_v0  ;;  %v6703_v54 = vpack.c.bf16 %v2572_v52, %v2571_v51  ;;  %v6706_v58 = vpack.c.bf16 %v2556_v56, %v2555_v55  ;;  %v2577_v52 = vld [vmem:[%s7588_s28 + $0x200] sm:$0xff]  ;;  %v2595_v15 = vld [vmem:[%s7588_s28 + $0x290] sm:$0xff]  ;;  %v2596_v55 = vld [vmem:[%s7588_s28 + $0x298] sm:$0xff] }
 0xb14   : > { %6681 = vmatprep.subr.msk.bf16.mxu1 %vm7612_vm3, %v6679_v1  ;;  %v2627_v56 = vld [vmem:[%s7588_s28 + $0x390] sm:$0xff] }
 0xb1a   : > { %6636 = vmatpush3.bf16.xpose.msk.msra.mxu0 %vm7612_vm3, %v6634_v11 }
 0xb1b   : > { %6684 = vmatpush3.bf16.xpose.msk.msra.mxu1 %vm7612_vm3, %v6682_v12  ;;  %6639 = vmatprep.subr.msk.bf16.mxu0 %vm7612_vm3, %v6637_v13  ;;  %v2557_v13 = vld [vmem:[%s7588_s28 + $0x160] sm:$0xff] }
 0xb1c   : > { %6687 = vmatprep.subr.msk.bf16.mxu1 %vm7612_vm3, %v6685_v14  ;;  %v2558_v14 = vld [vmem:[%s7588_s28 + $0x168] sm:$0xff] }
 0xb1d   : > { %v6712_v16 = vpack.c.bf16 %v2558_v14, %v2557_v13  ;;  %v2613_v13 = vld [vmem:[%s7588_s28 + $0x320] sm:$0xff]  ;;  %v2614_v14 = vld [vmem:[%s7588_s28 + $0x328] sm:$0xff] }
 0xb22   : > { %6642 = vmatpush3.bf16.xpose.msk.msra.mxu0 %vm7612_vm3, %v6640_v24  ;;  %v6715_v24 = vpack.c.bf16 %v2576_v21, %v2575_v19  ;;  %v2632_v19 = vld [vmem:[%s7588_s28 + $0x3b8] sm:$0xff]  ;;  %v6784_v21 = vpack.c.bf16 %v2614_v14, %v2613_v13  ;;  %v2657_v14 = vld [vmem:[%s7588_s28 + $0x480] sm:$0xff] }
 0xb23   : > { %6690 = vmatpush3.bf16.xpose.msk.msra.mxu1 %vm7612_vm3, %v6688_v25  ;;  %6645 = vmatprep.subr.msk.bf16.mxu0 %vm7612_vm3, %v6643_v26  ;;  %v6670_v25 = vpack.c.bf16 %v2528_v23, %v2527_v22  ;;  %v2559_v26 = vld [vmem:[%s7588_s28 + $0x170] sm:$0xff]  ;;  %v6787_v23 = vpack.c.bf16 %v2632_v19, %v2631_v18  ;;  %v2624_v13 = vld [vmem:[%s7588_s28 + $0x378] sm:$0xff]  ;;  %v2690_v18 = vld [vmem:[%s7588_s28 + $0x588] sm:$0xff] }
 0xb24   : > { %6693 = vmatprep.subr.msk.bf16.mxu1 %vm7612_vm3, %v6691_v27  ;;  %v2560_v27 = vld [vmem:[%s7588_s28 + $0x178] sm:$0xff] }
 0xb25   : > { %v6718_v28 = vpack.c.bf16 %v2560_v27, %v2559_v26  ;;  %v2615_v26 = vld [vmem:[%s7588_s28 + $0x330] sm:$0xff]  ;;  %v2616_v27 = vld [vmem:[%s7588_s28 + $0x338] sm:$0xff] }
 0xb26   : > { %v6790_v36 = vpack.c.bf16 %v2616_v27, %v2615_v26  ;;  %v2674_v26 = vld [vmem:[%s7588_s28 + $0x508] sm:$0xff]  ;;  %v2659_v27 = vld [vmem:[%s7588_s28 + $0x490] sm:$0xff] }
 0xb2a   : > { %6648 = vmatpush3.bf16.xpose.msk.msra.mxu0 %vm7612_vm3, %v6646_v39 }
 0xb2b   : > { %6696 = vmatpush3.bf16.xpose.msk.msra.mxu1 %vm7612_vm3, %v6694_v40  ;;  %6651 = vmatprep.subr.msk.bf16.mxu0 %vm7612_vm3, %v6649_v41 }
 0xb2c   : > { %6699 = vmatprep.subr.msk.bf16.mxu1 %vm7612_vm3, %v6697_v42 }
 0xb32   : > { %6654 = vmatpush3.bf16.xpose.msk.msra.mxu0 %vm7612_vm3, %v6652_v53  ;;  %v2578_v53 = vld [vmem:[%s7588_s28 + $0x208] sm:$0xff] }
 0xb33   : > { %6702 = vmatpush3.bf16.xpose.msk.msra.mxu1 %vm7612_vm3, %v6700_v34  ;;  %6657 = vmatprep.subr.msk.bf16.mxu0 %vm7612_vm3, %v6655_v33  ;;  %v2609_v34 = vld [vmem:[%s7588_s28 + $0x300] sm:$0xff]  ;;  %v2610_v33 = vld [vmem:[%s7588_s28 + $0x308] sm:$0xff] }
 0xb34   : > { %6705 = vmatprep.subr.msk.bf16.mxu1 %vm7612_vm3, %v6703_v54 }
 0xb3a   : > { %6660 = vmatpush3.bf16.xpose.msk.msra.mxu0 %vm7612_vm3, %v6658_v57  ;;  %v2628_v57 = vld [vmem:[%s7588_s28 + $0x398] sm:$0xff] }
 0xb3b   : > { %6708 = vmatpush3.bf16.xpose.msk.msra.mxu1 %vm7612_vm3, %v6706_v58  ;;  %6663 = vmatprep.subr.msk.bf16.mxu0 %vm7612_vm3, %v6661_v9 }
 0xb9e   : > { %v2476_v59 = vpop.xlane.xlu1 %2475 }
 0xb9f   : > { %v2478_v60 = vmul.f32 0.015625, %v2476_v59  ;;  %v2473_v61 = vpop.xlane.xlu0 %2472  ;;  %v6724_v59 = vpack.c.bf16 %v2578_v53, %v2577_v52  ;;  %v2587_v53 = vld [vmem:[%s7588_s28 + $0x250] sm:$0xff] }
 0xba0   : > { %v2477_v62 = vmul.f32 0.015625, %v2473_v61  ;;  %v6727_v61 = vpack.c.bf16 %v2596_v55, %v2595_v15  ;;  %v2605_v15 = vld [vmem:[%s7588_s28 + $0x2e0] sm:$0xff] }
 0xba1   : > { %v2480_v63 = vsub.f32 %v7914_v48, %v2478_v60  ;;  %v2574_v48 = vld [vmem:[%s7588_s28 + $0x1e8] sm:$0xff]  ;;  %v6772_v60 = vpack.c.bf16 %v2610_v33, %v2609_v34  ;;  %v2588_v34 = vld [vmem:[%s7588_s28 + $0x258] sm:$0xff]  ;;  %v2619_v33 = vld [vmem:[%s7588_s28 + $0x350] sm:$0xff] }
 0xba2   : > { %v2479_v0 = vsub.f32 %v7917_v49, %v2477_v62  ;;  %v2525_v49 = vld [vmem:[%s7588_s28 + $0x60] sm:$0xff]  ;;  %v6709_v11 = vpack.c.bf16 %v2574_v48, %v2573_v8  ;;  %v6775_v62 = vpack.c.bf16 %v2628_v57, %v2627_v56  ;;  %v2630_v8 = vld [vmem:[%s7588_s28 + $0x3a8] sm:$0xff]  ;;  %v6754_v57 = vpack.c.bf16 %v2588_v34, %v2587_v53 }
 0xba3   : > { %v2482_v1 = vmul.f32 %v2480_v63, %v2480_v63  ;;  %v6664_v12 = vpack.c.bf16 %v2526_v10, %v2525_v49  ;;  %v6781_v10 = vpack.c.bf16 %v2630_v8, %v2629_v7  ;;  %v2637_v55 = vld [vmem:[%s7588_s28 + $0x3e0] sm:$0xff]  ;;  %v2638_v56 = vld [vmem:[%s7588_s28 + $0x3e8] sm:$0xff]  ;;  %v2640_v7 = vld [vmem:[%s7588_s28 + $0x3f8] sm:$0xff] }
 0xba4   : > { %v2481_v2 = vmul.f32 %v2479_v0, %v2479_v0  ;;  %6711 = vmatprep.subr.msk.bf16.mxu1 %vm7612_vm3, %v6709_v11  ;;  %v2581_v11 = vld [vmem:[%s7588_s28 + $0x220] sm:$0xff]  ;;  %v2646_v53 = vld [vmem:[%s7588_s28 + $0x428] sm:$0xff] }
 0xba5   : > { %v2486_v3 = vsel %vm1758_vm9, %v2482_v1, 0.0  ;;  %6666 = vmatpush3.bf16.xpose.msk.msra.mxu0 %vm7612_vm3, %v6664_v12  ;;  %6714 = vmatpush3.bf16.xpose.msk.msra.mxu1 %vm7612_vm3, %v6712_v16  ;;  %v2580_v1 = vld [vmem:[%s7588_s28 + $0x218] sm:$0xff]  ;;  %v2582_v12 = vld [vmem:[%s7588_s28 + $0x228] sm:$0xff]  ;;  %v2599_v16 = vld [vmem:[%s7588_s28 + $0x2b0] sm:$0xff] }
 0xba6   : > { %2487 = vadd.xlane.f32.xlu1 %v2486_v3  ;;  %v2483_v4 = vsel %vm1099_vm2, %v2481_v2, 0.0  ;;  %6669 = vmatprep.subr.msk.bf16.mxu0 %vm7612_vm3, %v6667_v20  ;;  %v2611_v2 = vld [vmem:[%s7588_s28 + $0x310] sm:$0xff]  ;;  %v2612_v3 = vld [vmem:[%s7588_s28 + $0x318] sm:$0xff]  ;;  %v6736_v20 = vpack.c.bf16 %v2582_v12, %v2581_v11  ;;  %v6739_v22 = vpack.c.bf16 %v2600_v17, %v2599_v16  ;;  %v2658_v16 = vld [vmem:[%s7588_s28 + $0x488] sm:$0xff] }
 0xba7   : > { %2484 = vadd.xlane.f32.xlu0 %v2483_v4  ;;  %6717 = vmatprep.subr.msk.bf16.mxu1 %vm7612_vm3, %v6715_v24  ;;  %v2597_v4 = vld [vmem:[%s7588_s28 + $0x2a0] sm:$0xff]  ;;  %v6778_v48 = vpack.c.bf16 %v2612_v3, %v2611_v2  ;;  %v2583_v24 = vld [vmem:[%s7588_s28 + $0x230] sm:$0xff]  ;;  %v2622_v2 = vld [vmem:[%s7588_s28 + $0x368] sm:$0xff] }
 0xba8   : > { %v6733_v49 = vpack.c.bf16 %v2598_v6, %v2597_v4  ;;  %v2607_v3 = vld [vmem:[%s7588_s28 + $0x2f0] sm:$0xff]  ;;  %v2608_v4 = vld [vmem:[%s7588_s28 + $0x2f8] sm:$0xff]  ;;  %v2689_v17 = vld [vmem:[%s7588_s28 + $0x580] sm:$0xff] }
 0xba9   : > { %v2639_v6 = vld [vmem:[%s7588_s28 + $0x3f0] sm:$0xff]  ;;  %v2592_v11 = vld [vmem:[%s7588_s28 + $0x278] sm:$0xff]  ;;  %v2677_v34 = vld [vmem:[%s7588_s28 + $0x520] sm:$0xff] }
 0xbaa   : > { %v2623_v12 = vld [vmem:[%s7588_s28 + $0x370] sm:$0xff] }
 0xbad   : > { %6672 = vmatpush3.bf16.xpose.msk.msra.mxu0 %vm7612_vm3, %v6670_v25  ;;  %6720 = vmatpush3.bf16.xpose.msk.msra.mxu1 %vm7612_vm3, %v6718_v28  ;;  %v2584_v25 = vld [vmem:[%s7588_s28 + $0x238] sm:$0xff]  ;;  %v2601_v28 = vld [vmem:[%s7588_s28 + $0x2c0] sm:$0xff] }
 0xbae   : > { %6723 = vmatprep.subr.msk.bf16.mxu0 %vm7612_vm3, %v6721_v35  ;;  %6771 = vmatprep.subr.msk.bf16.mxu1 %vm7612_vm3, %v6769_v37  ;;  %v6742_v35 = vpack.c.bf16 %v2584_v25, %v2583_v24  ;;  %v6745_v37 = vpack.c.bf16 %v2602_v29, %v2601_v28  ;;  %v2642_v24 = vld [vmem:[%s7588_s28 + $0x408] sm:$0xff]  ;;  %v2673_v25 = vld [vmem:[%s7588_s28 + $0x500] sm:$0xff]  ;;  %v2660_v28 = vld [vmem:[%s7588_s28 + $0x498] sm:$0xff] }
 0xbaf   : > { %v2691_v29 = vld [vmem:[%s7588_s28 + $0x590] sm:$0xff] }
 0xc33   : > { %v2488_v38 = vpop.xlane.xlu1 %2487 }
 0xc34   : > { %v2490_v39 = vmul.f32 0.015625, %v2488_v38  ;;  %v2485_v40 = vpop.xlane.xlu0 %2484  ;;  %v6793_v38 = vpack.c.bf16 %v2634_v31, %v2633_v30  ;;  %v2692_v30 = vld [vmem:[%s7588_s28 + $0x598] sm:$0xff] }
 0xc35   : > { %v2489_v41 = vmul.f32 0.015625, %v2485_v40  ;;  %v2586_v40 = vld [vmem:[%s7588_s28 + $0x248] sm:$0xff] }
 0xc36   : > { %v2492_v42 = vadd.f32 1e-05, %v2490_v39  ;;  %v2585_v39 = vld [vmem:[%s7588_s28 + $0x240] sm:$0xff] }
 0xc37   : > { %v2491_v43 = vadd.f32 1e-05, %v2489_v41  ;;  %v2617_v41 = vld [vmem:[%s7588_s28 + $0x340] sm:$0xff] }
 0xc38   : > { %7206 = vrsqrt.f32 %v2492_v42  ;;  %v2618_v42 = vld [vmem:[%s7588_s28 + $0x348] sm:$0xff] }
 0xc39   : > { %7208 = vrsqrt.f32 %v2491_v43  ;;  %v2603_v43 = vld [vmem:[%s7588_s28 + $0x2d0] sm:$0xff] }
 0xc42   : > { %v7207_v44 = vpop.eup %7206 }
 0xc43   : > { %v7209_v45 = vpop.eup %7208  ;;  %v2496_v47 = vmul.f32 %v7207_v44, %v2480_v63  ;;  %v2604_v44 = vld [vmem:[%s7588_s28 + $0x2d8] sm:$0xff] }
 0xc44   : > { %v2495_v51 = vmul.f32 %v7209_v45, %v2479_v0  ;;  %v2579_v0 = vld [vmem:[%s7588_s28 + $0x210] sm:$0xff] }
 0xc45   : > { %v2504_v32 = vmul.f32 %v5545_v46, %v2496_v47  ;;  %v6730_v9 = vpack.c.bf16 %v2580_v1, %v2579_v0  ;;  %v2635_v45 = vld [vmem:[%s7588_s28 + $0x3d0] sm:$0xff]  ;;  %v6748_v47 = vpack.c.bf16 %v2586_v40, %v2585_v39  ;;  %v2590_v0 = vld [vmem:[%s7588_s28 + $0x268] sm:$0xff]  ;;  %v2621_v1 = vld [vmem:[%s7588_s28 + $0x360] sm:$0xff] }
 0xc46   : > { %v2503_v54 = vmul.f32 %v5545_v46, %v2495_v51  ;;  %v2636_v46 = vld [vmem:[%s7588_s28 + $0x3d8] sm:$0xff]  ;;  %v6751_v51 = vpack.c.bf16 %v2604_v44, %v2603_v43  ;;  %v2675_v40 = vld [vmem:[%s7588_s28 + $0x510] sm:$0xff]  ;;  %v2662_v43 = vld [vmem:[%s7588_s28 + $0x4a8] sm:$0xff] }
 0xc47   : > { %v8087_v63 = vadd.f32 %v5546_v50, %v2504_v32  ;;  %v6799_v52 = vpack.c.bf16 %v2636_v46, %v2635_v45  ;;  %v2606_v32 = vld [vmem:[%s7588_s28 + $0x2e8] sm:$0xff]  ;;  %v2644_v39 = vld [vmem:[%s7588_s28 + $0x418] sm:$0xff]  ;;  %v2693_v44 = vld [vmem:[%s7588_s28 + $0x5a0] sm:$0xff] }
 0xc48   : > { %v8081_v58 = vadd.f32 %v5546_v50, %v2503_v54  ;;  %v6796_v50 = vpack.c.bf16 %v2618_v42, %v2617_v41  ;;  %v2620_v54 = vld [vmem:[%s7588_s28 + $0x358] sm:$0xff]  ;;  %v2661_v42 = vld [vmem:[%s7588_s28 + $0x4a0] sm:$0xff]  ;;  %v2694_v45 = vld [vmem:[%s7588_s28 + $0x5a8] sm:$0xff] }
 0xc49   : > { %v2676_v41 = vld [vmem:[%s7588_s28 + $0x518] sm:$0xff] }
 0xc4a   : > { %5964 = vmatprep.mubr.msk.f32.mxu0 %vm1099_vm2, %v8081_v58  ;;  %6000 = vmatprep.mubr.msk.f32.mxu1 %vm1099_vm2, %v8081_v58 }
 0xc4b   : > { %5965 = vmatmul.mubr.msk.f32.vlgmr.msra.gmra.mrb[12].mxu0 %vm1099_vm2, %v8081_v58  ;;  %6001 = vmatmul.mubr.msk.f32.vlgmr.msra.gmra.mrb[12].mxu1 %vm1099_vm2, %v8081_v58 }
 0xc4c   : > { %6726 = vmatpush3.bf16.xpose.msk.msra.mxu0 %vm7612_vm3, %v6724_v59  ;;  %6774 = vmatpush3.bf16.xpose.msk.msra.mxu1 %vm7612_vm3, %v6772_v60  ;;  %v6802_v59 = vpack.c.bf16 %v2620_v54, %v2619_v33  ;;  %v6757_v60 = vpack.c.bf16 %v2606_v32, %v2605_v15  ;;  %v2678_v33 = vld [vmem:[%s7588_s28 + $0x528] sm:$0xff]  ;;  %v2663_v54 = vld [vmem:[%s7588_s28 + $0x4b0] sm:$0xff]  ;;  %v2664_v15 = vld [vmem:[%s7588_s28 + $0x4b8] sm:$0xff] }
 0xc4d   : > { %5966 = vmatprep.mubr.msk.f32.mxu0 %vm1099_vm2, %v8087_v63  ;;  %6002 = vmatprep.mubr.msk.f32.mxu1 %vm1099_vm2, %v8087_v63  ;;  %v2695_v32 = vld [vmem:[%s7588_s28 + $0x5b0] sm:$0xff] }
 0xc4e   : > { %6729 = vmatprep.subr.msk.bf16.mxu0 %vm7612_vm3, %v6727_v61  ;;  %6777 = vmatprep.subr.msk.bf16.mxu1 %vm7612_vm3, %v6775_v62  ;;  %v6805_v61 = vpack.c.bf16 %v2638_v56, %v2637_v55  ;;  %v2589_v62 = vld [vmem:[%s7588_s28 + $0x260] sm:$0xff]  ;;  %v2696_v55 = vld [vmem:[%s7588_s28 + $0x5b8] sm:$0xff] }
 0xc4f   : > { %5967 = vmatmul.mubr.msk.f32.gmra.mrb[14].mxu0 %vm1099_vm2, %v8087_v63  ;;  %6003 = vmatmul.mubr.msk.f32.gmra.mrb[14].mxu1 %vm1099_vm2, %v8087_v63  ;;  %v6760_v8 = vpack.c.bf16 %v2590_v0, %v2589_v62  ;;  %v2648_v62 = vld [vmem:[%s7588_s28 + $0x438] sm:$0xff]  ;;  %v2679_v0 = vld [vmem:[%s7588_s28 + $0x530] sm:$0xff] }
 0xc50   : > { %6036 = vmatprep.mubr.msk.f32.mxu0 %vm1099_vm2, %v8081_v58  ;;  %6072 = vmatprep.mubr.msk.f32.mxu1 %vm1099_vm2, %v8081_v58 }
 0xc54   : > { %6732 = vmatpush3.bf16.xpose.msk.msra.mxu0 %vm7612_vm3, %v6730_v9  ;;  %6780 = vmatpush3.bf16.xpose.msk.msra.mxu1 %vm7612_vm3, %v6778_v48  ;;  %v6808_v9 = vpack.c.bf16 %v2622_v2, %v2621_v1  ;;  %v6763_v48 = vpack.c.bf16 %v2608_v4, %v2607_v3  ;;  %v2680_v1 = vld [vmem:[%s7588_s28 + $0x538] sm:$0xff]  ;;  %v2665_v2 = vld [vmem:[%s7588_s28 + $0x4c0] sm:$0xff]  ;;  %v2666_v3 = vld [vmem:[%s7588_s28 + $0x4c8] sm:$0xff] }
 0xc55   : > { %6735 = vmatprep.subr.msk.bf16.mxu0 %vm7612_vm3, %v6733_v49  ;;  %6783 = vmatprep.subr.msk.bf16.mxu1 %vm7612_vm3, %v6781_v10  ;;  %v6811_v49 = vpack.c.bf16 %v2640_v7, %v2639_v6  ;;  %v2591_v10 = vld [vmem:[%s7588_s28 + $0x270] sm:$0xff]  ;;  %v2697_v4 = vld [vmem:[%s7588_s28 + $0x5c0] sm:$0xff]  ;;  %v2698_v6 = vld [vmem:[%s7588_s28 + $0x5c8] sm:$0xff] }
 0xc56   : > { %v6766_v19 = vpack.c.bf16 %v2592_v11, %v2591_v10  ;;  %v2650_v10 = vld [vmem:[%s7588_s28 + $0x448] sm:$0xff]  ;;  %v2681_v11 = vld [vmem:[%s7588_s28 + $0x540] sm:$0xff] }
 0xc5c   : > { %6738 = vmatpush3.bf16.xpose.msk.msra.mxu0 %vm7612_vm3, %v6736_v20  ;;  %6786 = vmatpush3.bf16.xpose.msk.msra.mxu1 %vm7612_vm3, %v6784_v21  ;;  %v6814_v20 = vpack.c.bf16 %v2624_v13, %v2623_v12  ;;  %v6817_v21 = vpack.c.bf16 %v2658_v16, %v2657_v14  ;;  %v2682_v12 = vld [vmem:[%s7588_s28 + $0x548] sm:$0xff]  ;;  %v2667_v13 = vld [vmem:[%s7588_s28 + $0x4d0] sm:$0xff]  ;;  %v2668_v14 = vld [vmem:[%s7588_s28 + $0x4d8] sm:$0xff] }
 0xc5d   : > { %6741 = vmatprep.subr.msk.bf16.mxu0 %vm7612_vm3, %v6739_v22  ;;  %6789 = vmatprep.subr.msk.bf16.mxu1 %vm7612_vm3, %v6787_v23  ;;  %v6865_v22 = vpack.c.bf16 %v2690_v18, %v2689_v17  ;;  %v2641_v23 = vld [vmem:[%s7588_s28 + $0x400] sm:$0xff]  ;;  %v2699_v16 = vld [vmem:[%s7588_s28 + $0x5d0] sm:$0xff]  ;;  %v2700_v17 = vld [vmem:[%s7588_s28 + $0x5d8] sm:$0xff] }
 0xc5e   : > { %v6820_v31 = vpack.c.bf16 %v2642_v24, %v2641_v23  ;;  %v2652_v23 = vld [vmem:[%s7588_s28 + $0x458] sm:$0xff]  ;;  %v2683_v24 = vld [vmem:[%s7588_s28 + $0x550] sm:$0xff] }
 0xc64   : > { %6744 = vmatpush3.bf16.xpose.msk.msra.mxu0 %vm7612_vm3, %v6742_v35  ;;  %6792 = vmatpush3.bf16.xpose.msk.msra.mxu1 %vm7612_vm3, %v6790_v36  ;;  %v6868_v35 = vpack.c.bf16 %v2674_v26, %v2673_v25  ;;  %v6823_v36 = vpack.c.bf16 %v2660_v28, %v2659_v27  ;;  %v2684_v25 = vld [vmem:[%s7588_s28 + $0x558] sm:$0xff]  ;;  %v2669_v26 = vld [vmem:[%s7588_s28 + $0x4e0] sm:$0xff]  ;;  %v2670_v27 = vld [vmem:[%s7588_s28 + $0x4e8] sm:$0xff] }
 0xc65   : > { %6747 = vmatprep.subr.msk.bf16.mxu0 %vm7612_vm3, %v6745_v37  ;;  %6795 = vmatprep.subr.msk.bf16.mxu1 %vm7612_vm3, %v6793_v38  ;;  %v6871_v37 = vpack.c.bf16 %v2692_v30, %v2691_v29  ;;  %v2643_v38 = vld [vmem:[%s7588_s28 + $0x410] sm:$0xff]  ;;  %v2701_v28 = vld [vmem:[%s7588_s28 + $0x5e0] sm:$0xff]  ;;  %v2702_v29 = vld [vmem:[%s7588_s28 + $0x5e8] sm:$0xff] }
 0xc66   : > { %v6826_v46 = vpack.c.bf16 %v2644_v39, %v2643_v38  ;;  %v2654_v38 = vld [vmem:[%s7588_s28 + $0x468] sm:$0xff]  ;;  %v2685_v39 = vld [vmem:[%s7588_s28 + $0x560] sm:$0xff] }
 0xc6c   : > { %6750 = vmatpush3.bf16.xpose.msk.msra.mxu0 %vm7612_vm3, %v6748_v47  ;;  %6798 = vmatpush3.bf16.xpose.msk.msra.mxu1 %vm7612_vm3, %v6796_v50  ;;  %v6874_v47 = vpack.c.bf16 %v2676_v41, %v2675_v40  ;;  %v6829_v50 = vpack.c.bf16 %v2662_v43, %v2661_v42  ;;  %v2686_v40 = vld [vmem:[%s7588_s28 + $0x568] sm:$0xff]  ;;  %v2671_v41 = vld [vmem:[%s7588_s28 + $0x4f0] sm:$0xff]  ;;  %v2672_v42 = vld [vmem:[%s7588_s28 + $0x4f8] sm:$0xff] }
 0xc6d   : > { %6753 = vmatprep.subr.msk.bf16.mxu0 %vm7612_vm3, %v6751_v51  ;;  %6801 = vmatprep.subr.msk.bf16.mxu1 %vm7612_vm3, %v6799_v52  ;;  %v6877_v51 = vpack.c.bf16 %v2694_v45, %v2693_v44  ;;  %v2645_v52 = vld [vmem:[%s7588_s28 + $0x420] sm:$0xff]  ;;  %v2703_v43 = vld [vmem:[%s7588_s28 + $0x5f0] sm:$0xff]  ;;  %v2704_v44 = vld [vmem:[%s7588_s28 + $0x5f8] sm:$0xff] }
 0xc6e   : > { %v6832_v56 = vpack.c.bf16 %v2646_v53, %v2645_v52  ;;  %v2656_v52 = vld [vmem:[%s7588_s28 + $0x478] sm:$0xff]  ;;  %v2687_v53 = vld [vmem:[%s7588_s28 + $0x570] sm:$0xff] }
 0xc74   : > { %6756 = vmatpush3.bf16.xpose.msk.msra.mxu0 %vm7612_vm3, %v6754_v57  ;;  %6804 = vmatpush3.bf16.xpose.msk.msra.mxu1 %vm7612_vm3, %v6802_v59  ;;  %v6880_v57 = vpack.c.bf16 %v2678_v33, %v2677_v34  ;;  %v6835_v59 = vpack.c.bf16 %v2664_v15, %v2663_v54  ;;  %v2688_v34 = vld [vmem:[%s7588_s28 + $0x578] sm:$0xff]  ;;  %v2721_v33 = vld [vmem:[%s7588_s28 + $0x680] sm:$0xff]  ;;  %v2722_v54 = vld [vmem:[%s7588_s28 + $0x688] sm:$0xff] }
 0xc75   : > { %6759 = vmatprep.subr.msk.bf16.mxu0 %vm7612_vm3, %v6757_v60  ;;  %6807 = vmatprep.subr.msk.bf16.mxu1 %vm7612_vm3, %v6805_v61  ;;  %v6883_v60 = vpack.c.bf16 %v2696_v55, %v2695_v32  ;;  %v2647_v61 = vld [vmem:[%s7588_s28 + $0x430] sm:$0xff]  ;;  %v2753_v15 = vld [vmem:[%s7588_s28 + $0x780] sm:$0xff]  ;;  %v2754_v32 = vld [vmem:[%s7588_s28 + $0x788] sm:$0xff] }
 0xc76   : > { %v6838_v7 = vpack.c.bf16 %v2648_v62, %v2647_v61  ;;  %v2706_v61 = vld [vmem:[%s7588_s28 + $0x608] sm:$0xff]  ;;  %v2737_v62 = vld [vmem:[%s7588_s28 + $0x700] sm:$0xff] }
 0xc7c   : > { %6762 = vmatpush3.bf16.xpose.msk.msra.mxu0 %vm7612_vm3, %v6760_v8  ;;  %6810 = vmatpush3.bf16.xpose.msk.msra.mxu1 %vm7612_vm3, %v6808_v9  ;;  %v6886_v8 = vpack.c.bf16 %v2680_v1, %v2679_v0  ;;  %v6841_v9 = vpack.c.bf16 %v2666_v3, %v2665_v2  ;;  %v2738_v0 = vld [vmem:[%s7588_s28 + $0x708] sm:$0xff]  ;;  %v2723_v1 = vld [vmem:[%s7588_s28 + $0x690] sm:$0xff]  ;;  %v2724_v2 = vld [vmem:[%s7588_s28 + $0x698] sm:$0xff] }
 0xc7d   : > { %6765 = vmatprep.subr.msk.bf16.mxu0 %vm7612_vm3, %v6763_v48  ;;  %6813 = vmatprep.subr.msk.bf16.mxu1 %vm7612_vm3, %v6811_v49  ;;  %v6889_v48 = vpack.c.bf16 %v2698_v6, %v2697_v4  ;;  %v2649_v49 = vld [vmem:[%s7588_s28 + $0x440] sm:$0xff]  ;;  %v2755_v3 = vld [vmem:[%s7588_s28 + $0x790] sm:$0xff]  ;;  %v2756_v4 = vld [vmem:[%s7588_s28 + $0x798] sm:$0xff] }
 0xc7e   : > { %v6844_v18 = vpack.c.bf16 %v2650_v10, %v2649_v49  ;;  %v2708_v49 = vld [vmem:[%s7588_s28 + $0x618] sm:$0xff]  ;;  %v2739_v10 = vld [vmem:[%s7588_s28 + $0x710] sm:$0xff] }
 0xc84   : > { %6768 = vmatpush3.bf16.xpose.msk.msra.mxu0 %vm7612_vm3, %v6766_v19  ;;  %6816 = vmatpush3.bf16.xpose.msk.msra.mxu1 %vm7612_vm3, %v6814_v20  ;;  %v6892_v19 = vpack.c.bf16 %v2682_v12, %v2681_v11  ;;  %v6847_v20 = vpack.c.bf16 %v2668_v14, %v2667_v13  ;;  %v2740_v11 = vld [vmem:[%s7588_s28 + $0x718] sm:$0xff]  ;;  %v2725_v12 = vld [vmem:[%s7588_s28 + $0x6a0] sm:$0xff]  ;;  %v2726_v13 = vld [vmem:[%s7588_s28 + $0x6a8] sm:$0xff] }
 0xc85   : > { %6819 = vmatprep.subr.msk.bf16.mxu0 %vm7612_vm3, %v6817_v21  ;;  %6867 = vmatprep.subr.msk.bf16.mxu1 %vm7612_vm3, %v6865_v22  ;;  %v6895_v21 = vpack.c.bf16 %v2700_v17, %v2699_v16  ;;  %v2651_v22 = vld [vmem:[%s7588_s28 + $0x450] sm:$0xff]  ;;  %v2757_v14 = vld [vmem:[%s7588_s28 + $0x7a0] sm:$0xff]  ;;  %v2758_v16 = vld [vmem:[%s7588_s28 + $0x7a8] sm:$0xff] }
 0xc86   : > { %v6850_v30 = vpack.c.bf16 %v2652_v23, %v2651_v22  ;;  %v2710_v22 = vld [vmem:[%s7588_s28 + $0x628] sm:$0xff]  ;;  %v2741_v23 = vld [vmem:[%s7588_s28 + $0x720] sm:$0xff] }
 0xc8b   : > { %6037 = vmatmul.mubr.msk.f32.vlgmr.msra.gmra.mrb[16].mxu0 %vm1099_vm2, %v8081_v58  ;;  %6073 = vmatmul.mubr.msk.f32.vlgmr.msra.gmra.mrb[16].mxu1 %vm1099_vm2, %v8081_v58 }
 0xc8c   : > { %6038 = vmatprep.mubr.msk.f32.mxu0 %vm1099_vm2, %v8087_v63  ;;  %6074 = vmatprep.mubr.msk.f32.mxu1 %vm1099_vm2, %v8087_v63 }
 0xc8d   : > { %6822 = vmatpush3.bf16.xpose.msk.msra.mxu0 %vm7612_vm3, %v6820_v31  ;;  %6870 = vmatpush3.bf16.xpose.msk.msra.mxu1 %vm7612_vm3, %v6868_v35  ;;  %v6898_v31 = vpack.c.bf16 %v2684_v25, %v2683_v24  ;;  %v6853_v35 = vpack.c.bf16 %v2670_v27, %v2669_v26  ;;  %v2742_v24 = vld [vmem:[%s7588_s28 + $0x728] sm:$0xff]  ;;  %v2727_v25 = vld [vmem:[%s7588_s28 + $0x6b0] sm:$0xff]  ;;  %v2728_v26 = vld [vmem:[%s7588_s28 + $0x6b8] sm:$0xff] }
 0xc8e   : > { %6825 = vmatprep.subr.msk.bf16.mxu0 %vm7612_vm3, %v6823_v36  ;;  %6873 = vmatprep.subr.msk.bf16.mxu1 %vm7612_vm3, %v6871_v37  ;;  %v6901_v36 = vpack.c.bf16 %v2702_v29, %v2701_v28  ;;  %v2653_v37 = vld [vmem:[%s7588_s28 + $0x460] sm:$0xff]  ;;  %v2759_v27 = vld [vmem:[%s7588_s28 + $0x7b0] sm:$0xff]  ;;  %v2760_v28 = vld [vmem:[%s7588_s28 + $0x7b8] sm:$0xff] }
 0xc8f   : > { %6039 = vmatmul.mubr.msk.f32.gmra.mrb[18].mxu0 %vm1099_vm2, %v8087_v63  ;;  %6075 = vmatmul.mubr.msk.f32.gmra.mrb[18].mxu1 %vm1099_vm2, %v8087_v63  ;;  %v6856_v45 = vpack.c.bf16 %v2654_v38, %v2653_v37  ;;  %v2712_v37 = vld [vmem:[%s7588_s28 + $0x638] sm:$0xff]  ;;  %v2743_v38 = vld [vmem:[%s7588_s28 + $0x730] sm:$0xff] }
 0xc90   : > { %6108 = vmatprep.mubr.msk.f32.mxu0 %vm1099_vm2, %v8081_v58  ;;  %6144 = vmatprep.mubr.msk.f32.mxu1 %vm1099_vm2, %v8081_v58 }
 0xc95   : > { %6828 = vmatpush3.bf16.xpose.msk.msra.mxu0 %vm7612_vm3, %v6826_v46  ;;  %6876 = vmatpush3.bf16.xpose.msk.msra.mxu1 %vm7612_vm3, %v6874_v47  ;;  %v6904_v46 = vpack.c.bf16 %v2686_v40, %v2685_v39  ;;  %v6859_v47 = vpack.c.bf16 %v2672_v42, %v2671_v41  ;;  %v2744_v39 = vld [vmem:[%s7588_s28 + $0x738] sm:$0xff]  ;;  %v2729_v40 = vld [vmem:[%s7588_s28 + $0x6c0] sm:$0xff]  ;;  %v2730_v41 = vld [vmem:[%s7588_s28 + $0x6c8] sm:$0xff] }
 0xc96   : > { %6831 = vmatprep.subr.msk.bf16.mxu0 %vm7612_vm3, %v6829_v50  ;;  %6879 = vmatprep.subr.msk.bf16.mxu1 %vm7612_vm3, %v6877_v51  ;;  %v6907_v50 = vpack.c.bf16 %v2704_v44, %v2703_v43  ;;  %v2655_v51 = vld [vmem:[%s7588_s28 + $0x470] sm:$0xff]  ;;  %v2761_v42 = vld [vmem:[%s7588_s28 + $0x7c0] sm:$0xff]  ;;  %v2762_v43 = vld [vmem:[%s7588_s28 + $0x7c8] sm:$0xff] }
 0xc97   : > { %v6862_v55 = vpack.c.bf16 %v2656_v52, %v2655_v51  ;;  %v2714_v51 = vld [vmem:[%s7588_s28 + $0x648] sm:$0xff]  ;;  %v2745_v52 = vld [vmem:[%s7588_s28 + $0x740] sm:$0xff] }
 0xc9d   : > { %6834 = vmatpush3.bf16.xpose.msk.msra.mxu0 %vm7612_vm3, %v6832_v56  ;;  %6882 = vmatpush3.bf16.xpose.msk.msra.mxu1 %vm7612_vm3, %v6880_v57  ;;  %v6910_v56 = vpack.c.bf16 %v2688_v34, %v2687_v53  ;;  %v6913_v57 = vpack.c.bf16 %v2722_v54, %v2721_v33  ;;  %v2746_v53 = vld [vmem:[%s7588_s28 + $0x748] sm:$0xff]  ;;  %v2731_v34 = vld [vmem:[%s7588_s28 + $0x6d0] sm:$0xff]  ;;  %v2732_v33 = vld [vmem:[%s7588_s28 + $0x6d8] sm:$0xff] }
 0xc9e   : > { %6837 = vmatprep.subr.msk.bf16.mxu0 %vm7612_vm3, %v6835_v59  ;;  %6885 = vmatprep.subr.msk.bf16.mxu1 %vm7612_vm3, %v6883_v60  ;;  %v6961_v59 = vpack.c.bf16 %v2754_v32, %v2753_v15  ;;  %v2705_v60 = vld [vmem:[%s7588_s28 + $0x600] sm:$0xff]  ;;  %v2763_v54 = vld [vmem:[%s7588_s28 + $0x7d0] sm:$0xff]  ;;  %v2764_v15 = vld [vmem:[%s7588_s28 + $0x7d8] sm:$0xff] }
 0xc9f   : > { %v6916_v6 = vpack.c.bf16 %v2706_v61, %v2705_v60  ;;  %v2716_v60 = vld [vmem:[%s7588_s28 + $0x658] sm:$0xff]  ;;  %v2747_v61 = vld [vmem:[%s7588_s28 + $0x750] sm:$0xff] }
 0xca5   : > { %6840 = vmatpush3.bf16.xpose.msk.msra.mxu0 %vm7612_vm3, %v6838_v7  ;;  %6888 = vmatpush3.bf16.xpose.msk.msra.mxu1 %vm7612_vm3, %v6886_v8  ;;  %v6964_v7 = vpack.c.bf16 %v2738_v0, %v2737_v62  ;;  %v6919_v8 = vpack.c.bf16 %v2724_v2, %v2723_v1  ;;  %v2748_v62 = vld [vmem:[%s7588_s28 + $0x758] sm:$0xff]  ;;  %v2733_v0 = vld [vmem:[%s7588_s28 + $0x6e0] sm:$0xff]  ;;  %v2734_v1 = vld [vmem:[%s7588_s28 + $0x6e8] sm:$0xff] }
 0xca6   : > { %6843 = vmatprep.subr.msk.bf16.mxu0 %vm7612_vm3, %v6841_v9  ;;  %6891 = vmatprep.subr.msk.bf16.mxu1 %vm7612_vm3, %v6889_v48  ;;  %v6967_v9 = vpack.c.bf16 %v2756_v4, %v2755_v3  ;;  %v2707_v48 = vld [vmem:[%s7588_s28 + $0x610] sm:$0xff]  ;;  %v2765_v2 = vld [vmem:[%s7588_s28 + $0x7e0] sm:$0xff]  ;;  %v2766_v3 = vld [vmem:[%s7588_s28 + $0x7e8] sm:$0xff] }
 0xca7   : > { %v6922_v17 = vpack.c.bf16 %v2708_v49, %v2707_v48  ;;  %v2718_v48 = vld [vmem:[%s7588_s28 + $0x668] sm:$0xff]  ;;  %v2749_v49 = vld [vmem:[%s7588_s28 + $0x760] sm:$0xff] }
 0xcad   : > { %6846 = vmatpush3.bf16.xpose.msk.msra.mxu0 %vm7612_vm3, %v6844_v18  ;;  %6894 = vmatpush3.bf16.xpose.msk.msra.mxu1 %vm7612_vm3, %v6892_v19  ;;  %v6970_v18 = vpack.c.bf16 %v2740_v11, %v2739_v10  ;;  %v6925_v19 = vpack.c.bf16 %v2726_v13, %v2725_v12  ;;  %v2750_v10 = vld [vmem:[%s7588_s28 + $0x768] sm:$0xff]  ;;  %v2735_v11 = vld [vmem:[%s7588_s28 + $0x6f0] sm:$0xff]  ;;  %v2736_v12 = vld [vmem:[%s7588_s28 + $0x6f8] sm:$0xff] }
 0xcae   : > { %6849 = vmatprep.subr.msk.bf16.mxu0 %vm7612_vm3, %v6847_v20  ;;  %6897 = vmatprep.subr.msk.bf16.mxu1 %vm7612_vm3, %v6895_v21  ;;  %v6973_v20 = vpack.c.bf16 %v2758_v16, %v2757_v14  ;;  %v2709_v21 = vld [vmem:[%s7588_s28 + $0x620] sm:$0xff]  ;;  %v2767_v13 = vld [vmem:[%s7588_s28 + $0x7f0] sm:$0xff]  ;;  %v2768_v14 = vld [vmem:[%s7588_s28 + $0x7f8] sm:$0xff] }
 0xcaf   : > { %v6928_v29 = vpack.c.bf16 %v2710_v22, %v2709_v21  ;;  %v2720_v21 = vld [vmem:[%s7588_s28 + $0x678] sm:$0xff]  ;;  %v2751_v22 = vld [vmem:[%s7588_s28 + $0x770] sm:$0xff] }
 0xcb5   : > { %6852 = vmatpush3.bf16.xpose.msk.msra.mxu0 %vm7612_vm3, %v6850_v30  ;;  %6900 = vmatpush3.bf16.xpose.msk.msra.mxu1 %vm7612_vm3, %v6898_v31  ;;  %v6976_v30 = vpack.c.bf16 %v2742_v24, %v2741_v23  ;;  %v6931_v31 = vpack.c.bf16 %v2728_v26, %v2727_v25  ;;  %v2752_v23 = vld [vmem:[%s7588_s28 + $0x778] sm:$0xff]  ;;  %v4276_v24 = vld [vmem:[%s8873_s22 + $0x8] sm:$0xff] }
 0xcb6   : > { %6855 = vmatprep.subr.msk.bf16.mxu0 %vm7612_vm3, %v6853_v35  ;;  %6903 = vmatprep.subr.msk.bf16.mxu1 %vm7612_vm3, %v6901_v36  ;;  %v6979_v35 = vpack.c.bf16 %v2760_v28, %v2759_v27  ;;  %v2711_v36 = vld [vmem:[%s7588_s28 + $0x630] sm:$0xff]  ;;  %v4292_v25 = vld [vmem:[%s8873_s22 + $0x88] sm:$0xff]  ;;  %v4278_v26 = vld [vmem:[%s8873_s22 + $0x18] sm:$0xff] }
 0xcb7   : > { %v6934_v44 = vpack.c.bf16 %v2712_v37, %v2711_v36  ;;  %v4294_v27 = vld [vmem:[%s8873_s22 + $0x98] sm:$0xff]  ;;  %v4291_v36 = vld [vmem:[%s8873_s22 + $0x80] sm:$0xff]  ;;  %v4277_v37 = vld [vmem:[%s8873_s22 + $0x10] sm:$0xff] }
 0xcbd   : > { %6858 = vmatpush3.bf16.xpose.msk.msra.mxu0 %vm7612_vm3, %v6856_v45  ;;  %6906 = vmatpush3.bf16.xpose.msk.msra.mxu1 %vm7612_vm3, %v6904_v46  ;;  %v6982_v45 = vpack.c.bf16 %v2744_v39, %v2743_v38  ;;  %v6937_v46 = vpack.c.bf16 %v2730_v41, %v2729_v40  ;;  %v4293_v38 = vld [vmem:[%s8873_s22 + $0x90] sm:$0xff]  ;;  %v4308_v39 = vld [vmem:[%s8873_s22 + $0x108] sm:$0xff]  ;;  %v4310_v41 = vld [vmem:[%s8873_s22 + $0x118] sm:$0xff] }
 0xcbe   : > { %6861 = vmatprep.subr.msk.bf16.mxu0 %vm7612_vm3, %v6859_v47  ;;  %6909 = vmatprep.subr.msk.bf16.mxu1 %vm7612_vm3, %v6907_v50  ;;  %v6985_v47 = vpack.c.bf16 %v2762_v43, %v2761_v42  ;;  %v2713_v50 = vld [vmem:[%s7588_s28 + $0x640] sm:$0xff]  ;;  %v4324_v40 = vld [vmem:[%s8873_s22 + $0x188] sm:$0xff]  ;;  %v4326_v42 = vld [vmem:[%s8873_s22 + $0x198] sm:$0xff] }
 0xcbf   : > { %v6940_v32 = vpack.c.bf16 %v2714_v51, %v2713_v50  ;;  %v4323_v50 = vld [vmem:[%s8873_s22 + $0x180] sm:$0xff]  ;;  %v4309_v51 = vld [vmem:[%s8873_s22 + $0x110] sm:$0xff] }
 0xcc5   : > { %6864 = vmatpush3.bf16.xpose.msk.msra.mxu0 %vm7612_vm3, %v6862_v55  ;;  %6912 = vmatpush3.bf16.xpose.msk.msra.mxu1 %vm7612_vm3, %v6910_v56  ;;  %v6988_v55 = vpack.c.bf16 %v2746_v53, %v2745_v52  ;;  %v6943_v56 = vpack.c.bf16 %v2732_v33, %v2731_v34  ;;  %v4325_v52 = vld [vmem:[%s8873_s22 + $0x190] sm:$0xff]  ;;  %v4340_v53 = vld [vmem:[%s8873_s22 + $0x208] sm:$0xff]  ;;  %v2773_v34 = vlaneseq }
 0xcc6   : > { %6915 = vmatprep.subr.msk.bf16.mxu0 %vm7612_vm3, %v6913_v57  ;;  %6963 = vmatprep.subr.msk.bf16.mxu1 %vm7612_vm3, %v6961_v59  ;;  %v6991_v57 = vpack.c.bf16 %v2764_v15, %v2763_v54  ;;  %v2715_v59 = vld [vmem:[%s7588_s28 + $0x650] sm:$0xff]  ;;  %v4356_v33 = vld [vmem:[%s8873_s22 + $0x288] sm:$0xff]  ;;  %v4342_v54 = vld [vmem:[%s8873_s22 + $0x218] sm:$0xff] }
 0xcc7   : > { %v6946_v4 = vpack.c.bf16 %v2716_v60, %v2715_v59  ;;  %v4358_v15 = vld [vmem:[%s8873_s22 + $0x298] sm:$0xff]  ;;  %v8537_v59 = vshrl.u32 %v2773_v34, 7  ;;  %v4339_v60 = vld [vmem:[%s8873_s22 + $0x200] sm:$0xff] }
 0xccc   : > { %6109 = vmatmul.mubr.msk.f32.vlgmr.msra.gmra.mrb[20].mxu0 %vm1099_vm2, %v8081_v58  ;;  %6145 = vmatmul.mubr.msk.f32.vlgmr.msra.gmra.mrb[20].mxu1 %vm1099_vm2, %v8081_v58 }
 0xccd   : > { %6110 = vmatprep.mubr.msk.f32.mxu0 %vm1099_vm2, %v8087_v63  ;;  %6146 = vmatprep.mubr.msk.f32.mxu1 %vm1099_vm2, %v8087_v63 }
 0xcce   : > { %6918 = vmatpush3.bf16.xpose.msk.msra.mxu0 %vm7612_vm3, %v6916_v6  ;;  %6966 = vmatpush3.bf16.xpose.msk.msra.mxu1 %vm7612_vm3, %v6964_v7  ;;  %v6994_v6 = vpack.c.bf16 %v2748_v62, %v2747_v61  ;;  %v6949_v7 = vpack.c.bf16 %v2734_v1, %v2733_v0  ;;  %v4355_v61 = vld [vmem:[%s8873_s22 + $0x280] sm:$0xff]  ;;  %v4341_v62 = vld [vmem:[%s8873_s22 + $0x210] sm:$0xff] }
 0xccf   : > { %6921 = vmatprep.subr.msk.bf16.mxu0 %vm7612_vm3, %v6919_v8  ;;  %6969 = vmatprep.subr.msk.bf16.mxu1 %vm7612_vm3, %v6967_v9  ;;  %v6997_v8 = vpack.c.bf16 %v2766_v3, %v2765_v2  ;;  %v2717_v9 = vld [vmem:[%s7588_s28 + $0x660] sm:$0xff]  ;;  %v4357_v0 = vld [vmem:[%s8873_s22 + $0x290] sm:$0xff]  ;;  %v2779_v2 = vsub.s32 1, %v8537_v59  ;;  %v2787_v3 = vsub.s32 3, %v8537_v59 }
 0xcd0   : > { %6111 = vmatmul.mubr.msk.f32.gmra.mrb[22].mxu0 %vm1099_vm2, %v8087_v63  ;;  %6147 = vmatmul.mubr.msk.f32.gmra.mrb[22].mxu1 %vm1099_vm2, %v8087_v63  ;;  %v6952_v16 = vpack.c.bf16 %v2718_v48, %v2717_v9  ;;  %v8544_v1 = vld [vmem:[%s7594_s27] sm:$0xff]  ;;  %v7019_v9 = vpack.c.bf16 %v4355_v61, %v4339_v60  ;;  %v7035_v48 = vpack.c.bf16 %v4357_v0, %v4341_v62 }
 0xcd1   : > { %6180 = vmatprep.mubr.msk.f32.mxu0 %vm1099_vm2, %v8081_v58  ;;  %6216 = vmatprep.mubr.msk.f32.mxu1 %vm1099_vm2, %v8081_v58 }
 0xcd6   : > { %6924 = vmatpush3.bf16.xpose.msk.msra.mxu0 %vm7612_vm3, %v6922_v17  ;;  %6972 = vmatpush3.bf16.xpose.msk.msra.mxu1 %vm7612_vm3, %v6970_v18  ;;  %v7000_v17 = vpack.c.bf16 %v2750_v10, %v2749_v49  ;;  %v6955_v18 = vpack.c.bf16 %v2736_v12, %v2735_v11  ;;  %v2780_v49 = vrot.slane %v8544_v1, %v2779_v2 }
 0xcd7   : > { %6927 = vmatprep.subr.msk.bf16.mxu0 %vm7612_vm3, %v6925_v19  ;;  %6975 = vmatprep.subr.msk.bf16.mxu1 %vm7612_vm3, %v6973_v20  ;;  %v7003_v19 = vpack.c.bf16 %v2768_v14, %v2767_v13  ;;  %v2719_v20 = vld [vmem:[%s7588_s28 + $0x670] sm:$0xff]  ;;  %v2788_v10 = vrot.slane %v8544_v1, %v2787_v3 }
 0xcd8   : > { %v6958_v28 = vpack.c.bf16 %v2720_v21, %v2719_v20  ;;  %v4387_v20 = vld [vmem:[%s8873_s22 + $0x380] sm:$0xff]  ;;  %v2783_v21 = vsub.s32 2, %v8537_v59 }
 0xcde   : > { %6930 = vmatpush3.bf16.xpose.msk.msra.mxu0 %vm7612_vm3, %v6928_v29  ;;  %6978 = vmatpush3.bf16.xpose.msk.msra.mxu1 %vm7612_vm3, %v6976_v30  ;;  %v7006_v29 = vpack.c.bf16 %v2752_v23, %v2751_v22  ;;  %v7009_v30 = vpack.c.bf16 %v4292_v25, %v4276_v24  ;;  %v4373_v24 = vld [vmem:[%s8873_s22 + $0x310] sm:$0xff] }
 0xcdf   : > { %6933 = vmatprep.subr.msk.bf16.mxu0 %vm7612_vm3, %v6931_v31  ;;  %6981 = vmatprep.subr.msk.bf16.mxu1 %vm7612_vm3, %v6979_v35  ;;  %v7025_v31 = vpack.c.bf16 %v4294_v27, %v4278_v26  ;;  %v4275_v35 = vld [vmem:[%s8873_s22] sm:$0xff]  ;;  %v4389_v25 = vld [vmem:[%s8873_s22 + $0x390] sm:$0xff]  ;;  %v4280_v26 = vld [vmem:[%s8873_s22 + $0x28] sm:$0xff] }
 0xce0   : > { %v7011_v43 = vpack.c.bf16 %v4291_v36, %v4275_v35  ;;  %v4296_v27 = vld [vmem:[%s8873_s22 + $0xa8] sm:$0xff] }
 0xce6   : > { %6936 = vmatpush3.bf16.xpose.msk.msra.mxu0 %vm7612_vm3, %v6934_v44  ;;  %6984 = vmatpush3.bf16.xpose.msk.msra.mxu1 %vm7612_vm3, %v6982_v45  ;;  %v7027_v44 = vpack.c.bf16 %v4293_v38, %v4277_v37  ;;  %v7013_v45 = vpack.c.bf16 %v4324_v40, %v4308_v39 }
 0xce7   : > { %6939 = vmatprep.subr.msk.bf16.mxu0 %vm7612_vm3, %v6937_v46  ;;  %6987 = vmatprep.subr.msk.bf16.mxu1 %vm7612_vm3, %v6985_v47  ;;  %v7029_v46 = vpack.c.bf16 %v4326_v42, %v4310_v41  ;;  %v4307_v47 = vld [vmem:[%s8873_s22 + $0x100] sm:$0xff]  ;;  %v7039_v41 = vpack.c.bf16 %v4389_v25, %v4373_v24  ;;  %v2784_v42 = vrot.slane %v8544_v1, %v2783_v21  ;;  %v4345_v25 = vld [vmem:[%s8873_s22 + $0x230] sm:$0xff] }
 0xce8   : > { %v4359_v24 = vld [vmem:[%s8873_s22 + $0x2a0] sm:$0xff] }
 0xcee   : > { %6942 = vmatpush3.bf16.xpose.msk.msra.mxu0 %vm7612_vm3, %v6940_v32  ;;  %6990 = vmatpush3.bf16.xpose.msk.msra.mxu1 %vm7612_vm3, %v6988_v55  ;;  %v7015_v32 = vpack.c.bf16 %v4323_v50, %v4307_v47  ;;  %v7031_v55 = vpack.c.bf16 %v4325_v52, %v4309_v51  ;;  %v4295_v50 = vld [vmem:[%s8873_s22 + $0xa0] sm:$0xff]  ;;  %v4281_v51 = vld [vmem:[%s8873_s22 + $0x30] sm:$0xff] }
 0xcef   : > { %6945 = vmatprep.subr.msk.bf16.mxu0 %vm7612_vm3, %v6943_v56  ;;  %6993 = vmatprep.subr.msk.bf16.mxu1 %vm7612_vm3, %v6991_v57  ;;  %v7017_v56 = vpack.c.bf16 %v4356_v33, %v4340_v53  ;;  %v7033_v57 = vpack.c.bf16 %v4358_v15, %v4342_v54  ;;  %v4297_v52 = vld [vmem:[%s8873_s22 + $0xb0] sm:$0xff]  ;;  %v4312_v33 = vld [vmem:[%s8873_s22 + $0x128] sm:$0xff]  ;;  %v4314_v15 = vld [vmem:[%s8873_s22 + $0x138] sm:$0xff] }
 0xcf0   : > { %v4328_v54 = vld [vmem:[%s8873_s22 + $0x1a8] sm:$0xff] }
 0xcf6   : > { %6948 = vmatpush3.bf16.xpose.msk.msra.mxu0 %vm7612_vm3, %v6946_v4  ;;  %6996 = vmatpush3.bf16.xpose.msk.msra.mxu1 %vm7612_vm3, %v6994_v6  ;;  %v4372_v4 = vld [vmem:[%s8873_s22 + $0x308] sm:$0xff] }
 0xcf7   : > { %6951 = vmatprep.subr.msk.bf16.mxu0 %vm7612_vm3, %v6949_v7  ;;  %6999 = vmatprep.subr.msk.bf16.mxu1 %vm7612_vm3, %v6997_v8  ;;  %v4388_v6 = vld [vmem:[%s8873_s22 + $0x388] sm:$0xff]  ;;  %v4374_v7 = vld [vmem:[%s8873_s22 + $0x318] sm:$0xff] }
 0xcf8   : > { %v4390_v8 = vld [vmem:[%s8873_s22 + $0x398] sm:$0xff]  ;;  %v7021_v11 = vpack.c.bf16 %v4388_v6, %v4372_v4  ;;  %v7045_v6 = vpack.c.bf16 %v4328_v54, %v4312_v33  ;;  %v2803_v33 = vsub.s32 7, %v8537_v59 }
 0xcf9   : > { %v7037_v12 = vpack.c.bf16 %v4390_v8, %v4374_v7 }
 0xcfe   : > { %6954 = vmatpush3.bf16.xpose.msk.msra.mxu0 %vm7612_vm3, %v6952_v16  ;;  %7002 = vmatpush3.bf16.xpose.msk.msra.mxu1 %vm7612_vm3, %v7000_v17  ;;  %v2775_v16 = vsub.s32 0, %v8537_v59 }
 0xcff   : > { %6957 = vmatprep.subr.msk.bf16.mxu0 %vm7612_vm3, %v6955_v18  ;;  %7005 = vmatprep.subr.msk.bf16.mxu1 %vm7612_vm3, %v7003_v19  ;;  %v4371_v19 = vld [vmem:[%s8873_s22 + $0x300] sm:$0xff] }
 0xd00   : > { %v2776_v37 = vrot.slane %v8544_v1, %v2775_v16  ;;  %v7023_v40 = vpack.c.bf16 %v4387_v20, %v4371_v19 }
 0xd06   : > { %6960 = vmatpush3.bf16.xpose.msk.msra.mxu0 %vm7612_vm3, %v6958_v28  ;;  %7008 = vmatpush3.bf16.xpose.msk.msra.mxu1 %vm7612_vm3, %v7006_v29  ;;  %v4282_v28 = vld [vmem:[%s8873_s22 + $0x38] sm:$0xff] }
 0xd07   : > { %7010 = vmatprep.subr.bf16.mxu0 %v7009_v30  ;;  %7026 = vmatprep.subr.bf16.mxu1 %v7025_v31  ;;  %v4298_v29 = vld [vmem:[%s8873_s22 + $0xb8] sm:$0xff] }
 0xd0d   : > { %6181 = vmatmul.mubr.msk.f32.vlgmr.msra.gmra.mrb[24].mxu0 %vm1099_vm2, %v8081_v58  ;;  %6217 = vmatmul.mubr.msk.f32.vlgmr.msra.gmra.mrb[24].mxu1 %vm1099_vm2, %v8081_v58 }
 0xd0e   : > { %6182 = vmatprep.mubr.msk.f32.mxu0 %vm1099_vm2, %v8087_v63  ;;  %6218 = vmatprep.mubr.msk.f32.mxu1 %vm1099_vm2, %v8087_v63 }
 0xd0f   : > { %7012 = vmatpush1.bf16.xpose.msra.mxu0 %v7011_v43  ;;  %7028 = vmatpush1.bf16.xpose.msra.mxu1 %v7027_v44  ;;  %v7041_v43 = vpack.c.bf16 %v4296_v27, %v4280_v26  ;;  %v7057_v44 = vpack.c.bf16 %v4298_v29, %v4282_v28  ;;  %v4361_v26 = vld [vmem:[%s8873_s22 + $0x2b0] sm:$0xff]  ;;  %v4376_v27 = vld [vmem:[%s8873_s22 + $0x328] sm:$0xff]  ;;  %v4378_v29 = vld [vmem:[%s8873_s22 + $0x338] sm:$0xff] }
 0xd10   : > { %7014 = vmatprep.subr.bf16.mxu0 %v7013_v45  ;;  %7030 = vmatprep.subr.bf16.mxu1 %v7029_v46  ;;  %v4279_v45 = vld [vmem:[%s8873_s22 + $0x20] sm:$0xff]  ;;  %v4392_v28 = vld [vmem:[%s8873_s22 + $0x3a8] sm:$0xff] }
 0xd11   : > { %6183 = vmatmul.mubr.msk.f32.gmra.mrb[26].mxu0 %vm1099_vm2, %v8087_v63  ;;  %6219 = vmatmul.mubr.msk.f32.gmra.mrb[26].mxu1 %vm1099_vm2, %v8087_v63 }
 0xd17   : > { %7016 = vmatpush1.bf16.xpose.msra.mxu0 %v7015_v32  ;;  %7032 = vmatpush1.bf16.xpose.msra.mxu1 %v7031_v55  ;;  %v4330_v32 = vld [vmem:[%s8873_s22 + $0x1b8] sm:$0xff]  ;;  %v7043_v55 = vpack.c.bf16 %v4295_v50, %v4279_v45 }
 0xd18   : > { %7018 = vmatprep.subr.bf16.mxu0 %v7017_v56  ;;  %7034 = vmatprep.subr.bf16.mxu1 %v7033_v57  ;;  %v7059_v56 = vpack.c.bf16 %v4297_v52, %v4281_v51  ;;  %v7061_v7 = vpack.c.bf16 %v4330_v32, %v4314_v15  ;;  %v4302_v45 = vld [vmem:[%s8873_s22 + $0xd8] sm:$0xff]  ;;  %v2791_v52 = vsub.s32 4, %v8537_v59 }
 0xd1a   : > { %v2792_v54 = vrot.slane %v8544_v1, %v2791_v52 }
 0xd1e   : > { %v3693_v13 = vpop.f32.mrb[12].mxu0  ;;  %v3770_v14 = vpop.f32.mrb[12].mxu1 }
 0xd1f   : > { %7020 = vmatpush1.bf16.xpose.msra.mxu0 %v7019_v9  ;;  %7036 = vmatpush1.bf16.xpose.msra.mxu1 %v7035_v48  ;;  %v3695_v17 = vpop.f32.mrb[13].mxu0  ;;  %v3772_v18 = vpop.f32.mrb[13].mxu1  ;;  %v3694_v46 = vadd.f32 %v3693_v13, %v2776_v37  ;;  %v3771_v47 = vadd.f32 %v3770_v14, %v2784_v42  ;;  %v4311_v48 = vld [vmem:[%s8873_s22 + $0x120] sm:$0xff]  ;;  %v4360_v13 = vld [vmem:[%s8873_s22 + $0x2a8] sm:$0xff]  ;;  %v4346_v14 = vld [vmem:[%s8873_s22 + $0x238] sm:$0xff] }
 0xd20   : > { %v3696_v22 = vadd.f32 %v3695_v17, %v2780_v49  ;;  %v3773_v23 = vadd.f32 %v3772_v18, %v2788_v10  ;;  %7022 = vmatprep.subr.bf16.mxu0 %v7021_v11  ;;  %7038 = vmatprep.subr.bf16.mxu1 %v7037_v12  ;;  %v4329_v11 = vld [vmem:[%s8873_s22 + $0x1b0] sm:$0xff]  ;;  %v4344_v12 = vld [vmem:[%s8873_s22 + $0x228] sm:$0xff]  ;;  %v4362_v17 = vld [vmem:[%s8873_s22 + $0x2b8] sm:$0xff] }
 0xd21   : > { %v4243_v57 = vmax.f32 %v3694_v46, 0.0  ;;  %v4245_v60 = vmax.f32 %v3771_v47, 0.0  ;;  %v7049_v20 = vpack.c.bf16 %v4360_v13, %v4344_v12 }
 0xd22   : > { %v4244_v30 = vmax.f32 %v3696_v22, 0.0  ;;  %v4246_v31 = vmax.f32 %v3773_v23, 0.0  ;;  %v3699_v35 = vpop.f32.mrb[14].mxu0  ;;  %v3776_v36 = vpop.f32.mrb[14].mxu1  ;;  %v7065_v22 = vpack.c.bf16 %v4362_v17, %v4346_v14  ;;  %v4343_v23 = vld [vmem:[%s8873_s22 + $0x220] sm:$0xff] }
 0xd23   : > { %v3701_v38 = vpop.f32.mrb[15].mxu0  ;;  %v3778_v39 = vpop.f32.mrb[15].mxu1  ;;  %v3700_v61 = vadd.f32 %v3699_v35, %v2776_v37  ;;  %v3777_v62 = vadd.f32 %v3776_v36, %v2784_v42  ;;  %v7067_v35 = vpack.c.bf16 %v4361_v26, %v4345_v25  ;;  %v7053_v36 = vpack.c.bf16 %v4392_v28, %v4376_v27  ;;  %v4284_v42 = vld [vmem:[%s8873_s22 + $0x48] sm:$0xff] }
 0xd24   : > { %4474 = vmatprep.mubr.f32.mxu0 %v4244_v30  ;;  %4549 = vmatprep.mubr.f32.mxu1 %v4246_v31  ;;  %v3702_v53 = vadd.f32 %v3701_v38, %v2780_v49  ;;  %v3779_v34 = vadd.f32 %v3778_v39, %v2788_v10  ;;  %v4327_v49 = vld [vmem:[%s8873_s22 + $0x1a0] sm:$0xff]  ;;  %v4313_v10 = vld [vmem:[%s8873_s22 + $0x130] sm:$0xff]  ;;  %v4394_v30 = vld [vmem:[%s8873_s22 + $0x3b8] sm:$0xff]  ;;  %v7051_v31 = vpack.c.bf16 %v4359_v24, %v4343_v23 }
 0xd25   : > { %v4259_v8 = vmax.f32 %v3700_v61, 0.0  ;;  %v4261_v9 = vmax.f32 %v3777_v62, 0.0  ;;  %v7047_v18 = vpack.c.bf16 %v4327_v49, %v4311_v48  ;;  %v7063_v19 = vpack.c.bf16 %v4329_v11, %v4313_v10  ;;  %v4375_v38 = vld [vmem:[%s8873_s22 + $0x320] sm:$0xff]  ;;  %v4285_v62 = vld [vmem:[%s8873_s22 + $0x50] sm:$0xff]  ;;  %v4332_v48 = vld [vmem:[%s8873_s22 + $0x1c8] sm:$0xff] }
 0xd26   : > { %v4260_v0 = vmax.f32 %v3702_v53, 0.0  ;;  %v4262_v4 = vmax.f32 %v3779_v34, 0.0  ;;  %v7069_v37 = vpack.c.bf16 %v4394_v30, %v4378_v29  ;;  %v4391_v39 = vld [vmem:[%s8873_s22 + $0x3a0] sm:$0xff]  ;;  %v2799_v53 = vsub.s32 6, %v8537_v59  ;;  %v4318_v49 = vld [vmem:[%s8873_s22 + $0x158] sm:$0xff] }
 0xd27   : > { %7024 = vmatpush1.bf16.xpose.msra.mxu0 %v7023_v40  ;;  %7040 = vmatpush1.bf16.xpose.msra.mxu1 %v7039_v41  ;;  %v4377_v40 = vld [vmem:[%s8873_s22 + $0x330] sm:$0xff]  ;;  %v7055_v46 = vpack.c.bf16 %v4391_v39, %v4375_v38  ;;  %v2795_v34 = vsub.s32 5, %v8537_v59  ;;  %v4334_v10 = vld [vmem:[%s8873_s22 + $0x1d8] sm:$0xff] }
 0xd28   : > { %7042 = vmatprep.subr.bf16.mxu0 %v7041_v43  ;;  %7058 = vmatprep.subr.bf16.mxu1 %v7057_v44  ;;  %v4393_v41 = vld [vmem:[%s8873_s22 + $0x3b0] sm:$0xff]  ;;  %v4300_v43 = vld [vmem:[%s8873_s22 + $0xc8] sm:$0xff]  ;;  %v4286_v44 = vld [vmem:[%s8873_s22 + $0x58] sm:$0xff]  ;;  %v2800_v15 = vrot.slane %v8544_v1, %v2799_v53 }
 0xd29   : > { %v7071_v47 = vpack.c.bf16 %v4393_v41, %v4377_v40  ;;  %v7073_v50 = vpack.c.bf16 %v4300_v43, %v4284_v42  ;;  %v7089_v51 = vpack.c.bf16 %v4302_v45, %v4286_v44  ;;  %v2796_v32 = vrot.slane %v8544_v1, %v2795_v34  ;;  %v4317_v40 = vld [vmem:[%s8873_s22 + $0x150] sm:$0xff]  ;;  %v4348_v42 = vld [vmem:[%s8873_s22 + $0x248] sm:$0xff]  ;;  %v4350_v44 = vld [vmem:[%s8873_s22 + $0x258] sm:$0xff] }
 0xd2a   : > { %v4333_v41 = vld [vmem:[%s8873_s22 + $0x1d0] sm:$0xff]  ;;  %v4364_v43 = vld [vmem:[%s8873_s22 + $0x2c8] sm:$0xff]  ;;  %v4366_v45 = vld [vmem:[%s8873_s22 + $0x2d8] sm:$0xff] }
 0xd2e   : > { %4475 = vmatmul.mubr.f32.vlgmr.msra.gmra.mrb[28].mxu0 %v4243_v57  ;;  %4550 = vmatmul.mubr.f32.vlgmr.msra.gmra.mrb[28].mxu1 %v4245_v60  ;;  %v4299_v57 = vld [vmem:[%s8873_s22 + $0xc0] sm:$0xff] }
 0xd2f   : > { %4479 = vmatprep.mubr.f32.mxu0 %v4260_v0  ;;  %4554 = vmatprep.mubr.f32.mxu1 %v4262_v4  ;;  %v4301_v0 = vld [vmem:[%s8873_s22 + $0xd0] sm:$0xff]  ;;  %v4316_v4 = vld [vmem:[%s8873_s22 + $0x148] sm:$0xff] }
 0xd30   : > { %7044 = vmatpush1.bf16.xpose.msra.mxu0 %v7043_v55  ;;  %7060 = vmatpush1.bf16.xpose.msra.mxu1 %v7059_v56  ;;  %v2804_v55 = vrot.slane %v8544_v1, %v2803_v33  ;;  %v4283_v56 = vld [vmem:[%s8873_s22 + $0x40] sm:$0xff]  ;;  %v7091_v14 = vpack.c.bf16 %v4301_v0, %v4285_v62 }
 0xd31   : > { %7046 = vmatprep.subr.bf16.mxu0 %v7045_v6  ;;  %7062 = vmatprep.subr.bf16.mxu1 %v7061_v7  ;;  %v7075_v13 = vpack.c.bf16 %v4299_v57, %v4283_v56  ;;  %v4380_v56 = vld [vmem:[%s8873_s22 + $0x348] sm:$0xff] }
 0xd32   : > { %4480 = vmatmul.mubr.f32.gmra.mrb[30].mxu0 %v4259_v8  ;;  %4555 = vmatmul.mubr.f32.gmra.mrb[30].mxu1 %v4261_v9  ;;  %v4396_v57 = vld [vmem:[%s8873_s22 + $0x3c8] sm:$0xff] }
 0xd38   : > { %7048 = vmatpush1.bf16.xpose.msra.mxu0 %v7047_v18  ;;  %7064 = vmatpush1.bf16.xpose.msra.mxu1 %v7063_v19 }
 0xd39   : > { %7050 = vmatprep.subr.bf16.mxu0 %v7049_v20  ;;  %7066 = vmatprep.subr.bf16.mxu1 %v7065_v22  ;;  %v7077_v20 = vpack.c.bf16 %v4332_v48, %v4316_v4  ;;  %v7093_v22 = vpack.c.bf16 %v4334_v10, %v4318_v49  ;;  %v7085_v4 = vpack.c.bf16 %v4396_v57, %v4380_v56  ;;  %v4397_v48 = vld [vmem:[%s8873_s22 + $0x3d0] sm:$0xff]  ;;  %v4288_v49 = vld [vmem:[%s8873_s22 + $0x68] sm:$0xff] }
 0xd3a   : > { %v4304_v10 = vld [vmem:[%s8873_s22 + $0xe8] sm:$0xff] }
 0xd40   : > { %7052 = vmatpush1.bf16.xpose.msra.mxu0 %v7051_v31  ;;  %7068 = vmatpush1.bf16.xpose.msra.mxu1 %v7067_v35 }
 0xd41   : > { %7054 = vmatprep.subr.bf16.mxu0 %v7053_v36  ;;  %7070 = vmatprep.subr.bf16.mxu1 %v7069_v37  ;;  %v4315_v36 = vld [vmem:[%s8873_s22 + $0x140] sm:$0xff] }
 0xd42   : > { %v4331_v37 = vld [vmem:[%s8873_s22 + $0x1c0] sm:$0xff] }
 0xd48   : > { %7056 = vmatpush1.bf16.xpose.msra.mxu0 %v7055_v46  ;;  %7072 = vmatpush1.bf16.xpose.msra.mxu1 %v7071_v47  ;;  %v7079_v46 = vpack.c.bf16 %v4331_v37, %v4315_v36  ;;  %v7095_v47 = vpack.c.bf16 %v4333_v41, %v4317_v40  ;;  %v4336_v36 = vld [vmem:[%s8873_s22 + $0x1e8] sm:$0xff]  ;;  %v4322_v37 = vld [vmem:[%s8873_s22 + $0x178] sm:$0xff] }
 0xd49   : > { %7074 = vmatprep.subr.bf16.mxu0 %v7073_v50  ;;  %7090 = vmatprep.subr.bf16.mxu1 %v7089_v51  ;;  %v7081_v50 = vpack.c.bf16 %v4364_v43, %v4348_v42  ;;  %v7097_v51 = vpack.c.bf16 %v4366_v45, %v4350_v44 }
 0xd5e   : > { %v3847_v60 = vpop.f32.mrb[16].mxu0  ;;  %v3924_v61 = vpop.f32.mrb[16].mxu1 }
 0xd5f   : > { %v3848_v6 = vadd.f32 %v3847_v60, %v2792_v54  ;;  %v3925_v7 = vadd.f32 %v3924_v61, %v2800_v15  ;;  %v3849_v8 = vpop.f32.mrb[17].mxu0  ;;  %v3926_v9 = vpop.f32.mrb[17].mxu1  ;;  %v4382_v60 = vld [vmem:[%s8873_s22 + $0x358] sm:$0xff] }
 0xd60   : > { %v3850_v11 = vadd.f32 %v3849_v8, %v2796_v32  ;;  %v3927_v12 = vadd.f32 %v3926_v9, %v2804_v55  ;;  %v4398_v61 = vld [vmem:[%s8873_s22 + $0x3d8] sm:$0xff]  ;;  %v4395_v8 = vld [vmem:[%s8873_s22 + $0x3c0] sm:$0xff]  ;;  %v4381_v9 = vld [vmem:[%s8873_s22 + $0x350] sm:$0xff] }
 0xd61   : > { %v4247_v23 = vmax.f32 %v3848_v6, 0.0  ;;  %v4249_v24 = vmax.f32 %v3925_v7, 0.0  ;;  %v7101_v6 = vpack.c.bf16 %v4398_v61, %v4382_v60  ;;  %v4379_v7 = vld [vmem:[%s8873_s22 + $0x340] sm:$0xff] }
 0xd62   : > { %v4248_v17 = vmax.f32 %v3850_v11, 0.0  ;;  %v4250_v1 = vmax.f32 %v3927_v12, 0.0  ;;  %v3853_v18 = vpop.f32.mrb[18].mxu0  ;;  %v3930_v19 = vpop.f32.mrb[18].mxu1  ;;  %v4290_v11 = vld [vmem:[%s8873_s22 + $0x78] sm:$0xff]  ;;  %v4319_v61 = vld [vmem:[%s8873_s22 + $0x160] sm:$0xff] }
 0xd63   : > { %v3854_v25 = vadd.f32 %v3853_v18, %v2792_v54  ;;  %v3931_v26 = vadd.f32 %v3930_v19, %v2800_v15  ;;  %v3855_v27 = vpop.f32.mrb[19].mxu0  ;;  %v3932_v28 = vpop.f32.mrb[19].mxu1  ;;  %v4347_v54 = vld [vmem:[%s8873_s22 + $0x240] sm:$0xff]  ;;  %v4306_v12 = vld [vmem:[%s8873_s22 + $0xf8] sm:$0xff]  ;;  %v8655_v18 = vld [vmem:[%s7594_s27 + $0x8] sm:$0xff] }
 0xd64   : > { %v3856_v29 = vadd.f32 %v3855_v27, %v2796_v32  ;;  %v3933_v30 = vadd.f32 %v3932_v28, %v2804_v55  ;;  %4624 = vmatprep.mubr.f32.mxu0 %v4248_v17  ;;  %4699 = vmatprep.mubr.f32.mxu1 %v4250_v1  ;;  %v4363_v15 = vld [vmem:[%s8873_s22 + $0x2c0] sm:$0xff]  ;;  %v4349_v32 = vld [vmem:[%s8873_s22 + $0x250] sm:$0xff]  ;;  %v7105_v17 = vpack.c.bf16 %v4304_v10, %v4288_v49  ;;  %v4370_v49 = vld [vmem:[%s8873_s22 + $0x2f8] sm:$0xff] }
 0xd65   : > { %4625 = vmatmul.mubr.f32.vlgmr.msra.gmra.mrb[32].mxu0 %v4247_v23  ;;  %4700 = vmatmul.mubr.f32.vlgmr.msra.gmra.mrb[32].mxu1 %v4249_v24  ;;  %v4263_v38 = vmax.f32 %v3854_v25, 0.0  ;;  %v4265_v39 = vmax.f32 %v3931_v26, 0.0  ;;  %v4365_v55 = vld [vmem:[%s8873_s22 + $0x2d0] sm:$0xff]  ;;  %v7083_v62 = vpack.c.bf16 %v4363_v15, %v4347_v54  ;;  %v7121_v1 = vpack.c.bf16 %v4306_v12, %v4290_v11  ;;  %v4287_v24 = vld [vmem:[%s8873_s22 + $0x60] sm:$0xff] }
 0xd66   : > { %v4264_v31 = vmax.f32 %v3856_v29, 0.0  ;;  %v4266_v35 = vmax.f32 %v3933_v30, 0.0  ;;  %7076 = vmatpush1.bf16.xpose.msra.mxu0 %v7075_v13  ;;  %7092 = vmatpush1.bf16.xpose.msra.mxu1 %v7091_v14  ;;  %v7099_v0 = vpack.c.bf16 %v4365_v55, %v4349_v32  ;;  %v7087_v13 = vpack.c.bf16 %v4395_v8, %v4379_v7  ;;  %v4303_v25 = vld [vmem:[%s8873_s22 + $0xe0] sm:$0xff]  ;;  %v4289_v28 = vld [vmem:[%s8873_s22 + $0x70] sm:$0xff]  ;;  %v4320_v29 = vld [vmem:[%s8873_s22 + $0x168] sm:$0xff] }
 0xd67   : > { %7078 = vmatprep.subr.bf16.mxu0 %v7077_v20  ;;  %7094 = vmatprep.subr.bf16.mxu1 %v7093_v22  ;;  %v7103_v14 = vpack.c.bf16 %v4397_v48, %v4381_v9  ;;  %v2808_v19 = vrot.slane %v8655_v18, %v2775_v16  ;;  %v2816_v20 = vrot.slane %v8655_v18, %v2783_v21  ;;  %v4305_v16 = vld [vmem:[%s8873_s22 + $0xf0] sm:$0xff]  ;;  %v4352_v8 = vld [vmem:[%s8873_s22 + $0x268] sm:$0xff]  ;;  %v4354_v48 = vld [vmem:[%s8873_s22 + $0x278] sm:$0xff] }
 0xd68   : > { %4629 = vmatprep.mubr.f32.mxu0 %v4264_v31  ;;  %4704 = vmatprep.mubr.f32.mxu1 %v4266_v35  ;;  %v2812_v22 = vrot.slane %v8655_v18, %v2779_v2  ;;  %v2820_v23 = vrot.slane %v8655_v18, %v2787_v3  ;;  %v7107_v40 = vpack.c.bf16 %v4303_v25, %v4287_v24  ;;  %v4337_v7 = vld [vmem:[%s8873_s22 + $0x1f0] sm:$0xff]  ;;  %v4368_v9 = vld [vmem:[%s8873_s22 + $0x2e8] sm:$0xff]  ;;  %v4402_v24 = vld [vmem:[%s8873_s22 + $0x3f8] sm:$0xff] }
 0xd69   : > { %4630 = vmatmul.mubr.f32.gmra.mrb[34].mxu0 %v4263_v38  ;;  %4705 = vmatmul.mubr.f32.gmra.mrb[34].mxu1 %v4265_v39  ;;  %v4338_v38 = vld [vmem:[%s8873_s22 + $0x1f8] sm:$0xff]  ;;  %v7123_v41 = vpack.c.bf16 %v4305_v16, %v4289_v28  ;;  %v7109_v45 = vpack.c.bf16 %v4336_v36, %v4320_v29  ;;  %v7113_v12 = vpack.c.bf16 %v4368_v9, %v4352_v8  ;;  %v4383_v16 = vld [vmem:[%s8873_s22 + $0x360] sm:$0xff] }
 0xd6a   : > { %v4399_v29 = vld [vmem:[%s8873_s22 + $0x3e0] sm:$0xff]  ;;  %v2824_v36 = vrot.slane %v8655_v18, %v2791_v52 }
 0xd6e   : > { %7080 = vmatpush1.bf16.xpose.msra.mxu0 %v7079_v46  ;;  %7096 = vmatpush1.bf16.xpose.msra.mxu1 %v7095_v47  ;;  %v7125_v46 = vpack.c.bf16 %v4338_v38, %v4322_v37  ;;  %v2832_v37 = vrot.slane %v8655_v18, %v2799_v53  ;;  %v2828_v38 = vrot.slane %v8655_v18, %v2795_v34 }
 0xd6f   : > { %7082 = vmatprep.subr.bf16.mxu0 %v7081_v50  ;;  %7098 = vmatprep.subr.bf16.mxu1 %v7097_v51 }
 0xd76   : > { %7084 = vmatpush1.bf16.xpose.msra.mxu0 %v7083_v62  ;;  %7100 = vmatpush1.bf16.xpose.msra.mxu1 %v7099_v0  ;;  %v4335_v62 = vld [vmem:[%s8873_s22 + $0x1e0] sm:$0xff] }
 0xd77   : > { %7086 = vmatprep.subr.bf16.mxu0 %v7085_v4  ;;  %7102 = vmatprep.subr.bf16.mxu1 %v7101_v6  ;;  %v4321_v6 = vld [vmem:[%s8873_s22 + $0x170] sm:$0xff]  ;;  %v7111_v10 = vpack.c.bf16 %v4335_v62, %v4319_v61 }
 0xd78   : > { %v7127_v11 = vpack.c.bf16 %v4337_v7, %v4321_v6 }
 0xd7e   : > { %7088 = vmatpush1.bf16.xpose.msra.mxu0 %v7087_v13  ;;  %7104 = vmatpush1.bf16.xpose.msra.mxu1 %v7103_v14  ;;  %v7129_v13 = vpack.c.bf16 %v4370_v49, %v4354_v48  ;;  %v4351_v14 = vld [vmem:[%s8873_s22 + $0x260] sm:$0xff] }
 0xd7f   : > { %7106 = vmatprep.subr.bf16.mxu0 %v7105_v17  ;;  %7122 = vmatprep.subr.bf16.mxu1 %v7121_v1  ;;  %v4367_v17 = vld [vmem:[%s8873_s22 + $0x2e0] sm:$0xff]  ;;  %v4353_v1 = vld [vmem:[%s8873_s22 + $0x270] sm:$0xff] }
 0xd80   : > { %v7115_v25 = vpack.c.bf16 %v4367_v17, %v4351_v14 }
 0xd9f   : > { %v4001_v26 = vpop.f32.mrb[20].mxu0  ;;  %v4078_v27 = vpop.f32.mrb[20].mxu1 }
 0xda0   : > { %v4002_v30 = vadd.f32 %v4001_v26, %v2808_v19  ;;  %v4079_v31 = vadd.f32 %v4078_v27, %v2816_v20  ;;  %v4003_v35 = vpop.f32.mrb[21].mxu0  ;;  %v4080_v21 = vpop.f32.mrb[21].mxu1 }
 0xda1   : > { %v4004_v39 = vadd.f32 %v4003_v35, %v2812_v22  ;;  %v4081_v2 = vadd.f32 %v4080_v21, %v2820_v23  ;;  %v7119_v35 = vpack.c.bf16 %v4399_v29, %v4383_v16 }
 0xda2   : > { %v4251_v47 = vmax.f32 %v4002_v30, 0.0  ;;  %v4253_v50 = vmax.f32 %v4079_v31, 0.0  ;;  %v4385_v30 = vld [vmem:[%s8873_s22 + $0x370] sm:$0xff] }
 0xda3   : > { %v4252_v42 = vmax.f32 %v4004_v39, 0.0  ;;  %v4254_v3 = vmax.f32 %v4081_v2, 0.0  ;;  %v4007_v43 = vpop.f32.mrb[22].mxu0  ;;  %v4084_v44 = vpop.f32.mrb[22].mxu1  ;;  %v4401_v31 = vld [vmem:[%s8873_s22 + $0x3f0] sm:$0xff]  ;;  %v2836_v39 = vrot.slane %v8655_v18, %v2803_v33 }
 0xda4   : > { %v4008_v51 = vadd.f32 %v4007_v43, %v2808_v19  ;;  %v4085_v54 = vadd.f32 %v4084_v44, %v2816_v20  ;;  %v4009_v15 = vpop.f32.mrb[23].mxu0  ;;  %v4086_v32 = vpop.f32.mrb[23].mxu1  ;;  %v4369_v19 = vld [vmem:[%s8873_s22 + $0x2f0] sm:$0xff]  ;;  %v4384_v20 = vld [vmem:[%s8873_s22 + $0x368] sm:$0xff]  ;;  %v7135_v21 = vpack.c.bf16 %v4401_v31, %v4385_v30 }
 0xda5   : > { %v4010_v55 = vadd.f32 %v4009_v15, %v2812_v22  ;;  %v4087_v56 = vadd.f32 %v4086_v32, %v2820_v23  ;;  %4774 = vmatprep.mubr.f32.mxu0 %v4252_v42  ;;  %4849 = vmatprep.mubr.f32.mxu1 %v4254_v3  ;;  %v4400_v22 = vld [vmem:[%s8873_s22 + $0x3e8] sm:$0xff]  ;;  %v4386_v23 = vld [vmem:[%s8873_s22 + $0x378] sm:$0xff]  ;;  %v7131_v26 = vpack.c.bf16 %v4369_v19, %v4353_v1  ;;  %s8879_s22 = sld [smem:[#allocation28_spill]] (!%p5822_p8) }
 0xda6   : > { %4775 = vmatmul.mubr.f32.vlgmr.msra.gmra.mrb[36].mxu0 %v4251_v47  ;;  %4850 = vmatmul.mubr.f32.vlgmr.msra.gmra.mrb[36].mxu1 %v4253_v50  ;;  %v4267_v0 = vmax.f32 %v4008_v51, 0.0  ;;  %v4269_v4 = vmax.f32 %v4085_v54, 0.0  ;;  %v7117_v27 = vpack.c.bf16 %v4400_v22, %v4384_v20  ;;  %v7133_v28 = vpack.c.bf16 %v4402_v24, %v4386_v23 }
 0xda7   : > { %v4268_v57 = vmax.f32 %v4010_v55, 0.0  ;;  %v4270_v60 = vmax.f32 %v4087_v56, 0.0  ;;  %7108 = vmatpush1.bf16.xpose.msra.mxu0 %v7107_v40  ;;  %7124 = vmatpush1.bf16.xpose.msra.mxu1 %v7123_v41 }
 0xda8   : > { %7110 = vmatprep.subr.bf16.mxu0 %v7109_v45  ;;  %7126 = vmatprep.subr.bf16.mxu1 %v7125_v46 }
 0xda9   : > { %4779 = vmatprep.mubr.f32.mxu0 %v4268_v57  ;;  %4854 = vmatprep.mubr.f32.mxu1 %v4270_v60  ;;  %v5819_v60 = vld [vmem:[%s1073_s20] ss:$0 sm:$0xff] }
 0xdaa   : > { %4780 = vmatmul.mubr.f32.gmra.mrb[38].mxu0 %v4267_v0  ;;  %4855 = vmatmul.mubr.f32.gmra.mrb[38].mxu1 %v4269_v4 }
 0xdaf   : > { %7112 = vmatpush1.bf16.xpose.msra.mxu0 %v7111_v10  ;;  %7128 = vmatpush1.bf16.xpose.msra.mxu1 %v7127_v11 }
 0xdb0   : > { %7114 = vmatprep.subr.bf16.mxu0 %v7113_v12  ;;  %7130 = vmatprep.subr.bf16.mxu1 %v7129_v13 }
 0xdb7   : > { %7116 = vmatpush1.bf16.xpose.msra.mxu0 %v7115_v25  ;;  %7132 = vmatpush1.bf16.xpose.msra.mxu1 %v7131_v26 }
 0xdb8   : > { %7118 = vmatprep.subr.bf16.mxu0 %v7117_v27  ;;  %7134 = vmatprep.subr.bf16.mxu1 %v7133_v28 }
 0xdbf   : > { %7120 = vmatpush1.bf16.xpose.msra.mxu0 %v7119_v35  ;;  %7136 = vmatpush1.bf16.xpose.msra.mxu1 %v7135_v21 }
 0xde0   : > { %v4155_v2 = vpop.f32.mrb[24].mxu0  ;;  %v4232_v40 = vpop.f32.mrb[24].mxu1 }
 0xde1   : > { %v4156_v41 = vadd.f32 %v4155_v2, %v2824_v36  ;;  %v4233_v42 = vadd.f32 %v4232_v40, %v2832_v37  ;;  %v4157_v3 = vpop.f32.mrb[25].mxu0  ;;  %v4234_v43 = vpop.f32.mrb[25].mxu1 }
 0xde2   : > { %v4158_v44 = vadd.f32 %v4157_v3, %v2828_v38  ;;  %v4235_v52 = vadd.f32 %v4234_v43, %v2836_v39 }
 0xde3   : > { %v4255_v50 = vmax.f32 %v4156_v41, 0.0  ;;  %v4257_v51 = vmax.f32 %v4233_v42, 0.0 }
 0xde4   : > { %v4256_v45 = vmax.f32 %v4158_v44, 0.0  ;;  %v4258_v46 = vmax.f32 %v4235_v52, 0.0  ;;  %v4161_v47 = vpop.f32.mrb[26].mxu0  ;;  %v4238_v53 = vpop.f32.mrb[26].mxu1 }
 0xde5   : > { %v4162_v54 = vadd.f32 %v4161_v47, %v2824_v36  ;;  %v4239_v34 = vadd.f32 %v4238_v53, %v2832_v37  ;;  %v4163_v15 = vpop.f32.mrb[27].mxu0  ;;  %v4240_v59 = vpop.f32.mrb[27].mxu1 }
 0xde6   : > { %v4164_v33 = vadd.f32 %v4163_v15, %v2828_v38  ;;  %v4241_v18 = vadd.f32 %v4240_v59, %v2836_v39  ;;  %4924 = vmatprep.mubr.f32.mxu0 %v4256_v45  ;;  %4999 = vmatprep.mubr.f32.mxu1 %v4258_v46 }
 0xde7   : > { %4925 = vmatmul.mubr.f32.vlgmr.msra.gmra.mrb[40].mxu0 %v4255_v50  ;;  %5000 = vmatmul.mubr.f32.vlgmr.msra.gmra.mrb[40].mxu1 %v4257_v51  ;;  %v4271_v56 = vmax.f32 %v4162_v54, 0.0  ;;  %v4273_v57 = vmax.f32 %v4239_v34, 0.0 }
 0xde8   : > { %v4272_v32 = vmax.f32 %v4164_v33, 0.0  ;;  %v4274_v55 = vmax.f32 %v4241_v18, 0.0 }
 0xdea   : > { %4929 = vmatprep.mubr.f32.mxu0 %v4272_v32  ;;  %5004 = vmatprep.mubr.f32.mxu1 %v4274_v55 }
 0xdeb   : > { %4930 = vmatmul.mubr.f32.gmra.mrb[42].mxu0 %v4271_v56  ;;  %5005 = vmatmul.mubr.f32.gmra.mrb[42].mxu1 %v4273_v57 }
 0xe01   : > { %v4476_v61 = vpop.f32.mrb[28].mxu0  ;;  %v4551_v62 = vpop.f32.mrb[28].mxu1 }
 0xe02   : > { %v4477_v0 = vadd.f32 %v5819_v60, %v4476_v61  ;;  %v4478_v4 = vpop.f32.mrb[29].mxu0  ;;  %v4553_v6 = vpop.f32.mrb[29].mxu1 }
 0xe04   : > { %v4552_v7 = vadd.f32 %v4551_v62, %v4477_v0 }
 0xe05   : > { %v4481_v8 = vpop.f32.mrb[30].mxu0  ;;  %v4556_v9 = vpop.f32.mrb[30].mxu1 }
 0xe06   : > { %v4482_v48 = vadd.f32 %v5819_v60, %v4481_v8  ;;  %v4483_v49 = vpop.f32.mrb[31].mxu0  ;;  %v4558_v10 = vpop.f32.mrb[31].mxu1  ;;  %v5820_v8 = vld [vmem:[%s8875_s4] ss:$0 sm:$0xff]  ;;  %s8881_s4 = sld [smem:[#allocation31_spill]] (!%p5822_p8) }
 0xe08   : > { %v4557_v11 = vadd.f32 %v4556_v9, %v4482_v48  ;;  %v5821_v48 = vld [vmem:[%s8876_s26] ss:$0 sm:$0xff]  ;;  %s8882_s26 = sld [smem:[#allocation32_spill]] (!%p5822_p8) }
 0xe38   : > { %v4626_v12 = vpop.f32.mrb[32].mxu0  ;;  %v4701_v13 = vpop.f32.mrb[32].mxu1 }
 0xe39   : > { %v4627_v14 = vadd.f32 %v4626_v12, %v4552_v7  ;;  %v4628_v17 = vpop.f32.mrb[33].mxu0  ;;  %v4703_v1 = vpop.f32.mrb[33].mxu1 }
 0xe3b   : > { %v4702_v19 = vadd.f32 %v4701_v13, %v4627_v14 }
 0xe3c   : > { %v4631_v20 = vpop.f32.mrb[34].mxu0  ;;  %v4706_v22 = vpop.f32.mrb[34].mxu1 }
 0xe3d   : > { %v4632_v23 = vadd.f32 %v4631_v20, %v4557_v11  ;;  %v4633_v24 = vpop.f32.mrb[35].mxu0  ;;  %v4708_v25 = vpop.f32.mrb[35].mxu1 }
 0xe3f   : > { %v4707_v26 = vadd.f32 %v4706_v22, %v4632_v23 }
 0xe79   : > { %v4776_v27 = vpop.f32.mrb[36].mxu0  ;;  %v4851_v28 = vpop.f32.mrb[36].mxu1 }
 0xe7a   : > { %v4777_v16 = vadd.f32 %v4776_v27, %v4702_v19  ;;  %v4778_v29 = vpop.f32.mrb[37].mxu0  ;;  %v4853_v30 = vpop.f32.mrb[37].mxu1 }
 0xe7b   : > { %v5106_v29 = vld [vmem:[%s8878_s25] sm:$0xff] (!%p5822_p8)  ;;  %v5107_v30 = vld [vmem:[%s8878_s25 + $0x8] sm:$0xf] (!%p5822_p8) }
 0xe7c   : > { %v4852_v31 = vadd.f32 %v4851_v28, %v4777_v16 }
 0xe7d   : > { %v4781_v35 = vpop.f32.mrb[38].mxu0  ;;  %v4856_v21 = vpop.f32.mrb[38].mxu1 }
 0xe7e   : > { %v4782_v36 = vadd.f32 %v4781_v35, %v4707_v26  ;;  %v4783_v37 = vpop.f32.mrb[39].mxu0  ;;  %v4858_v38 = vpop.f32.mrb[39].mxu1 }
 0xe80   : > { %v4857_v39 = vadd.f32 %v4856_v21, %v4782_v36 }
 0xeba   : > { %v4926_v2 = vpop.f32.mrb[40].mxu0  ;;  %v5001_v40 = vpop.f32.mrb[40].mxu1 }
 0xebb   : > { %v4927_v41 = vadd.f32 %v4926_v2, %v4852_v31  ;;  %v4928_v42 = vpop.f32.mrb[41].mxu0  ;;  %v5003_v3 = vpop.f32.mrb[41].mxu1  ;;  %v7137_v31 = vpack.c.bf16 (!%p5822_p8), %v5107_v30, %v5106_v29 }
 0xebc   : > { %v5824_v42 = vld [vmem:[%s8880_s0] ss:$0 sm:$0xff] (!%p5822_p8) }
 0xebd   : > { %v5002_v43 = vadd.f32 %v5001_v40, %v4927_v41  ;;  %7139 = vmatprep.subr.msk.bf16.mxu0 (!%p5822_p8), %vm7612_vm3, %v7137_v31  ;;  %v5823_v40 = vld [vmem:[%s8879_s22] ss:$0 sm:$0xff] (!%p5822_p8) }
 0xebe   : > { %v4931_v44 = vpop.f32.mrb[42].mxu0  ;;  %v5006_v52 = vpop.f32.mrb[42].mxu1  ;;  %7142 = vmatpush3.bf16.xpose.msk.msra.mxu0 (!%p5822_p8), %vm7612_vm3, %v7137_v31 }
 0xebf   : > { %v4932_v45 = vadd.f32 %v4931_v44, %v4857_v39  ;;  %v4933_v46 = vpop.f32.mrb[43].mxu0  ;;  %v5008_v47 = vpop.f32.mrb[43].mxu1  ;;  %v5010_v53 = vadd.f32 %v5002_v43, %v8081_v58 }
 0xec0   : > { %v5825_v46 = vld [vmem:[%s8881_s4] ss:$0 sm:$0xff] (!%p5822_p8) }
 0xec1   : > { %v5007_v50 = vadd.f32 %v5006_v52, %v4932_v45  ;;  %v5014_v51 = vsel %vm1099_vm2, %v5010_v53, 0.0 }
 0xec2   : > { %5015 = vadd.xlane.f32.xlu0 %v5014_v51 }
 0xec3   : > { %v5011_v54 = vadd.f32 %v5007_v50, %v8087_v63 }
 0xec5   : > { %v5017_v34 = vsel %vm1758_vm9, %v5011_v54, 0.0 }
 0xec6   : > { %5018 = vadd.xlane.f32.xlu1 %v5017_v34 }
 0xf4f   : > { %v5016_v15 = vpop.xlane.xlu0 %5015 }
 0xf50   : > { %v5020_v59 = vmul.f32 0.015625, %v5016_v15 }
 0xf52   : > { %v5022_v33 = vsub.f32 %v5010_v53, %v5020_v59 }
 0xf53   : > { %v5019_v18 = vpop.xlane.xlu1 %5018 }
 0xf54   : > { %v5021_v32 = vmul.f32 0.015625, %v5019_v18  ;;  %v5024_v55 = vmul.f32 %v5022_v33, %v5022_v33 }
 0xf56   : > { %v5023_v56 = vsub.f32 %v5011_v54, %v5021_v32  ;;  %v5026_v57 = vsel %vm1099_vm2, %v5024_v55, 0.0 }
 0xf57   : > { %5027 = vadd.xlane.f32.xlu0 %v5026_v57 }
 0xf58   : > { %v5025_v58 = vmul.f32 %v5023_v56, %v5023_v56 }
 0xf5a   : > { %v5029_v60 = vsel %vm1758_vm9, %v5025_v58, 0.0 }
 0xf5b   : > { %5030 = vadd.xlane.f32.xlu1 %v5029_v60 }
 0xfe4   : > { %v5028_v63 = vpop.xlane.xlu0 %5027 }
 0xfe5   : > { %v5032_v61 = vmul.f32 0.015625, %v5028_v63 }
 0xfe7   : > { %v5034_v62 = vadd.f32 1e-05, %v5032_v61 }
 0xfe8   : > { %v5031_v0 = vpop.xlane.xlu1 %5030 }
 0xfe9   : > { %7210 = vrsqrt.f32 %v5034_v62  ;;  %v5033_v4 = vmul.f32 0.015625, %v5031_v0 }
 0xfeb   : > { %v5035_v6 = vadd.f32 1e-05, %v5033_v4 }
 0xfed   : > { %7212 = vrsqrt.f32 %v5035_v6 }
 0xff3   : > { %v7211_v7 = vpop.eup %7210 }
 0xff4   : > { %v5038_v9 = vmul.f32 %v7211_v7, %v5022_v33 }
 0xff6   : > { %v5046_v49 = vmul.f32 %v5820_v8, %v5038_v9 }
 0xff7   : > { %v7213_v10 = vpop.eup %7212 }
 0xff8   : > { %v5054_v11 = vadd.f32 %v5821_v48, %v5046_v49  ;;  %v5039_v12 = vmul.f32 %v7213_v10, %v5023_v56  ;;  %5061 = sbr.rel (%p5822_p8) target bundleno = 4623 (0x120f), region = 136 }
 0xffa   : > { %5056 = vst.msk [vmem:[#allocation2] sm:$0xff] %vm1099_vm2, %v5054_v11  ;;  %v5047_v13 = vmul.f32 %v5820_v8, %v5039_v12  ;;  %v5064_v17 = vsel (!%p5822_p8), %vm1099_vm2, %v5054_v11, 0.0 }
 0xffb   : > { %5065 = vadd.xlane.f32.xlu0 (!%p5822_p8), %v5064_v17 }
 0xffc   : > { %v5055_v14 = vadd.f32 %v5821_v48, %v5047_v13 }
 0xffe   : > { %5057 = vst.msk [vmem:[#allocation2 + $0x8] sm:$0x3f] %vm1758_vm9, %v5055_v14  ;;  %v5067_v1 = vsel (!%p5822_p8), %vm1758_vm9, %v5055_v14, 0.0 }
 0xfff   : > { %5068 = vadd.xlane.f32.xlu0 %v5067_v1 }
0x1088   : > { %v5066_v19 = vpop.xlane.xlu0 %5065 }
0x1089   : > { %v5070_v20 = vmul.f32 0.015625, %v5066_v19 }
0x108b   : > { %v5072_v22 = vsub.f32 %v5054_v11, %v5070_v20 }
0x108c   : > { %v5069_v23 = vpop.xlane.xlu0 %5068 }
0x108d   : > { %v5071_v24 = vmul.f32 0.015625, %v5069_v23  ;;  %v5074_v25 = vmul.f32 %v5072_v22, %v5072_v22 }
0x108f   : > { %v5073_v26 = vsub.f32 %v5055_v14, %v5071_v24  ;;  %v5076_v27 = vsel %vm1099_vm2, %v5074_v25, 0.0 }
0x1090   : > { %5077 = vadd.xlane.f32.xlu1 %v5076_v27 }
0x1091   : > { %v5075_v28 = vmul.f32 %v5073_v26, %v5073_v26 }
0x1093   : > { %v5079_v16 = vsel %vm1758_vm9, %v5075_v28, 0.0 }
0x1094   : > { %5080 = vadd.xlane.f32.xlu1 %v5079_v16 }
0x111d   : > { %v5078_v35 = vpop.xlane.xlu1 %5077 }
0x111e   : > { %v5082_v21 = vmul.f32 0.015625, %v5078_v35 }
0x1120   : > { %v5084_v36 = vadd.f32 1e-05, %v5082_v21 }
0x1121   : > { %v5081_v37 = vpop.xlane.xlu1 %5080 }
0x1122   : > { %7214 = vrsqrt.f32 %v5084_v36  ;;  %v5083_v38 = vmul.f32 0.015625, %v5081_v37 }
0x1124   : > { %v5085_v39 = vadd.f32 1e-05, %v5083_v38 }
0x1126   : > { %7216 = vrsqrt.f32 %v5085_v39 }
0x112c   : > { %v7215_v2 = vpop.eup %7214 }
0x112d   : > { %v5088_v41 = vmul.f32 %v7215_v2, %v5072_v22 }
0x112f   : > { %v5096_v5 = vmul.f32 %v5823_v40, %v5088_v41 }
0x1130   : > { %v7217_v3 = vpop.eup %7216 }
0x1131   : > { %v5089_v43 = vmul.f32 %v7217_v3, %v5073_v26  ;;  %v5104_v44 = vadd.f32 %v5824_v42, %v5096_v5 }
0x1133   : > { %v5097_v52 = vmul.f32 %v5823_v40, %v5089_v43  ;;  %6408 = vmatprep.mubr.msk.f32.mxu0 %vm1099_vm2, %v5104_v44 }
0x1135   : > { %v5105_v45 = vadd.f32 %v5824_v42, %v5097_v52 }
0x1137   : > { %6409 = vmatmul.mubr.msk.f32.vlgmr.msra.gmra.mrb[0].mxu0 %vm1099_vm2, %v5105_v45 }
0x120a   : > { %v6410_v47 = vpop.f32.mrb[0].mxu0 }
0x120b   : > { %v5199_v53 = vadd.f32 %v6410_v47, %v5825_v46  ;;  %v5193_v50 = vpop.f32.mrb[1].mxu0 }
0x120c   : > { %v5194_v51 = vadd.f32 %v5825_v46, %v5193_v50 }
0x120d   : > { %5205 = vst.msk [vmem:[%s8882_s26 + $0x8] sm:$0x3f] %vm5204_vm12, %v5199_v53 }
0x120e   : > { %5203 = vst.msk [vmem:[%s8882_s26] sm:$0xff] %vm5202_vm13, %v5194_v51 }
0x120f PF: > { %s8883_s28 = sld [smem:[#allocation9_spill]]  ;;  %s8884_s27 = sld [smem:[#allocation6_spill]] }
0x1210   : > { %s8885_s3 = sld [smem:[#allocation7_spill]]  ;;  %s8886_s7 = sld [smem:[#allocation10_spill]] }
0x1215   : > { %p36_p4 = scmp.ge.s32.totalorder %s8883_s28, 27  }
0x1217   :  { %38 = sbr.rel (!%p36_p4) target bundleno = 22 (0x16), region = 219 }
0x121e   :  { %5217 = vsyncpa [#allocation4], 1 }
0x121f   :  { %5219 = vsyncpa [#allocation4 + $0x1], 1 }

</bundles_post_ra>
